<compile_context>
chip_gen: v5e
topology: v5e:2x2
jax: 0.10.0
libtpu: 0.0.40
codegen_flags: <defaults>
</compile_context>

<pallas_src>
import functools

import jax
import jax.numpy as jnp
import numpy as np
from jax.experimental import pallas as pl
from jax.experimental.pallas import tpu as pltpu

_LANE = 128


def _round_up(x, m):
    return (x + m - 1) // m * m


def _pick_chunk(m_conv, target=256):
    """Split the flattened spatial axis into <= target-row chunks (static starts)."""
    if m_conv <= target:
        return m_conv, 1
    n_chunks = -(-m_conv // target)
    tm = min(_round_up(-(-m_conv // n_chunks), 8), m_conv)
    return tm, n_chunks


# ----------------------------------------------------------------------------
# Fused Bottleneck kernel.
# "Padded-flat" (PF) layout: the zero-padded image (1 top / 2 bottom pad rows,
# 1 left / 1 right pad col) flattened to (H+3)*(W+2) rows, so 3x3 tap (dy, dx)
# is the constant row shift dy*(W+2)+dx of one VMEM-resident block.
# ----------------------------------------------------------------------------
def _bottleneck_kernel(*refs, H, W, tm, n_chunks, add, res_from_x):
    if add and not res_from_x:
        x_ref, w1_ref, b1_ref, w2_ref, b2_ref, r_ref, o_ref, y1_ref = refs
    else:
        x_ref, w1_ref, b1_ref, w2_ref, b2_ref, o_ref, y1_ref = refs
        r_ref = None

    wp2 = W + 2
    m_conv = H * wp2                 # flat conv-output rows (2 junk cols per image row)
    j = pl.program_id(1)

    def conv_chunk(src_ref, w_ref, bias, q0):
        # 9 shifted-tap MXU matmuls accumulated into a local f32 value
        # (single store per chunk; no scratch round trips).
        acc = jnp.dot(src_ref[pl.ds(q0, tm), :], w_ref[0],
                      preferred_element_type=jnp.float32)
        for t in range(1, 9):        # static unroll over the 3x3 taps
            dy, dx = divmod(t, 3)
            acc += jnp.dot(src_ref[pl.ds(q0 + dy * wp2 + dx, tm), :], w_ref[t],
                           preferred_element_type=jnp.float32)
        y = acc + bias
        # SiLU: exp and reciprocal both live on the (otherwise idle) EUP slot.
        return y * pl.reciprocal(1.0 + jnp.exp(-y), approx=True)

    # ---- cv1: build the PF-layout intermediate once per image (j == 0) -----
    @pl.when(j == 0)
    def _():
        cmid = y1_ref.shape[-1]
        # Zero the PF padding regions so cv2 convolves over true zeros.
        y1_ref[pl.ds(0, wp2 + 1), :] = jnp.zeros((wp2 + 1, cmid), y1_ref.dtype)
        y1_ref[pl.ds((H + 1) * wp2 + 1, 2 * wp2 - 1), :] = jnp.zeros(
            (2 * wp2 - 1, cmid), y1_ref.dtype)
        for ci in range(n_chunks):                    # static chunk starts
            q0 = min(ci * tm, m_conv - tm)
            y = conv_chunk(x_ref, w1_ref, b1_ref[...], q0)
            # Zero-mask the two junk columns per flattened row: they land on the
            # left/right conv-padding columns of the PF layout cv2 reads.
            col = (q0 + jax.lax.broadcasted_iota(jnp.int32, (tm, 1), 0)) % wp2
            y = jnp.where(col < W, y, 0.0)
            y1_ref[pl.ds(q0 + wp2 + 1, tm), :] = y.astype(y1_ref.dtype)

    # ---- cv2 (+ fused residual add) -----------------------------------------
    for ci in range(n_chunks):
        q0 = min(ci * tm, m_conv - tm)
        y = conv_chunk(y1_ref, w2_ref, b2_ref[...], q0)
        if add:
            if res_from_x:
                # Residual = center tap of the already-resident x block
                # (valid because shortcut requires c1 == c2; single cout block).
                r = x_ref[pl.ds(q0 + wp2 + 1, tm), :]
            else:
                r = r_ref[pl.ds(q0 + wp2 + 1, tm), :]
            y = y + r.astype(jnp.float32)
        o_ref[pl.ds(q0, tm), :] = y.astype(o_ref.dtype)


# ----------------------------------------------------------------------------
# pallas_call wrapper
# ----------------------------------------------------------------------------
def bottleneck_pallas(x_pf, p1, p2, *, H, W, add, out_dtype=jnp.bfloat16):
    n, L, c1p = x_pf.shape
    wp2 = W + 2
    m_conv = H * wp2
    assert L == (H + 3) * wp2
    cmid = p1["w9"].shape[-1]
    cout = p2["w9"].shape[-1]
    assert p1["w9"].shape[1] == c1p and p2["w9"].shape[1] == cmid

    # 256-wide cout tiles feed the full 256-wide MXU on v6e/v7x; otherwise 128
    # (v5e MXUs are 128 wide, and <=128-channel layers only have one block).
    tco = 256 if cout % 256 == 0 else _LANE
    n_co = cout // tco
    tm, n_chunks = _pick_chunk(m_conv)

    res_from_x = add and n_co == 1
    if add:
        assert c1p == cout, "shortcut requires c1 == c2"

    inputs = [x_pf, p1["w9"], p1["b"], p2["w9"], p2["b"]]
    in_specs = [
        # whole PF image resident per batch element (reused by every cout block
        # and as the residual source):
        pl.BlockSpec((None, L, c1p), lambda i, j: (i, 0, 0)),
        # folded weights/bias: constant block index -> DMA'd once, then resident
        pl.BlockSpec((9, c1p, cmid), lambda i, j: (0, 0, 0)),
        pl.BlockSpec((1, cmid), lambda i, j: (0, 0)),
        pl.BlockSpec((9, cmid, tco), lambda i, j: (0, 0, j)),
        pl.BlockSpec((1, tco), lambda i, j: (0, j)),
    ]
    if add and not res_from_x:
        # TODO(synk): rare path (shortcut with >1 padded cout block): re-reads the
        # needed channel slice of x per block instead of a dynamic lane slice.
        inputs.append(x_pf)
        in_specs.append(pl.BlockSpec((None, L, tco), lambda i, j: (i, 0, j)))

    bf = 2
    vmem_need = (2 * L * c1p * bf + 2 * 9 * c1p * cmid * bf
                 + 2 * 9 * cmid * tco * bf + 2 * (cmid + tco) * 4
                 + 2 * m_conv * tco * jnp.dtype(out_dtype).itemsize
                 + L * cmid * bf)
    if add and not res_from_x:
        vmem_need += 2 * L * tco * bf
    # 48 MiB cap keeps headroom on v7x (64 MiB physical); v5e/v6e have 128 MiB.
    vmem_limit = int(min(max(2 * vmem_need, 16 << 20), 48 << 20))

    flops = 2 * n * m_conv * 9 * (c1p * cmid + cmid * cout)
    bytes_acc = (n * L * c1p * bf + 9 * c1p * cmid * bf + 9 * cmid * cout * bf
                 + (cmid + cout) * 4
                 + n * m_conv * cout * jnp.dtype(out_dtype).itemsize)
    if add and not res_from_x:
        bytes_acc += n * L * cout * bf

    kernel = functools.partial(_bottleneck_kernel, H=H, W=W, tm=tm,
                               n_chunks=n_chunks, add=add, res_from_x=res_from_x)

    return pl.pallas_call(
        kernel,
        out_shape=jax.ShapeDtypeStruct((n, m_conv, cout), out_dtype),
        grid=(n, n_co),
        in_specs=in_specs,
        out_specs=pl.BlockSpec((None, m_conv, tco), lambda i, j: (i, 0, j)),
        scratch_shapes=[pltpu.VMEM((L, cmid), jnp.bfloat16)],   # cv1 output, PF layout
        compiler_params=pltpu.CompilerParams(
            # batch axis "parallel" (megacore shards whole images); the cout axis
            # must stay "arbitrary": the cv1 scratch is built at j == 0 and reused.
            dimension_semantics=("parallel", "arbitrary"),
            vmem_limit_bytes=vmem_limit),
        cost_estimate=pl.CostEstimate(
            flops=int(flops),
            transcendentals=int(n * m_conv * (cmid + cout)),
            bytes_accessed=int(bytes_acc)),
    )(*inputs)


# ----------------------------------------------------------------------------
# Deterministic parameters: Conv2d weight + BatchNorm folded, channel-padded
# ----------------------------------------------------------------------------
def make_conv_params(key, cin, cout, k=3):
    assert k == 3, "Bottleneck default k=(3,3) only"
    # TODO(synk): grouped conv (g > 1) not implemented (Bottleneck default g=1).
    kw_, kg, kb, km, kv = jax.random.split(key, 5)
    w = jax.random.normal(kw_, (cout, cin, k, k), jnp.float32) / np.sqrt(cin * k * k)
    gamma = 1.0 + 0.1 * jax.random.normal(kg, (cout,), jnp.float32)
    beta = 0.1 * jax.random.normal(kb, (cout,), jnp.float32)
    mean = 0.1 * jax.random.normal(km, (cout,), jnp.float32)
    var = 0.5 + jnp.abs(jax.random.normal(kv, (cout,), jnp.float32))
    eps = 1e-3                                    # ultralytics BatchNorm2d(eps=0.001)
    scale = gamma / jnp.sqrt(var + eps)
    w_fold = (w * scale[:, None, None, None]).astype(jnp.bfloat16)   # bf16 master
    b_fold = beta - mean * scale                                     # f32

    cinp, coutp = _round_up(cin, _LANE), _round_up(cout, _LANE)
    w_hwio = jnp.transpose(w_fold, (2, 3, 1, 0))                     # (3,3,cin,cout)
    w9 = jnp.pad(w_hwio.reshape(9, cin, cout),
                 ((0, 0), (0, cinp - cin), (0, coutp - cout)))       # lane-padded
    b = jnp.pad(b_fold, (0, coutp - cout)).reshape(1, coutp)
    return {"w9": w9,                                   # (9, Cinp, Coutp) bf16
            "b": b,                                     # (1, Coutp) f32
            "w_hwio": w_hwio.astype(jnp.float32),       # reference (unpadded)
            "b_ref": b_fold}                            # reference (unpadded)


def init_bottleneck(key, c1, c2, e=0.5):
    c_ = max(int(c2 * e), 1)
    k1, k2 = jax.random.split(key)
    return {"cv1": make_conv_params(k1, c1, c_),
            "cv2": make_conv_params(k2, c_, c2)}


# ----------------------------------------------------------------------------
# Forward pass (mirrors Bottleneck.forward)
# ----------------------------------------------------------------------------
def bottleneck_forward(x_nchw, params, add):
    n, c1, h, w = x_nchw.shape
    c2 = params["cv2"]["w_hwio"].shape[-1]
    c1p = _round_up(c1, _LANE)
    wp2 = w + 2

    # NCHW -> NHWC, channel pad, bf16 cast and padded-flat layout in one pass.
    x = jnp.transpose(x_nchw, (0, 2, 3, 1)).astype(jnp.bfloat16)
    x_pf = jnp.pad(x, ((0, 0), (1, 2), (1, 1), (0, c1p - c1))).reshape(
        n, (h + 3) * wp2, c1p)

    out = bottleneck_pallas(x_pf, params["cv1"], params["cv2"],
                            H=h, W=w, add=add, out_dtype=jnp.bfloat16)
    # bf16 slice / transpose; upcast only at the very end.
    out = out.reshape(n, h, wp2, -1)[:, :, :w, :c2]
    return jnp.transpose(out, (0, 3, 1, 2)).astype(x_nchw.dtype)


# ----------------------------------------------------------------------------
# Pure-JAX reference (numerical sanity check)
# ----------------------------------------------------------------------------
def _conv_ref(x, p):
    y = jax.lax.conv_general_dilated(
        x, p["w_hwio"], (1, 1), [(1, 1), (1, 1)],
        dimension_numbers=("NHWC", "HWIO", "NHWC"))
    return jax.nn.silu(y + p["b_ref"].reshape(1, 1, 1, -1))


def bottleneck_ref(x_nchw, params, add):
    x = jnp.transpose(x_nchw, (0, 2, 3, 1)).astype(jnp.float32)
    y = _conv_ref(_conv_ref(x, params["cv1"]), params["cv2"])
    if add:
        y = y + x
    return jnp.transpose(y, (0, 3, 1, 2))


# ----------------------------------------------------------------------------
if __name__ == "__main__":
    key = jax.random.PRNGKey(0)
    kx, kp = jax.random.split(key)

    c1, c2, shortcut = 4, 4, True
    x = jax.random.normal(kx, (2, c1, 16, 16), jnp.float32)          # NCHW like PyTorch
    params = init_bottleneck(kp, c1, c2)
    add = shortcut and c1 == c2

    fwd = jax.jit(lambda inp: bottleneck_forward(inp, params, add))
    out = jax.block_until_ready(fwd(x))
    assert out.shape == (2, c2, 16, 16)

    ref = jax.block_until_ready(bottleneck_ref(x, params, add))
    np.testing.assert_allclose(np.asarray(out), np.asarray(ref), atol=5e-2, rtol=5e-2)

    print("KERNEL_OK")
</pallas_src>

<mosaic_0001>
module attributes {stable_mosaic.version = 11 : i64} {
  func.func @_bottleneck_kernel(%arg0: i32, %arg1: i32, %arg2: memref<1x342x128xbf16, #tpu.memory_space<vmem>>, %arg3: memref<9x128x128xbf16, #tpu.memory_space<vmem>>, %arg4: memref<1x128xf32, #tpu.memory_space<vmem>>, %arg5: memref<9x128x128xbf16, #tpu.memory_space<vmem>>, %arg6: memref<1x128xf32, #tpu.memory_space<vmem>>, %arg7: memref<1x288x128xbf16, #tpu.memory_space<vmem>>, %arg8: memref<342x128xbf16, #tpu.memory_space<vmem>>) attributes {dimension_semantics = [#tpu.dimension_semantics<parallel>, #tpu.dimension_semantics<arbitrary>], iteration_bounds = array<i64: 2, 1>, scalar_prefetch = 0 : i64, scratch_operands = 1 : i64, tpu.core_type = #tpu.core_type<tc>, window_params = [{transform_indices = @transform_0, window_bounds = array<i64: 1, 342, 128>}, {pipeline_mode = #tpu.pipeline_mode<synchronous>, transform_indices = @transform_1, window_bounds = array<i64: 9, 128, 128>}, {pipeline_mode = #tpu.pipeline_mode<synchronous>, transform_indices = @transform_2, window_bounds = array<i64: 1, 128>}, {transform_indices = @transform_3, window_bounds = array<i64: 9, 128, 128>}, {transform_indices = @transform_4, window_bounds = array<i64: 1, 128>}, {transform_indices = @transform_5, window_bounds = array<i64: 1, 288, 128>}]} {
    %c0_i32 = arith.constant 0 : i32
    %0 = arith.cmpi eq, %arg1, %c0_i32 : i32
    %1 = arith.extui %0 : i1 to i32
    %c0_i32_0 = arith.constant 0 : i32
    %2 = arith.cmpi ne, %1, %c0_i32_0 : i32
    scf.if %2 {
      %cst_104 = arith.constant 0.000000e+00 : bf16
      %127 = vector.broadcast %cst_104 : bf16 to vector<19x128xbf16>
      %c0_105 = arith.constant 0 : index
      %c0_106 = arith.constant 0 : index
      %128 = vector.load %arg8[%c0_105, %c0_106] : memref<342x128xbf16, #tpu.memory_space<vmem>>, vector<19x128xbf16>
      tpu.vector_store %arg8[%c0_105, %c0_106], %127 {strides = array<i32>} : memref<342x128xbf16, #tpu.memory_space<vmem>>, vector<19x128xbf16>,
      %cst_107 = arith.constant 0.000000e+00 : bf16
      %129 = vector.broadcast %cst_107 : bf16 to vector<35x128xbf16>
      %c307 = arith.constant 307 : index
      %c0_108 = arith.constant 0 : index
      %130 = vector.load %arg8[%c307, %c0_108] : memref<342x128xbf16, #tpu.memory_space<vmem>>, vector<35x128xbf16>
      tpu.vector_store %arg8[%c307, %c0_108], %129 {strides = array<i32>} : memref<342x128xbf16, #tpu.memory_space<vmem>>, vector<35x128xbf16>,
      %c0_109 = arith.constant 0 : index
      %c0_110 = arith.constant 0 : index
      %131 = vector.load %arg4[%c0_109, %c0_110] : memref<1x128xf32, #tpu.memory_space<vmem>>, vector<1x128xf32>
      %c0_111 = arith.constant 0 : index
      %c0_112 = arith.constant 0 : index
      %c0_113 = arith.constant 0 : index
      %132 = vector.load %arg2[%c0_111, %c0_112, %c0_113] : memref<1x342x128xbf16, #tpu.memory_space<vmem>>, vector<1x144x128xbf16>
      %133 = vector.shape_cast %132 : vector<1x144x128xbf16> to vector<144x128xbf16>
      %c0_114 = arith.constant 0 : index
      %c0_115 = arith.constant 0 : index
      %c0_116 = arith.constant 0 : index
      %134 = vector.load %arg3[%c0_114, %c0_115, %c0_116] : memref<9x128x128xbf16, #tpu.memory_space<vmem>>, vector<1x128x128xbf16>
      %135 = vector.shape_cast %134 : vector<1x128x128xbf16> to vector<128x128xbf16>
      %cst_117 = arith.constant dense<0.000000e+00> : vector<144x128xf32>
      %136 = tpu.matmul %133, %135, %cst_117 {dimension_numbers = #tpu.dot_dimension_numbers<[1], [0], [0], [1], [0, 0, 1, 1], [], []>} : vector<144x128xbf16>, vector<128x128xbf16>, vector<144x128xf32> -> vector<144x128xf32>
      %c0_118 = arith.constant 0 : index
      %c1_119 = arith.constant 1 : index
      %c0_120 = arith.constant 0 : index
      %137 = vector.load %arg2[%c0_118, %c1_119, %c0_120] : memref<1x342x128xbf16, #tpu.memory_space<vmem>>, vector<1x144x128xbf16>
      %138 = vector.shape_cast %137 : vector<1x144x128xbf16> to vector<144x128xbf16>
      %c1_121 = arith.constant 1 : index
      %c0_122 = arith.constant 0 : index
      %c0_123 = arith.constant 0 : index
      %139 = vector.load %arg3[%c1_121, %c0_122, %c0_123] : memref<9x128x128xbf16, #tpu.memory_space<vmem>>, vector<1x128x128xbf16>
      %140 = vector.shape_cast %139 : vector<1x128x128xbf16> to vector<128x128xbf16>
      %cst_124 = arith.constant dense<0.000000e+00> : vector<144x128xf32>
      %141 = tpu.matmul %138, %140, %cst_124 {dimension_numbers = #tpu.dot_dimension_numbers<[1], [0], [0], [1], [0, 0, 1, 1], [], []>} : vector<144x128xbf16>, vector<128x128xbf16>, vector<144x128xf32> -> vector<144x128xf32>
      %142 = arith.addf %136, %141 : vector<144x128xf32>
      %c0_125 = arith.constant 0 : index
      %c2_126 = arith.constant 2 : index
      %c0_127 = arith.constant 0 : index
      %143 = vector.load %arg2[%c0_125, %c2_126, %c0_127] : memref<1x342x128xbf16, #tpu.memory_space<vmem>>, vector<1x144x128xbf16>
      %144 = vector.shape_cast %143 : vector<1x144x128xbf16> to vector<144x128xbf16>
      %c2_128 = arith.constant 2 : index
      %c0_129 = arith.constant 0 : index
      %c0_130 = arith.constant 0 : index
      %145 = vector.load %arg3[%c2_128, %c0_129, %c0_130] : memref<9x128x128xbf16, #tpu.memory_space<vmem>>, vector<1x128x128xbf16>
      %146 = vector.shape_cast %145 : vector<1x128x128xbf16> to vector<128x128xbf16>
      %cst_131 = arith.constant dense<0.000000e+00> : vector<144x128xf32>
      %147 = tpu.matmul %144, %146, %cst_131 {dimension_numbers = #tpu.dot_dimension_numbers<[1], [0], [0], [1], [0, 0, 1, 1], [], []>} : vector<144x128xbf16>, vector<128x128xbf16>, vector<144x128xf32> -> vector<144x128xf32>
      %148 = arith.addf %142, %147 : vector<144x128xf32>
      %c0_132 = arith.constant 0 : index
      %c18_133 = arith.constant 18 : index
      %c0_134 = arith.constant 0 : index
      %149 = vector.load %arg2[%c0_132, %c18_133, %c0_134] : memref<1x342x128xbf16, #tpu.memory_space<vmem>>, vector<1x144x128xbf16>
      %150 = vector.shape_cast %149 : vector<1x144x128xbf16> to vector<144x128xbf16>
      %c3_135 = arith.constant 3 : index
      %c0_136 = arith.constant 0 : index
      %c0_137 = arith.constant 0 : index
      %151 = vector.load %arg3[%c3_135, %c0_136, %c0_137] : memref<9x128x128xbf16, #tpu.memory_space<vmem>>, vector<1x128x128xbf16>
      %152 = vector.shape_cast %151 : vector<1x128x128xbf16> to vector<128x128xbf16>
      %cst_138 = arith.constant dense<0.000000e+00> : vector<144x128xf32>
      %153 = tpu.matmul %150, %152, %cst_138 {dimension_numbers = #tpu.dot_dimension_numbers<[1], [0], [0], [1], [0, 0, 1, 1], [], []>} : vector<144x128xbf16>, vector<128x128xbf16>, vector<144x128xf32> -> vector<144x128xf32>
      %154 = arith.addf %148, %153 : vector<144x128xf32>
      %c0_139 = arith.constant 0 : index
      %c19_140 = arith.constant 19 : index
      %c0_141 = arith.constant 0 : index
      %155 = vector.load %arg2[%c0_139, %c19_140, %c0_141] : memref<1x342x128xbf16, #tpu.memory_space<vmem>>, vector<1x144x128xbf16>
      %156 = vector.shape_cast %155 : vector<1x144x128xbf16> to vector<144x128xbf16>
      %c4_142 = arith.constant 4 : index
      %c0_143 = arith.constant 0 : index
      %c0_144 = arith.constant 0 : index
      %157 = vector.load %arg3[%c4_142, %c0_143, %c0_144] : memref<9x128x128xbf16, #tpu.memory_space<vmem>>, vector<1x128x128xbf16>
      %158 = vector.shape_cast %157 : vector<1x128x128xbf16> to vector<128x128xbf16>
      %cst_145 = arith.constant dense<0.000000e+00> : vector<144x128xf32>
      %159 = tpu.matmul %156, %158, %cst_145 {dimension_numbers = #tpu.dot_dimension_numbers<[1], [0], [0], [1], [0, 0, 1, 1], [], []>} : vector<144x128xbf16>, vector<128x128xbf16>, vector<144x128xf32> -> vector<144x128xf32>
      %160 = arith.addf %154, %159 : vector<144x128xf32>
      %c0_146 = arith.constant 0 : index
      %c20_147 = arith.constant 20 : index
      %c0_148 = arith.constant 0 : index
      %161 = vector.load %arg2[%c0_146, %c20_147, %c0_148] : memref<1x342x128xbf16, #tpu.memory_space<vmem>>, vector<1x144x128xbf16>
      %162 = vector.shape_cast %161 : vector<1x144x128xbf16> to vector<144x128xbf16>
      %c5_149 = arith.constant 5 : index
      %c0_150 = arith.constant 0 : index
      %c0_151 = arith.constant 0 : index
      %163 = vector.load %arg3[%c5_149, %c0_150, %c0_151] : memref<9x128x128xbf16, #tpu.memory_space<vmem>>, vector<1x128x128xbf16>
      %164 = vector.shape_cast %163 : vector<1x128x128xbf16> to vector<128x128xbf16>
      %cst_152 = arith.constant dense<0.000000e+00> : vector<144x128xf32>
      %165 = tpu.matmul %162, %164, %cst_152 {dimension_numbers = #tpu.dot_dimension_numbers<[1], [0], [0], [1], [0, 0, 1, 1], [], []>} : vector<144x128xbf16>, vector<128x128xbf16>, vector<144x128xf32> -> vector<144x128xf32>
      %166 = arith.addf %160, %165 : vector<144x128xf32>
      %c0_153 = arith.constant 0 : index
      %c36_154 = arith.constant 36 : index
      %c0_155 = arith.constant 0 : index
      %167 = vector.load %arg2[%c0_153, %c36_154, %c0_155] : memref<1x342x128xbf16, #tpu.memory_space<vmem>>, vector<1x144x128xbf16>
      %168 = vector.shape_cast %167 : vector<1x144x128xbf16> to vector<144x128xbf16>
      %c6_156 = arith.constant 6 : index
      %c0_157 = arith.constant 0 : index
      %c0_158 = arith.constant 0 : index
      %169 = vector.load %arg3[%c6_156, %c0_157, %c0_158] : memref<9x128x128xbf16, #tpu.memory_space<vmem>>, vector<1x128x128xbf16>
      %170 = vector.shape_cast %169 : vector<1x128x128xbf16> to vector<128x128xbf16>
      %cst_159 = arith.constant dense<0.000000e+00> : vector<144x128xf32>
      %171 = tpu.matmul %168, %170, %cst_159 {dimension_numbers = #tpu.dot_dimension_numbers<[1], [0], [0], [1], [0, 0, 1, 1], [], []>} : vector<144x128xbf16>, vector<128x128xbf16>, vector<144x128xf32> -> vector<144x128xf32>
      %172 = arith.addf %166, %171 : vector<144x128xf32>
      %c0_160 = arith.constant 0 : index
      %c37_161 = arith.constant 37 : index
      %c0_162 = arith.constant 0 : index
      %173 = vector.load %arg2[%c0_160, %c37_161, %c0_162] : memref<1x342x128xbf16, #tpu.memory_space<vmem>>, vector<1x144x128xbf16>
      %174 = vector.shape_cast %173 : vector<1x144x128xbf16> to vector<144x128xbf16>
      %c7_163 = arith.constant 7 : index
      %c0_164 = arith.constant 0 : index
      %c0_165 = arith.constant 0 : index
      %175 = vector.load %arg3[%c7_163, %c0_164, %c0_165] : memref<9x128x128xbf16, #tpu.memory_space<vmem>>, vector<1x128x128xbf16>
      %176 = vector.shape_cast %175 : vector<1x128x128xbf16> to vector<128x128xbf16>
      %cst_166 = arith.constant dense<0.000000e+00> : vector<144x128xf32>
      %177 = tpu.matmul %174, %176, %cst_166 {dimension_numbers = #tpu.dot_dimension_numbers<[1], [0], [0], [1], [0, 0, 1, 1], [], []>} : vector<144x128xbf16>, vector<128x128xbf16>, vector<144x128xf32> -> vector<144x128xf32>
      %178 = arith.addf %172, %177 : vector<144x128xf32>
      %c0_167 = arith.constant 0 : index
      %c38_168 = arith.constant 38 : index
      %c0_169 = arith.constant 0 : index
      %179 = vector.load %arg2[%c0_167, %c38_168, %c0_169] : memref<1x342x128xbf16, #tpu.memory_space<vmem>>, vector<1x144x128xbf16>
      %180 = vector.shape_cast %179 : vector<1x144x128xbf16> to vector<144x128xbf16>
      %c8_170 = arith.constant 8 : index
      %c0_171 = arith.constant 0 : index
      %c0_172 = arith.constant 0 : index
      %181 = vector.load %arg3[%c8_170, %c0_171, %c0_172] : memref<9x128x128xbf16, #tpu.memory_space<vmem>>, vector<1x128x128xbf16>
      %182 = vector.shape_cast %181 : vector<1x128x128xbf16> to vector<128x128xbf16>
      %cst_173 = arith.constant dense<0.000000e+00> : vector<144x128xf32>
      %183 = tpu.matmul %180, %182, %cst_173 {dimension_numbers = #tpu.dot_dimension_numbers<[1], [0], [0], [1], [0, 0, 1, 1], [], []>} : vector<144x128xbf16>, vector<128x128xbf16>, vector<144x128xf32> -> vector<144x128xf32>
      %184 = arith.addf %178, %183 : vector<144x128xf32>
      %185 = vector.broadcast %131 : vector<1x128xf32> to vector<144x128xf32>
      %186 = arith.addf %184, %185 : vector<144x128xf32>
      %cst_174 = arith.constant 0.000000e+00 : f32
      %187 = vector.broadcast %cst_174 : f32 to vector<144x128xf32>
      %188 = arith.subf %187, %186 : vector<144x128xf32>
      %189 = math.exp %188 : vector<144x128xf32>
      %cst_175 = arith.constant 1.000000e+00 : f32
      %190 = vector.broadcast %cst_175 : f32 to vector<144x128xf32>
      %191 = arith.addf %190, %189 : vector<144x128xf32>
      %192 = tpu.reciprocal %191 {approx = true} : vector<144x128xf32> -> vector<144x128xf32>
      %193 = arith.mulf %186, %192 : vector<144x128xf32>
      %194 = tpu.iota {dimensions = array<i32: 0>} : vector<144x1xi32>
      %c0_i32_176 = arith.constant 0 : i32
      %195 = vector.broadcast %c0_i32_176 : i32 to vector<144x1xi32>
      %196 = arith.addi %195, %194 : vector<144x1xi32>
      %c18_i32 = arith.constant 18 : i32
      %c0_i32_177 = arith.constant 0 : i32
      %197 = arith.cmpi eq, %c18_i32, %c0_i32_177 : i32
      %c1_i32 = arith.constant 1 : i32
      %198 = arith.select %197, %c1_i32, %c18_i32 : i32
      %199 = vector.broadcast %198 : i32 to vector<144x1xi32>
      %200 = arith.remsi %196, %199 : vector<144x1xi32>
      %c0_i32_178 = arith.constant 0 : i32
      %201 = vector.broadcast %c0_i32_178 : i32 to vector<144x1xi32>
      %202 = arith.cmpi ne, %200, %201 : vector<144x1xi32>
      %c0_i32_179 = arith.constant 0 : i32
      %203 = vector.broadcast %c0_i32_179 : i32 to vector<144x1xi32>
      %204 = arith.cmpi slt, %200, %203 : vector<144x1xi32>
      %c0_i32_180 = arith.constant 0 : i32
      %205 = arith.cmpi slt, %198, %c0_i32_180 : i32
      %206 = vector.broadcast %205 : i1 to vector<144x1xi1>
      %207 = vector.broadcast %206 : vector<144x1xi1> to vector<144x1xi1>
      %208 = arith.xori %204, %207 : vector<144x1xi1>
      %209 = arith.andi %208, %202 : vector<144x1xi1>
      %210 = vector.broadcast %198 : i32 to vector<144x1xi32>
      %211 = arith.addi %200, %210 : vector<144x1xi32>
      %212 = arith.select %209, %211, %200 : vector<144x1xi1>, vector<144x1xi32>
      %c16_i32 = arith.constant 16 : i32
      %213 = vector.broadcast %c16_i32 : i32 to vector<144x1xi32>
      %214 = arith.cmpi slt, %212, %213 : vector<144x1xi32>
      %cst_181 = arith.constant 0.000000e+00 : f32
      %215 = vector.shape_cast %214 : vector<144x1xi1> to vector<144x1xi1>
      %216 = vector.broadcast %215 : vector<144x1xi1> to vector<144x128xi1>
      %217 = vector.broadcast %cst_181 : f32 to vector<144x128xf32>
      %218 = arith.select %216, %193, %217 : vector<144x128xi1>, vector<144x128xf32>
      %219 = arith.truncf %218 : vector<144x128xf32> to vector<144x128xbf16>
      %c19_182 = arith.constant 19 : index
      %c0_183 = arith.constant 0 : index
      %220 = vector.load %arg8[%c19_182, %c0_183] : memref<342x128xbf16, #tpu.memory_space<vmem>>, vector<144x128xbf16>
      tpu.vector_store %arg8[%c19_182, %c0_183], %219 {strides = array<i32>} : memref<342x128xbf16, #tpu.memory_space<vmem>>, vector<144x128xbf16>,
      %c0_184 = arith.constant 0 : index
      %c0_185 = arith.constant 0 : index
      %221 = vector.load %arg4[%c0_184, %c0_185] : memref<1x128xf32, #tpu.memory_space<vmem>>, vector<1x128xf32>
      %c0_186 = arith.constant 0 : index
      %c144_187 = arith.constant 144 : index
      %c0_188 = arith.constant 0 : index
      %222 = vector.load %arg2[%c0_186, %c144_187, %c0_188] : memref<1x342x128xbf16, #tpu.memory_space<vmem>>, vector<1x144x128xbf16>
      %223 = vector.shape_cast %222 : vector<1x144x128xbf16> to vector<144x128xbf16>
      %c0_189 = arith.constant 0 : index
      %c0_190 = arith.constant 0 : index
      %c0_191 = arith.constant 0 : index
      %224 = vector.load %arg3[%c0_189, %c0_190, %c0_191] : memref<9x128x128xbf16, #tpu.memory_space<vmem>>, vector<1x128x128xbf16>
      %225 = vector.shape_cast %224 : vector<1x128x128xbf16> to vector<128x128xbf16>
      %cst_192 = arith.constant dense<0.000000e+00> : vector<144x128xf32>
      %226 = tpu.matmul %223, %225, %cst_192 {dimension_numbers = #tpu.dot_dimension_numbers<[1], [0], [0], [1], [0, 0, 1, 1], [], []>} : vector<144x128xbf16>, vector<128x128xbf16>, vector<144x128xf32> -> vector<144x128xf32>
      %c0_193 = arith.constant 0 : index
      %c145_194 = arith.constant 145 : index
      %c0_195 = arith.constant 0 : index
      %227 = vector.load %arg2[%c0_193, %c145_194, %c0_195] : memref<1x342x128xbf16, #tpu.memory_space<vmem>>, vector<1x144x128xbf16>
      %228 = vector.shape_cast %227 : vector<1x144x128xbf16> to vector<144x128xbf16>
      %c1_196 = arith.constant 1 : index
      %c0_197 = arith.constant 0 : index
      %c0_198 = arith.constant 0 : index
      %229 = vector.load %arg3[%c1_196, %c0_197, %c0_198] : memref<9x128x128xbf16, #tpu.memory_space<vmem>>, vector<1x128x128xbf16>
      %230 = vector.shape_cast %229 : vector<1x128x128xbf16> to vector<128x128xbf16>
      %cst_199 = arith.constant dense<0.000000e+00> : vector<144x128xf32>
      %231 = tpu.matmul %228, %230, %cst_199 {dimension_numbers = #tpu.dot_dimension_numbers<[1], [0], [0], [1], [0, 0, 1, 1], [], []>} : vector<144x128xbf16>, vector<128x128xbf16>, vector<144x128xf32> -> vector<144x128xf32>
      %232 = arith.addf %226, %231 : vector<144x128xf32>
      %c0_200 = arith.constant 0 : index
      %c146_201 = arith.constant 146 : index
      %c0_202 = arith.constant 0 : index
      %233 = vector.load %arg2[%c0_200, %c146_201, %c0_202] : memref<1x342x128xbf16, #tpu.memory_space<vmem>>, vector<1x144x128xbf16>
      %234 = vector.shape_cast %233 : vector<1x144x128xbf16> to vector<144x128xbf16>
      %c2_203 = arith.constant 2 : index
      %c0_204 = arith.constant 0 : index
      %c0_205 = arith.constant 0 : index
      %235 = vector.load %arg3[%c2_203, %c0_204, %c0_205] : memref<9x128x128xbf16, #tpu.memory_space<vmem>>, vector<1x128x128xbf16>
      %236 = vector.shape_cast %235 : vector<1x128x128xbf16> to vector<128x128xbf16>
      %cst_206 = arith.constant dense<0.000000e+00> : vector<144x128xf32>
      %237 = tpu.matmul %234, %236, %cst_206 {dimension_numbers = #tpu.dot_dimension_numbers<[1], [0], [0], [1], [0, 0, 1, 1], [], []>} : vector<144x128xbf16>, vector<128x128xbf16>, vector<144x128xf32> -> vector<144x128xf32>
      %238 = arith.addf %232, %237 : vector<144x128xf32>
      %c0_207 = arith.constant 0 : index
      %c162_208 = arith.constant 162 : index
      %c0_209 = arith.constant 0 : index
      %239 = vector.load %arg2[%c0_207, %c162_208, %c0_209] : memref<1x342x128xbf16, #tpu.memory_space<vmem>>, vector<1x144x128xbf16>
      %240 = vector.shape_cast %239 : vector<1x144x128xbf16> to vector<144x128xbf16>
      %c3_210 = arith.constant 3 : index
      %c0_211 = arith.constant 0 : index
      %c0_212 = arith.constant 0 : index
      %241 = vector.load %arg3[%c3_210, %c0_211, %c0_212] : memref<9x128x128xbf16, #tpu.memory_space<vmem>>, vector<1x128x128xbf16>
      %242 = vector.shape_cast %241 : vector<1x128x128xbf16> to vector<128x128xbf16>
      %cst_213 = arith.constant dense<0.000000e+00> : vector<144x128xf32>
      %243 = tpu.matmul %240, %242, %cst_213 {dimension_numbers = #tpu.dot_dimension_numbers<[1], [0], [0], [1], [0, 0, 1, 1], [], []>} : vector<144x128xbf16>, vector<128x128xbf16>, vector<144x128xf32> -> vector<144x128xf32>
      %244 = arith.addf %238, %243 : vector<144x128xf32>
      %c0_214 = arith.constant 0 : index
      %c163_215 = arith.constant 163 : index
      %c0_216 = arith.constant 0 : index
      %245 = vector.load %arg2[%c0_214, %c163_215, %c0_216] : memref<1x342x128xbf16, #tpu.memory_space<vmem>>, vector<1x144x128xbf16>
      %246 = vector.shape_cast %245 : vector<1x144x128xbf16> to vector<144x128xbf16>
      %c4_217 = arith.constant 4 : index
      %c0_218 = arith.constant 0 : index
      %c0_219 = arith.constant 0 : index
      %247 = vector.load %arg3[%c4_217, %c0_218, %c0_219] : memref<9x128x128xbf16, #tpu.memory_space<vmem>>, vector<1x128x128xbf16>
      %248 = vector.shape_cast %247 : vector<1x128x128xbf16> to vector<128x128xbf16>
      %cst_220 = arith.constant dense<0.000000e+00> : vector<144x128xf32>
      %249 = tpu.matmul %246, %248, %cst_220 {dimension_numbers = #tpu.dot_dimension_numbers<[1], [0], [0], [1], [0, 0, 1, 1], [], []>} : vector<144x128xbf16>, vector<128x128xbf16>, vector<144x128xf32> -> vector<144x128xf32>
      %250 = arith.addf %244, %249 : vector<144x128xf32>
      %c0_221 = arith.constant 0 : index
      %c164_222 = arith.constant 164 : index
      %c0_223 = arith.constant 0 : index
      %251 = vector.load %arg2[%c0_221, %c164_222, %c0_223] : memref<1x342x128xbf16, #tpu.memory_space<vmem>>, vector<1x144x128xbf16>
      %252 = vector.shape_cast %251 : vector<1x144x128xbf16> to vector<144x128xbf16>
      %c5_224 = arith.constant 5 : index
      %c0_225 = arith.constant 0 : index
      %c0_226 = arith.constant 0 : index
      %253 = vector.load %arg3[%c5_224, %c0_225, %c0_226] : memref<9x128x128xbf16, #tpu.memory_space<vmem>>, vector<1x128x128xbf16>
      %254 = vector.shape_cast %253 : vector<1x128x128xbf16> to vector<128x128xbf16>
      %cst_227 = arith.constant dense<0.000000e+00> : vector<144x128xf32>
      %255 = tpu.matmul %252, %254, %cst_227 {dimension_numbers = #tpu.dot_dimension_numbers<[1], [0], [0], [1], [0, 0, 1, 1], [], []>} : vector<144x128xbf16>, vector<128x128xbf16>, vector<144x128xf32> -> vector<144x128xf32>
      %256 = arith.addf %250, %255 : vector<144x128xf32>
      %c0_228 = arith.constant 0 : index
      %c180_229 = arith.constant 180 : index
      %c0_230 = arith.constant 0 : index
      %257 = vector.load %arg2[%c0_228, %c180_229, %c0_230] : memref<1x342x128xbf16, #tpu.memory_space<vmem>>, vector<1x144x128xbf16>
      %258 = vector.shape_cast %257 : vector<1x144x128xbf16> to vector<144x128xbf16>
      %c6_231 = arith.constant 6 : index
      %c0_232 = arith.constant 0 : index
      %c0_233 = arith.constant 0 : index
      %259 = vector.load %arg3[%c6_231, %c0_232, %c0_233] : memref<9x128x128xbf16, #tpu.memory_space<vmem>>, vector<1x128x128xbf16>
      %260 = vector.shape_cast %259 : vector<1x128x128xbf16> to vector<128x128xbf16>
      %cst_234 = arith.constant dense<0.000000e+00> : vector<144x128xf32>
      %261 = tpu.matmul %258, %260, %cst_234 {dimension_numbers = #tpu.dot_dimension_numbers<[1], [0], [0], [1], [0, 0, 1, 1], [], []>} : vector<144x128xbf16>, vector<128x128xbf16>, vector<144x128xf32> -> vector<144x128xf32>
      %262 = arith.addf %256, %261 : vector<144x128xf32>
      %c0_235 = arith.constant 0 : index
      %c181_236 = arith.constant 181 : index
      %c0_237 = arith.constant 0 : index
      %263 = vector.load %arg2[%c0_235, %c181_236, %c0_237] : memref<1x342x128xbf16, #tpu.memory_space<vmem>>, vector<1x144x128xbf16>
      %264 = vector.shape_cast %263 : vector<1x144x128xbf16> to vector<144x128xbf16>
      %c7_238 = arith.constant 7 : index
      %c0_239 = arith.constant 0 : index
      %c0_240 = arith.constant 0 : index
      %265 = vector.load %arg3[%c7_238, %c0_239, %c0_240] : memref<9x128x128xbf16, #tpu.memory_space<vmem>>, vector<1x128x128xbf16>
      %266 = vector.shape_cast %265 : vector<1x128x128xbf16> to vector<128x128xbf16>
      %cst_241 = arith.constant dense<0.000000e+00> : vector<144x128xf32>
      %267 = tpu.matmul %264, %266, %cst_241 {dimension_numbers = #tpu.dot_dimension_numbers<[1], [0], [0], [1], [0, 0, 1, 1], [], []>} : vector<144x128xbf16>, vector<128x128xbf16>, vector<144x128xf32> -> vector<144x128xf32>
      %268 = arith.addf %262, %267 : vector<144x128xf32>
      %c0_242 = arith.constant 0 : index
      %c182_243 = arith.constant 182 : index
      %c0_244 = arith.constant 0 : index
      %269 = vector.load %arg2[%c0_242, %c182_243, %c0_244] : memref<1x342x128xbf16, #tpu.memory_space<vmem>>, vector<1x144x128xbf16>
      %270 = vector.shape_cast %269 : vector<1x144x128xbf16> to vector<144x128xbf16>
      %c8_245 = arith.constant 8 : index
      %c0_246 = arith.constant 0 : index
      %c0_247 = arith.constant 0 : index
      %271 = vector.load %arg3[%c8_245, %c0_246, %c0_247] : memref<9x128x128xbf16, #tpu.memory_space<vmem>>, vector<1x128x128xbf16>
      %272 = vector.shape_cast %271 : vector<1x128x128xbf16> to vector<128x128xbf16>
      %cst_248 = arith.constant dense<0.000000e+00> : vector<144x128xf32>
      %273 = tpu.matmul %270, %272, %cst_248 {dimension_numbers = #tpu.dot_dimension_numbers<[1], [0], [0], [1], [0, 0, 1, 1], [], []>} : vector<144x128xbf16>, vector<128x128xbf16>, vector<144x128xf32> -> vector<144x128xf32>
      %274 = arith.addf %268, %273 : vector<144x128xf32>
      %275 = vector.broadcast %221 : vector<1x128xf32> to vector<144x128xf32>
      %276 = arith.addf %274, %275 : vector<144x128xf32>
      %cst_249 = arith.constant 0.000000e+00 : f32
      %277 = vector.broadcast %cst_249 : f32 to vector<144x128xf32>
      %278 = arith.subf %277, %276 : vector<144x128xf32>
      %279 = math.exp %278 : vector<144x128xf32>
      %cst_250 = arith.constant 1.000000e+00 : f32
      %280 = vector.broadcast %cst_250 : f32 to vector<144x128xf32>
      %281 = arith.addf %280, %279 : vector<144x128xf32>
      %282 = tpu.reciprocal %281 {approx = true} : vector<144x128xf32> -> vector<144x128xf32>
      %283 = arith.mulf %276, %282 : vector<144x128xf32>
      %284 = tpu.iota {dimensions = array<i32: 0>} : vector<144x1xi32>
      %c144_i32 = arith.constant 144 : i32
      %285 = vector.broadcast %c144_i32 : i32 to vector<144x1xi32>
      %286 = arith.addi %285, %284 : vector<144x1xi32>
      %c18_i32_251 = arith.constant 18 : i32
      %c0_i32_252 = arith.constant 0 : i32
      %287 = arith.cmpi eq, %c18_i32_251, %c0_i32_252 : i32
      %c1_i32_253 = arith.constant 1 : i32
      %288 = arith.select %287, %c1_i32_253, %c18_i32_251 : i32
      %289 = vector.broadcast %288 : i32 to vector<144x1xi32>
      %290 = arith.remsi %286, %289 : vector<144x1xi32>
      %c0_i32_254 = arith.constant 0 : i32
      %291 = vector.broadcast %c0_i32_254 : i32 to vector<144x1xi32>
      %292 = arith.cmpi ne, %290, %291 : vector<144x1xi32>
      %c0_i32_255 = arith.constant 0 : i32
      %293 = vector.broadcast %c0_i32_255 : i32 to vector<144x1xi32>
      %294 = arith.cmpi slt, %290, %293 : vector<144x1xi32>
      %c0_i32_256 = arith.constant 0 : i32
      %295 = arith.cmpi slt, %288, %c0_i32_256 : i32
      %296 = vector.broadcast %295 : i1 to vector<144x1xi1>
      %297 = vector.broadcast %296 : vector<144x1xi1> to vector<144x1xi1>
      %298 = arith.xori %294, %297 : vector<144x1xi1>
      %299 = arith.andi %298, %292 : vector<144x1xi1>
      %300 = vector.broadcast %288 : i32 to vector<144x1xi32>
      %301 = arith.addi %290, %300 : vector<144x1xi32>
      %302 = arith.select %299, %301, %290 : vector<144x1xi1>, vector<144x1xi32>
      %c16_i32_257 = arith.constant 16 : i32
      %303 = vector.broadcast %c16_i32_257 : i32 to vector<144x1xi32>
      %304 = arith.cmpi slt, %302, %303 : vector<144x1xi32>
      %cst_258 = arith.constant 0.000000e+00 : f32
      %305 = vector.shape_cast %304 : vector<144x1xi1> to vector<144x1xi1>
      %306 = vector.broadcast %305 : vector<144x1xi1> to vector<144x128xi1>
      %307 = vector.broadcast %cst_258 : f32 to vector<144x128xf32>
      %308 = arith.select %306, %283, %307 : vector<144x128xi1>, vector<144x128xf32>
      %309 = arith.truncf %308 : vector<144x128xf32> to vector<144x128xbf16>
      %c163_259 = arith.constant 163 : index
      %c0_260 = arith.constant 0 : index
      %310 = vector.load %arg8[%c163_259, %c0_260] : memref<342x128xbf16, #tpu.memory_space<vmem>>, vector<144x128xbf16>
      tpu.vector_store %arg8[%c163_259, %c0_260], %309 {strides = array<i32>} : memref<342x128xbf16, #tpu.memory_space<vmem>>, vector<144x128xbf16>,
    } else {
    }
    %c0 = arith.constant 0 : index
    %c0_1 = arith.constant 0 : index
    %3 = vector.load %arg6[%c0, %c0_1] : memref<1x128xf32, #tpu.memory_space<vmem>>, vector<1x128xf32>
    %c0_2 = arith.constant 0 : index
    %c0_3 = arith.constant 0 : index
    %4 = vector.load %arg8[%c0_2, %c0_3] : memref<342x128xbf16, #tpu.memory_space<vmem>>, vector<144x128xbf16>
    %c0_4 = arith.constant 0 : index
    %c0_5 = arith.constant 0 : index
    %c0_6 = arith.constant 0 : index
    %5 = vector.load %arg5[%c0_4, %c0_5, %c0_6] : memref<9x128x128xbf16, #tpu.memory_space<vmem>>, vector<1x128x128xbf16>
    %6 = vector.shape_cast %5 : vector<1x128x128xbf16> to vector<128x128xbf16>
    %cst = arith.constant dense<0.000000e+00> : vector<144x128xf32>
    %7 = tpu.matmul %4, %6, %cst {dimension_numbers = #tpu.dot_dimension_numbers<[1], [0], [0], [1], [0, 0, 1, 1], [], []>} : vector<144x128xbf16>, vector<128x128xbf16>, vector<144x128xf32> -> vector<144x128xf32>
    %c1 = arith.constant 1 : index
    %c0_7 = arith.constant 0 : index
    %8 = vector.load %arg8[%c1, %c0_7] : memref<342x128xbf16, #tpu.memory_space<vmem>>, vector<144x128xbf16>
    %c1_8 = arith.constant 1 : index
    %c0_9 = arith.constant 0 : index
    %c0_10 = arith.constant 0 : index
    %9 = vector.load %arg5[%c1_8, %c0_9, %c0_10] : memref<9x128x128xbf16, #tpu.memory_space<vmem>>, vector<1x128x128xbf16>
    %10 = vector.shape_cast %9 : vector<1x128x128xbf16> to vector<128x128xbf16>
    %cst_11 = arith.constant dense<0.000000e+00> : vector<144x128xf32>
    %11 = tpu.matmul %8, %10, %cst_11 {dimension_numbers = #tpu.dot_dimension_numbers<[1], [0], [0], [1], [0, 0, 1, 1], [], []>} : vector<144x128xbf16>, vector<128x128xbf16>, vector<144x128xf32> -> vector<144x128xf32>
    %12 = arith.addf %7, %11 : vector<144x128xf32>
    %c2 = arith.constant 2 : index
    %c0_12 = arith.constant 0 : index
    %13 = vector.load %arg8[%c2, %c0_12] : memref<342x128xbf16, #tpu.memory_space<vmem>>, vector<144x128xbf16>
    %c2_13 = arith.constant 2 : index
    %c0_14 = arith.constant 0 : index
    %c0_15 = arith.constant 0 : index
    %14 = vector.load %arg5[%c2_13, %c0_14, %c0_15] : memref<9x128x128xbf16, #tpu.memory_space<vmem>>, vector<1x128x128xbf16>
    %15 = vector.shape_cast %14 : vector<1x128x128xbf16> to vector<128x128xbf16>
    %cst_16 = arith.constant dense<0.000000e+00> : vector<144x128xf32>
    %16 = tpu.matmul %13, %15, %cst_16 {dimension_numbers = #tpu.dot_dimension_numbers<[1], [0], [0], [1], [0, 0, 1, 1], [], []>} : vector<144x128xbf16>, vector<128x128xbf16>, vector<144x128xf32> -> vector<144x128xf32>
    %17 = arith.addf %12, %16 : vector<144x128xf32>
    %c18 = arith.constant 18 : index
    %c0_17 = arith.constant 0 : index
    %18 = vector.load %arg8[%c18, %c0_17] : memref<342x128xbf16, #tpu.memory_space<vmem>>, vector<144x128xbf16>
    %c3 = arith.constant 3 : index
    %c0_18 = arith.constant 0 : index
    %c0_19 = arith.constant 0 : index
    %19 = vector.load %arg5[%c3, %c0_18, %c0_19] : memref<9x128x128xbf16, #tpu.memory_space<vmem>>, vector<1x128x128xbf16>
    %20 = vector.shape_cast %19 : vector<1x128x128xbf16> to vector<128x128xbf16>
    %cst_20 = arith.constant dense<0.000000e+00> : vector<144x128xf32>
    %21 = tpu.matmul %18, %20, %cst_20 {dimension_numbers = #tpu.dot_dimension_numbers<[1], [0], [0], [1], [0, 0, 1, 1], [], []>} : vector<144x128xbf16>, vector<128x128xbf16>, vector<144x128xf32> -> vector<144x128xf32>
    %22 = arith.addf %17, %21 : vector<144x128xf32>
    %c19 = arith.constant 19 : index
    %c0_21 = arith.constant 0 : index
    %23 = vector.load %arg8[%c19, %c0_21] : memref<342x128xbf16, #tpu.memory_space<vmem>>, vector<144x128xbf16>
    %c4 = arith.constant 4 : index
    %c0_22 = arith.constant 0 : index
    %c0_23 = arith.constant 0 : index
    %24 = vector.load %arg5[%c4, %c0_22, %c0_23] : memref<9x128x128xbf16, #tpu.memory_space<vmem>>, vector<1x128x128xbf16>
    %25 = vector.shape_cast %24 : vector<1x128x128xbf16> to vector<128x128xbf16>
    %cst_24 = arith.constant dense<0.000000e+00> : vector<144x128xf32>
    %26 = tpu.matmul %23, %25, %cst_24 {dimension_numbers = #tpu.dot_dimension_numbers<[1], [0], [0], [1], [0, 0, 1, 1], [], []>} : vector<144x128xbf16>, vector<128x128xbf16>, vector<144x128xf32> -> vector<144x128xf32>
    %27 = arith.addf %22, %26 : vector<144x128xf32>
    %c20 = arith.constant 20 : index
    %c0_25 = arith.constant 0 : index
    %28 = vector.load %arg8[%c20, %c0_25] : memref<342x128xbf16, #tpu.memory_space<vmem>>, vector<144x128xbf16>
    %c5 = arith.constant 5 : index
    %c0_26 = arith.constant 0 : index
    %c0_27 = arith.constant 0 : index
    %29 = vector.load %arg5[%c5, %c0_26, %c0_27] : memref<9x128x128xbf16, #tpu.memory_space<vmem>>, vector<1x128x128xbf16>
    %30 = vector.shape_cast %29 : vector<1x128x128xbf16> to vector<128x128xbf16>
    %cst_28 = arith.constant dense<0.000000e+00> : vector<144x128xf32>
    %31 = tpu.matmul %28, %30, %cst_28 {dimension_numbers = #tpu.dot_dimension_numbers<[1], [0], [0], [1], [0, 0, 1, 1], [], []>} : vector<144x128xbf16>, vector<128x128xbf16>, vector<144x128xf32> -> vector<144x128xf32>
    %32 = arith.addf %27, %31 : vector<144x128xf32>
    %c36 = arith.constant 36 : index
    %c0_29 = arith.constant 0 : index
    %33 = vector.load %arg8[%c36, %c0_29] : memref<342x128xbf16, #tpu.memory_space<vmem>>, vector<144x128xbf16>
    %c6 = arith.constant 6 : index
    %c0_30 = arith.constant 0 : index
    %c0_31 = arith.constant 0 : index
    %34 = vector.load %arg5[%c6, %c0_30, %c0_31] : memref<9x128x128xbf16, #tpu.memory_space<vmem>>, vector<1x128x128xbf16>
    %35 = vector.shape_cast %34 : vector<1x128x128xbf16> to vector<128x128xbf16>
    %cst_32 = arith.constant dense<0.000000e+00> : vector<144x128xf32>
    %36 = tpu.matmul %33, %35, %cst_32 {dimension_numbers = #tpu.dot_dimension_numbers<[1], [0], [0], [1], [0, 0, 1, 1], [], []>} : vector<144x128xbf16>, vector<128x128xbf16>, vector<144x128xf32> -> vector<144x128xf32>
    %37 = arith.addf %32, %36 : vector<144x128xf32>
    %c37 = arith.constant 37 : index
    %c0_33 = arith.constant 0 : index
    %38 = vector.load %arg8[%c37, %c0_33] : memref<342x128xbf16, #tpu.memory_space<vmem>>, vector<144x128xbf16>
    %c7 = arith.constant 7 : index
    %c0_34 = arith.constant 0 : index
    %c0_35 = arith.constant 0 : index
    %39 = vector.load %arg5[%c7, %c0_34, %c0_35] : memref<9x128x128xbf16, #tpu.memory_space<vmem>>, vector<1x128x128xbf16>
    %40 = vector.shape_cast %39 : vector<1x128x128xbf16> to vector<128x128xbf16>
    %cst_36 = arith.constant dense<0.000000e+00> : vector<144x128xf32>
    %41 = tpu.matmul %38, %40, %cst_36 {dimension_numbers = #tpu.dot_dimension_numbers<[1], [0], [0], [1], [0, 0, 1, 1], [], []>} : vector<144x128xbf16>, vector<128x128xbf16>, vector<144x128xf32> -> vector<144x128xf32>
    %42 = arith.addf %37, %41 : vector<144x128xf32>
    %c38 = arith.constant 38 : index
    %c0_37 = arith.constant 0 : index
    %43 = vector.load %arg8[%c38, %c0_37] : memref<342x128xbf16, #tpu.memory_space<vmem>>, vector<144x128xbf16>
    %c8 = arith.constant 8 : index
    %c0_38 = arith.constant 0 : index
    %c0_39 = arith.constant 0 : index
    %44 = vector.load %arg5[%c8, %c0_38, %c0_39] : memref<9x128x128xbf16, #tpu.memory_space<vmem>>, vector<1x128x128xbf16>
    %45 = vector.shape_cast %44 : vector<1x128x128xbf16> to vector<128x128xbf16>
    %cst_40 = arith.constant dense<0.000000e+00> : vector<144x128xf32>
    %46 = tpu.matmul %43, %45, %cst_40 {dimension_numbers = #tpu.dot_dimension_numbers<[1], [0], [0], [1], [0, 0, 1, 1], [], []>} : vector<144x128xbf16>, vector<128x128xbf16>, vector<144x128xf32> -> vector<144x128xf32>
    %47 = arith.addf %42, %46 : vector<144x128xf32>
    %48 = vector.broadcast %3 : vector<1x128xf32> to vector<144x128xf32>
    %49 = arith.addf %47, %48 : vector<144x128xf32>
    %cst_41 = arith.constant 0.000000e+00 : f32
    %50 = vector.broadcast %cst_41 : f32 to vector<144x128xf32>
    %51 = arith.subf %50, %49 : vector<144x128xf32>
    %52 = math.exp %51 : vector<144x128xf32>
    %cst_42 = arith.constant 1.000000e+00 : f32
    %53 = vector.broadcast %cst_42 : f32 to vector<144x128xf32>
    %54 = arith.addf %53, %52 : vector<144x128xf32>
    %55 = tpu.reciprocal %54 {approx = true} : vector<144x128xf32> -> vector<144x128xf32>
    %56 = arith.mulf %49, %55 : vector<144x128xf32>
    %c0_43 = arith.constant 0 : index
    %c19_44 = arith.constant 19 : index
    %c0_45 = arith.constant 0 : index
    %57 = vector.load %arg2[%c0_43, %c19_44, %c0_45] : memref<1x342x128xbf16, #tpu.memory_space<vmem>>, vector<1x144x128xbf16>
    %58 = vector.shape_cast %57 : vector<1x144x128xbf16> to vector<144x128xbf16>
    %59 = arith.extf %58 : vector<144x128xbf16> to vector<144x128xf32>
    %60 = arith.addf %56, %59 : vector<144x128xf32>
    %61 = arith.truncf %60 : vector<144x128xf32> to vector<144x128xbf16>
    %c0_46 = arith.constant 0 : index
    %c0_47 = arith.constant 0 : index
    %c0_48 = arith.constant 0 : index
    %62 = vector.load %arg7[%c0_46, %c0_47, %c0_48] : memref<1x288x128xbf16, #tpu.memory_space<vmem>>, vector<1x144x128xbf16>
    %63 = vector.shape_cast %62 : vector<1x144x128xbf16> to vector<144x128xbf16>
    %64 = vector.shape_cast %61 : vector<144x128xbf16> to vector<1x144x128xbf16>
    tpu.vector_store %arg7[%c0_46, %c0_47, %c0_48], %64 {strides = array<i32>} : memref<1x288x128xbf16, #tpu.memory_space<vmem>>, vector<1x144x128xbf16>,
    %c0_49 = arith.constant 0 : index
    %c0_50 = arith.constant 0 : index
    %65 = vector.load %arg6[%c0_49, %c0_50] : memref<1x128xf32, #tpu.memory_space<vmem>>, vector<1x128xf32>
    %c144 = arith.constant 144 : index
    %c0_51 = arith.constant 0 : index
    %66 = vector.load %arg8[%c144, %c0_51] : memref<342x128xbf16, #tpu.memory_space<vmem>>, vector<144x128xbf16>
    %c0_52 = arith.constant 0 : index
    %c0_53 = arith.constant 0 : index
    %c0_54 = arith.constant 0 : index
    %67 = vector.load %arg5[%c0_52, %c0_53, %c0_54] : memref<9x128x128xbf16, #tpu.memory_space<vmem>>, vector<1x128x128xbf16>
    %68 = vector.shape_cast %67 : vector<1x128x128xbf16> to vector<128x128xbf16>
    %cst_55 = arith.constant dense<0.000000e+00> : vector<144x128xf32>
    %69 = tpu.matmul %66, %68, %cst_55 {dimension_numbers = #tpu.dot_dimension_numbers<[1], [0], [0], [1], [0, 0, 1, 1], [], []>} : vector<144x128xbf16>, vector<128x128xbf16>, vector<144x128xf32> -> vector<144x128xf32>
    %c145 = arith.constant 145 : index
    %c0_56 = arith.constant 0 : index
    %70 = vector.load %arg8[%c145, %c0_56] : memref<342x128xbf16, #tpu.memory_space<vmem>>, vector<144x128xbf16>
    %c1_57 = arith.constant 1 : index
    %c0_58 = arith.constant 0 : index
    %c0_59 = arith.constant 0 : index
    %71 = vector.load %arg5[%c1_57, %c0_58, %c0_59] : memref<9x128x128xbf16, #tpu.memory_space<vmem>>, vector<1x128x128xbf16>
    %72 = vector.shape_cast %71 : vector<1x128x128xbf16> to vector<128x128xbf16>
    %cst_60 = arith.constant dense<0.000000e+00> : vector<144x128xf32>
    %73 = tpu.matmul %70, %72, %cst_60 {dimension_numbers = #tpu.dot_dimension_numbers<[1], [0], [0], [1], [0, 0, 1, 1], [], []>} : vector<144x128xbf16>, vector<128x128xbf16>, vector<144x128xf32> -> vector<144x128xf32>
    %74 = arith.addf %69, %73 : vector<144x128xf32>
    %c146 = arith.constant 146 : index
    %c0_61 = arith.constant 0 : index
    %75 = vector.load %arg8[%c146, %c0_61] : memref<342x128xbf16, #tpu.memory_space<vmem>>, vector<144x128xbf16>
    %c2_62 = arith.constant 2 : index
    %c0_63 = arith.constant 0 : index
    %c0_64 = arith.constant 0 : index
    %76 = vector.load %arg5[%c2_62, %c0_63, %c0_64] : memref<9x128x128xbf16, #tpu.memory_space<vmem>>, vector<1x128x128xbf16>
    %77 = vector.shape_cast %76 : vector<1x128x128xbf16> to vector<128x128xbf16>
    %cst_65 = arith.constant dense<0.000000e+00> : vector<144x128xf32>
    %78 = tpu.matmul %75, %77, %cst_65 {dimension_numbers = #tpu.dot_dimension_numbers<[1], [0], [0], [1], [0, 0, 1, 1], [], []>} : vector<144x128xbf16>, vector<128x128xbf16>, vector<144x128xf32> -> vector<144x128xf32>
    %79 = arith.addf %74, %78 : vector<144x128xf32>
    %c162 = arith.constant 162 : index
    %c0_66 = arith.constant 0 : index
    %80 = vector.load %arg8[%c162, %c0_66] : memref<342x128xbf16, #tpu.memory_space<vmem>>, vector<144x128xbf16>
    %c3_67 = arith.constant 3 : index
    %c0_68 = arith.constant 0 : index
    %c0_69 = arith.constant 0 : index
    %81 = vector.load %arg5[%c3_67, %c0_68, %c0_69] : memref<9x128x128xbf16, #tpu.memory_space<vmem>>, vector<1x128x128xbf16>
    %82 = vector.shape_cast %81 : vector<1x128x128xbf16> to vector<128x128xbf16>
    %cst_70 = arith.constant dense<0.000000e+00> : vector<144x128xf32>
    %83 = tpu.matmul %80, %82, %cst_70 {dimension_numbers = #tpu.dot_dimension_numbers<[1], [0], [0], [1], [0, 0, 1, 1], [], []>} : vector<144x128xbf16>, vector<128x128xbf16>, vector<144x128xf32> -> vector<144x128xf32>
    %84 = arith.addf %79, %83 : vector<144x128xf32>
    %c163 = arith.constant 163 : index
    %c0_71 = arith.constant 0 : index
    %85 = vector.load %arg8[%c163, %c0_71] : memref<342x128xbf16, #tpu.memory_space<vmem>>, vector<144x128xbf16>
    %c4_72 = arith.constant 4 : index
    %c0_73 = arith.constant 0 : index
    %c0_74 = arith.constant 0 : index
    %86 = vector.load %arg5[%c4_72, %c0_73, %c0_74] : memref<9x128x128xbf16, #tpu.memory_space<vmem>>, vector<1x128x128xbf16>
    %87 = vector.shape_cast %86 : vector<1x128x128xbf16> to vector<128x128xbf16>
    %cst_75 = arith.constant dense<0.000000e+00> : vector<144x128xf32>
    %88 = tpu.matmul %85, %87, %cst_75 {dimension_numbers = #tpu.dot_dimension_numbers<[1], [0], [0], [1], [0, 0, 1, 1], [], []>} : vector<144x128xbf16>, vector<128x128xbf16>, vector<144x128xf32> -> vector<144x128xf32>
    %89 = arith.addf %84, %88 : vector<144x128xf32>
    %c164 = arith.constant 164 : index
    %c0_76 = arith.constant 0 : index
    %90 = vector.load %arg8[%c164, %c0_76] : memref<342x128xbf16, #tpu.memory_space<vmem>>, vector<144x128xbf16>
    %c5_77 = arith.constant 5 : index
    %c0_78 = arith.constant 0 : index
    %c0_79 = arith.constant 0 : index
    %91 = vector.load %arg5[%c5_77, %c0_78, %c0_79] : memref<9x128x128xbf16, #tpu.memory_space<vmem>>, vector<1x128x128xbf16>
    %92 = vector.shape_cast %91 : vector<1x128x128xbf16> to vector<128x128xbf16>
    %cst_80 = arith.constant dense<0.000000e+00> : vector<144x128xf32>
    %93 = tpu.matmul %90, %92, %cst_80 {dimension_numbers = #tpu.dot_dimension_numbers<[1], [0], [0], [1], [0, 0, 1, 1], [], []>} : vector<144x128xbf16>, vector<128x128xbf16>, vector<144x128xf32> -> vector<144x128xf32>
    %94 = arith.addf %89, %93 : vector<144x128xf32>
    %c180 = arith.constant 180 : index
    %c0_81 = arith.constant 0 : index
    %95 = vector.load %arg8[%c180, %c0_81] : memref<342x128xbf16, #tpu.memory_space<vmem>>, vector<144x128xbf16>
    %c6_82 = arith.constant 6 : index
    %c0_83 = arith.constant 0 : index
    %c0_84 = arith.constant 0 : index
    %96 = vector.load %arg5[%c6_82, %c0_83, %c0_84] : memref<9x128x128xbf16, #tpu.memory_space<vmem>>, vector<1x128x128xbf16>
    %97 = vector.shape_cast %96 : vector<1x128x128xbf16> to vector<128x128xbf16>
    %cst_85 = arith.constant dense<0.000000e+00> : vector<144x128xf32>
    %98 = tpu.matmul %95, %97, %cst_85 {dimension_numbers = #tpu.dot_dimension_numbers<[1], [0], [0], [1], [0, 0, 1, 1], [], []>} : vector<144x128xbf16>, vector<128x128xbf16>, vector<144x128xf32> -> vector<144x128xf32>
    %99 = arith.addf %94, %98 : vector<144x128xf32>
    %c181 = arith.constant 181 : index
    %c0_86 = arith.constant 0 : index
    %100 = vector.load %arg8[%c181, %c0_86] : memref<342x128xbf16, #tpu.memory_space<vmem>>, vector<144x128xbf16>
    %c7_87 = arith.constant 7 : index
    %c0_88 = arith.constant 0 : index
    %c0_89 = arith.constant 0 : index
    %101 = vector.load %arg5[%c7_87, %c0_88, %c0_89] : memref<9x128x128xbf16, #tpu.memory_space<vmem>>, vector<1x128x128xbf16>
    %102 = vector.shape_cast %101 : vector<1x128x128xbf16> to vector<128x128xbf16>
    %cst_90 = arith.constant dense<0.000000e+00> : vector<144x128xf32>
    %103 = tpu.matmul %100, %102, %cst_90 {dimension_numbers = #tpu.dot_dimension_numbers<[1], [0], [0], [1], [0, 0, 1, 1], [], []>} : vector<144x128xbf16>, vector<128x128xbf16>, vector<144x128xf32> -> vector<144x128xf32>
    %104 = arith.addf %99, %103 : vector<144x128xf32>
    %c182 = arith.constant 182 : index
    %c0_91 = arith.constant 0 : index
    %105 = vector.load %arg8[%c182, %c0_91] : memref<342x128xbf16, #tpu.memory_space<vmem>>, vector<144x128xbf16>
    %c8_92 = arith.constant 8 : index
    %c0_93 = arith.constant 0 : index
    %c0_94 = arith.constant 0 : index
    %106 = vector.load %arg5[%c8_92, %c0_93, %c0_94] : memref<9x128x128xbf16, #tpu.memory_space<vmem>>, vector<1x128x128xbf16>
    %107 = vector.shape_cast %106 : vector<1x128x128xbf16> to vector<128x128xbf16>
    %cst_95 = arith.constant dense<0.000000e+00> : vector<144x128xf32>
    %108 = tpu.matmul %105, %107, %cst_95 {dimension_numbers = #tpu.dot_dimension_numbers<[1], [0], [0], [1], [0, 0, 1, 1], [], []>} : vector<144x128xbf16>, vector<128x128xbf16>, vector<144x128xf32> -> vector<144x128xf32>
    %109 = arith.addf %104, %108 : vector<144x128xf32>
    %110 = vector.broadcast %65 : vector<1x128xf32> to vector<144x128xf32>
    %111 = arith.addf %109, %110 : vector<144x128xf32>
    %cst_96 = arith.constant 0.000000e+00 : f32
    %112 = vector.broadcast %cst_96 : f32 to vector<144x128xf32>
    %113 = arith.subf %112, %111 : vector<144x128xf32>
    %114 = math.exp %113 : vector<144x128xf32>
    %cst_97 = arith.constant 1.000000e+00 : f32
    %115 = vector.broadcast %cst_97 : f32 to vector<144x128xf32>
    %116 = arith.addf %115, %114 : vector<144x128xf32>
    %117 = tpu.reciprocal %116 {approx = true} : vector<144x128xf32> -> vector<144x128xf32>
    %118 = arith.mulf %111, %117 : vector<144x128xf32>
    %c0_98 = arith.constant 0 : index
    %c163_99 = arith.constant 163 : index
    %c0_100 = arith.constant 0 : index
    %119 = vector.load %arg2[%c0_98, %c163_99, %c0_100] : memref<1x342x128xbf16, #tpu.memory_space<vmem>>, vector<1x144x128xbf16>
    %120 = vector.shape_cast %119 : vector<1x144x128xbf16> to vector<144x128xbf16>
    %121 = arith.extf %120 : vector<144x128xbf16> to vector<144x128xf32>
    %122 = arith.addf %118, %121 : vector<144x128xf32>
    %123 = arith.truncf %122 : vector<144x128xf32> to vector<144x128xbf16>
    %c0_101 = arith.constant 0 : index
    %c144_102 = arith.constant 144 : index
    %c0_103 = arith.constant 0 : index
    %124 = vector.load %arg7[%c0_101, %c144_102, %c0_103] : memref<1x288x128xbf16, #tpu.memory_space<vmem>>, vector<1x144x128xbf16>
    %125 = vector.shape_cast %124 : vector<1x144x128xbf16> to vector<144x128xbf16>
    %126 = vector.shape_cast %123 : vector<144x128xbf16> to vector<1x144x128xbf16>
    tpu.vector_store %arg7[%c0_101, %c144_102, %c0_103], %126 {strides = array<i32>} : memref<1x288x128xbf16, #tpu.memory_space<vmem>>, vector<1x144x128xbf16>,
    return
  }
  func.func @transform_0(%arg0: i32, %arg1: i32) -> (i32, i32, i32) {
    %c0_i32 = arith.constant 0 : i32
    %c0_i32_0 = arith.constant 0 : i32
    %c0_i32_1 = arith.constant 0 : i32
    return %arg0, %c0_i32, %c0_i32_0 : i32, i32, i32
  }
  func.func @transform_1(%arg0: i32, %arg1: i32) -> (i32, i32, i32) {
    %c0_i32 = arith.constant 0 : i32
    %c0_i32_0 = arith.constant 0 : i32
    %c0_i32_1 = arith.constant 0 : i32
    %c0_i32_2 = arith.constant 0 : i32
    return %c0_i32, %c0_i32_0, %c0_i32_1 : i32, i32, i32
  }
  func.func @transform_2(%arg0: i32, %arg1: i32) -> (i32, i32) {
    %c0_i32 = arith.constant 0 : i32
    %c0_i32_0 = arith.constant 0 : i32
    %c0_i32_1 = arith.constant 0 : i32
    return %c0_i32, %c0_i32_0 : i32, i32
  }
  func.func @transform_3(%arg0: i32, %arg1: i32) -> (i32, i32, i32) {
    %c0_i32 = arith.constant 0 : i32
    %c0_i32_0 = arith.constant 0 : i32
    %c0_i32_1 = arith.constant 0 : i32
    return %c0_i32, %c0_i32_0, %arg1 : i32, i32, i32
  }
  func.func @transform_4(%arg0: i32, %arg1: i32) -> (i32, i32) {
    %c0_i32 = arith.constant 0 : i32
    %c0_i32_0 = arith.constant 0 : i32
    return %c0_i32, %arg1 : i32, i32
  }
  func.func @transform_5(%arg0: i32, %arg1: i32) -> (i32, i32, i32) {
    %c0_i32 = arith.constant 0 : i32
    %c0_i32_0 = arith.constant 0 : i32
    return %arg0, %c0_i32, %arg1 : i32, i32, i32
  }
}

</mosaic_0001>

<bundles_post_ra>
// kernel: _lambda_.1
= control target key start
LH: loop header
LB: loop body
LE: loop exit
PB: predicated region body
PF: predicated region fallthrough
CT: control target
= control target key end

     0   :  { %s13581_s18 = smov 0   ;;  %s13583_s19 = smov 0   ;;  %s18038_s0 = inlined_call_operand.vmem [shape: bf16[2,342,128], index: 0, kind: input, shape index: {}]   ;;  %s18039_s1 = inlined_call_operand.vmem [shape: bf16[9,128,128], index: 1, kind: input, shape index: {}]   ;;  %s18040_s2 = inlined_call_operand.vmem [shape: f32[1,128], index: 2, kind: input, shape index: {}]   ;;  %s18041_s3 = inlined_call_operand.vmem [shape: bf16[9,128,128], index: 3, kind: input, shape index: {}]   ;;  %s18042_s4 = inlined_call_operand.vmem [shape: f32[1,128], index: 4, kind: input, shape index: {}]   ;;  %s18043_s5 = inlined_call_operand.vmem [shape: bf16[2,288,128], index: 5, kind: output, shape index: {}]  }
   0x1   :  { %s13585_s20 = smov 0  }
   0x2 LB: > { %s27_s21 = sadd.s32 1, %s13544_s19  ;;  %p10532_p0 = scmp.ge.s32.totalorder %s13548_s20, 1  ;;  %s13548_s20 = sphi %s13585_s20, %s15_s20   ;;  %s13544_s19 = sphi %s13583_s19, %s18331_s19   ;;  %s13540_s18 = sphi %s13581_s18, %s18330_s18  }
   0x3   : > { %p29_p1 = scmp.ge.s32.totalorder %s27_s21, 2  ;;  %p218_p2 = scmp.lt.s32.totalorder %s13548_s20, 3 }
   0x5   : > { %s18333_s21 = smov (%p29_p1, %s27_s21), 0  ;;  %p219_p3 = pnand %p10532_p0, %p218_p2 }
   0x7   : > { %222 = sbr.rel (%p219_p3) target bundleno = 1640 (0x668), region = 40 }
   0xc   : > { %v12608_v0 = vld [vmem:[%s18039_s1 + $0x78] sm:$0xff]  ;;  %p256_p4 = scmp.lt.s32.totalorder %s13540_s18, 1  ;;  %v12607_v4 = vld [vmem:[%s18039_s1 + $0x70] sm:$0xff]  ;;  %v12606_v8 = vld [vmem:[%s18039_s1 + $0x68] sm:$0xff]  ;;  %vm400_vm0 = vsmask.f32 7424 }
   0xd   : > { %v12600_v1 = vld [vmem:[%s18039_s1 + $0x38] sm:$0xff]  ;;  %534 = vmatpush.bf16.msra.mxu0 %v12608_v0  ;;  %v12599_v5 = vld [vmem:[%s18039_s1 + $0x30] sm:$0xff]  ;;  %v12598_v9 = vld [vmem:[%s18039_s1 + $0x28] sm:$0xff]  ;;  %vm720_vm1 = vcmask 1046528   ;;  %vm1122_vm2 = vsmask.f32 6400 }
   0xe   : > { %v12616_v2 = vld [vmem:[%s18039_s1 + $0xb8] sm:$0xff]  ;;  %645 = vmatpush.bf16.msra.mxu1 %v12600_v1  ;;  %v12615_v6 = vld [vmem:[%s18039_s1 + $0xb0] sm:$0xff]  ;;  %s18335_s18 = smov (!%p256_p4, %s13540_s18), 1  ;;  %v12614_v10 = vld [vmem:[%s18039_s1 + $0xa8] sm:$0xff]  ;;  %vm1362_vm3 = vcmask 1045504   ;;  %vm2004_vm5 = vcmask 1044480  }
   0xf   : > { %v12632_v3 = vld [vmem:[%s18039_s1 + $0xf8] sm:$0xff]  ;;  %797 = vmatpush.bf16.msra.mxu2 %v12616_v2  ;;  %v12631_v7 = vld [vmem:[%s18039_s1 + $0xf0] sm:$0xff]  ;;  %v12630_v11 = vld [vmem:[%s18039_s1 + $0xe8] sm:$0xff]  ;;  %s13186_s25 = smul.u32 172, %s18335_s18  ;;  %vm1764_vm4 = vsmask.f32 5376 }
  0x10   : > { %1029 = vmatpush.bf16.msra.mxu3 %v12632_v3  ;;  %v12605_v12 = vld [vmem:[%s18039_s1 + $0x60] sm:$0xff]  ;;  %v12604_v16 = vld [vmem:[%s18039_s1 + $0x58] sm:$0xff]  ;;  %v12603_v23 = vld [vmem:[%s18039_s1 + $0x50] sm:$0xff]  ;;  %vm283_vm6 = vcmask 1041408   ;;  %vm284_vm7 = vsmask.f32 1280 }
  0x11   : > { %535 = vmatpush.bf16.msra.mxu0 %v12607_v4  ;;  %v12597_v13 = vld [vmem:[%s18039_s1 + $0x20] sm:$0xff]  ;;  %s13653_s11 = scalar_lea.vmem %s18038_s0, %s13186_s25  ;;  %v12596_v17 = vld [vmem:[%s18039_s1 + $0x18] sm:$0xff]  ;;  %v12595_v24 = vld [vmem:[%s18039_s1 + $0x10] sm:$0xff]  ;;  %vm289_vm9 = vcmask 1043457   ;;  %vm290_vm10 = vsmask.f32 7942 }
  0x12   : > { %646 = vmatpush.bf16.msra.mxu1 %v12599_v5  ;;  %v12613_v14 = vld [vmem:[%s18039_s1 + $0xa0] sm:$0xff]  ;;  %v12612_v18 = vld [vmem:[%s18039_s1 + $0x98] sm:$0xff]  ;;  %v869_v21 = vld [vmem:[%s13653_s11 + $0x8] sm:$0xe]  ;;  %s13187_s24 = smul.u32 144, %s18335_s18 }
  0x13   : > { %798 = vmatpush.bf16.msra.mxu2 %v12615_v6  ;;  %v12629_v15 = vld [vmem:[%s18039_s1 + $0xe0] sm:$0xff]  ;;  %v12628_v19 = vld [vmem:[%s18039_s1 + $0xd8] sm:$0xff]  ;;  %v13670_v22 = vld [vmem:[%s13653_s11 + $0xc] sm:$0xf]  ;;  %v924_v29 = vunpack.c.l.b16 %v869_v21 }
  0x14   : > { %1030 = vmatpush.bf16.msra.mxu3 %v12631_v7  ;;  %v12970_v20 = vld [vmem:[%s13653_s11] sm:$0xff]   ;;  %v13679_v25 = vld [vmem:[%s13653_s11 + $0x8] sm:$0xff]  ;;  %v12611_v27 = vld [vmem:[%s18039_s1 + $0x90] sm:$0xff]  ;;  %v925_v30 = vunpack.c.l.b16 %v13670_v22  ;;  %s17342_s26 = scalar_lea.vmem %s18043_s5, %s13187_s24 }
  0x15   : > { %536 = vmatpush.bf16.msra.mxu0 %v12606_v8  ;;  %v404_v26 = vshll.u32 %v12970_v20, 16  ;;  %v12627_v28 = vld [vmem:[%s18039_s1 + $0xd0] sm:$0xff]  ;;  %v13139_v31 = vld [vmem:[%s13653_s11] sm:$0xf0]  ;;  %v13140_v32 = vld [vmem:[%s13653_s11] sm:$0xe] }
  0x16   : > { %647 = vmatpush.bf16.msra.mxu1 %v12598_v9  ;;  %v12602_v33 = vld [vmem:[%s18039_s1 + $0x48] sm:$0xff]  ;;  %v402_v35 = vshrl.u32 %v12970_v20, 16  ;;  %v409_v37 = vshll.u32 %v13679_v25, 16  ;;  %v13141_v40 = vor.u32 %v13140_v32, %v13139_v31  ;;  %v13704_v41 = vld [vmem:[%s13653_s11 + $0x10] sm:$0xff]  ;;  %v13708_v42 = vpack.c.b16 %v925_v30, %v924_v29  ;;  %v12601_v43 = vld [vmem:[%s18039_s1 + $0x40] sm:$0xff] }
  0x17   : > { %799 = vmatpush.bf16.msra.mxu2 %v12614_v10  ;;  %v12594_v34 = vld [vmem:[%s18039_s1 + $0x8] sm:$0xff]  ;;  %v406_v36 = vrot.slane %v404_v26, 1  ;;  %v12593_v44 = vld [vmem:[%s18039_s1] sm:$0xff]  ;;  %v722_v50 = vrot.slane %v13679_v25, 1  ;;  %v954_v52 = vrot.slane %v13704_v41, 1  ;;  %v12664_v53 = vld [vmem:[%s18039_s1 + $0x1b8] sm:$0xff] }
  0x18   : > { %1031 = vmatpush.bf16.msra.mxu3 %v12630_v11  ;;  %v12610_v38 = vld [vmem:[%s18039_s1 + $0x88] sm:$0xff]  ;;  %v411_v46 = vrot.slane %v409_v37, 1  ;;  %v12609_v47 = vld [vmem:[%s18039_s1 + $0x80] sm:$0xff]  ;;  %v721_v49 = vrot.slane %v13141_v40, 1  ;;  %v953_v51 = vrot.slane %v13708_v42, 1  ;;  %v12640_v54 = vld [vmem:[%s18039_s1 + $0x138] sm:$0xff] }
  0x19   : > { %537 = vmatpush.bf16.msra.mxu0 %v12605_v12  ;;  %v12626_v39 = vld [vmem:[%s18039_s1 + $0xc8] sm:$0xff]  ;;  %v407_v45 = vor.u32 %v406_v36, %v402_v35  ;;  %v12625_v48 = vld [vmem:[%s18039_s1 + $0xc0] sm:$0xff]  ;;  %v12672_v58 = vld [vmem:[%s18039_s1 + $0x1f8] sm:$0xff]  ;;  %v413_v3 = vshrl.u32 %v13679_v25, 16 }
  0x1a   : > { %648 = vmatpush.bf16.msra.mxu1 %v12597_v13  ;;  %v723_v56 = vsel %vm720_vm1, %v721_v49, %v722_v50  ;;  %v955_v57 = vsel %vm720_vm1, %v953_v51, %v954_v52  ;;  %v12648_v59 = vld [vmem:[%s18039_s1 + $0x178] sm:$0xff]  ;;  %v12663_v60 = vld [vmem:[%s18039_s1 + $0x1b0] sm:$0xff]  ;;  %v12662_v1 = vld [vmem:[%s18039_s1 + $0x1a8] sm:$0xff] }
  0x1b   : > { %800 = vmatpush.bf16.msra.mxu2 %v12613_v14  ;;  %v412_v55 = vsel %vm400_vm0, %v407_v45, %v411_v46  ;;  %v12639_v61 = vld [vmem:[%s18039_s1 + $0x130] sm:$0xff]  ;;  %v12638_v2 = vld [vmem:[%s18039_s1 + $0x128] sm:$0xff]  ;;  %v13761_v5 = vld [vmem:[%s13653_s11 + $0x18] sm:$0xff]  ;;  %v415_v8 = vor.u32 %v413_v3, %v411_v46 }
  0x1c   : > { %1032 = vmatpush.bf16.msra.mxu3 %v12629_v15  ;;  %v12586_v62 = vld [vmem:[%s13653_s11 + $0x10] sm:$0xff]  ;;  %v12670_v6 = vld [vmem:[%s18039_s1 + $0x1e8] sm:$0xff]  ;;  %v956_v11 = vrot.slane %v13761_v5, 1  ;;  %v12587_v15 = vld [vmem:[%s13653_s11 + $0x18] sm:$0xff] }
  0x1d   : > { %538 = vmatpush.bf16.msra.mxu0 %v12604_v16  ;;  %v12671_v63 = vld [vmem:[%s18039_s1 + $0x1f0] sm:$0xff]  ;;  %v417_v4 = vshll.u32 %v12586_v62, 16  ;;  %v12646_v7 = vld [vmem:[%s18039_s1 + $0x168] sm:$0xff]  ;;  %v724_v10 = vrot.slane %v12586_v62, 1  ;;  %v12661_v16 = vld [vmem:[%s18039_s1 + $0x1a0] sm:$0xff]  ;;  %v425_v21 = vshll.u32 %v12587_v15, 16 }
  0x1e   : > { %649 = vmatpush.bf16.msra.mxu1 %v12596_v17  ;;  %v12647_v0 = vld [vmem:[%s18039_s1 + $0x170] sm:$0xff]  ;;  %v957_v14 = vsel %vm720_vm1, %v954_v52, %v956_v11  ;;  %v12637_v17 = vld [vmem:[%s18039_s1 + $0x120] sm:$0xff]  ;;  %v726_v26 = vrot.slane %v12587_v15, 1  ;;  %v12668_v35 = vld [vmem:[%s18039_s1 + $0x1d8] sm:$0xff]  ;;  %v429_v37 = vshrl.u32 %v12587_v15, 16 }
  0x1f   : > { %801 = vmatpush.bf16.msra.mxu2 %v12612_v18  ;;  %v419_v9 = vrot.slane %v417_v4, 1  ;;  %v725_v13 = vsel %vm720_vm1, %v722_v50, %v724_v10  ;;  %v12669_v18 = vld [vmem:[%s18039_s1 + $0x1e0] sm:$0xff]  ;;  %v12644_v36 = vld [vmem:[%s18039_s1 + $0x158] sm:$0xff]  ;;  %v12589_v49 = vld [vmem:[%s13653_s11 + $0x28] sm:$0xff] }
  0x20   : > { %1033 = vmatpush.bf16.msra.mxu3 %v12628_v19  ;;  %v12645_v19 = vld [vmem:[%s18039_s1 + $0x160] sm:$0xff]  ;;  %v727_v29 = vsel %vm720_vm1, %v724_v10, %v726_v26  ;;  %v12659_v50 = vld [vmem:[%s18039_s1 + $0x190] sm:$0xff]  ;;  %v12666_v3 = vld [vmem:[%s18039_s1 + $0x1c8] sm:$0xff]  ;;  %v445_v4 = vshrl.u32 %v12589_v49, 16 }
  0x21   : > { %539 = vmatpush.bf16.msra.mxu0 %v12603_v23  ;;  %v420_v12 = vsel %vm400_vm0, %v415_v8, %v419_v9  ;;  %v13788_v23 = vld [vmem:[%s13653_s11 + $0x20] sm:$0xff]  ;;  %v12635_v51 = vld [vmem:[%s18039_s1 + $0x110] sm:$0xff]  ;;  %vm14371_vm8 = vmand %vm283_vm6, %vm284_vm7 }
  0x22   : > { %650 = vmatpush.bf16.msra.mxu1 %v12595_v24  ;;  %v12588_v32 = vld [vmem:[%s13653_s11 + $0x20] sm:$0xff]  ;;  %v12667_v52 = vld [vmem:[%s18039_s1 + $0x1d0] sm:$0xff]  ;;  %vm14379_vm11 = vmand %vm289_vm9, %vm290_vm10 }
  0x23   : > { %802 = vmatpush.bf16.msra.mxu2 %v12611_v27  ;;  %v958_v27 = vrot.slane %v13788_v23, 1  ;;  %v12703_v22 = vld [vmem:[%s18039_s1 + $0x70] sm:$0xff] }
  0x24   : > { %1034 = vmatpush.bf16.msra.mxu3 %v12627_v28 }
  0x25   : > { %540 = vmatpush.bf16.msra.mxu0 %v12602_v33  ;;  %v959_v31 = vsel %vm720_vm1, %v956_v11, %v958_v27  ;;  %v12660_v33 = vld [vmem:[%s18039_s1 + $0x198] sm:$0xff] }
  0x26   : > { %651 = vmatpush.bf16.msra.mxu1 %v12594_v34  ;;  %v12636_v34 = vld [vmem:[%s18039_s1 + $0x118] sm:$0xff] }
  0x27   : > { %803 = vmatpush.bf16.msra.mxu2 %v12610_v38  ;;  %v433_v38 = vshll.u32 %v12588_v32, 16 }
  0x28   : > { %1035 = vmatpush.bf16.msra.mxu3 %v12626_v39  ;;  %v13808_v39 = vld [vmem:[%s13653_s11 + $0x28] sm:$0xff] }
  0x29   : > { %541 = vmatpush.bf16.msra.mxu0 %v12601_v43  ;;  %v435_v43 = vrot.slane %v433_v38, 1  ;;  %v960_v45 = vrot.slane %v13808_v39, 1 }
  0x2a   : > { %652 = vmatpush.bf16.msra.mxu1 %v12593_v44  ;;  %v728_v44 = vrot.slane %v12588_v32, 1 }
  0x2b   : > { %804 = vmatpush.bf16.msra.mxu2 %v12609_v47 }
  0x2c   : > { %1036 = vmatpush.bf16.msra.mxu3 %v12625_v48  ;;  %542 = vmatmul.bf16.vlgmr.msra.gmra.mxu0 %v412_v55  ;;  %v729_v47 = vsel %vm720_vm1, %v726_v26, %v728_v44  ;;  %v961_v48 = vsel %vm720_vm1, %v958_v27, %v960_v45  ;;  %v441_v55 = vshll.u32 %v12589_v49, 16 }
  0x2d   : > { %1269 = vmatpush.bf16.msrb.mxu0 %v12640_v54  ;;  %653 = vmatmul.bf16.vlgmr.msra.gmra.mxu1 %v12970_v20  ;;  %v421_v20 = vshrl.u32 %v12586_v62, 16  ;;  %v437_v54 = vshrl.u32 %v12588_v32, 16 }
  0x2e   : > { %805 = vmatmul.bf16.vlgmr.msra.gmra.mxu2 %v723_v56  ;;  %1439 = vmatpush.bf16.msrb.mxu1 %v12648_v59  ;;  %v13828_v56 = vld [vmem:[%s13653_s11 + $0x30] sm:$0xff]  ;;  %v730_v59 = vrot.slane %v12589_v49, 1 }
  0x2f   : > { %1671 = vmatpush.bf16.msrb.mxu2 %v12664_v53  ;;  %1037 = vmatmul.bf16.vlgmr.msra.gmra.mxu3 %v955_v57  ;;  %v423_v24 = vor.u32 %v421_v20, %v419_v9  ;;  %v12643_v53 = vld [vmem:[%s18039_s1 + $0x150] sm:$0xff]  ;;  %v439_v57 = vor.u32 %v437_v54, %v435_v43  ;;  %v12712_v54 = vld [vmem:[%s18039_s1 + $0xb8] sm:$0xff] }
  0x30   : > { %1911 = vmatpush.bf16.msrb.mxu3 %v12672_v58  ;;  %v443_v58 = vrot.slane %v441_v55, 1 }
  0x31   : > { %1270 = vmatpush.bf16.msrb.mxu0 %v12639_v61 }
  0x32   : > { %1440 = vmatpush.bf16.msrb.mxu1 %v12647_v0  ;;  %v444_v61 = vsel %vm400_vm0, %v439_v57, %v443_v58  ;;  %v12590_v0 = vld [vmem:[%s13653_s11 + $0x30] sm:$0xff]  ;;  %v447_v8 = vor.u32 %v445_v4, %v443_v58 }
  0x33   : > { %1672 = vmatpush.bf16.msrb.mxu2 %v12663_v60  ;;  %v962_v60 = vrot.slane %v13828_v56, 1  ;;  %v732_v10 = vrot.slane %v12590_v0, 1 }
  0x34   : > { %1912 = vmatpush.bf16.msrb.mxu3 %v12671_v63 }
  0x35   : > { %1271 = vmatpush.bf16.msrb.mxu0 %v12638_v2  ;;  %v963_v63 = vsel %vm720_vm1, %v960_v45, %v962_v60  ;;  %v12634_v2 = vld [vmem:[%s18039_s1 + $0x108] sm:$0xff] }
  0x36   : > { %1441 = vmatpush.bf16.msrb.mxu1 %v12646_v7  ;;  %v13845_v7 = vld [vmem:[%s13653_s11 + $0x38] sm:$0xff]  ;;  %v334_v45 = vld [vmem:[%s13653_s11 + $0x48] sm:$0x1] }
  0x37   : > { %1673 = vmatpush.bf16.msrb.mxu2 %v12662_v1  ;;  %v12658_v1 = vld [vmem:[%s18039_s1 + $0x188] sm:$0xff]  ;;  %v964_v11 = vrot.slane %v13845_v7, 1 }
  0x38   : > { %1913 = vmatpush.bf16.msrb.mxu3 %v12670_v6  ;;  %v449_v6 = vshll.u32 %v12590_v0, 16 }
  0x39   : > { %1272 = vmatpush.bf16.msrb.mxu0 %v12637_v17  ;;  %v453_v17 = vshrl.u32 %v12590_v0, 16 }
  0x3a   : > { %1442 = vmatpush.bf16.msrb.mxu1 %v12645_v19  ;;  %v451_v9 = vrot.slane %v449_v6, 1  ;;  %v13856_v19 = vld [vmem:[%s13653_s11 + $0x40] sm:$0xff] }
  0x3b   : > { %1674 = vmatpush.bf16.msrb.mxu2 %v12661_v16  ;;  %v12642_v16 = vld [vmem:[%s18039_s1 + $0x148] sm:$0xff] }
  0x3c   : > { %547 = vmatmul.bf16.gmra.mxu0 %v420_v12  ;;  %1914 = vmatpush.bf16.msrb.mxu3 %v12669_v18  ;;  %v452_v12 = vsel %vm400_vm0, %v447_v8, %v451_v9  ;;  %v455_v20 = vor.u32 %v453_v17, %v451_v9  ;;  %v1127_v17 = vshll.u32 %v13708_v42, 16 }
  0x3d   : > { %658 = vmatmul.bf16.gmra.mxu1 %v13679_v25  ;;  %v427_v25 = vrot.slane %v425_v21, 1  ;;  %1273 = vmatpush.bf16.msrb.mxu0 %v12636_v34  ;;  %v12641_v34 = vld [vmem:[%s18039_s1 + $0x140] sm:$0xff] }
  0x3e   : > { %810 = vmatmul.bf16.gmra.mxu2 %v725_v13  ;;  %1443 = vmatpush.bf16.msrb.mxu1 %v12644_v36  ;;  %v733_v13 = vsel %vm720_vm1, %v730_v59, %v732_v10 }
  0x3f   : > { %1042 = vmatmul.bf16.gmra.mxu3 %v957_v14  ;;  %v428_v28 = vsel %vm400_vm0, %v423_v24, %v427_v25  ;;  %1675 = vmatpush.bf16.msrb.mxu2 %v12660_v33  ;;  %v431_v40 = vor.u32 %v429_v37, %v427_v25  ;;  %v965_v14 = vsel %vm720_vm1, %v962_v60, %v964_v11  ;;  %v966_v25 = vrot.slane %v13856_v19, 1  ;;  %v12665_v33 = vld [vmem:[%s18039_s1 + $0x1c0] sm:$0xff]  ;;  %v13876_v37 = vld [vmem:[%s13653_s11 + $0x48] sm:$0xff]  ;;  %v1511_v60 = vld [vmem:[%s13653_s11 + $0x10] sm:$0xc] }
  0x40   : > { %1915 = vmatpush.bf16.msrb.mxu3 %v12668_v35 }
  0x41   : > { %v436_v46 = vsel %vm400_vm0, %v431_v40, %v435_v43  ;;  %1274 = vmatpush.bf16.msrb.mxu0 %v12635_v51 }
  0x42   : > { %1444 = vmatpush.bf16.msrb.mxu1 %v12643_v53  ;;  %v12680_v53 = vld [vmem:[%s18039_s1 + $0x238] sm:$0xff] }
  0x43   : > { %1676 = vmatpush.bf16.msrb.mxu2 %v12659_v50  ;;  %v887_v50 = vld [vmem:[%s13653_s11 + $0x50] sm:$0x1] }
  0x44   : > { %1916 = vmatpush.bf16.msrb.mxu3 %v12667_v52  ;;  %v12696_v52 = vld [vmem:[%s18039_s1 + $0x38] sm:$0xff]  ;;  %v942_v55 = vunpack.c.l.b16 %v887_v50  ;;  %v12711_v50 = vld [vmem:[%s18039_s1 + $0xb0] sm:$0xff] }
  0x45   : > { %1275 = vmatpush.bf16.msrb.mxu0 %v12634_v2 }
  0x46   : > { %1445 = vmatpush.bf16.msrb.mxu1 %v12642_v16  ;;  %v1124_v16 = vshrl.u32 %v13708_v42, 16 }
  0x47   : > { %1677 = vmatpush.bf16.msrb.mxu2 %v12658_v1  ;;  %v1566_v1 = vunpack.c.l.b16 %v1511_v60 }
  0x48   : > { %1917 = vmatpush.bf16.msrb.mxu3 %v12666_v3 }
  0x4a   : > { %1446 = vmatpush.bf16.msrb.mxu1 %v12641_v34 }
  0x4c   : > { %552 = vmatmul.bf16.gmra.mxu0 %v428_v28  ;;  %v967_v28 = vsel %vm720_vm1, %v964_v11, %v966_v25  ;;  %1918 = vmatpush.bf16.msrb.mxu3 %v12665_v33 }
  0x4d   : > { %663 = vmatmul.bf16.gmra.mxu1 %v12586_v62  ;;  %v731_v62 = vsel %vm720_vm1, %v728_v44, %v730_v59  ;;  %v968_v44 = vrot.slane %v13876_v37, 1  ;;  %v952_v59 = vpack.c.b16 %v942_v55, %v942_v55 }
  0x4e   : > { %815 = vmatmul.bf16.gmra.mxu2 %v727_v29  ;;  %v12657_v29 = vld [vmem:[%s18039_s1 + $0x180] sm:$0xff] }
  0x4f   : > { %1047 = vmatmul.bf16.gmra.mxu3 %v959_v31  ;;  %v12592_v31 = vld [vmem:[%s13653_s11 + $0x40] sm:$0xff]  ;;  %1678 = vmatpush.bf16.msrb.mxu2 %v12657_v29  ;;  %v970_v4 = vrot.slane %v952_v59, 1 }
  0x50   : > { %v465_v36 = vshll.u32 %v12592_v31, 16  ;;  %v736_v43 = vrot.slane %v12592_v31, 1  ;;  %3720 = vmatpush.bf16.msra.mxu3 %v12712_v54  ;;  %v469_v57 = vshrl.u32 %v12592_v31, 16 }
  0x52   : > { %v467_v40 = vrot.slane %v465_v36, 1 }
  0x53   : > { %3570 = vmatpush.bf16.msra.mxu2 %v12696_v52 }
  0x54   : > { %3721 = vmatpush.bf16.msra.mxu3 %v12711_v50 }
  0x5c   : > { %557 = vmatmul.bf16.gmra.mxu0 %v436_v46 }
  0x5d   : > { %668 = vmatmul.bf16.gmra.mxu1 %v12587_v15  ;;  %v12591_v15 = vld [vmem:[%s13653_s11 + $0x38] sm:$0xff] }
  0x5e   : > { %820 = vmatmul.bf16.gmra.mxu2 %v729_v47  ;;  %v457_v18 = vshll.u32 %v12591_v15, 16  ;;  %v734_v24 = vrot.slane %v12591_v15, 1  ;;  %v461_v35 = vshrl.u32 %v12591_v15, 16  ;;  %v389_v47 = vunpack.c.l.b16 %v334_v45 }
  0x5f   : > { %1052 = vmatmul.bf16.gmra.mxu3 %v961_v48 }
  0x60   : > { %v459_v21 = vrot.slane %v457_v18, 1  ;;  %v735_v27 = vsel %vm720_vm1, %v732_v10, %v734_v24  ;;  %v737_v48 = vsel %vm720_vm1, %v734_v24, %v736_v43  ;;  %v399_v51 = vpack.c.b16 %v389_v47, %v389_v47 }
  0x61   : > { %v1132_v18 = vshrl.u32 %v13704_v41, 16 }
  0x62   : > { %v460_v26 = vsel %vm400_vm0, %v455_v20, %v459_v21  ;;  %v463_v38 = vor.u32 %v461_v35, %v459_v21  ;;  %v473_v58 = vshll.u32 %v399_v51, 16  ;;  %v738_v3 = vrot.slane %v399_v51, 1 }
  0x63   : > { %v1135_v20 = vshll.u32 %v13704_v41, 16  ;;  %v1134_v33 = vrot.slane %v1132_v18, 1 }
  0x64   : > { %v468_v46 = vsel %vm400_vm0, %v463_v38, %v467_v40 }
  0x65   : > { %v1137_v34 = vrot.slane %v1135_v20, 2 }
  0x67   : > { %v1138_v51 = vor.u32 %v1137_v34, %v1134_v33  ;;  %v1366_v34 = vrot.slane %v13761_v5, 2 }
  0x6c   : > { %562 = vmatmul.bf16.gmra.mxu0 %v444_v61  ;;  %v13895_v61 = vld [vmem:[%s13653_s11 + $0x14] sm:$0xf] }
  0x6d   : > { %673 = vmatmul.bf16.gmra.mxu1 %v12588_v32  ;;  %v12633_v32 = vld [vmem:[%s18039_s1 + $0x100] sm:$0xff]  ;;  %v1567_v2 = vunpack.c.l.b16 %v13895_v61  ;;  %v12759_v61 = vld [vmem:[%s18039_s1 + $0x1b0] sm:$0xff] }
  0x6e   : > { %825 = vmatmul.bf16.gmra.mxu2 %v731_v62  ;;  %1276 = vmatpush.bf16.msrb.mxu0 %v12633_v32  ;;  %v12704_v62 = vld [vmem:[%s18039_s1 + $0x78] sm:$0xff]  ;;  %v1129_v32 = vrot.slane %v1127_v17, 2 }
  0x6f   : > { %1057 = vmatmul.bf16.gmra.mxu3 %v963_v63  ;;  %v471_v63 = vor.u32 %v469_v57, %v467_v40  ;;  %3459 = vmatpush.bf16.msra.mxu1 %v12704_v62  ;;  %v13904_v10 = vpack.c.b16 %v1567_v2, %v1566_v1 }
  0x71   : > { %v1766_v24 = vshrl.u32 %v13904_v10, 16  ;;  %v1595_v54 = vrot.slane %v13904_v10, 2 }
  0x72   : > { %2081 = vmatpush.bf16.msra.mxu0 %v12680_v53  ;;  %v1364_v53 = vrot.slane %v13704_v41, 2 }
  0x73   : > { %3460 = vmatpush.bf16.msra.mxu1 %v12703_v22  ;;  %v13973_v22 = vld [vmem:[%s13653_s11 + $0x28] sm:$0xff] }
  0x7c   : > { %567 = vmatmul.bf16.gmra.mxu0 %v452_v12  ;;  %v739_v12 = vsel %vm720_vm1, %v736_v43, %v738_v3  ;;  %v1768_v43 = vrot.slane %v1766_v24, 2 }
  0x7d   : > { %678 = vmatmul.bf16.gmra.mxu1 %v12589_v49  ;;  %v969_v49 = vsel %vm720_vm1, %v966_v25, %v968_v44  ;;  %v12695_v25 = vld [vmem:[%s18039_s1 + $0x30] sm:$0xff] }
  0x7e   : > { %830 = vmatmul.bf16.gmra.mxu2 %v733_v13  ;;  %v971_v13 = vsel %vm720_vm1, %v968_v44, %v970_v4 }
  0x7f   : > { %1062 = vmatmul.bf16.gmra.mxu3 %v965_v14  ;;  %v1341_v14 = vld [vmem:[%s13653_s11 + $0x8] sm:$0xc]  ;;  %3571 = vmatpush.bf16.msra.mxu2 %v12695_v25 }
  0x80   : > { %v1360_v21 = vunpack.c.l.b16 %v1341_v14 }
  0x82   : > { %v1361_v40 = vpack.c.b16 %v925_v30, %v1360_v21 }
  0x84   : > { %v1363_v52 = vrot.slane %v1361_v40, 2 }
  0x86   : > { %v1365_v41 = vsel %vm1362_vm3, %v1363_v52, %v1364_v53  ;;  %v1150_v52 = vshrl.u32 %v13788_v23, 16 }
  0x8c   : > { %572 = vmatmul.bf16.gmra.mxu0 %v460_v26  ;;  %v1769_v26 = vshll.u32 %v13904_v10, 16  ;;  %v1141_v10 = vshrl.u32 %v13761_v5, 16 }
  0x8d   : > { %683 = vmatmul.bf16.gmra.mxu1 %v12590_v0  ;;  %v475_v0 = vrot.slane %v473_v58, 1 }
  0x8e   : > { %835 = vmatmul.bf16.gmra.mxu2 %v735_v27  ;;  %v1771_v45 = vrot.slane %v1769_v26, 3  ;;  %v1143_v21 = vrot.slane %v1141_v10, 1  ;;  %v12709_v10 = vld [vmem:[%s18039_s1 + $0xa0] sm:$0xff] }
  0x8f   : > { %1067 = vmatmul.bf16.gmra.mxu3 %v967_v28  ;;  %v476_v9 = vsel %vm400_vm0, %v471_v63, %v475_v0 }
  0x90   : > { %v1772_v57 = vor.u32 %v1771_v45, %v1768_v43 }
  0x9c   : > { %577 = vmatmul.bf16.gmra.mxu0 %v468_v46 }
  0x9d   : > { %688 = vmatmul.bf16.gmra.mxu1 %v12591_v15  ;;  %v13910_v15 = vld [vmem:[%s13653_s11 + $0x18] sm:$0xff] }
  0x9e   : > { %840 = vmatmul.bf16.gmra.mxu2 %v737_v48  ;;  %v1774_v27 = vshrl.u32 %v13910_v15, 16  ;;  %v1777_v28 = vshll.u32 %v13910_v15, 16  ;;  %v1596_v55 = vrot.slane %v13910_v15, 2 }
  0x9f   : > { %1072 = vmatmul.bf16.gmra.mxu3 %v969_v49  ;;  %v12679_v49 = vld [vmem:[%s18039_s1 + $0x230] sm:$0xff] }
  0xa0   : > { %v1776_v46 = vrot.slane %v1774_v27, 2  ;;  %v1779_v47 = vrot.slane %v1777_v28, 3  ;;  %2082 = vmatpush.bf16.msra.mxu0 %v12679_v49  ;;  %v1597_v4 = vsel %vm1362_vm3, %v1595_v54, %v1596_v55  ;;  %v1153_v54 = vshll.u32 %v13788_v23, 16 }
  0xa2   : > { %v1780_v58 = vor.u32 %v1779_v47, %v1776_v46  ;;  %v1367_v47 = vsel %vm1362_vm3, %v1364_v53, %v1366_v34  ;;  %v1795_v53 = vshll.u32 %v13973_v22, 16 }
  0xa9   : > { %v543_v6 = vpop.f32.mrf.mxu0 }
  0xaa   : > { %v654_v8 = vpop.f32.mrf.mxu1 }
  0xab   : > { %v655_v11 = vadd.f32 %v654_v8, %v543_v6  ;;  %v1781_v6 = vsel %vm1764_vm4, %v1772_v57, %v1780_v58  ;;  %v13944_v8 = vld [vmem:[%s13653_s11 + $0x20] sm:$0xff] }
  0xac   : > { %582 = vmatmul.bf16.gmra.mxu0 %v476_v9 }
  0xad   : > { %693 = vmatmul.bf16.gmra.mxu1 %v12592_v31  ;;  %v1126_v31 = vrot.slane %v1124_v16, 1 }
  0xae   : > { %845 = vmatmul.bf16.gmra.mxu2 %v739_v12  ;;  %v1783_v12 = vshrl.u32 %v13944_v8, 16 }
  0xaf   : > { %1077 = vmatmul.bf16.gmra.mxu3 %v971_v13  ;;  %v1130_v30 = vor.u32 %v1129_v32, %v1126_v31  ;;  %v1786_v13 = vshll.u32 %v13944_v8, 16  ;;  %v12710_v31 = vld [vmem:[%s18039_s1 + $0xa8] sm:$0xff] }
  0xb0   : > { %v1785_v26 = vrot.slane %v1783_v12, 2  ;;  %v12702_v32 = vld [vmem:[%s18039_s1 + $0x68] sm:$0xff]  ;;  %3722 = vmatpush.bf16.msra.mxu3 %v12710_v31 }
  0xb1   : > { %v806_v42 = vpop.f32.mrf.mxu2  ;;  %v545_v36 = vpop.f32.mrf.mxu0  ;;  %v1139_v1 = vsel %vm1122_vm2, %v1130_v30, %v1138_v51  ;;  %v1788_v27 = vrot.slane %v1786_v13, 3  ;;  %3461 = vmatpush.bf16.msra.mxu1 %v12702_v32  ;;  %v1368_v13 = vrot.slane %v13788_v23, 2  ;;  %v1159_v32 = vshrl.u32 %v13808_v39, 16 }
  0xb2   : > { %v1038_v29 = vpop.f32.mrf.mxu3  ;;  %v851_v35 = vadd.f32 %v806_v42, %v655_v11  ;;  %v656_v38 = vpop.f32.mrf.mxu1  ;;  %v1144_v11 = vshll.u32 %v13761_v5, 16  ;;  %v12694_v42 = vld [vmem:[%s18039_s1 + $0x28] sm:$0xff] }
  0xb3   : > { %v657_v44 = vadd.f32 %v656_v38, %v545_v36  ;;  %3572 = vmatpush.bf16.msra.mxu2 %v12694_v42  ;;  %v1789_v36 = vor.u32 %v1788_v27, %v1785_v26  ;;  %v1369_v26 = vsel %vm1362_vm3, %v1366_v34, %v1368_v13 }
  0xb4   : > { %v13925_v48 = vadd.f32 %v1038_v29, %v851_v35  ;;  %v1146_v24 = vrot.slane %v1144_v11, 2  ;;  %v12678_v29 = vld [vmem:[%s18039_s1 + $0x228] sm:$0xff]  ;;  %v1598_v35 = vrot.slane %v13944_v8, 2  ;;  %v12701_v11 = vld [vmem:[%s18039_s1 + $0x60] sm:$0xff]  ;;  %3723 = vmatpush.bf16.msra.mxu3 %v12709_v10  ;;  %v14028_v10 = vld [vmem:[%s13653_s11 + $0x38] sm:$0xff] }
  0xb5   : > { %2083 = vmatpush.bf16.msra.mxu0 %v12678_v29  ;;  %v1790_v50 = vsel %vm1764_vm4, %v1780_v58, %v1789_v36  ;;  %3462 = vmatpush.bf16.msra.mxu1 %v12701_v11  ;;  %v14002_v29 = vld [vmem:[%s13653_s11 + $0x30] sm:$0xff] }
  0xb6   : > { %v1147_v33 = vor.u32 %v1146_v24, %v1143_v21  ;;  %v1599_v5 = vsel %vm1362_vm3, %v1596_v55, %v1598_v35  ;;  %v1804_v34 = vshll.u32 %v14002_v29, 16 }
  0xb8   : > { %v1148_v46 = vsel %vm1122_vm2, %v1138_v51, %v1147_v33  ;;  %v1792_v51 = vshrl.u32 %v13973_v22, 16 }
  0xb9   : > { %v808_v59 = vpop.f32.mrf.mxu2  ;;  %v548_v63 = vpop.f32.mrf.mxu0 }
  0xba   : > { %v1040_v60 = vpop.f32.mrf.mxu3  ;;  %v852_v62 = vadd.f32 %v808_v59, %v657_v44  ;;  %v659_v0 = vpop.f32.mrf.mxu1 }
  0xbb   : > { %v660_v3 = vadd.f32 %v659_v0, %v548_v63  ;;  %v1155_v63 = vrot.slane %v1153_v54, 2  ;;  %v12676_v54 = vld [vmem:[%s18039_s1 + $0x218] sm:$0xff] }
  0xbc   : > { %v13946_v9 = vadd.f32 %v1040_v60, %v852_v62  ;;  %1277 = vmatmul.bf16.vlgmr.msrb.gmra.mxu0 %v1139_v1  ;;  %v1152_v62 = vrot.slane %v1150_v52, 1  ;;  %v1794_v1 = vrot.slane %v1792_v51, 2  ;;  %v12692_v52 = vld [vmem:[%s18039_s1 + $0x18] sm:$0xff] }
  0xbd   : > { %1447 = vmatmul.bf16.vlgmr.msrb.gmra.mxu1 %v1365_v41  ;;  %v1797_v41 = vrot.slane %v1795_v53, 3  ;;  %v12708_v51 = vld [vmem:[%s18039_s1 + $0x98] sm:$0xff] }
  0xbe   : > { %1679 = vmatmul.bf16.vlgmr.msrb.gmra.mxu2 %v1597_v4  ;;  %v12693_v4 = vld [vmem:[%s18039_s1 + $0x20] sm:$0xff]  ;;  %v1156_v12 = vor.u32 %v1155_v63, %v1152_v62  ;;  %3724 = vmatpush.bf16.msra.mxu3 %v12708_v51 }
  0xbf   : > { %1919 = vmatmul.bf16.vlgmr.msrb.gmra.mxu3 %v1781_v6  ;;  %v12677_v6 = vld [vmem:[%s18039_s1 + $0x220] sm:$0xff]  ;;  %3573 = vmatpush.bf16.msra.mxu2 %v12693_v4 }
  0xc0   : > { %2084 = vmatpush.bf16.msra.mxu0 %v12677_v6 }
  0xc1   : > { %v811_v14 = vpop.f32.mrf.mxu2  ;;  %v550_v18 = vpop.f32.mrf.mxu0 }
  0xc2   : > { %v1043_v16 = vpop.f32.mrf.mxu3  ;;  %v853_v17 = vadd.f32 %v811_v14, %v660_v3  ;;  %v661_v20 = vpop.f32.mrf.mxu1  ;;  %v1600_v14 = vrot.slane %v13973_v22, 2 }
  0xc3   : > { %v662_v25 = vadd.f32 %v661_v20, %v550_v18  ;;  %3574 = vmatpush.bf16.msra.mxu2 %v12692_v52 }
  0xc4   : > { %v13952_v28 = vadd.f32 %v1043_v16, %v853_v17  ;;  %v1798_v16 = vor.u32 %v1797_v41, %v1794_v1  ;;  %v1601_v23 = vsel %vm1362_vm3, %v1598_v35, %v1600_v14  ;;  %2085 = vmatpush.bf16.msra.mxu0 %v12676_v54 }
  0xc6   : > { %v1799_v42 = vsel %vm1764_vm4, %v1789_v36, %v1798_v16 }
  0xc9   : > { %v813_v38 = vpop.f32.mrf.mxu2  ;;  %v553_v44 = vpop.f32.mrf.mxu0 }
  0xca   : > { %v1045_v40 = vpop.f32.mrf.mxu3  ;;  %v854_v43 = vadd.f32 %v813_v38, %v662_v25  ;;  %v664_v45 = vpop.f32.mrf.mxu1  ;;  %v1157_v25 = vsel %vm1122_vm2, %v1147_v33, %v1156_v12  ;;  %v1162_v38 = vshll.u32 %v13808_v39, 16  ;;  %v1801_v33 = vshrl.u32 %v14002_v29, 16 }
  0xcb   : > { %v665_v49 = vadd.f32 %v664_v45, %v553_v44  ;;  %v1161_v45 = vrot.slane %v1159_v32, 1 }
  0xcc   : > { %v13975_v30 = vadd.f32 %v1045_v40, %v854_v43  ;;  %1282 = vmatmul.bf16.gmra.mxu0 %v1148_v46  ;;  %v1164_v46 = vrot.slane %v1162_v38, 2 }
  0xcd   : > { %1452 = vmatmul.bf16.gmra.mxu1 %v1367_v47 }
  0xce   : > { %1684 = vmatmul.bf16.gmra.mxu2 %v1599_v5  ;;  %v1806_v5 = vrot.slane %v1804_v34, 3  ;;  %v1165_v53 = vor.u32 %v1164_v46, %v1161_v45 }
  0xcf   : > { %1924 = vmatmul.bf16.gmra.mxu3 %v1790_v50 }
  0xd0   : > { %v1166_v1 = vsel %vm1122_vm2, %v1156_v12, %v1165_v53  ;;  %v1168_v12 = vshrl.u32 %v13828_v56, 16 }
  0xd1   : > { %v816_v57 = vpop.f32.mrf.mxu2  ;;  %v555_v58 = vpop.f32.mrf.mxu0 }
  0xd2   : > { %v1048_v55 = vpop.f32.mrf.mxu3  ;;  %v855_v59 = vadd.f32 %v816_v57, %v665_v49  ;;  %v666_v60 = vpop.f32.mrf.mxu1  ;;  %v1803_v49 = vrot.slane %v1801_v33, 2  ;;  %v1370_v57 = vrot.slane %v13808_v39, 2  ;;  %v12691_v33 = vld [vmem:[%s18039_s1 + $0x10] sm:$0xff] }
  0xd3   : > { %v667_v0 = vadd.f32 %v666_v60, %v555_v58  ;;  %3575 = vmatpush.bf16.msra.mxu2 %v12691_v33 }
  0xd4   : > { %v13981_v3 = vadd.f32 %v1048_v55, %v855_v59  ;;  %v1602_v55 = vrot.slane %v14002_v29, 2  ;;  %v1807_v59 = vor.u32 %v1806_v5, %v1803_v49  ;;  %v1371_v41 = vsel %vm1362_vm3, %v1368_v13, %v1370_v57 }
  0xd5   : > { %v1171_v13 = vshll.u32 %v13828_v56, 16 }
  0xd6   : > { %v1603_v6 = vsel %vm1362_vm3, %v1600_v14, %v1602_v55  ;;  %v1808_v39 = vsel %vm1764_vm4, %v1798_v16, %v1807_v59  ;;  %v1810_v14 = vshrl.u32 %v14028_v10, 16  ;;  %v1813_v16 = vshll.u32 %v14028_v10, 16 }
  0xd8   : > { %v1815_v32 = vrot.slane %v1813_v16, 3 }
  0xd9   : > { %v818_v17 = vpop.f32.mrf.mxu2  ;;  %v558_v21 = vpop.f32.mrf.mxu0 }
  0xda   : > { %v1050_v18 = vpop.f32.mrf.mxu3  ;;  %v856_v20 = vadd.f32 %v818_v17, %v667_v0  ;;  %v669_v24 = vpop.f32.mrf.mxu1  ;;  %v12700_v17 = vld [vmem:[%s18039_s1 + $0x58] sm:$0xff] }
  0xdb   : > { %v670_v27 = vadd.f32 %v669_v24, %v558_v21  ;;  %3463 = vmatpush.bf16.msra.mxu1 %v12700_v17 }
  0xdc   : > { %v14004_v31 = vadd.f32 %v1050_v18, %v856_v20  ;;  %1287 = vmatmul.bf16.gmra.mxu0 %v1157_v25 }
  0xdd   : > { %1457 = vmatmul.bf16.gmra.mxu1 %v1369_v26  ;;  %v1170_v26 = vrot.slane %v1168_v12, 1 }
  0xde   : > { %1689 = vmatmul.bf16.gmra.mxu2 %v1601_v23 }
  0xdf   : > { %1929 = vmatmul.bf16.gmra.mxu3 %v1799_v42  ;;  %v1812_v42 = vrot.slane %v1810_v14, 2 }
  0xe1   : > { %v821_v40 = vpop.f32.mrf.mxu2  ;;  %v560_v36 = vpop.f32.mrf.mxu0 }
  0xe2   : > { %v1053_v35 = vpop.f32.mrf.mxu3  ;;  %v857_v43 = vadd.f32 %v821_v40, %v670_v27  ;;  %v671_v44 = vpop.f32.mrf.mxu1  ;;  %v1173_v27 = vrot.slane %v1171_v13, 2  ;;  %v1372_v40 = vrot.slane %v13828_v56, 2 }
  0xe3   : > { %v672_v47 = vadd.f32 %v671_v44, %v560_v36 }
  0xe4   : > { %v14010_v50 = vadd.f32 %v1053_v35, %v857_v43  ;;  %v1174_v34 = vor.u32 %v1173_v27, %v1170_v26  ;;  %v1604_v35 = vrot.slane %v14028_v10, 2  ;;  %v1816_v43 = vor.u32 %v1815_v32, %v1812_v42 }
  0xe5   : > { %v1373_v5 = vsel %vm1362_vm3, %v1370_v57, %v1372_v40  ;;  %v1177_v57 = vshrl.u32 %v13845_v7, 16 }
  0xe6   : > { %v1175_v49 = vsel %vm1122_vm2, %v1165_v53, %v1174_v34  ;;  %v1605_v54 = vsel %vm1362_vm3, %v1602_v55, %v1604_v35  ;;  %v1817_v51 = vsel %vm1764_vm4, %v1807_v59, %v1816_v43  ;;  %v12699_v53 = vld [vmem:[%s18039_s1 + $0x50] sm:$0xff]  ;;  %v1180_v55 = vshll.u32 %v13845_v7, 16 }
  0xe7   : > { %3464 = vmatpush.bf16.msra.mxu1 %v12699_v53 }
  0xe8   : > { %v1182_v17 = vrot.slane %v1180_v55, 2 }
  0xe9   : > { %v823_v58 = vpop.f32.mrf.mxu2  ;;  %v563_v63 = vpop.f32.mrf.mxu0 }
  0xea   : > { %v1055_v60 = vpop.f32.mrf.mxu3  ;;  %v858_v62 = vadd.f32 %v823_v58, %v672_v47  ;;  %v674_v0 = vpop.f32.mrf.mxu1  ;;  %v14051_v58 = vld [vmem:[%s13653_s11 + $0x40] sm:$0xff] }
  0xeb   : > { %v675_v4 = vadd.f32 %v674_v0, %v563_v63  ;;  %v1819_v59 = vshrl.u32 %v14051_v58, 16  ;;  %v1822_v63 = vshll.u32 %v14051_v58, 16 }
  0xec   : > { %v14030_v11 = vadd.f32 %v1055_v60, %v858_v62  ;;  %1292 = vmatmul.bf16.gmra.mxu0 %v1166_v1  ;;  %v12675_v60 = vld [vmem:[%s18039_s1 + $0x210] sm:$0xff] }
  0xed   : > { %1462 = vmatmul.bf16.gmra.mxu1 %v1371_v41  ;;  %v12707_v62 = vld [vmem:[%s18039_s1 + $0x90] sm:$0xff]  ;;  %2086 = vmatpush.bf16.msra.mxu0 %v12675_v60  ;;  %v1821_v13 = vrot.slane %v1819_v59, 2  ;;  %v1824_v14 = vrot.slane %v1822_v63, 3 }
  0xee   : > { %1694 = vmatmul.bf16.gmra.mxu2 %v1603_v6  ;;  %3725 = vmatpush.bf16.msra.mxu3 %v12707_v62 }
  0xef   : > { %1934 = vmatmul.bf16.gmra.mxu3 %v1808_v39  ;;  %v1179_v39 = vrot.slane %v1177_v57, 1 }
  0xf1   : > { %v826_v18 = vpop.f32.mrf.mxu2  ;;  %v565_v24 = vpop.f32.mrf.mxu0 }
  0xf2   : > { %v1058_v20 = vpop.f32.mrf.mxu3  ;;  %v859_v21 = vadd.f32 %v826_v18, %v675_v4  ;;  %v676_v25 = vpop.f32.mrf.mxu1  ;;  %v1183_v18 = vor.u32 %v1182_v17, %v1179_v39 }
  0xf3   : > { %v677_v23 = vadd.f32 %v676_v25, %v565_v24  ;;  %v1825_v24 = vor.u32 %v1824_v14, %v1821_v13 }
  0xf4   : > { %v14039_v38 = vadd.f32 %v1058_v20, %v859_v21  ;;  %v1374_v20 = vrot.slane %v13845_v7, 2  ;;  %v1606_v21 = vrot.slane %v14051_v58, 2  ;;  %v1184_v32 = vsel %vm1122_vm2, %v1174_v34, %v1183_v18  ;;  %v12706_v34 = vld [vmem:[%s18039_s1 + $0x88] sm:$0xff] }
  0xf5   : > { %3726 = vmatpush.bf16.msra.mxu3 %v12706_v34 }
  0xf6   : > { %v1375_v33 = vsel %vm1362_vm3, %v1372_v40, %v1374_v20  ;;  %v1186_v40 = vshrl.u32 %v13856_v19, 16 }
  0xf8   : > { %v1188_v57 = vrot.slane %v1186_v40, 1 }
  0xf9   : > { %v828_v36 = vpop.f32.mrf.mxu2  ;;  %v568_v46 = vpop.f32.mrf.mxu0 }
  0xfa   : > { %v1060_v44 = vpop.f32.mrf.mxu3  ;;  %v860_v45 = vadd.f32 %v828_v36, %v677_v23  ;;  %v679_v47 = vpop.f32.mrf.mxu1 }
  0xfb   : > { %v680_v52 = vadd.f32 %v679_v47, %v568_v46  ;;  %v14077_v46 = vld [vmem:[%s13653_s11 + $0x48] sm:$0xff] }
  0xfc   : > { %v14053_v56 = vadd.f32 %v1060_v44, %v860_v45  ;;  %1297 = vmatmul.bf16.gmra.mxu0 %v1175_v49  ;;  %v1607_v44 = vsel %vm1362_vm3, %v1604_v35, %v1606_v21  ;;  %v1826_v45 = vsel %vm1764_vm4, %v1816_v43, %v1825_v24  ;;  %v12690_v47 = vld [vmem:[%s18039_s1 + $0x8] sm:$0xff]  ;;  %v1189_v35 = vshll.u32 %v13856_v19, 16 }
  0xfd   : > { %1467 = vmatmul.bf16.gmra.mxu1 %v1373_v5  ;;  %v12674_v49 = vld [vmem:[%s18039_s1 + $0x208] sm:$0xff]  ;;  %v1828_v5 = vshrl.u32 %v14077_v46, 16  ;;  %3576 = vmatpush.bf16.msra.mxu2 %v12690_v47 }
  0xfe   : > { %1699 = vmatmul.bf16.gmra.mxu2 %v1605_v54  ;;  %v12698_v43 = vld [vmem:[%s18039_s1 + $0x48] sm:$0xff]  ;;  %2087 = vmatpush.bf16.msra.mxu0 %v12674_v49  ;;  %v1191_v55 = vrot.slane %v1189_v35, 2 }
  0xff   : > { %1939 = vmatmul.bf16.gmra.mxu3 %v1817_v51  ;;  %3465 = vmatpush.bf16.msra.mxu1 %v12698_v43  ;;  %v1830_v63 = vrot.slane %v1828_v5, 2 }
 0x101   : > { %v831_v0 = vpop.f32.mrf.mxu2  ;;  %v570_v4 = vpop.f32.mrf.mxu0 }
 0x102   : > { %v1063_v1 = vpop.f32.mrf.mxu3  ;;  %v861_v41 = vadd.f32 %v831_v0, %v680_v52  ;;  %v681_v6 = vpop.f32.mrf.mxu1  ;;  %v1831_v52 = vshll.u32 %v14077_v46, 16 }
 0x103   : > { %v682_v12 = vadd.f32 %v681_v6, %v570_v4  ;;  %v1376_v4 = vrot.slane %v13856_v19, 2  ;;  %v1608_v6 = vrot.slane %v14077_v46, 2 }
 0x104   : > { %v14068_v16 = vadd.f32 %v1063_v1, %v861_v41  ;;  %v1833_v0 = vrot.slane %v1831_v52, 3  ;;  %v1192_v41 = vor.u32 %v1191_v55, %v1188_v57  ;;  %v1743_v57 = vld [vmem:[%s13653_s11 + $0x58] sm:$0x7] }
 0x106   : > { %v1834_v39 = vor.u32 %v1833_v0, %v1830_v63 }
 0x109   : > { %v833_v25 = vpop.f32.mrf.mxu2  ;;  %v573_v23 = vpop.f32.mrf.mxu0 }
 0x10a   : > { %v1065_v26 = vpop.f32.mrf.mxu3  ;;  %v862_v27 = vadd.f32 %v833_v25, %v682_v12  ;;  %v684_v42 = vpop.f32.mrf.mxu1 }
 0x10b   : > { %v685_v36 = vadd.f32 %v684_v42, %v573_v23  ;;  %v1609_v42 = vsel %vm1362_vm3, %v1606_v21, %v1608_v6  ;;  %v12673_v21 = vld [vmem:[%s18039_s1 + $0x200] sm:$0xff] }
 0x10c   : > { %v14079_v7 = vadd.f32 %v1065_v26, %v862_v27  ;;  %1302 = vmatmul.bf16.gmra.mxu0 %v1184_v32  ;;  %v1193_v26 = vsel %vm1122_vm2, %v1183_v18, %v1192_v41  ;;  %v1377_v27 = vsel %vm1362_vm3, %v1374_v20, %v1376_v4  ;;  %v1835_v32 = vsel %vm1764_vm4, %v1825_v24, %v1834_v39  ;;  %v12705_v24 = vld [vmem:[%s18039_s1 + $0x80] sm:$0xff] }
 0x10d   : > { %1472 = vmatmul.bf16.gmra.mxu1 %v1375_v33  ;;  %v14106_v33 = vld [vmem:[%s13653_s11 + $0x50] sm:$0xff]  ;;  %v1195_v18 = vshrl.u32 %v13876_v37, 16  ;;  %v1198_v20 = vshll.u32 %v13876_v37, 16  ;;  %2088 = vmatpush.bf16.msra.mxu0 %v12673_v21 }
 0x10e   : > { %1704 = vmatmul.bf16.gmra.mxu2 %v1607_v44  ;;  %v12697_v44 = vld [vmem:[%s18039_s1 + $0x40] sm:$0xff]  ;;  %v1840_v47 = vshll.u32 %v14106_v33, 16  ;;  %3727 = vmatpush.bf16.msra.mxu3 %v12705_v24  ;;  %v1610_v0 = vrot.slane %v14106_v33, 2  ;;  %v1529_v24 = vld [vmem:[%s13653_s11 + $0x58] sm:$0x3] }
 0x10f   : > { %1944 = vmatmul.bf16.gmra.mxu3 %v1826_v45  ;;  %v1837_v45 = vshrl.u32 %v14106_v33, 16  ;;  %3466 = vmatpush.bf16.msra.mxu1 %v12697_v44  ;;  %v1197_v5 = vrot.slane %v1195_v18, 1  ;;  %v1200_v52 = vrot.slane %v1198_v20, 2 }
 0x110   : > { %v1611_v18 = vsel %vm1362_vm3, %v1608_v6, %v1610_v0  ;;  %v12760_v6 = vld [vmem:[%s18039_s1 + $0x1b8] sm:$0xff] }
 0x111   : > { %v836_v54 = vpop.f32.mrf.mxu2  ;;  %v575_v62 = vpop.f32.mrf.mxu0  ;;  %v1201_v55 = vor.u32 %v1200_v52, %v1197_v5 }
 0x112   : > { %v1068_v51 = vpop.f32.mrf.mxu3  ;;  %v863_v60 = vadd.f32 %v836_v54, %v685_v36  ;;  %v686_v53 = vpop.f32.mrf.mxu1  ;;  %v12689_v36 = vld [vmem:[%s18039_s1] sm:$0xff]  ;;  %4588 = vmatpush.bf16.msrb.mxu3 %v12760_v6 }
 0x113   : > { %v687_v59 = vadd.f32 %v686_v53, %v575_v62  ;;  %3577 = vmatpush.bf16.msra.mxu2 %v12689_v36  ;;  %v1101_v62 = vld [vmem:[%s13653_s11 + $0x50] sm:$0x3] }
 0x114   : > { %v14097_v1 = vadd.f32 %v1068_v51, %v863_v60  ;;  %v1839_v51 = vrot.slane %v1837_v45, 2  ;;  %v1842_v60 = vrot.slane %v1840_v47, 3  ;;  %v1120_v63 = vunpack.c.l.b16 %v1101_v62 }
 0x116   : > { %4589 = vmatpush.bf16.msrb.mxu3 %v12759_v61 }
 0x119   : > { %v838_v17 = vpop.f32.mrf.mxu2  ;;  %v578_v14 = vpop.f32.mrf.mxu0 }
 0x11a   : > { %v1070_v12 = vpop.f32.mrf.mxu3  ;;  %v864_v13 = vadd.f32 %v838_v17, %v687_v59  ;;  %v689_v25 = vpop.f32.mrf.mxu1  ;;  %v1378_v59 = vrot.slane %v13876_v37, 2  ;;  %v1843_v17 = vor.u32 %v1842_v60, %v1839_v51 }
 0x11b   : > { %v690_v23 = vadd.f32 %v689_v25, %v578_v14 }
 0x11c   : > { %v14108_v19 = vadd.f32 %v1070_v12, %v864_v13  ;;  %1307 = vmatmul.bf16.gmra.mxu0 %v1193_v26  ;;  %v1762_v12 = vunpack.c.l.b16 %v1743_v57  ;;  %v1844_v37 = vsel %vm1764_vm4, %v1834_v39, %v1843_v17  ;;  %v1584_v39 = vunpack.c.l.b16 %v1529_v24 }
 0x11d   : > { %1477 = vmatmul.bf16.gmra.mxu1 %v1377_v27 }
 0x11e   : > { %1709 = vmatmul.bf16.gmra.mxu2 %v1609_v42  ;;  %v1379_v42 = vsel %vm1362_vm3, %v1376_v4, %v1378_v59  ;;  %v14136_v20 = vpack.c.b16 %v1762_v12, %v1762_v12  ;;  %v12728_v4 = vld [vmem:[%s18039_s1 + $0xf8] sm:$0xff]  ;;  %v1594_v60 = vpack.c.b16 %v1584_v39, %v1584_v39 }
 0x11f   : > { %1949 = vmatmul.bf16.gmra.mxu3 %v1835_v32  ;;  %v1121_v32 = vpack.c.b16 %v1120_v63, %v1120_v63  ;;  %3951 = vmatpush.bf16.msrb.mxu0 %v12728_v4  ;;  %v12736_v12 = vld [vmem:[%s18039_s1 + $0x138] sm:$0xff]  ;;  %v13142_v4 = vld [vmem:[%s13653_s11 + $0x48] sm:$0xff]  }
 0x120   : > { %v1846_v47 = vshrl.u32 %v14136_v20, 16  ;;  %4189 = vmatpush.bf16.msrb.mxu1 %v12736_v12  ;;  %v12727_v12 = vld [vmem:[%s18039_s1 + $0xf0] sm:$0xff] }
 0x121   : > { %v841_v49 = vpop.f32.mrf.mxu2  ;;  %v580_v35 = vpop.f32.mrf.mxu0  ;;  %v1204_v44 = vshrl.u32 %v1121_v32, 16  ;;  %v1207_v45 = vshll.u32 %v1121_v32, 16 }
 0x122   : > { %v1073_v34 = vpop.f32.mrf.mxu3  ;;  %v865_v40 = vadd.f32 %v841_v49, %v690_v23  ;;  %v691_v43 = vpop.f32.mrf.mxu1  ;;  %v1202_v23 = vsel %vm1122_vm2, %v1192_v41, %v1201_v55  ;;  %v12744_v41 = vld [vmem:[%s18039_s1 + $0x178] sm:$0xff]  ;;  %v1849_v49 = vshll.u32 %v14136_v20, 16  ;;  %v1848_v62 = vrot.slane %v1846_v47, 2 }
 0x123   : > { %v692_v54 = vadd.f32 %v691_v43, %v580_v35  ;;  %4357 = vmatpush.bf16.msrb.mxu2 %v12744_v41  ;;  %v1206_v52 = vrot.slane %v1204_v44, 1  ;;  %v1983_v44 = vld [vmem:[%s13653_s11 + $0x10] sm:$0x8]  ;;  %3952 = vmatpush.bf16.msrb.mxu0 %v12727_v12 }
 0x124   : > { %v14127_v53 = vadd.f32 %v1073_v34, %v865_v40  ;;  %v1851_v57 = vrot.slane %v1849_v49, 3  ;;  %v2002_v47 = vunpack.c.l.b16 %v1983_v44  ;;  %v13143_v49 = vld [vmem:[%s13653_s11 + $0x48] sm:$0xf0] }
 0x129   : > { %v843_v13 = vpop.f32.mrf.mxu2  ;;  %v583_v26 = vpop.f32.mrf.mxu0 }
 0x12a   : > { %v1075_v14 = vpop.f32.mrf.mxu3  ;;  %v866_v25 = vadd.f32 %v843_v13, %v692_v54  ;;  %v694_v27 = vpop.f32.mrf.mxu1  ;;  %v1209_v54 = vrot.slane %v1207_v45, 2 }
 0x12b   : > { %v695_v36 = vadd.f32 %v694_v27, %v583_v26  ;;  %v1852_v26 = vor.u32 %v1851_v57, %v1848_v62 }
 0x12c   : > { %v14138_v21 = vadd.f32 %v1075_v14, %v866_v25  ;;  %1312 = vmatmul.bf16.gmra.mxu0 %v1202_v23  ;;  %v1210_v13 = vor.u32 %v1209_v54, %v1206_v52  ;;  %v1380_v14 = vrot.slane %v1121_v32, 2  ;;  %v1612_v25 = vrot.slane %v1594_v60, 2 }
 0x12d   : > { %1482 = vmatmul.bf16.gmra.mxu1 %v1379_v42  ;;  %v1853_v41 = vsel %vm1764_vm4, %v1843_v17, %v1852_v26  ;;  %v3327_v52 = vshrl.u32 %v13142_v4, 16 }
 0x12e   : > { %1714 = vmatmul.bf16.gmra.mxu2 %v1611_v18  ;;  %v1381_v24 = vsel %vm1362_vm3, %v1378_v59, %v1380_v14  ;;  %v1613_v32 = vsel %vm1362_vm3, %v1610_v0, %v1612_v25  ;;  %v3329_v59 = vshll.u32 %v13142_v4, 16  ;;  %v13144_v0 = vld [vmem:[%s13653_s11 + $0x48] sm:$0xe]  ;;  %v2006_v25 = vrot.slane %v13910_v15, 3 }
 0x12f   : > { %1954 = vmatmul.bf16.gmra.mxu3 %v1844_v37  ;;  %v1211_v37 = vsel %vm1122_vm2, %v1201_v55, %v1210_v13  ;;  %v14167_v55 = vld [vmem:[%s13653_s11 + $0x50] sm:$0xff]  ;;  %v13145_v62 = vor.u32 %v13144_v0, %v13143_v49 }
 0x130   : > { %v3331_v54 = vrot.slane %v3329_v59, 1  ;;  %v12735_v13 = vld [vmem:[%s18039_s1 + $0x130] sm:$0xff] }
 0x131   : > { %v846_v34 = vpop.f32.mrf.mxu2  ;;  %v585_v43 = vpop.f32.mrf.mxu0  ;;  %4190 = vmatpush.bf16.msrb.mxu1 %v12735_v13 }
 0x132   : > { %v1078_v40 = vpop.f32.mrf.mxu3  ;;  %v867_v35 = vadd.f32 %v846_v34, %v695_v36  ;;  %v696_v5 = vpop.f32.mrf.mxu1 }
 0x133   : > { %v697_v51 = vadd.f32 %v696_v5, %v585_v43 }
 0x134   : > { %v14152_v63 = vadd.f32 %v1078_v40, %v867_v35  ;;  %v2003_v40 = vpack.c.b16 %v1567_v2, %v2002_v47  ;;  %v14198_v47 = vld [vmem:[%s13653_s11 + $0x58] sm:$0xff] }
 0x136   : > { %v2005_v14 = vrot.slane %v2003_v40, 3 }
 0x138   : > { %v2007_v44 = vsel %vm2004_vm5, %v2005_v14, %v2006_v25 }
 0x139   : > { %v848_v27 = vpop.f32.mrf.mxu2  ;;  %v1278_v36 = vpop.f32.mrf.mxu0 }
 0x13a   : > { %v1080_v23 = vpop.f32.mrf.mxu3  ;;  %v868_v42 = vadd.f32 %v848_v27, %v697_v51  ;;  %v1448_v18 = vpop.f32.mrf.mxu1  ;;  %v1323_v45 = vadd.f32 %v1278_v36, %v13925_v48  ;;  %v12743_v48 = vld [vmem:[%s18039_s1 + $0x170] sm:$0xff]  ;;  %v3334_v51 = vshll.u32 %v14167_v55, 16  ;;  %v3644_v27 = vrot.slane %v13145_v62, 1 }
 0x13b   : > { %4358 = vmatpush.bf16.msrb.mxu2 %v12743_v48  ;;  %v3647_v62 = vrot.slane %v14198_v47, 1 }
 0x13c   : > { %v14164_v6 = vadd.f32 %v1080_v23, %v868_v42  ;;  %v1493_v39 = vadd.f32 %v1448_v18, %v1323_v45  ;;  %1317 = vmatmul.bf16.gmra.mxu0 %v1211_v37  ;;  %v3336_v26 = vrot.slane %v3334_v51, 1  ;;  %v3645_v23 = vrot.slane %v14167_v55, 1 }
 0x13d   : > { %1487 = vmatmul.bf16.gmra.mxu1 %v1381_v24 }
 0x13e   : > { %1719 = vmatmul.bf16.gmra.mxu2 %v1613_v32  ;;  %v3646_v32 = vsel %vm720_vm1, %v3644_v27, %v3645_v23 }
 0x13f   : > { %1959 = vmatmul.bf16.gmra.mxu3 %v1853_v41 }
 0x141   : > { %v1680_v17 = vpop.f32.mrf.mxu2  ;;  %v1280_v43 = vpop.f32.mrf.mxu0 }
 0x142   : > { %v1920_v34 = vpop.f32.mrf.mxu3  ;;  %v1725_v35 = vadd.f32 %v1680_v17, %v1493_v39  ;;  %v1450_v5 = vpop.f32.mrf.mxu1  ;;  %v1324_v60 = vadd.f32 %v1280_v43, %v13946_v9  ;;  %v3332_v9 = vor.u32 %v3331_v54, %v3327_v52  ;;  %v12758_v52 = vld [vmem:[%s18039_s1 + $0x1a8] sm:$0xff] }
 0x143   : > { %v12734_v54 = vld [vmem:[%s18039_s1 + $0x128] sm:$0xff]  ;;  %4590 = vmatpush.bf16.msrb.mxu3 %v12758_v52 }
 0x144   : > { %v14178_v57 = vadd.f32 %v1920_v34, %v1725_v35  ;;  %v1494_v2 = vadd.f32 %v1450_v5, %v1324_v60  ;;  %v3337_v45 = vsel %vm400_vm0, %v3332_v9, %v3336_v26  ;;  %v3338_v34 = vshrl.u32 %v14167_v55, 16  ;;  %v12726_v5 = vld [vmem:[%s18039_s1 + $0xe8] sm:$0xff]  ;;  %4191 = vmatpush.bf16.msrb.mxu1 %v12734_v54 }
 0x145   : > { %3953 = vmatpush.bf16.msrb.mxu0 %v12726_v5 }
 0x146   : > { %v3340_v51 = vor.u32 %v3338_v34, %v3336_v26  ;;  %v3648_v26 = vsel %vm720_vm1, %v3645_v23, %v3647_v62 }
 0x149   : > { %v1682_v42 = vpop.f32.mrf.mxu2  ;;  %v1283_v37 = vpop.f32.mrf.mxu0 }
 0x14a   : > { %v1922_v36 = vpop.f32.mrf.mxu3  ;;  %v1726_v18 = vadd.f32 %v1682_v42, %v1494_v2  ;;  %v1453_v24 = vpop.f32.mrf.mxu1  ;;  %v1325_v15 = vadd.f32 %v1283_v37, %v13952_v28  ;;  %v3342_v28 = vshll.u32 %v14198_v47, 16 }
 0x14c   : > { %v14195_v41 = vadd.f32 %v1922_v36, %v1726_v18  ;;  %v1495_v39 = vadd.f32 %v1453_v24, %v1325_v15  ;;  %2089 = vmatmul.bf16.vlgmr.msra.gmra.mxu0 %v2007_v44  ;;  %v3344_v60 = vrot.slane %v3342_v28, 1  ;;  %v14227_v18 = vld [vmem:[%s13653_s11 + $0x60] sm:$0xff]  ;;  %v3346_v15 = vshrl.u32 %v14198_v47, 16 }
 0x14d   : > { %3467 = vmatmul.bf16.vlgmr.msra.gmra.mxu1 %v3337_v45  ;;  %v3649_v34 = vrot.slane %v14227_v18, 1 }
 0x14e   : > { %3578 = vmatmul.bf16.vlgmr.msra.gmra.mxu2 %v13142_v4  ;;  %v12742_v4 = vld [vmem:[%s18039_s1 + $0x168] sm:$0xff]  ;;  %v3345_v27 = vsel %vm400_vm0, %v3340_v51, %v3344_v60 }
 0x14f   : > { %3728 = vmatmul.bf16.vlgmr.msra.gmra.mxu3 %v3646_v32  ;;  %4359 = vmatpush.bf16.msrb.mxu2 %v12742_v4  ;;  %v3650_v51 = vsel %vm720_vm1, %v3647_v62, %v3649_v34 }
 0x151   : > { %v1685_v59 = vpop.f32.mrf.mxu2  ;;  %v1285_v0 = vpop.f32.mrf.mxu0 }
 0x152   : > { %v1925_v48 = vpop.f32.mrf.mxu3  ;;  %v1727_v49 = vadd.f32 %v1685_v59, %v1495_v39  ;;  %v1455_v17 = vpop.f32.mrf.mxu1  ;;  %v1326_v40 = vadd.f32 %v1285_v0, %v13975_v30  ;;  %v2008_v30 = vrot.slane %v13944_v8, 3  ;;  %v12725_v59 = vld [vmem:[%s18039_s1 + $0xe0] sm:$0xff]  ;;  %v3348_v0 = vor.u32 %v3346_v15, %v3344_v60 }
 0x153   : > { %3954 = vmatpush.bf16.msrb.mxu0 %v12725_v59 }
 0x154   : > { %v14203_v35 = vadd.f32 %v1925_v48, %v1727_v49  ;;  %v1496_v43 = vadd.f32 %v1455_v17, %v1326_v40  ;;  %v2009_v9 = vsel %vm2004_vm5, %v2006_v25, %v2008_v30  ;;  %v12757_v48 = vld [vmem:[%s18039_s1 + $0x1a0] sm:$0xff]  ;;  %v2010_v49 = vrot.slane %v13973_v22, 3 }
 0x155   : > { %4591 = vmatpush.bf16.msrb.mxu3 %v12757_v48 }
 0x156   : > { %v2011_v22 = vsel %vm2004_vm5, %v2008_v30, %v2010_v49 }
 0x159   : > { %v1687_v12 = vpop.f32.mrf.mxu2  ;;  %v1288_v13 = vpop.f32.mrf.mxu0 }
 0x15a   : > { %v1927_v61 = vpop.f32.mrf.mxu3  ;;  %v1728_v2 = vadd.f32 %v1687_v12, %v1496_v43  ;;  %v1458_v14 = vpop.f32.mrf.mxu1  ;;  %v1327_v8 = vadd.f32 %v1288_v13, %v13981_v3  ;;  %v3350_v3 = vshll.u32 %v14227_v18, 16 }
 0x15c   : > { %v14223_v42 = vadd.f32 %v1927_v61, %v1728_v2  ;;  %v1497_v36 = vadd.f32 %v1458_v14, %v1327_v8  ;;  %2094 = vmatmul.bf16.gmra.mxu0 %v2009_v9  ;;  %v3352_v17 = vrot.slane %v3350_v3, 1  ;;  %v14256_v61 = vld [vmem:[%s13653_s11 + $0x68] sm:$0xff] }
 0x15d   : > { %3472 = vmatmul.bf16.gmra.mxu1 %v3345_v27  ;;  %v3354_v27 = vshrl.u32 %v14227_v18, 16 }
 0x15e   : > { %3583 = vmatmul.bf16.gmra.mxu2 %v14167_v55  ;;  %v12741_v55 = vld [vmem:[%s18039_s1 + $0x160] sm:$0xff]  ;;  %v3353_v52 = vsel %vm400_vm0, %v3348_v0, %v3352_v17 }
 0x15f   : > { %3733 = vmatmul.bf16.gmra.mxu3 %v3648_v26  ;;  %4360 = vmatpush.bf16.msrb.mxu2 %v12741_v55 }
 0x161   : > { %v1690_v37 = vpop.f32.mrf.mxu2  ;;  %v1290_v25 = vpop.f32.mrf.mxu0 }
 0x162   : > { %v1930_v24 = vpop.f32.mrf.mxu3  ;;  %v1729_v44 = vadd.f32 %v1690_v37, %v1497_v36  ;;  %v1460_v45 = vpop.f32.mrf.mxu1  ;;  %v1328_v23 = vadd.f32 %v1290_v25, %v14004_v31  ;;  %v12733_v31 = vld [vmem:[%s18039_s1 + $0x120] sm:$0xff]  ;;  %v12724_v36 = vld [vmem:[%s18039_s1 + $0xd8] sm:$0xff] }
 0x163   : > { %4192 = vmatpush.bf16.msrb.mxu1 %v12733_v31  ;;  %v12756_v37 = vld [vmem:[%s18039_s1 + $0x198] sm:$0xff]  ;;  %3955 = vmatpush.bf16.msrb.mxu0 %v12724_v36  ;;  %v12723_v36 = vld [vmem:[%s18039_s1 + $0xd0] sm:$0xff] }
 0x164   : > { %v14232_v32 = vadd.f32 %v1930_v24, %v1729_v44  ;;  %v1498_v39 = vadd.f32 %v1460_v45, %v1328_v23  ;;  %v2012_v24 = vrot.slane %v14002_v29, 3  ;;  %v3356_v44 = vor.u32 %v3354_v27, %v3352_v17  ;;  %4592 = vmatpush.bf16.msrb.mxu3 %v12756_v37  ;;  %v12732_v17 = vld [vmem:[%s18039_s1 + $0x118] sm:$0xff]  ;;  %v12755_v37 = vld [vmem:[%s18039_s1 + $0x190] sm:$0xff] }
 0x166   : > { %v2013_v55 = vsel %vm2004_vm5, %v2010_v49, %v2012_v24 }
 0x167   : > { %4193 = vmatpush.bf16.msrb.mxu1 %v12732_v17  ;;  %3956 = vmatpush.bf16.msrb.mxu0 %v12723_v36 }
 0x168   : > { %4593 = vmatpush.bf16.msrb.mxu3 %v12755_v37 }
 0x169   : > { %v1692_v28 = vpop.f32.mrf.mxu2  ;;  %v1293_v43 = vpop.f32.mrf.mxu0 }
 0x16a   : > { %v1932_v40 = vpop.f32.mrf.mxu3  ;;  %v1730_v4 = vadd.f32 %v1692_v28, %v1498_v39  ;;  %v1463_v5 = vpop.f32.mrf.mxu1  ;;  %v1329_v54 = vadd.f32 %v1293_v43, %v14010_v50  ;;  %v3358_v50 = vshll.u32 %v14256_v61, 16  ;;  %v14285_v28 = vld [vmem:[%s13653_s11 + $0x70] sm:$0xff]  ;;  %v3362_v43 = vshrl.u32 %v14256_v61, 16 }
 0x16c   : > { %v14252_v60 = vadd.f32 %v1932_v40, %v1730_v4  ;;  %v1499_v12 = vadd.f32 %v1463_v5, %v1329_v54  ;;  %2099 = vmatmul.bf16.gmra.mxu0 %v2011_v22  ;;  %v3360_v25 = vrot.slane %v3358_v50, 1  ;;  %v3366_v5 = vshll.u32 %v14285_v28, 16 }
 0x16d   : > { %3477 = vmatmul.bf16.gmra.mxu1 %v3353_v52 }
 0x16e   : > { %3588 = vmatmul.bf16.gmra.mxu2 %v14198_v47  ;;  %v12740_v47 = vld [vmem:[%s18039_s1 + $0x158] sm:$0xff]  ;;  %v3361_v59 = vsel %vm400_vm0, %v3356_v44, %v3360_v25 }
 0x16f   : > { %3738 = vmatmul.bf16.gmra.mxu3 %v3650_v51  ;;  %4361 = vmatpush.bf16.msrb.mxu2 %v12740_v47  ;;  %v2014_v51 = vrot.slane %v14028_v10, 3 }
 0x171   : > { %v1695_v2 = vpop.f32.mrf.mxu2  ;;  %v1295_v30 = vpop.f32.mrf.mxu0  ;;  %v2015_v50 = vsel %vm2004_vm5, %v2012_v24, %v2014_v51  ;;  %v12731_v24 = vld [vmem:[%s18039_s1 + $0x110] sm:$0xff] }
 0x172   : > { %v1935_v13 = vpop.f32.mrf.mxu3  ;;  %v1731_v14 = vadd.f32 %v1695_v2, %v1499_v12  ;;  %v1465_v9 = vpop.f32.mrf.mxu1  ;;  %v1330_v62 = vadd.f32 %v1295_v30, %v14030_v11  ;;  %v3651_v11 = vrot.slane %v14256_v61, 1  ;;  %v3364_v12 = vor.u32 %v3362_v43, %v3360_v25  ;;  %4194 = vmatpush.bf16.msrb.mxu1 %v12731_v24  ;;  %v14353_v24 = vld [vmem:[%s13653_s11 + $0x88] sm:$0xff] }
 0x173   : > { %v3368_v2 = vrot.slane %v3366_v5, 1 }
 0x174   : > { %v14261_v8 = vadd.f32 %v1935_v13, %v1731_v14  ;;  %v1500_v26 = vadd.f32 %v1465_v9, %v1330_v62  ;;  %v3652_v29 = vsel %vm720_vm1, %v3649_v34, %v3651_v11  ;;  %v3653_v13 = vrot.slane %v14285_v28, 1 }
 0x175   : > { %v3369_v62 = vsel %vm400_vm0, %v3364_v12, %v3368_v2  ;;  %v12722_v12 = vld [vmem:[%s18039_s1 + $0xc8] sm:$0xff] }
 0x176   : > { %v3654_v47 = vsel %vm720_vm1, %v3651_v11, %v3653_v13  ;;  %3957 = vmatpush.bf16.msrb.mxu0 %v12722_v12  ;;  %v2020_v12 = vrot.slane %v14106_v33, 3 }
 0x179   : > { %v1697_v45 = vpop.f32.mrf.mxu2  ;;  %v1298_v23 = vpop.f32.mrf.mxu0 }
 0x17a   : > { %v1937_v15 = vpop.f32.mrf.mxu3  ;;  %v1732_v3 = vadd.f32 %v1697_v45, %v1500_v26  ;;  %v1468_v39 = vpop.f32.mrf.mxu1  ;;  %v1331_v48 = vadd.f32 %v1298_v23, %v14039_v38  ;;  %v3370_v23 = vshrl.u32 %v14285_v28, 16 }
 0x17c   : > { %v14278_v0 = vadd.f32 %v1937_v15, %v1732_v3  ;;  %v1501_v31 = vadd.f32 %v1468_v39, %v1331_v48  ;;  %2104 = vmatmul.bf16.gmra.mxu0 %v2013_v55  ;;  %v2016_v48 = vrot.slane %v14051_v58, 3  ;;  %v12738_v58 = vld [vmem:[%s18039_s1 + $0x148] sm:$0xff] }
 0x17d   : > { %3482 = vmatmul.bf16.gmra.mxu1 %v3361_v59 }
 0x17e   : > { %3593 = vmatmul.bf16.gmra.mxu2 %v14227_v18  ;;  %v12739_v18 = vld [vmem:[%s18039_s1 + $0x150] sm:$0xff]  ;;  %v2017_v43 = vsel %vm2004_vm5, %v2014_v51, %v2016_v48  ;;  %v12754_v51 = vld [vmem:[%s18039_s1 + $0x188] sm:$0xff] }
 0x17f   : > { %3743 = vmatmul.bf16.gmra.mxu3 %v3652_v29  ;;  %4362 = vmatpush.bf16.msrb.mxu2 %v12739_v18  ;;  %v3372_v29 = vor.u32 %v3370_v23, %v3368_v2  ;;  %v12730_v2 = vld [vmem:[%s18039_s1 + $0x108] sm:$0xff] }
 0x180   : > { %4594 = vmatpush.bf16.msrb.mxu3 %v12754_v51  ;;  %4195 = vmatpush.bf16.msrb.mxu1 %v12730_v2 }
 0x181   : > { %v1700_v49 = vpop.f32.mrf.mxu2  ;;  %v1300_v4 = vpop.f32.mrf.mxu0 }
 0x182   : > { %v1940_v40 = vpop.f32.mrf.mxu3  ;;  %v1733_v38 = vadd.f32 %v1700_v49, %v1501_v31  ;;  %v1470_v34 = vpop.f32.mrf.mxu1  ;;  %v1332_v22 = vadd.f32 %v1300_v4, %v14053_v56 }
 0x183   : > { %4363 = vmatpush.bf16.msrb.mxu2 %v12738_v58 }
 0x184   : > { %v14290_v52 = vadd.f32 %v1940_v40, %v1733_v38  ;;  %v1502_v54 = vadd.f32 %v1470_v34, %v1332_v22 }
 0x189   : > { %v1702_v14 = vpop.f32.mrf.mxu2  ;;  %v1303_v27 = vpop.f32.mrf.mxu0 }
 0x18a   : > { %v1942_v30 = vpop.f32.mrf.mxu3  ;;  %v1734_v9 = vadd.f32 %v1702_v14, %v1502_v54  ;;  %v1473_v56 = vpop.f32.mrf.mxu1  ;;  %v1333_v26 = vadd.f32 %v1303_v27, %v14068_v16  ;;  %v14314_v16 = vld [vmem:[%s13653_s11 + $0x78] sm:$0xff] }
 0x18b   : > { %v3374_v39 = vshll.u32 %v14314_v16, 16  ;;  %v3655_v31 = vrot.slane %v14314_v16, 1 }
 0x18c   : > { %v14301_v10 = vadd.f32 %v1942_v30, %v1734_v9  ;;  %v1503_v44 = vadd.f32 %v1473_v56, %v1333_v26  ;;  %2109 = vmatmul.bf16.gmra.mxu0 %v2015_v50  ;;  %v3378_v56 = vshrl.u32 %v14314_v16, 16 }
 0x18d   : > { %3487 = vmatmul.bf16.gmra.mxu1 %v3369_v62  ;;  %v3376_v17 = vrot.slane %v3374_v39, 1  ;;  %v3656_v22 = vsel %vm720_vm1, %v3653_v13, %v3655_v31 }
 0x18e   : > { %3598 = vmatmul.bf16.gmra.mxu2 %v14256_v61 }
 0x18f   : > { %3748 = vmatmul.bf16.gmra.mxu3 %v3654_v47  ;;  %v3377_v5 = vsel %vm400_vm0, %v3372_v29, %v3376_v17  ;;  %v2018_v47 = vrot.slane %v14077_v46, 3  ;;  %v3380_v36 = vor.u32 %v3378_v56, %v3376_v17 }
 0x191   : > { %v1705_v25 = vpop.f32.mrf.mxu2  ;;  %v1305_v15 = vpop.f32.mrf.mxu0 }
 0x192   : > { %v1945_v11 = vpop.f32.mrf.mxu3  ;;  %v1735_v45 = vadd.f32 %v1705_v25, %v1503_v44  ;;  %v1475_v3 = vpop.f32.mrf.mxu1  ;;  %v1334_v55 = vadd.f32 %v1305_v15, %v14079_v7  ;;  %v2282_v25 = vlaneseq }
 0x194   : > { %v14319_v59 = vadd.f32 %v1945_v11, %v1735_v45  ;;  %v1504_v61 = vadd.f32 %v1475_v3, %v1334_v55  ;;  %v14359_v55 = vshrl.u32 %v2282_v25, 7  ;;  %v18046_v25 = vmov 0  }
 0x195   : > { %281 = vst [vmem:[#allocation2] sm:$0xf] %v18046_v25 }
 0x196   : > { %18110 = vst [vmem:[#allocation3_spill] sm:$0xff] %v14359_v55 }
 0x197   : > { %282 = vst [vmem:[#allocation2 + $0x4] sm:$0xf] %v18046_v25 }
 0x198   : > { %295 = vst [vmem:[#allocation2 + $0x9c] sm:$0xf] %v18046_v25 }
 0x199   : > { %v1707_v49 = vpop.f32.mrf.mxu2  ;;  %v1308_v4 = vpop.f32.mrf.mxu0  ;;  %296 = vst [vmem:[#allocation2 + $0xa0] sm:$0xf] %v18046_v25 }
 0x19a   : > { %v1947_v40 = vpop.f32.mrf.mxu3  ;;  %v1736_v38 = vadd.f32 %v1707_v49, %v1504_v61  ;;  %v1478_v34 = vpop.f32.mrf.mxu1  ;;  %v1335_v7 = vadd.f32 %v1308_v4, %v14097_v1  ;;  %v14340_v1 = vld [vmem:[%s13653_s11 + $0x80] sm:$0xff]  ;;  %v3390_v49 = vshll.u32 %v14353_v24, 16 }
 0x19b   : > { %v3657_v44 = vrot.slane %v14340_v1, 1  ;;  %v3386_v17 = vshrl.u32 %v14340_v1, 16 }
 0x19c   : > { %v14327_v54 = vadd.f32 %v1947_v40, %v1736_v38  ;;  %v1505_v18 = vadd.f32 %v1478_v34, %v1335_v7  ;;  %2114 = vmatmul.bf16.gmra.mxu0 %v2017_v43  ;;  %v3261_v40 = vld [vmem:[%s13653_s11 + $0x90] sm:$0x1]  ;;  %v2304_v34 = vand.u32 65535, %v14359_v55  ;;  %v2305_v7 = vshrl.u32 %v14359_v55, 16 }
 0x19d   : > { %3492 = vmatmul.bf16.gmra.mxu1 %v3377_v5  ;;  %v3658_v29 = vsel %vm720_vm1, %v3655_v31, %v3657_v44  ;;  %v292_v31 = vld [vmem:[#allocation2 + $0x98] sm:$0xe]  ;;  %v18114_v5 = vmov 0 }
 0x19e   : > { %3603 = vmatmul.bf16.gmra.mxu2 %v14285_v28  ;;  %v3382_v28 = vshll.u32 %v14340_v1, 16  ;;  %v18115_v5 = vsel %vm14379_vm11, 4294967295, %v18114_v5  ;;  %v2308_v58 = vmul.u32 58254, %v2304_v34  ;;  %v2309_v51 = vmul.u32 14564, %v2305_v7 }
 0x19f   : > { %3753 = vmatmul.bf16.gmra.mxu3 %v3656_v22  ;;  %18116 = vst [vmem:[#allocation5_spill] sm:$0xff] %v18115_v5  ;;  %v293_v22 = vsel %vm14379_vm11, 0, %v292_v31 }
 0x1a0   : > { %v3384_v37 = vrot.slane %v3382_v28, 1  ;;  %294 = vst [vmem:[#allocation2 + $0x98] sm:$0xe] %v293_v22 }
 0x1a1   : > { %v1710_v13 = vpop.f32.mrf.mxu2  ;;  %v1310_v9 = vpop.f32.mrf.mxu0 }
 0x1a2   : > { %v1950_v14 = vpop.f32.mrf.mxu3  ;;  %v1737_v30 = vadd.f32 %v1710_v13, %v1505_v18  ;;  %v1480_v27 = vpop.f32.mrf.mxu1  ;;  %v1336_v50 = vadd.f32 %v1310_v9, %v14108_v19  ;;  %v2019_v19 = vsel %vm2004_vm5, %v2016_v48, %v2018_v47  ;;  %v3385_v39 = vsel %vm400_vm0, %v3380_v36, %v3384_v37  ;;  %v286_v48 = vld [vmem:[#allocation2 + $0x8] sm:$0x3] }
 0x1a3   : > { %v287_v43 = vsel %vm14371_vm8, 0, %v286_v48  ;;  %v3315_v18 = vunpack.c.l.b16 %v3261_v40  ;;  %v3659_v9 = vrot.slane %v14353_v24, 1  ;;  %v2313_v36 = vshll.u32 %v2309_v51, 16  ;;  %v14415_v48 = vld [vmem:[%s13653_s11 + $0x54] sm:$0xf] }
 0x1a4   : > { %v14348_v62 = vadd.f32 %v1950_v14, %v1737_v30  ;;  %v1506_v26 = vadd.f32 %v1480_v27, %v1336_v50  ;;  %288 = vst [vmem:[#allocation2 + $0x8] sm:$0x3] %v287_v43  ;;  %v3388_v14 = vor.u32 %v3386_v17, %v3384_v37  ;;  %v14387_v30 = vrot.slane %v3390_v49, 1  ;;  %v3792_v17 = vld [vmem:[%s13653_s11 + $0x50] sm:$0xe] }
 0x1a5   : > { %v2311_v27 = vshll.u32 %v2308_v58, 16  ;;  %v2312_v49 = vshrl.u32 %v2308_v58, 16 }
 0x1a9   : > { %v1712_v11 = vpop.f32.mrf.mxu2  ;;  %v1313_v3 = vpop.f32.mrf.mxu0 }
 0x1aa   : > { %v1952_v45 = vpop.f32.mrf.mxu3  ;;  %v1738_v15 = vadd.f32 %v1712_v11, %v1506_v26  ;;  %v1483_v23 = vpop.f32.mrf.mxu1  ;;  %v1337_v61 = vadd.f32 %v1313_v3, %v14127_v53  ;;  %v18111_v53 = vmov 0  ;;  %v2310_v26 = vmul.u32 58254, %v2305_v7 }
 0x1ab   : > { %v18112_v53 = vsel %vm14371_vm8, 4294967295, %v18111_v53  ;;  %v14392_v11 = vadd.s32 8, %v14359_v55  ;;  %v2314_v7 = vshrl.u32 %v2309_v51, 16  ;;  %v12753_v51 = vld [vmem:[%s18039_s1 + $0x180] sm:$0xff] }
 0x1ac   : > { %v14368_v38 = vadd.f32 %v1952_v45, %v1738_v15  ;;  %v1507_v4 = vadd.f32 %v1483_v23, %v1337_v61  ;;  %2119 = vmatmul.bf16.gmra.mxu0 %v2019_v19  ;;  %18113 = vst [vmem:[#allocation4_spill] sm:$0xff] %v18112_v53  ;;  %v14396_v15 = vpack.c.b16 %v3315_v18, %v3315_v18 }
 0x1ad   : > { %3497 = vmatmul.bf16.gmra.mxu1 %v3385_v39  ;;  %18117 = vst [vmem:[#allocation6_spill] sm:$0xff] %v14392_v11  ;;  %v2021_v23 = vsel %vm2004_vm5, %v2018_v47, %v2020_v12  ;;  %v3393_v61 = vsel %vm400_vm0, %v3388_v14, %v14387_v30  ;;  %v2334_v47 = vshrl.u32 %v14392_v11, 16  ;;  %v12737_v14 = vld [vmem:[%s18039_s1 + $0x140] sm:$0xff]  ;;  %4595 = vmatpush.bf16.msrb.mxu3 %v12753_v51 }
 0x1ae   : > { %3608 = vmatmul.bf16.gmra.mxu2 %v14314_v16  ;;  %v2307_v16 = vmul.u32 14564, %v2304_v34  ;;  %v3394_v34 = vshrl.u32 %v14353_v24, 16  ;;  %v3398_v43 = vshll.u32 %v14396_v15, 16 }
 0x1af   : > { %3758 = vmatmul.bf16.gmra.mxu3 %v3658_v29  ;;  %v14424_v58 = vmul.u32 14564, %v2334_v47  ;;  %4364 = vmatpush.bf16.msrb.mxu2 %v12737_v14 }
 0x1b0   : > { %vm2315_vm12 = vc.u32 %v2307_v16, %v2311_v27  ;;  %v2317_v37 = vadd.s32 %v2311_v27, %v2307_v16  ;;  %v2022_v27 = vrot.slane %v14136_v20, 3 }
 0x1b1   : > { %v1715_v2 = vpop.f32.mrf.mxu2  ;;  %v1315_v28 = vpop.f32.mrf.mxu0  ;;  %v2316_v19 = vsel %vm2315_vm12, 1, %v18046_v25  ;;  %v2342_v20 = vshll.u32 %v14424_v58, 16  ;;  %v2343_v14 = vshrl.u32 %v14424_v58, 16 }
 0x1b2   : > { %v1955_v13 = vpop.f32.mrf.mxu3  ;;  %v1739_v56 = vadd.f32 %v1715_v2, %v1507_v4  ;;  %v1485_v50 = vpop.f32.mrf.mxu1  ;;  %v1338_v45 = vadd.f32 %v1315_v28, %v14138_v21  ;;  %v2333_v21 = vand.u32 65535, %v14392_v11  ;;  %v2318_v29 = vadd.s32 %v2316_v19, %v2310_v26 }
 0x1b3   : > { %vm2319_vm13 = vc.u32 %v2317_v37, %v2313_v36  ;;  %v3660_v4 = vsel %vm720_vm1, %v3657_v44, %v3659_v9  ;;  %v12721_v44 = vld [vmem:[%s18039_s1 + $0xc0] sm:$0xff]  ;;  %v3847_v28 = vunpack.c.l.b16 %v14415_v48  ;;  %v2339_v37 = vmul.u32 58254, %v2334_v47 }
 0x1b4   : > { %v14398_v3 = vadd.f32 %v1955_v13, %v1739_v56  ;;  %v1508_v39 = vadd.f32 %v1485_v50, %v1338_v45  ;;  %v2320_v46 = vsel %vm2319_vm13, 1, %v18046_v25  ;;  %v2337_v40 = vmul.u32 58254, %v2333_v21  ;;  %v12729_v45 = vld [vmem:[%s18039_s1 + $0x100] sm:$0xff]  ;;  %3958 = vmatpush.bf16.msrb.mxu0 %v12721_v44 }
 0x1b5   : > { %v2322_v31 = vadd.s32 %v2320_v46, %v2318_v29  ;;  %v2336_v22 = vmul.u32 14564, %v2333_v21  ;;  %v3846_v56 = vunpack.c.l.b16 %v3792_v17  ;;  %4196 = vmatpush.bf16.msrb.mxu1 %v12729_v45  ;;  %v14447_v47 = vadd.s32 16, %v14359_v55 }
 0x1b6   : > { %v2340_v18 = vshll.u32 %v2337_v40, 16 }
 0x1b7   : > { %v2323_v13 = vadd.s32 %v2322_v31, %v2312_v49  ;;  %v3396_v49 = vor.u32 %v3394_v34, %v14387_v30  ;;  %18118 = vst [vmem:[#allocation7_spill] sm:$0xff] %v14447_v47  ;;  %v2341_v30 = vshrl.u32 %v2337_v40, 16 }
 0x1b8   : > { %vm2344_vm14 = vc.u32 %v2336_v22, %v2340_v18  ;;  %v2346_v17 = vadd.s32 %v2340_v18, %v2336_v22  ;;  %v14454_v22 = vpack.c.b16 %v3847_v28, %v3846_v56  ;;  %v2362_v18 = vand.u32 65535, %v14447_v47 }
 0x1b9   : > { %v1717_v16 = vpop.f32.mrf.mxu2  ;;  %v1318_v26 = vpop.f32.mrf.mxu0  ;;  %v2324_v21 = vadd.s32 %v2323_v13, %v2314_v7  ;;  %v2345_v29 = vsel %vm2344_vm14, 1, %v18046_v25  ;;  %v14450_v7 = vld [vmem:[%s13653_s11 + $0x58] sm:$0xff] }
 0x1ba   : > { %v1957_v2 = vpop.f32.mrf.mxu3  ;;  %v1740_v50 = vadd.f32 %v1717_v16, %v1508_v39  ;;  %v1488_v36 = vpop.f32.mrf.mxu1  ;;  %v1339_v19 = vadd.f32 %v1318_v26, %v14152_v63  ;;  %v2347_v46 = vadd.s32 %v2345_v29, %v2339_v37  ;;  %vm2348_vm15 = vc.u32 %v2346_v17, %v2342_v20 }
 0x1bb   : > { %v2325_v63 = vshrl.u32 %v2324_v21, 4  ;;  %v2349_v34 = vsel %vm2348_vm15, 1, %v18046_v25  ;;  %v2363_v16 = vshrl.u32 %v14447_v47, 16  ;;  %v2365_v44 = vmul.u32 14564, %v2362_v18 }
 0x1bc   : > { %v14443_v39 = vadd.f32 %v1957_v2, %v1740_v50  ;;  %v1509_v31 = vadd.f32 %v1488_v36, %v1339_v19  ;;  %2124 = vmatmul.bf16.gmra.mxu0 %v2021_v23  ;;  %v3400_v2 = vrot.slane %v3398_v43, 1  ;;  %v2351_v13 = vadd.s32 %v2349_v34, %v2347_v46 }
 0x1bd   : > { %3502 = vmatmul.bf16.gmra.mxu1 %v3393_v61  ;;  %v2326_v23 = vmul.u32 18, %v2325_v63  ;;  %v14463_v61 = vsel %vm2004_vm5, %v2020_v12, %v2022_v27  ;;  %v4044_v50 = vshrl.u32 %v14454_v22, 16  ;;  %v4052_v26 = vshrl.u32 %v14450_v7, 16 }
 0x1be   : > { %3613 = vmatmul.bf16.gmra.mxu2 %v14340_v1  ;;  %v2366_v1 = vmul.u32 58254, %v2362_v18  ;;  %v2352_v56 = vadd.s32 %v2351_v13, %v2341_v30  ;;  %v4055_v33 = vshll.u32 %v14450_v7, 16  ;;  %v4047_v45 = vshll.u32 %v14454_v22, 16  ;;  %v4261_v18 = vld [vmem:[%s13653_s11 + $0x50] sm:$0xc] }
 0x1bf   : > { %3763 = vmatmul.bf16.gmra.mxu3 %v3660_v4  ;;  %v14466_v4 = vmul.u32 14564, %v2363_v16  ;;  %v14472_v43 = vsub.s32 %v14359_v55, %v2326_v23  ;;  %v3401_v20 = vsel %vm400_vm0, %v3396_v49, %v3400_v2  ;;  %v2368_v19 = vmul.u32 58254, %v2363_v16 }
 0x1c0   : > { %v2369_v58 = vshll.u32 %v2366_v1, 16  ;;  %v2353_v17 = vadd.s32 %v2352_v56, %v2343_v14  ;;  %v4046_v30 = vrot.slane %v4044_v50, 1  ;;  %v4054_v34 = vrot.slane %v4052_v26, 1  ;;  %v14489_v56 = vld [vmem:[%s18040_s2] ss:$0 sm:$0xff] }
 0x1c1   : > { %v1720_v40 = vpop.f32.mrf.mxu2  ;;  %v1320_v12 = vpop.f32.mrf.mxu0  ;;  %v2371_v21 = vshll.u32 %v14466_v4, 16  ;;  %vm2823_vm9 = vcmp.ne.s32.totalorder %v14472_v43, 0  ;;  %v4049_v23 = vrot.slane %v4047_v45, 2  ;;  %v4057_v49 = vrot.slane %v4055_v33, 2 }
 0x1c2   : > { %v1960_v51 = vpop.f32.mrf.mxu3  ;;  %v1741_v36 = vadd.f32 %v1720_v40, %v1509_v31  ;;  %v1490_v27 = vpop.f32.mrf.mxu1  ;;  %v1340_v37 = vadd.f32 %v1320_v12, %v14164_v6  ;;  %vm2373_vm6 = vc.u32 %v2365_v44, %v2369_v58  ;;  %v2375_v46 = vadd.s32 %v2369_v58, %v2365_v44 }
 0x1c3   : > { %v3661_v31 = vrot.slane %v14396_v15, 1  ;;  %v2374_v63 = vsel %vm2373_vm6, 1, %v18046_v25  ;;  %v2354_v6 = vshrl.u32 %v2353_v17, 4  ;;  %vm2841_vm10 = vcmp.lt.s32.totalorder %v14472_v43, 0 }
 0x1c4   : > { %v14478_v29 = vadd.f32 %v1960_v51, %v1741_v36  ;;  %v2370_v16 = vshrl.u32 %v2366_v1, 16  ;;  %v2376_v2 = vadd.s32 %v2374_v63, %v2368_v19  ;;  %vm2377_vm12 = vc.u32 %v2375_v46, %v2371_v21  ;;  %v4429_v36 = vld [vmem:[%s13653_s11 + $0x58] sm:$0xc]  ;;  %v14502_v21 = vld [vmem:[%s13653_s11 + $0x5c] sm:$0xf]  ;;  %vm14509_vm13 = vmand %vm2841_vm10, %vm2823_vm9 }
 0x1c5   : > { %v1510_v13 = vadd.f32 %v1490_v27, %v1340_v37  ;;  %v2355_v14 = vmul.u32 18, %v2354_v6  ;;  %v2378_v15 = vsel %vm2377_vm12, 1, %v18046_v25  ;;  %v4279_v44 = vunpack.c.l.b16 %v4261_v18 }
 0x1c6   : > { %v3662_v50 = vsel %vm720_vm1, %v3659_v9, %v3661_v31  ;;  %v2372_v1 = vshrl.u32 %v14466_v4, 16  ;;  %v2380_v26 = vadd.s32 %v2378_v15, %v2376_v2  ;;  %v3875_v33 = vrot.slane %v14454_v22, 1 }
 0x1c7   : > { %v14498_v58 = vadd.s32 18, %v14472_v43  ;;  %v18045_v37 = vrot.slane %v14450_v7, 1  ;;  %v4050_v19 = vor.u32 %v4049_v23, %v4046_v30  ;;  %v14513_v17 = vor.u32 %v4057_v49, %v4054_v34  ;;  %v14526_v30 = vld [vmem:[%s13653_s11 + $0x60] sm:$0xff] }
 0x1c8   : > { %v2381_v4 = vadd.s32 %v2380_v26, %v2370_v16  ;;  %v14516_v46 = vadd.s32 24, %v14359_v55  ;;  %v14521_v63 = vsub.s32 %v14392_v11, %v2355_v14  ;;  %v4483_v18 = vunpack.c.l.b16 %v4429_v36 }
 0x1c9   : > { %v1722_v40 = vpop.f32.mrf.mxu2  ;;  %v2090_v27 = vpop.f32.mrf.mxu0  ;;  %v18044_v23 = vunpack.c.l.b16 %v14502_v21  ;;  %v2895_v48 = vsel %vm14509_vm13, %v14498_v58, %v14472_v43  ;;  %v18049_v43 = vrot.slane %v14526_v30, 2 }
 0x1ca   : > { %v1962_v51 = vpop.f32.mrf.mxu3  ;;  %v1742_v12 = vadd.f32 %v1722_v40, %v1510_v13  ;;  %v3468_v45 = vpop.f32.mrf.mxu1  ;;  %v2135_v9 = vadd.f32 %v2090_v27, %v14178_v57  ;;  %18121 = vst [vmem:[#allocation8_spill] sm:$0xff] %v14516_v46  ;;  %v4280_v57 = vpack.c.b16 %v3847_v28, %v4279_v44  ;;  %v2382_v34 = vadd.s32 %v2381_v4, %v2372_v1 }
 0x1cb   : > { %v2391_v49 = vand.u32 65535, %v14516_v46  ;;  %v14542_v28 = vsel %vm720_vm1, %v3875_v33, %v18045_v37  ;;  %v14551_v13 = vsel %vm1122_vm2, %v4050_v19, %v14513_v17  ;;  %vm2824_vm14 = vcmp.ne.s32.totalorder %v14521_v63, 0 }
 0x1cc   : > { %v14518_v31 = vadd.f32 %v1962_v51, %v1742_v12  ;;  %v14529_v6 = vadd.f32 %v14489_v56, %v2135_v9  ;;  %2129 = vmatmul.bf16.gmra.mxu0 %v14463_v61  ;;  %v2392_v61 = vshrl.u32 %v14516_v46, 16  ;;  %v2383_v2 = vshrl.u32 %v2382_v34, 4 }
 0x1cd   : > { %3507 = vmatmul.bf16.gmra.mxu1 %v3401_v20  ;;  %v14546_v20 = vadd.s32 32, %v14359_v55  ;;  %v2394_v14 = vmul.u32 14564, %v2391_v49  ;;  %v2395_v15 = vmul.u32 58254, %v2391_v49  ;;  %v4281_v1 = vrot.slane %v4280_v57, 2 }
 0x1ce   : > { %3618 = vmatmul.bf16.gmra.mxu2 %v14353_v24  ;;  %v2174_v16 = vsub.f32 0.0, %v14529_v6  ;;  %v18048_v24 = vrot.slane %v14450_v7, 2  ;;  %v14555_v44 = vmul.u32 14564, %v2392_v61  ;;  %v14560_v26 = vpack.c.b16 %v18044_v23, %v4483_v18  ;;  %v14598_v23 = vld [vmem:[%s13653_s11 + $0x60] sm:$0xff] }
 0x1cf   : > { %3768 = vmatmul.bf16.gmra.mxu3 %v3662_v50  ;;  %18122 = vst [vmem:[#allocation9_spill] sm:$0xff] %v14546_v20  ;;  %v2384_v12 = vmul.u32 18, %v2383_v2  ;;  %v2398_v27 = vshll.u32 %v2395_v15, 16  ;;  %v2420_v58 = vand.u32 65535, %v14546_v20  ;;  %v2397_v22 = vmul.u32 58254, %v2392_v61 }
 0x1d0   : > { %v2192_v40 = vmul.f32 1.442695, %v2174_v16  ;;  %v2400_v4 = vshll.u32 %v14555_v44, 16  ;;  %v2421_v18 = vshrl.u32 %v14546_v20, 16  ;;  %vm2842_vm6 = vcmp.lt.s32.totalorder %v14521_v63, 0 }
 0x1d1   : > { %v3579_v51 = vpop.f32.mrf.mxu2  ;;  %v2092_v36 = vpop.f32.mrf.mxu0  ;;  %vm2402_vm15 = vc.u32 %v2394_v14, %v2398_v27  ;;  %v2404_v57 = vadd.s32 %v2398_v27, %v2394_v14  ;;  %v4512_v49 = vrot.slane %v14560_v26, 2  ;;  %v2399_v16 = vshrl.u32 %v2395_v15, 16 }
 0x1d2   : > { %v3729_v50 = vpop.f32.mrf.mxu3  ;;  %v3580_v33 = vadd.f32 %v3579_v51, %v3468_v45  ;;  %13217 = vpow2.f32 %v2192_v40  ;;  %v2136_v19 = vadd.f32 %v2092_v36, %v14195_v41  ;;  %v14564_v9 = vpop.f32.mrf.mxu1  ;;  %v14576_v41 = vsub.s32 %v14447_v47, %v2384_v12 }
 0x1d3   : > { %v2403_v61 = vsel %vm2402_vm15, 1, %v18046_v25  ;;  %vm2406_vm9 = vc.u32 %v2404_v57, %v2400_v4  ;;  %v14579_v2 = vmul.u32 58254, %v2420_v58  ;;  %v4283_v15 = vsel %vm1362_vm3, %v4281_v1, %v18048_v24  ;;  %vm14614_vm15 = vmand %vm2842_vm6, %vm2824_vm14 }
 0x1d4   : > { %v14567_v34 = vadd.f32 %v3729_v50, %v3580_v33  ;;  %v14571_v45 = vadd.f32 %v14489_v56, %v2136_v19  ;;  %v2405_v40 = vadd.s32 %v2403_v61, %v2397_v22  ;;  %v2407_v51 = vsel %vm2406_vm9, 1, %v18046_v25 }
 0x1d5   : > { %v2423_v50 = vmul.u32 14564, %v2420_v58  ;;  %v14584_v33 = vadd.s32 18, %v14521_v63  ;;  %v14589_v36 = vmul.u32 14564, %v2421_v18  ;;  %v2427_v12 = vshll.u32 %v14579_v2, 16 }
 0x1d6   : > { %v2175_v14 = vsub.f32 0.0, %v14571_v45  ;;  %v2401_v22 = vshrl.u32 %v14555_v44, 16  ;;  %v2409_v58 = vadd.s32 %v2407_v51, %v2405_v40  ;;  %v2426_v61 = vmul.u32 58254, %v2421_v18 }
 0x1d7   : > { %vm14600_vm10 = vcmp.lt.s32.totalorder %v2895_v48, 16  ;;  %vm2825_vm12 = vcmp.ne.s32.totalorder %v14576_v41, 0  ;;  %v2429_v24 = vshll.u32 %v14589_v36, 16  ;;  %vm2431_vm13 = vc.u32 %v2423_v50, %v2427_v12 }
 0x1d8   : > { %v13218_v27 = vpop.eup %13217  ;;  %v2194_v19 = vmul.f32 1.442695, %v2175_v14  ;;  %v4514_v14 = vsel %vm1362_vm3, %v4512_v49, %v18049_v43  ;;  %v2410_v18 = vadd.s32 %v2409_v58, %v2399_v16  ;;  %vm2843_vm9 = vcmp.lt.s32.totalorder %v14576_v41, 0 }
 0x1d9   : > { %v14592_v4 = vpop.f32.mrf.mxu2  ;;  %v2228_v37 = vadd.f32 1.0, %v13218_v27  ;;  %v2095_v1 = vpop.f32.mrf.mxu0  ;;  %v18128_v40 = vmov 0   ;;  %v2433_v51 = vadd.s32 %v2427_v12, %v2423_v50  ;;  %v14627_v58 = vadd.s32 18, %v14576_v41  ;;  %v12800_v12 = vld [vmem:[%s18041_s3 + $0x78] sm:$0xff]  ;;  %vm14656_vm6 = vmand %vm2843_vm9, %vm2825_vm12 }
 0x1da   : > { %v14594_v57 = vpop.f32.mrf.mxu3  ;;  %13219 = vpow2.f32 %v2194_v19  ;;  %v2137_v44 = vadd.f32 %v2095_v1, %v14203_v35  ;;  %v2432_v49 = vsel %vm2431_vm13, 1, %v18128_v40  ;;  %v3473_v35 = vpop.f32.mrf.mxu1  ;;  %v4061_v19 = vshrl.u32 %v14598_v23, 16  ;;  %6371 = vmatpush.bf16.msra.mxu2 %v12800_v12  ;;  %v14663_v12 = vld [vmem:[%s13653_s11 + $0x68] sm:$0xff] }
 0x1db   : > { %18123 = vst [vmem:[#allocation10_spill] sm:$0xff] %v14594_v57  ;;  %13221 = vrcp.f32 %v2228_v37  ;;  %v2411_v37 = vadd.s32 %v2410_v18, %v2401_v22  ;;  %v2434_v16 = vadd.s32 %v2432_v49, %v2426_v61  ;;  %v2428_v1 = vshrl.u32 %v14579_v2, 16 }
 0x1dc   : > { %v14621_v27 = vadd.f32 %v14489_v56, %v2137_v44  ;;  %3959 = vmatmul.bf16.vlgmr.msrb.gmra.mxu0 %v14542_v28  ;;  %vm2435_vm14 = vc.u32 %v2433_v51, %v2429_v24  ;;  %v4064_v50 = vshll.u32 %v14598_v23, 16  ;;  %v2896_v28 = vsel %vm14614_vm15, %v14584_v33, %v14521_v63  ;;  %v12792_v24 = vld [vmem:[%s18041_s3 + $0x38] sm:$0xff] }
 0x1dd   : > { %4197 = vmatmul.bf16.vlgmr.msrb.gmra.mxu1 %v14551_v13  ;;  %v2412_v2 = vshrl.u32 %v2411_v37, 4  ;;  %v2436_v22 = vsel %vm2435_vm14, 1, %v18128_v40  ;;  %v12776_v63 = vld [vmem:[%s18039_s1 + $0x238] sm:$0xff]  ;;  %v2430_v33 = vshrl.u32 %v14589_v36, 16  ;;  %v18053_v37 = vrot.slane %v14598_v23, 1  ;;  %6482 = vmatpush.bf16.msra.mxu3 %v12792_v24 }
 0x1de   : > { %4365 = vmatmul.bf16.vlgmr.msrb.gmra.mxu2 %v4283_v15  ;;  %v2176_v13 = vsub.f32 0.0, %v14621_v27  ;;  %v12768_v15 = vld [vmem:[%s18039_s1 + $0x1f8] sm:$0xff]  ;;  %v2438_v61 = vadd.s32 %v2436_v22, %v2434_v16  ;;  %v4066_v44 = vrot.slane %v4064_v50, 2  ;;  %v18052_v47 = vrot.slane %v14598_v23, 2  ;;  %4994 = vmatpush.bf16.msra.mxu1 %v12776_v63 }
 0x1df   : > { %4596 = vmatmul.bf16.vlgmr.msrb.gmra.mxu3 %v4514_v14  ;;  %v4063_v14 = vrot.slane %v4061_v19, 1  ;;  %4826 = vmatpush.bf16.msra.mxu0 %v12768_v15  ;;  %v2413_v43 = vmul.u32 18, %v2412_v2  ;;  %vm14670_vm12 = vcmp.lt.s32.totalorder %v2896_v28, 16  ;;  %v18134_v28 = vrot.slane %v14450_v7, 1 }
 0x1e0   : > { %v13220_v18 = vpop.eup %13219  ;;  %v2196_v48 = vmul.f32 1.442695, %v2176_v13  ;;  %v2439_v50 = vadd.s32 %v2438_v61, %v2428_v1  ;;  %v18055_v63 = vrot.slane %v14663_v12, 2  ;;  %v18135_v61 = vrot.slane %v14450_v7, 2 }
 0x1e1   : > { %v3584_v49 = vpop.f32.mrf.mxu2  ;;  %v13222_v11 = vpop.eup %13221  ;;  %v2229_v57 = vadd.f32 1.0, %v13220_v18  ;;  %v14660_v13 = vor.u32 %v4066_v44, %v4063_v14  ;;  %v14668_v22 = vsub.s32 %v14516_v46, %v2413_v43  ;;  %v3879_v25 = vsel %vm720_vm1, %v18134_v28, %v18053_v37 }
 0x1e2   : > { %v3734_v51 = vpop.f32.mrf.mxu3  ;;  %v3585_v16 = vadd.f32 %v3584_v49, %v3473_v35  ;;  %v2097_v19 = vpop.f32.mrf.mxu0  ;;  %v2264_v15 = vmul.f32 %v13222_v11, %v14529_v6  ;;  %13223 = vpow2.f32 %v2196_v48  ;;  %v2440_v1 = vadd.s32 %v2439_v50, %v2430_v33 }
 0x1e3   : > { %v2138_v2 = vadd.f32 %v2097_v19, %v14223_v42  ;;  %13225 = vrcp.f32 %v2229_v57  ;;  %v2897_v11 = vsel %vm14656_vm6, %v14627_v58, %v14576_v41  ;;  %v14686_v6 = vadd.s32 40, %v14359_v55  ;;  %v14696_v41 = vpop.f32.mrf.mxu1 }
 0x1e4   : > { %v14674_v35 = vadd.f32 %v3734_v51, %v3585_v16  ;;  %v2967_v24 = vsel %vm14600_vm10, %v2264_v15, 0.0  ;;  %v2441_v57 = vshrl.u32 %v2440_v1, 4  ;;  %vm2826_vm10 = vcmp.ne.s32.totalorder %v14668_v22, 0 }
 0x1e5   : > { %v14683_v42 = vadd.f32 %v14489_v56, %v2138_v2  ;;  %18133 = vst [vmem:[#allocation11_spill] sm:$0xff] %v14686_v6  ;;  %v2985_v43 = vpack.c.bf16 %v2967_v24, %v2967_v24  ;;  %v4068_v58 = vsel %vm1122_vm2, %v14513_v17, %v14660_v13  ;;  %v4285_v14 = vsel %vm1362_vm3, %v18135_v61, %v18052_v47 }
 0x1e6   : > { %vm3003_vm13 = vsmask.f32 5392  ;;  %vm2844_vm15 = vcmp.lt.s32.totalorder %v14668_v22, 0  ;;  %v2442_v49 = vmul.u32 18, %v2441_v57  ;;  %v2880_v16 = vadd.s32 18, %v14668_v22 }
 0x1e7   : > { %v2177_v33 = vsub.f32 0.0, %v14683_v42  ;;  %v3006_v44 = vshrl.u32 %v2985_v43, 16  ;;  %v3009_v48 = vshll.u32 %v2985_v43, 16  ;;  %v2449_v17 = vand.u32 65535, %v14686_v6  ;;  %vm14732_vm14 = vmand %vm2844_vm15, %vm2826_vm10 }
 0x1e8   : > { %v13224_v51 = vpop.eup %13223  ;;  %v2450_v7 = vshrl.u32 %v14686_v6, 16  ;;  %v18136_v57 = vrot.slane %v14526_v30, 2  ;;  %v14722_v37 = vsub.s32 %v14546_v20, %v2442_v49  ;;  %vm14724_vm9 = vcmp.lt.s32.totalorder %v2897_v11, 16 }
 0x1e9   : > { %v2198_v36 = vmul.f32 1.442695, %v2177_v33  ;;  %v14708_v19 = vpop.f32.mrf.mxu2  ;;  %v13226_v15 = vpop.eup %13225  ;;  %v3008_v2 = vrot.slane %v3006_v44, 6  ;;  %v3011_v1 = vrot.slane %v3009_v48, 7  ;;  %v2230_v24 = vadd.f32 1.0, %v13224_v51  ;;  %v12775_v44 = vld [vmem:[%s18039_s1 + $0x230] sm:$0xff] }
 0x1ea   : > { %v14710_v50 = vpop.f32.mrf.mxu3  ;;  %v2100_v43 = vpop.f32.mrf.mxu0  ;;  %v4516_v28 = vsel %vm1362_vm3, %v18136_v57, %v18055_v63  ;;  %v3203_v33 = vld [vmem:[#allocation2 + $0x8] sm:$0xe]  ;;  %v2265_v61 = vmul.f32 %v13226_v15, %v14571_v45  ;;  %v14737_v45 = vadd.s32 48, %v14359_v55  ;;  %v14744_v11 = vmul.u32 58254, %v2449_v17  ;;  %4995 = vmatpush.bf16.msra.mxu1 %v12775_v44 }
 0x1eb   : > { %13227 = vpow2.f32 %v2198_v36  ;;  %v2139_v47 = vadd.f32 %v2100_v43, %v14232_v32  ;;  %v3012_v46 = vor.u32 %v3011_v1, %v3008_v2  ;;  %v14746_v49 = vmul.u32 14564, %v2450_v7 }
 0x1ec   : > { %13229 = vrcp.f32 %v2230_v24  ;;  %18141 = vst [vmem:[#allocation12_spill] sm:$0xff] %v14737_v45  ;;  %v2968_v32 = vsel %vm14670_vm12, %v2265_v61, 0.0  ;;  %3964 = vmatmul.bf16.gmra.mxu0 %v3879_v25  ;;  %vm2827_vm6 = vcmp.ne.s32.totalorder %v14722_v37, 0  ;;  %vm2845_vm10 = vcmp.lt.s32.totalorder %v14722_v37, 0  ;;  %v12799_v25 = vld [vmem:[%s18041_s3 + $0x70] sm:$0xff] }
 0x1ed   : > { %v14742_v48 = vadd.f32 %v14489_v56, %v2139_v47  ;;  %4202 = vmatmul.bf16.gmra.mxu1 %v4068_v58  ;;  %v3204_v51 = vsel %vm14379_vm11, %v3012_v46, %v3203_v33  ;;  %v2986_v36 = vpack.c.bf16 %v2968_v32, %v2968_v32  ;;  %v2898_v47 = vsel %vm14732_vm14, %v2880_v16, %v14668_v22  ;;  %v12767_v58 = vld [vmem:[%s18039_s1 + $0x1f0] sm:$0xff]  ;;  %vm14770_vm12 = vmand %vm2845_vm10, %vm2827_vm6 }
 0x1ee   : > { %4370 = vmatmul.bf16.gmra.mxu2 %v4285_v14  ;;  %3205 = vst [vmem:[#allocation2 + $0x8] sm:$0xe] %v3204_v51  ;;  %v12791_v14 = vld [vmem:[%s18041_s3 + $0x30] sm:$0xff]  ;;  %v2881_v1 = vadd.s32 18, %v14722_v37  ;;  %v2452_v24 = vmul.u32 14564, %v2449_v17  ;;  %v3013_v16 = vrot.slane %v3012_v46, 4  ;;  %4827 = vmatpush.bf16.msra.mxu0 %v12767_v58  ;;  %vm14781_vm14 = vmor %vm284_vm7, %vm3003_vm13 }
 0x1ef   : > { %4601 = vmatmul.bf16.gmra.mxu3 %v4516_v28  ;;  %v2178_v18 = vsub.f32 0.0, %v14742_v48  ;;  %v3015_v15 = vshrl.u32 %v2986_v36, 16  ;;  %v3018_v2 = vshll.u32 %v2986_v36, 16  ;;  %v3478_v28 = vpop.f32.mrf.mxu1  ;;  %6372 = vmatpush.bf16.msra.mxu2 %v12799_v25  ;;  %v2455_v61 = vmul.u32 58254, %v2450_v7 }
 0x1f0   : > { %v2456_v30 = vshll.u32 %v14744_v11, 16  ;;  %vm14775_vm15 = vcmp.lt.s32.totalorder %v2898_v47, 16  ;;  %6483 = vmatpush.bf16.msra.mxu3 %v12791_v14  ;;  %v18146_v25 = vmov 0  ;;  %v2458_v47 = vshll.u32 %v14746_v49, 16 }
 0x1f1   : > { %v13228_v22 = vpop.eup %13227  ;;  %v2200_v43 = vmul.f32 1.442695, %v2178_v18  ;;  %v3589_v33 = vpop.f32.mrf.mxu2  ;;  %v3017_v17 = vrot.slane %v3015_v15, 6  ;;  %v3020_v51 = vrot.slane %v3018_v2, 7  ;;  %v18147_v25 = vsel %vm14781_vm14, 4294967295, %v18146_v25 }
 0x1f2   : > { %v13230_v32 = vpop.eup %13229  ;;  %v2231_v46 = vadd.f32 1.0, %v13228_v22  ;;  %v3590_v18 = vadd.f32 %v3589_v33, %v3478_v28  ;;  %v2102_v63 = vpop.f32.mrf.mxu0  ;;  %18148 = vst [vmem:[#allocation13_spill] sm:$0xff] %v18147_v25  ;;  %v2899_v14 = vsel %vm14770_vm12, %v2881_v1, %v14722_v37  ;;  %vm2460_vm7 = vc.u32 %v2452_v24, %v2456_v30 }
 0x1f3   : > { %v2266_v7 = vmul.f32 %v13230_v32, %v14621_v27  ;;  %13231 = vpow2.f32 %v2200_v43  ;;  %v3739_v58 = vpop.f32.mrf.mxu3  ;;  %v2140_v15 = vadd.f32 %v2102_v63, %v14252_v60  ;;  %v3021_v2 = vor.u32 %v3020_v51, %v3017_v17 }
 0x1f4   : > { %13233 = vrcp.f32 %v2231_v46  ;;  %v14791_v22 = vadd.f32 %v3739_v58, %v3590_v18  ;;  %v2462_v27 = vadd.s32 %v2456_v30, %v2452_v24  ;;  %v2457_v43 = vshrl.u32 %v14744_v11, 16 }
 0x1f5   : > { %v2969_v28 = vsel %vm14724_vm9, %v2266_v7, 0.0  ;;  %v14796_v33 = vadd.f32 %v14489_v56, %v2140_v15  ;;  %v3022_v60 = vsel %vm14781_vm14, %v3013_v16, %v3021_v2  ;;  %v2461_v32 = vsel %vm2460_vm7, 1, %v18128_v40 }
 0x1f6   : > { %v2987_v63 = vpack.c.bf16 %v2969_v28, %v2969_v28  ;;  %3206 = vst [vmem:[#allocation2 + $0xc] sm:$0xf] %v3022_v60  ;;  %v2463_v1 = vadd.s32 %v2461_v32, %v2455_v61  ;;  %vm2464_vm13 = vc.u32 %v2462_v27, %v2458_v47  ;;  %v2478_v57 = vand.u32 65535, %v14737_v45 }
 0x1f7   : > { %v2179_v37 = vsub.f32 0.0, %v14796_v33  ;;  %v2465_v16 = vsel %vm2464_vm13, 1, %v18128_v40  ;;  %v2479_v17 = vshrl.u32 %v14737_v45, 16  ;;  %v3023_v51 = vrot.slane %v3021_v2, 4 }
 0x1f8   : > { %v3025_v24 = vshrl.u32 %v2987_v63, 16  ;;  %v3028_v30 = vshll.u32 %v2987_v63, 16  ;;  %v2459_v18 = vshrl.u32 %v14746_v49, 16  ;;  %v2467_v7 = vadd.s32 %v2465_v16, %v2463_v1 }
 0x1f9   : > { %v13232_v11 = vpop.eup %13231  ;;  %v2202_v46 = vmul.f32 1.442695, %v2179_v37  ;;  %vm14810_vm9 = vcmp.lt.s32.totalorder %v2899_v14, 16  ;;  %v14814_v60 = vmul.u32 58254, %v2478_v57  ;;  %v2481_v37 = vmul.u32 14564, %v2478_v57  ;;  %v14828_v57 = vpop.f32.mrf.mxu2 }
 0x1fa   : > { %v13234_v61 = vpop.eup %13233  ;;  %v3027_v58 = vrot.slane %v3025_v24, 6  ;;  %v3030_v15 = vrot.slane %v3028_v30, 7  ;;  %v2232_v47 = vadd.f32 1.0, %v13232_v11  ;;  %v2105_v27 = vpop.f32.mrf.mxu0  ;;  %v2468_v2 = vadd.s32 %v2467_v7, %v2457_v43 }
 0x1fb   : > { %v2267_v63 = vmul.f32 %v13234_v61, %v14683_v42  ;;  %13235 = vpow2.f32 %v2202_v46  ;;  %v2141_v32 = vadd.f32 %v2105_v27, %v14261_v8  ;;  %v14818_v1 = vmul.u32 14564, %v2479_v17 }
 0x1fc   : > { %v3031_v49 = vor.u32 %v3030_v15, %v3027_v58  ;;  %13237 = vrcp.f32 %v2232_v47  ;;  %v2469_v44 = vadd.s32 %v2468_v2, %v2459_v18  ;;  %v2484_v30 = vmul.u32 58254, %v2479_v17  ;;  %v14834_v15 = vpop.f32.mrf.mxu1 }
 0x1fd   : > { %v2970_v14 = vsel %vm14775_vm15, %v2267_v63, 0.0  ;;  %v14823_v24 = vadd.f32 %v14489_v56, %v2141_v32  ;;  %v2485_v8 = vshll.u32 %v14814_v60, 16  ;;  %v2486_v36 = vshrl.u32 %v14814_v60, 16  ;;  %v12798_v60 = vld [vmem:[%s18041_s3 + $0x68] sm:$0xff] }
 0x1fe   : > { %v3032_v42 = vsel %vm14781_vm14, %v3023_v51, %v3031_v49  ;;  %v3033_v16 = vrot.slane %v3031_v49, 4  ;;  %v2988_v43 = vpack.c.bf16 %v2970_v14, %v2970_v14  ;;  %v2470_v11 = vshrl.u32 %v2469_v44, 4  ;;  %6373 = vmatpush.bf16.msra.mxu2 %v12798_v60 }
 0x1ff   : > { %3207 = vst [vmem:[#allocation2 + $0x10] sm:$0xf] %v3032_v42  ;;  %v2180_v46 = vsub.f32 0.0, %v14823_v24  ;;  %v2487_v18 = vshll.u32 %v14818_v1, 16  ;;  %v2488_v61 = vshrl.u32 %v14818_v1, 16  ;;  %vm2489_vm6 = vc.u32 %v2481_v37, %v2485_v8  ;;  %v14841_v1 = vld [vmem:[%s13653_s11 + $0x68] sm:$0xff] }
 0x200   : > { %v3035_v7 = vshrl.u32 %v2988_v43, 16  ;;  %v3038_v17 = vshll.u32 %v2988_v43, 16  ;;  %v2471_v58 = vmul.u32 18, %v2470_v11  ;;  %v2490_v27 = vsel %vm2489_vm6, 1, %v18128_v40 }
 0x201   : > { %v13236_v51 = vpop.eup %13235  ;;  %v2204_v47 = vmul.f32 1.442695, %v2180_v46  ;;  %v2491_v63 = vadd.s32 %v2485_v8, %v2481_v37  ;;  %v2492_v44 = vadd.s32 %v2490_v27, %v2484_v30  ;;  %v14845_v8 = vpop.f32.mrf.mxu3  ;;  %v18056_v46 = vrot.slane %v14841_v1, 1 }
 0x202   : > { %v13238_v2 = vpop.eup %13237  ;;  %v3037_v32 = vrot.slane %v3035_v7, 6  ;;  %v3040_v49 = vrot.slane %v3038_v17, 7  ;;  %v2233_v14 = vadd.f32 1.0, %v13236_v51  ;;  %v2472_v43 = vsub.s32 %v14686_v6, %v2471_v58  ;;  %18151 = vst [vmem:[#allocation14_spill] sm:$0xff] %v14845_v8 }
 0x203   : > { %v2268_v42 = vmul.f32 %v13238_v2, %v14742_v48  ;;  %13239 = vpow2.f32 %v2204_v47  ;;  %vm2493_vm10 = vc.u32 %v2491_v63, %v2487_v18  ;;  %v14852_v48 = vld [vmem:[%s13653_s11 + $0x70] sm:$0xff]  ;;  %v18152_v27 = vrot.slane %v14598_v23, 1 }
 0x204   : > { %v3041_v37 = vor.u32 %v3040_v49, %v3037_v32  ;;  %13241 = vrcp.f32 %v2233_v14  ;;  %v2494_v11 = vsel %vm2493_vm10, 1, %v18128_v40  ;;  %vm2828_vm12 = vcmp.ne.s32.totalorder %v2472_v43, 0  ;;  %v2107_v14 = vpop.f32.mrf.mxu0  ;;  %v3483_v6 = vpop.f32.mrf.mxu1 }
 0x205   : > { %v2971_v30 = vsel %vm14810_vm9, %v2268_v42, 0.0  ;;  %vm2846_vm15 = vcmp.lt.s32.totalorder %v2472_v43, 0  ;;  %v2882_v7 = vadd.s32 18, %v2472_v43  ;;  %v2496_v58 = vadd.s32 %v2494_v11, %v2492_v44 }
 0x206   : > { %v3042_v18 = vsel %vm14781_vm14, %v3033_v16, %v3041_v37  ;;  %v3043_v17 = vrot.slane %v3041_v37, 4  ;;  %v2989_v51 = vpack.c.bf16 %v2971_v30, %v2971_v30  ;;  %vm2864_vm7 = vmand %vm2846_vm15, %vm2828_vm12  ;;  %v3881_v28 = vsel %vm720_vm1, %v18152_v27, %v18056_v46  ;;  %v3594_v30 = vpop.f32.mrf.mxu2 }
 0x207   : > { %3208 = vst [vmem:[#allocation2 + $0x14] sm:$0xf] %v3042_v18  ;;  %v2900_v47 = vsel %vm2864_vm7, %v2882_v7, %v2472_v43  ;;  %v4070_v63 = vshrl.u32 %v14841_v1, 16  ;;  %v4073_v60 = vshll.u32 %v14841_v1, 16  ;;  %v2497_v49 = vadd.s32 %v2496_v58, %v2486_v36  ;;  %3969 = vmatmul.bf16.gmra.mxu0 %v3881_v28 }
 0x208   : > { %v3045_v2 = vshrl.u32 %v2989_v51, 16  ;;  %v3048_v32 = vshll.u32 %v2989_v51, 16  ;;  %vm14863_vm13 = vcmp.lt.s32.totalorder %v2900_v47, 16  ;;  %v18060_v37 = vrot.slane %v14841_v1, 2 }
 0x209   : > { %v13240_v44 = vpop.eup %13239  ;;  %v4072_v42 = vrot.slane %v4070_v63, 1  ;;  %v4075_v43 = vrot.slane %v4073_v60, 2  ;;  %v18059_v11 = vrot.slane %v14852_v48, 2  ;;  %v2498_v51 = vadd.s32 %v2497_v49, %v2488_v61 }
 0x20a   : > { %v13242_v7 = vpop.eup %13241  ;;  %v3047_v18 = vrot.slane %v3045_v2, 6  ;;  %v3050_v27 = vrot.slane %v3048_v32, 7  ;;  %v2234_v46 = vadd.f32 1.0, %v13240_v44  ;;  %v18155_v36 = vrot.slane %v14598_v23, 2 }
 0x20b   : > { %v2269_v47 = vmul.f32 %v13242_v7, %v14796_v33  ;;  %v14870_v20 = vor.u32 %v4075_v43, %v4072_v42  ;;  %v18156_v28 = vrot.slane %v14663_v12, 2  ;;  %v2499_v61 = vshrl.u32 %v2498_v51, 4  ;;  %v3744_v42 = vpop.f32.mrf.mxu3 }
 0x20c   : > { %v4287_v58 = vsel %vm1362_vm3, %v18155_v36, %v18060_v37  ;;  %v3051_v60 = vor.u32 %v3050_v27, %v3047_v18  ;;  %13243 = vrcp.f32 %v2234_v46  ;;  %v3595_v33 = vadd.f32 %v3594_v30, %v3483_v6 }
 0x20d   : > { %v4518_v63 = vsel %vm1362_vm3, %v18156_v28, %v18059_v11  ;;  %4375 = vmatmul.bf16.gmra.mxu2 %v4287_v58  ;;  %v2972_v2 = vsel %vm14863_vm13, %v2269_v47, 0.0  ;;  %v4077_v23 = vsel %vm1122_vm2, %v14660_v13, %v14870_v20  ;;  %v2142_v32 = vadd.f32 %v2107_v14, %v14278_v0  ;;  %v2110_v58 = vpop.f32.mrf.mxu0 }
 0x20e   : > { %4606 = vmatmul.bf16.gmra.mxu3 %v4518_v63  ;;  %v14889_v49 = vadd.s32 56, %v14359_v55  ;;  %v3052_v12 = vsel %vm14781_vm14, %v3043_v17, %v3051_v60  ;;  %v2990_v46 = vpack.c.bf16 %v2972_v2, %v2972_v2  ;;  %v2500_v44 = vmul.u32 18, %v2499_v61  ;;  %4207 = vmatmul.bf16.gmra.mxu1 %v4077_v23 }
 0x20f   : > { %3209 = vst [vmem:[#allocation2 + $0x18] sm:$0xf] %v3052_v12  ;;  %v14893_v6 = vadd.f32 %v3744_v42, %v3595_v33  ;;  %v14896_v16 = vadd.f32 %v14489_v56, %v2142_v32  ;;  %v3053_v2 = vrot.slane %v3051_v60, 4  ;;  %v12766_v60 = vld [vmem:[%s18039_s1 + $0x1e8] sm:$0xff] }
 0x210   : > { %18157 = vst [vmem:[#allocation15_spill] sm:$0xff] %v14889_v49  ;;  %v2507_v13 = vand.u32 65535, %v14889_v49  ;;  %v2508_v0 = vshrl.u32 %v14889_v49, 16  ;;  %v3055_v14 = vshrl.u32 %v2990_v46, 16  ;;  %v3058_v43 = vshll.u32 %v2990_v46, 16  ;;  %v14915_v46 = vld [vmem:[%s13653_s11 + $0x70] sm:$0xff]  ;;  %4828 = vmatpush.bf16.msra.mxu0 %v12766_v60 }
 0x211   : > { %v2501_v30 = vsub.s32 %v14737_v45, %v2500_v44  ;;  %v2181_v17 = vsub.f32 0.0, %v14896_v16 }
 0x212   : > { %v2510_v7 = vmul.u32 14564, %v2507_v13  ;;  %v14902_v18 = vmul.u32 58254, %v2507_v13  ;;  %v14904_v27 = vmul.u32 14564, %v2508_v0  ;;  %v13244_v51 = vpop.eup %13243  ;;  %v3057_v47 = vrot.slane %v3055_v14, 6  ;;  %v14921_v13 = vpop.f32.mrf.mxu1  ;;  %v12774_v14 = vld [vmem:[%s18039_s1 + $0x228] sm:$0xff] }
 0x213   : > { %v3060_v36 = vrot.slane %v3058_v43, 7  ;;  %vm2829_vm9 = vcmp.ne.s32.totalorder %v2501_v30, 0  ;;  %vm2847_vm6 = vcmp.lt.s32.totalorder %v2501_v30, 0  ;;  %v2270_v28 = vmul.f32 %v13244_v51, %v14823_v24  ;;  %18160 = vst [vmem:[#allocation16_spill] sm:$0xff] %v14921_v13  ;;  %v14932_v43 = vpop.f32.mrf.mxu2  ;;  %4996 = vmatpush.bf16.msra.mxu1 %v12774_v14 }
 0x214   : > { %vm14907_vm10 = vmand %vm2847_vm6, %vm2829_vm9  ;;  %v2883_v61 = vadd.s32 18, %v2501_v30  ;;  %v2206_v33 = vmul.f32 1.442695, %v2181_v17  ;;  %v2513_v32 = vmul.u32 58254, %v2508_v0  ;;  %v2514_v12 = vshll.u32 %v14902_v18, 16  ;;  %v12790_v0 = vld [vmem:[%s18041_s3 + $0x28] sm:$0xff] }
 0x215   : > { %v14911_v23 = vor.u32 %v3060_v36, %v3057_v47  ;;  %v2515_v24 = vshrl.u32 %v14902_v18, 16  ;;  %v2516_v42 = vshll.u32 %v14904_v27, 16  ;;  %18161 = vst [vmem:[#allocation17_spill] sm:$0xff] %v14932_v43  ;;  %v2517_v17 = vshrl.u32 %v14904_v27, 16  ;;  %6484 = vmatpush.bf16.msra.mxu3 %v12790_v0  ;;  %v14944_v27 = vpop.f32.mrf.mxu3  ;;  %v2112_v11 = vpop.f32.mrf.mxu0  ;;  %v14964_v43 = vld [vmem:[%s13653_s11 + $0x78] sm:$0xff] }
 0x216   : > { %v2901_v44 = vsel %vm14907_vm10, %v2883_v61, %v2501_v30  ;;  %13245 = vpow2.f32 %v2206_v33  ;;  %vm2518_vm15 = vc.u32 %v2510_v7, %v2514_v12  ;;  %v2520_v47 = vadd.s32 %v2514_v12, %v2510_v7  ;;  %18163 = vst [vmem:[#allocation19_spill] sm:$0xff] %v14944_v27 }
 0x217   : > { %v3062_v30 = vsel %vm14781_vm14, %v3053_v2, %v14911_v23  ;;  %vm2919_vm12 = vcmp.lt.s32.totalorder %v2901_v44, 16  ;;  %v2519_v51 = vsel %vm2518_vm15, 1, %v18128_v40  ;;  %v2143_v36 = vadd.f32 %v2110_v58, %v14290_v52 }
 0x218   : > { %3210 = vst [vmem:[#allocation2 + $0x1c] sm:$0xf] %v3062_v30  ;;  %v2973_v18 = vsel %vm2919_vm12, %v2270_v28, 0.0  ;;  %v2521_v61 = vadd.s32 %v2519_v51, %v2513_v32  ;;  %v14941_v33 = vadd.s32 64, %v14359_v55  ;;  %v3882_v2 = vrot.slane %v14915_v46, 1 }
 0x219   : > { %v2991_v63 = vpack.c.bf16 %v2973_v18, %v2973_v18  ;;  %vm2522_vm7 = vc.u32 %v2520_v47, %v2516_v42  ;;  %v14947_v28 = vadd.f32 %v14489_v56, %v2143_v36  ;;  %v4079_v7 = vshrl.u32 %v14915_v46, 16 }
 0x21a   : > { %18162 = vst [vmem:[#allocation18_spill] sm:$0xff] %v14941_v33  ;;  %v4082_v12 = vshll.u32 %v14915_v46, 16  ;;  %v2523_v58 = vsel %vm2522_vm7, 1, %v18128_v40  ;;  %v2536_v32 = vand.u32 65535, %v14941_v33  ;;  %v2537_v42 = vshrl.u32 %v14941_v33, 16 }
 0x21b   : > { %v3065_v44 = vshrl.u32 %v2991_v63, 16  ;;  %v3068_v52 = vshll.u32 %v2991_v63, 16  ;;  %v2525_v0 = vadd.s32 %v2523_v58, %v2521_v61  ;;  %v2182_v14 = vsub.f32 0.0, %v14947_v28 }
 0x21c   : > { %v13246_v60 = vpop.eup %13245  ;;  %v18164_v30 = vrot.slane %v14841_v1, 1  ;;  %v2539_v63 = vmul.u32 14564, %v2536_v32  ;;  %v2540_v61 = vmul.u32 58254, %v2536_v32  ;;  %v2541_v58 = vmul.u32 14564, %v2537_v42 }
 0x21d   : > { %v3067_v51 = vrot.slane %v3065_v44, 6  ;;  %v3070_v47 = vrot.slane %v3068_v52, 7  ;;  %v2235_v36 = vadd.f32 1.0, %v13246_v60  ;;  %v2526_v37 = vadd.s32 %v2525_v0, %v2515_v24  ;;  %v3488_v52 = vpop.f32.mrf.mxu1 }
 0x21e   : > { %v3883_v18 = vsel %vm720_vm1, %v18164_v30, %v3882_v2  ;;  %v2208_v45 = vmul.f32 1.442695, %v2182_v14  ;;  %v3063_v5 = vrot.slane %v14911_v23, 4  ;;  %v2542_v8 = vmul.u32 58254, %v2537_v42  ;;  %v3599_v30 = vpop.f32.mrf.mxu2 }
 0x21f   : > { %3974 = vmatmul.bf16.gmra.mxu0 %v3883_v18  ;;  %v14961_v27 = vor.u32 %v3070_v47, %v3067_v51  ;;  %13247 = vrcp.f32 %v2235_v36  ;;  %v2527_v13 = vadd.s32 %v2526_v37, %v2517_v17  ;;  %v2543_v44 = vshll.u32 %v2540_v61, 16 }
 0x220   : > { %13249 = vpow2.f32 %v2208_v45  ;;  %v4081_v60 = vrot.slane %v4079_v7, 1  ;;  %v2544_v32 = vshrl.u32 %v2540_v61, 16  ;;  %v2545_v0 = vshll.u32 %v2541_v58, 16 }
 0x221   : > { %v3072_v24 = vsel %vm14781_vm14, %v3063_v5, %v14961_v27  ;;  %v2528_v23 = vshrl.u32 %v2527_v13, 4  ;;  %vm2547_vm13 = vc.u32 %v2539_v63, %v2543_v44  ;;  %v2549_v14 = vadd.s32 %v2543_v44, %v2539_v63  ;;  %v3749_v5 = vpop.f32.mrf.mxu3 }
 0x222   : > { %3211 = vst [vmem:[#allocation2 + $0x20] sm:$0xf] %v3072_v24  ;;  %v4084_v18 = vrot.slane %v4082_v12, 2  ;;  %v2548_v42 = vsel %vm2547_vm13, 1, %v18128_v40  ;;  %v18064_v37 = vrot.slane %v14915_v46, 2  ;;  %v18063_v45 = vrot.slane %v14964_v43, 2 }
 0x223   : > { %v3600_v17 = vadd.f32 %v3599_v30, %v3488_v52  ;;  %v2529_v7 = vmul.u32 18, %v2528_v23  ;;  %v2550_v51 = vadd.s32 %v2548_v42, %v2542_v8  ;;  %vm2551_vm9 = vc.u32 %v2549_v14, %v2545_v0 }
 0x224   : > { %v14972_v47 = vor.u32 %v4084_v18, %v4081_v60  ;;  %v2552_v61 = vsel %vm2551_vm9, 1, %v18128_v40  ;;  %v18165_v13 = vrot.slane %v14841_v1, 2  ;;  %v18166_v63 = vrot.slane %v14852_v48, 2  ;;  %v2115_v18 = vpop.f32.mrf.mxu0 }
 0x225   : > { %v13248_v36 = vpop.eup %13247  ;;  %v14985_v8 = vadd.f32 %v3749_v5, %v3600_v17  ;;  %v2530_v60 = vsub.s32 %v14889_v49, %v2529_v7  ;;  %v2546_v30 = vshrl.u32 %v2541_v58, 16  ;;  %v2554_v24 = vadd.s32 %v2552_v61, %v2550_v51 }
 0x226   : > { %v4289_v12 = vsel %vm1362_vm3, %v18165_v13, %v18064_v37  ;;  %v4520_v44 = vsel %vm1362_vm3, %v18166_v63, %v18063_v45  ;;  %v13250_v52 = vpop.eup %13249  ;;  %v4086_v0 = vsel %vm1122_vm2, %v14870_v20, %v14972_v47  ;;  %v2271_v1 = vmul.f32 %v13248_v36, %v14896_v16 }
 0x227   : > { %4380 = vmatmul.bf16.gmra.mxu2 %v4289_v12  ;;  %v2236_v23 = vadd.f32 1.0, %v13250_v52  ;;  %4212 = vmatmul.bf16.gmra.mxu1 %v4086_v0  ;;  %v2144_v48 = vadd.f32 %v2112_v11, %v14301_v10  ;;  %v14994_v14 = vadd.s32 72, %v14359_v55  ;;  %vm2830_vm6 = vcmp.ne.s32.totalorder %v2530_v60, 0  ;;  %v15001_v10 = vpop.f32.mrf.mxu1 }
 0x228   : > { %4611 = vmatmul.bf16.gmra.mxu3 %v4520_v44  ;;  %vm2848_vm10 = vcmp.lt.s32.totalorder %v2530_v60, 0  ;;  %v2884_v58 = vadd.s32 18, %v2530_v60  ;;  %v2555_v42 = vadd.s32 %v2554_v24, %v2544_v32  ;;  %v2145_v11 = vadd.f32 %v2115_v18, %v14319_v59  ;;  %v12797_v59 = vld [vmem:[%s18041_s3 + $0x60] sm:$0xff] }
 0x229   : > { %18167 = vst [vmem:[#allocation20_spill] sm:$0xff] %v14994_v14  ;;  %vm2866_vm12 = vmand %vm2848_vm10, %vm2830_vm6  ;;  %13251 = vrcp.f32 %v2236_v23  ;;  %v14997_v20 = vadd.f32 %v14489_v56, %v2144_v48  ;;  %v2565_v16 = vand.u32 65535, %v14994_v14  ;;  %v2566_v17 = vshrl.u32 %v14994_v14, 16  ;;  %v15021_v23 = vld [vmem:[%s18040_s2] ss:$0 sm:$0xff]  ;;  %6374 = vmatpush.bf16.msra.mxu2 %v12797_v59 }
 0x22a   : > { %v2902_v7 = vsel %vm2866_vm12, %v2884_v58, %v2530_v60  ;;  %v2556_v51 = vadd.s32 %v2555_v42, %v2546_v30  ;;  %v3073_v61 = vrot.slane %v14961_v27, 4  ;;  %v12765_v27 = vld [vmem:[%s18039_s1 + $0x1e0] sm:$0xff]  ;;  %v15024_v48 = vadd.f32 %v15021_v23, %v2145_v11 }
 0x22b   : > { %vm2920_vm15 = vcmp.lt.s32.totalorder %v2902_v7, 16  ;;  %v2183_v5 = vsub.f32 0.0, %v14997_v20  ;;  %v2568_v36 = vmul.u32 14564, %v2565_v16  ;;  %v2569_v32 = vmul.u32 58254, %v2565_v16  ;;  %v12773_v16 = vld [vmem:[%s18039_s1 + $0x220] sm:$0xff]  ;;  %4829 = vmatpush.bf16.msra.mxu0 %v12765_v27 }
 0x22c   : > { %v2974_v13 = vsel %vm2920_vm15, %v2271_v1, 0.0  ;;  %v2557_v56 = vshrl.u32 %v2556_v51, 4  ;;  %v15006_v12 = vmul.u32 14564, %v2566_v17  ;;  %v2571_v52 = vmul.u32 58254, %v2566_v17  ;;  %v12789_v1 = vld [vmem:[%s18041_s3 + $0x20] sm:$0xff]  ;;  %4997 = vmatpush.bf16.msra.mxu1 %v12773_v16 }
 0x22d   : > { %v2992_v63 = vpack.c.bf16 %v2974_v13, %v2974_v13  ;;  %v2210_v44 = vmul.f32 1.442695, %v2183_v5  ;;  %v2572_v60 = vshll.u32 %v2569_v32, 16  ;;  %v2573_v24 = vshrl.u32 %v2569_v32, 16  ;;  %6485 = vmatpush.bf16.msra.mxu3 %v12789_v1 }
 0x22e   : > { %v2558_v30 = vmul.u32 18, %v2557_v56  ;;  %v2574_v0 = vshll.u32 %v15006_v12, 16  ;;  %v2184_v56 = vsub.f32 0.0, %v15024_v48  ;;  %v2575_v1 = vshrl.u32 %v15006_v12, 16 }
 0x22f   : > { %v13252_v18 = vpop.eup %13251  ;;  %v3075_v58 = vshrl.u32 %v2992_v63, 16  ;;  %v3078_v42 = vshll.u32 %v2992_v63, 16  ;;  %13253 = vpow2.f32 %v2210_v44  ;;  %vm2576_vm7 = vc.u32 %v2568_v36, %v2572_v60  ;;  %v15034_v63 = vld [vmem:[%s13653_s11 + $0x78] sm:$0xff] }
 0x230   : > { %v2272_v17 = vmul.f32 %v13252_v18, %v14947_v28  ;;  %v2559_v7 = vsub.s32 %v14941_v33, %v2558_v30  ;;  %v2577_v51 = vsel %vm2576_vm7, 1, %v18128_v40  ;;  %v2578_v5 = vadd.s32 %v2572_v60, %v2568_v36  ;;  %v15036_v28 = vpop.f32.mrf.mxu2  ;;  %v15038_v30 = vpop.f32.mrf.mxu3 }
 0x231   : > { %v3077_v11 = vrot.slane %v3075_v58, 6  ;;  %v3080_v32 = vrot.slane %v3078_v42, 7  ;;  %v2579_v13 = vadd.s32 %v2577_v51, %v2571_v52  ;;  %18168 = vst [vmem:[#allocation21_spill] sm:$0xff] %v15036_v28  ;;  %v2212_v59 = vmul.f32 1.442695, %v2184_v56  ;;  %v15045_v58 = vpop.f32.mrf.mxu1 }
 0x232   : > { %vm2831_vm13 = vcmp.ne.s32.totalorder %v2559_v7, 0  ;;  %vm2849_vm9 = vcmp.lt.s32.totalorder %v2559_v7, 0  ;;  %v2885_v44 = vadd.s32 18, %v2559_v7  ;;  %vm2580_vm6 = vc.u32 %v2578_v5, %v2574_v0  ;;  %18169 = vst [vmem:[#allocation22_spill] sm:$0xff] %v15038_v30 }
 0x233   : > { %v3081_v36 = vor.u32 %v3080_v32, %v3077_v11  ;;  %vm2867_vm10 = vmand %vm2849_vm9, %vm2831_vm13  ;;  %v2581_v60 = vsel %vm2580_vm6, 1, %v18128_v40  ;;  %v15042_v52 = vadd.s32 80, %v14359_v55  ;;  %v18067_v0 = vrot.slane %v15034_v63, 1 }
 0x234   : > { %v2903_v27 = vsel %vm2867_vm10, %v2885_v44, %v2559_v7  ;;  %v2583_v18 = vadd.s32 %v2581_v60, %v2579_v13  ;;  %13255 = vpow2.f32 %v2212_v59  ;;  %v4088_v51 = vshrl.u32 %v15034_v63, 16 }
 0x235   : > { %18170 = vst [vmem:[#allocation23_spill] sm:$0xff] %v15042_v52  ;;  %v13254_v42 = vpop.eup %13253  ;;  %v3082_v16 = vsel %vm14781_vm14, %v3073_v61, %v3081_v36  ;;  %vm2921_vm12 = vcmp.lt.s32.totalorder %v2903_v27, 16  ;;  %v2594_v7 = vand.u32 65535, %v15042_v52  ;;  %v3083_v12 = vrot.slane %v3081_v36, 4 }
 0x236   : > { %3212 = vst [vmem:[#allocation2 + $0x24] sm:$0xf] %v3082_v16  ;;  %v2975_v5 = vsel %vm2921_vm12, %v2272_v17, 0.0  ;;  %v2237_v11 = vadd.f32 1.0, %v13254_v42  ;;  %v2584_v32 = vadd.s32 %v2583_v18, %v2573_v24  ;;  %v2595_v56 = vshrl.u32 %v15042_v52, 16 }
 0x237   : > { %v2993_v13 = vpack.c.bf16 %v2975_v5, %v2975_v5  ;;  %v3885_v61 = vsel %vm720_vm1, %v3882_v2, %v18067_v0  ;;  %v2597_v60 = vmul.u32 14564, %v2594_v7  ;;  %v2598_v59 = vmul.u32 58254, %v2594_v7  ;;  %v15064_v0 = vld [vmem:[%s13653_s11 + $0x80] sm:$0xff] }
 0x238   : > { %13257 = vrcp.f32 %v2237_v11  ;;  %v2585_v44 = vadd.s32 %v2584_v32, %v2575_v1  ;;  %3979 = vmatmul.bf16.gmra.mxu0 %v3885_v61  ;;  %v2599_v24 = vmul.u32 14564, %v2595_v56  ;;  %v4090_v18 = vrot.slane %v4088_v51, 1  ;;  %v3604_v7 = vpop.f32.mrf.mxu2  ;;  %v3754_v61 = vpop.f32.mrf.mxu3 }
 0x239   : > { %v3085_v17 = vshrl.u32 %v2993_v13, 16  ;;  %v3088_v27 = vshll.u32 %v2993_v13, 16  ;;  %v2600_v36 = vmul.u32 58254, %v2595_v56  ;;  %v2601_v16 = vshll.u32 %v2598_v59, 16 }
 0x23a   : > { %v2586_v42 = vshrl.u32 %v2585_v44, 4  ;;  %v4091_v5 = vshll.u32 %v15034_v63, 16  ;;  %v13256_v45 = vpop.eup %13255  ;;  %v2602_v49 = vshrl.u32 %v2598_v59, 16  ;;  %v2603_v2 = vshll.u32 %v2599_v24, 16 }
 0x23b   : > { %v3087_v37 = vrot.slane %v3085_v17, 6  ;;  %v3090_v33 = vrot.slane %v3088_v27, 7  ;;  %v2238_v1 = vadd.f32 1.0, %v13256_v45  ;;  %vm2605_vm15 = vc.u32 %v2597_v60, %v2601_v16  ;;  %v2117_v45 = vpop.f32.mrf.mxu0 }
 0x23c   : > { %v2587_v11 = vmul.u32 18, %v2586_v42  ;;  %v2607_v32 = vadd.s32 %v2601_v16, %v2597_v60  ;;  %v2606_v51 = vsel %vm2605_vm15, 1, %v18128_v40  ;;  %v4093_v56 = vrot.slane %v4091_v5, 2  ;;  %v15067_v42 = vpop.f32.mrf.mxu1 }
 0x23d   : > { %v15059_v13 = vor.u32 %v3090_v33, %v3087_v37  ;;  %v18069_v44 = vrot.slane %v15034_v63, 2  ;;  %v2604_v59 = vshrl.u32 %v2599_v24, 16  ;;  %v2608_v27 = vadd.s32 %v2606_v51, %v2600_v36  ;;  %18171 = vst [vmem:[#allocation24_spill] sm:$0xff] %v15067_v42 }
 0x23e   : > { %v13258_v30 = vpop.eup %13257  ;;  %v2588_v17 = vsub.s32 %v14994_v14, %v2587_v11  ;;  %vm2609_vm7 = vc.u32 %v2607_v32, %v2603_v2  ;;  %13259 = vrcp.f32 %v2238_v1  ;;  %v15074_v24 = vor.u32 %v4093_v56, %v4090_v18 }
 0x23f   : > { %v3092_v33 = vsel %vm14781_vm14, %v3083_v12, %v15059_v13  ;;  %v2273_v37 = vmul.f32 %v13258_v30, %v14997_v20  ;;  %v2610_v60 = vsel %vm2609_vm7, 1, %v18128_v40  ;;  %v18172_v36 = vrot.slane %v14915_v46, 2 }
 0x240   : > { %3213 = vst [vmem:[#allocation2 + $0x28] sm:$0xf] %v3092_v33  ;;  %vm2832_vm13 = vcmp.ne.s32.totalorder %v2588_v17, 0  ;;  %vm2850_vm9 = vcmp.lt.s32.totalorder %v2588_v17, 0  ;;  %v2886_v16 = vadd.s32 18, %v2588_v17  ;;  %v2612_v5 = vadd.s32 %v2610_v60, %v2608_v27 }
 0x241   : > { %vm2868_vm6 = vmand %vm2850_vm9, %vm2832_vm13  ;;  %v4291_v2 = vsel %vm1362_vm3, %v18172_v36, %v18069_v44  ;;  %v18068_v12 = vrot.slane %v15064_v0, 2  ;;  %v3605_v20 = vadd.f32 %v3604_v7, %v15045_v58  ;;  %v2146_v1 = vadd.f32 %v2117_v45, %v14327_v54 }
 0x242   : > { %v2904_v30 = vsel %vm2868_vm6, %v2886_v16, %v2588_v17  ;;  %v2613_v11 = vadd.s32 %v2612_v5, %v2602_v49  ;;  %4385 = vmatmul.bf16.gmra.mxu2 %v4291_v2  ;;  %v15085_v32 = vadd.s32 88, %v14359_v55  ;;  %v4095_v18 = vsel %vm1122_vm2, %v14972_v47, %v15074_v24 }
 0x243   : > { %vm2922_vm10 = vcmp.lt.s32.totalorder %v2904_v30, 16  ;;  %v18174_v46 = vrot.slane %v14964_v43, 2  ;;  %v15095_v58 = vadd.f32 %v3754_v61, %v3605_v20  ;;  %4217 = vmatmul.bf16.gmra.mxu1 %v4095_v18  ;;  %v15098_v54 = vadd.f32 %v15021_v23, %v2146_v1  ;;  %v15103_v61 = vpop.f32.mrf.mxu2  ;;  %v2120_v1 = vpop.f32.mrf.mxu0 }
 0x244   : > { %18173 = vst [vmem:[#allocation25_spill] sm:$0xff] %v15085_v32  ;;  %v2976_v49 = vsel %vm2922_vm10, %v2273_v37, 0.0  ;;  %v2614_v7 = vadd.s32 %v2613_v11, %v2604_v59  ;;  %v2623_v56 = vand.u32 65535, %v15085_v32  ;;  %v13260_v17 = vpop.eup %13259  ;;  %v2624_v47 = vshrl.u32 %v15085_v32, 16  ;;  %v15105_v37 = vpop.f32.mrf.mxu3 }
 0x245   : > { %v4522_v51 = vsel %vm1362_vm3, %v18174_v46, %v18068_v12  ;;  %v2994_v27 = vpack.c.bf16 %v2976_v49, %v2976_v49  ;;  %v2185_v43 = vsub.f32 0.0, %v15098_v54  ;;  %18175 = vst [vmem:[#allocation26_spill] sm:$0xff] %v15103_v61  ;;  %v3093_v59 = vrot.slane %v15059_v13, 4  ;;  %v15110_v18 = vpop.f32.mrf.mxu1  ;;  %v12796_v13 = vld [vmem:[%s18041_s3 + $0x58] sm:$0xff] }
 0x246   : > { %4616 = vmatmul.bf16.gmra.mxu3 %v4522_v51  ;;  %v2615_v45 = vshrl.u32 %v2614_v7, 4  ;;  %v2626_v33 = vmul.u32 14564, %v2623_v56  ;;  %v2627_v60 = vmul.u32 58254, %v2623_v56  ;;  %18176 = vst [vmem:[#allocation27_spill] sm:$0xff] %v15105_v37  ;;  %v15108_v36 = vmul.u32 14564, %v2624_v47  ;;  %v12764_v56 = vld [vmem:[%s18039_s1 + $0x1d8] sm:$0xff]  ;;  %6375 = vmatpush.bf16.msra.mxu2 %v12796_v13 }
 0x247   : > { %v3095_v16 = vshrl.u32 %v2994_v27, 16  ;;  %v3098_v5 = vshll.u32 %v2994_v27, 16  ;;  %v2214_v20 = vmul.f32 1.442695, %v2185_v43  ;;  %v2629_v30 = vmul.u32 58254, %v2624_v47  ;;  %4830 = vmatpush.bf16.msra.mxu0 %v12764_v56 }
 0x248   : > { %v2616_v2 = vmul.u32 18, %v2615_v45  ;;  %v2630_v11 = vshll.u32 %v2627_v60, 16  ;;  %v2274_v49 = vmul.f32 %v13260_v17, %v15024_v48  ;;  %v2632_v7 = vshll.u32 %v15108_v36, 16  ;;  %v12788_v48 = vld [vmem:[%s18041_s3 + $0x18] sm:$0xff] }
 0x249   : > { %v3097_v46 = vrot.slane %v3095_v16, 6  ;;  %v3100_v51 = vrot.slane %v3098_v5, 7  ;;  %13261 = vpow2.f32 %v2214_v20  ;;  %v12772_v17 = vld [vmem:[%s18039_s1 + $0x218] sm:$0xff]  ;;  %v2631_v43 = vshrl.u32 %v2627_v60, 16  ;;  %6486 = vmatpush.bf16.msra.mxu3 %v12788_v48  ;;  %v15132_v20 = vld [vmem:[%s13653_s11 + $0x80] sm:$0xff] }
 0x24a   : > { %v2617_v27 = vsub.s32 %v15042_v52, %v2616_v2  ;;  %vm2634_vm12 = vc.u32 %v2626_v33, %v2630_v11  ;;  %v2636_v47 = vadd.s32 %v2630_v11, %v2626_v33  ;;  %v2147_v5 = vadd.f32 %v2120_v1, %v14348_v62  ;;  %4998 = vmatpush.bf16.msra.mxu1 %v12772_v17 }
 0x24b   : > { %v15127_v45 = vor.u32 %v3100_v51, %v3097_v46  ;;  %v2635_v16 = vsel %vm2634_vm12, 1, %v18128_v40  ;;  %v2633_v60 = vshrl.u32 %v15108_v36, 16  ;;  %v18072_v51 = vrot.slane %v15132_v20, 1  ;;  %v2122_v44 = vpop.f32.mrf.mxu0 }
 0x24c   : > { %vm2833_vm15 = vcmp.ne.s32.totalorder %v2617_v27, 0  ;;  %vm2851_vm7 = vcmp.lt.s32.totalorder %v2617_v27, 0  ;;  %v2887_v33 = vadd.s32 18, %v2617_v27  ;;  %v2637_v2 = vadd.s32 %v2635_v16, %v2629_v30  ;;  %v3609_v16 = vpop.f32.mrf.mxu2 }
 0x24d   : > { %v3102_v11 = vsel %vm14781_vm14, %v3093_v59, %v15127_v45  ;;  %vm2869_vm13 = vmand %vm2851_vm7, %vm2833_vm15  ;;  %vm2638_vm9 = vc.u32 %v2636_v47, %v2632_v7  ;;  %v15139_v46 = vadd.f32 %v15021_v23, %v2147_v5  ;;  %v15143_v30 = vadd.s32 96, %v14359_v55  ;;  %v15155_v5 = vpop.f32.mrf.mxu3  ;;  %v15158_v52 = vpop.f32.mrf.mxu1 }
 0x24e   : > { %3214 = vst [vmem:[#allocation2 + $0x2c] sm:$0xf] %v3102_v11  ;;  %v2905_v62 = vsel %vm2869_vm13, %v2887_v33, %v2617_v27  ;;  %v2639_v1 = vsel %vm2638_vm9, 1, %v18128_v40  ;;  %v3103_v13 = vrot.slane %v15127_v45, 4  ;;  %v18178_v27 = vrot.slane %v15034_v63, 1 }
 0x24f   : > { %18177 = vst [vmem:[#allocation28_spill] sm:$0xff] %v15143_v30  ;;  %vm2923_vm6 = vcmp.lt.s32.totalorder %v2905_v62, 16  ;;  %v2641_v59 = vadd.s32 %v2639_v1, %v2637_v2  ;;  %v2186_v56 = vsub.f32 0.0, %v15139_v46  ;;  %v13262_v36 = vpop.eup %13261  ;;  %v2652_v47 = vand.u32 65535, %v15143_v30 }
 0x250   : > { %v2977_v7 = vsel %vm2923_vm6, %v2274_v49, 0.0  ;;  %v2653_v48 = vshrl.u32 %v15143_v30, 16  ;;  %v3887_v17 = vsel %vm720_vm1, %v18178_v27, %v18072_v51  ;;  %v2239_v33 = vadd.f32 1.0, %v13262_v36  ;;  %18179 = vst [vmem:[#allocation29_spill] sm:$0xff] %v15158_v52 }
 0x251   : > { %v2995_v45 = vpack.c.bf16 %v2977_v7, %v2977_v7  ;;  %v2642_v2 = vadd.s32 %v2641_v59, %v2631_v43  ;;  %v2216_v11 = vmul.f32 1.442695, %v2186_v56  ;;  %3984 = vmatmul.bf16.gmra.mxu0 %v3887_v17  ;;  %v2655_v49 = vmul.u32 14564, %v2652_v47  ;;  %v15161_v43 = vld [vmem:[%s13653_s11 + $0x88] sm:$0xff] }
 0x252   : > { %v2656_v62 = vmul.u32 58254, %v2652_v47  ;;  %v2657_v1 = vmul.u32 14564, %v2653_v48  ;;  %v4097_v12 = vshrl.u32 %v15132_v20, 16  ;;  %13263 = vrcp.f32 %v2239_v33 }
 0x253   : > { %v3105_v14 = vshrl.u32 %v2995_v45, 16  ;;  %v3108_v37 = vshll.u32 %v2995_v45, 16  ;;  %v2643_v27 = vadd.s32 %v2642_v2, %v2633_v60  ;;  %13265 = vpow2.f32 %v2216_v11 }
 0x254   : > { %v2658_v51 = vmul.u32 58254, %v2653_v48  ;;  %v2659_v7 = vshll.u32 %v2656_v62, 16  ;;  %v2661_v36 = vshll.u32 %v2657_v1, 16  ;;  %v2660_v47 = vshrl.u32 %v2656_v62, 16 }
 0x255   : > { %v3107_v59 = vrot.slane %v3105_v14, 6  ;;  %v3110_v56 = vrot.slane %v3108_v37, 7  ;;  %v2644_v17 = vshrl.u32 %v2643_v27, 4  ;;  %v4099_v42 = vrot.slane %v4097_v12, 1 }
 0x256   : > { %vm2663_vm10 = vc.u32 %v2655_v49, %v2659_v7  ;;  %v2665_v61 = vadd.s32 %v2659_v7, %v2655_v49  ;;  %v4100_v28 = vshll.u32 %v15132_v20, 16  ;;  %v18074_v48 = vrot.slane %v15132_v20, 2 }
 0x257   : > { %v15164_v52 = vor.u32 %v3110_v56, %v3107_v59  ;;  %v2645_v45 = vmul.u32 18, %v2644_v17  ;;  %v2664_v60 = vsel %vm2663_vm10, 1, %v18128_v40  ;;  %v18073_v14 = vrot.slane %v15161_v43, 2 }
 0x258   : > { %v2666_v33 = vadd.s32 %v2664_v60, %v2658_v51  ;;  %vm2667_vm12 = vc.u32 %v2665_v61, %v2661_v36  ;;  %v4102_v2 = vrot.slane %v4100_v28, 2  ;;  %v13264_v37 = vpop.eup %13263  ;;  %v2662_v49 = vshrl.u32 %v2657_v1, 16  ;;  %v15182_v36 = vpop.f32.mrf.mxu2 }
 0x259   : > { %v3112_v11 = vsel %vm14781_vm14, %v3103_v13, %v15164_v52  ;;  %v2646_v12 = vsub.s32 %v15085_v32, %v2645_v45  ;;  %v2668_v62 = vsel %vm2667_vm12, 1, %v18128_v40  ;;  %v13266_v27 = vpop.eup %13265  ;;  %v2275_v7 = vmul.f32 %v13264_v37, %v15098_v54  ;;  %v15184_v13 = vpop.f32.mrf.mxu3 }
 0x25a   : > { %3215 = vst [vmem:[#allocation2 + $0x30] sm:$0xf] %v3112_v11  ;;  %v2670_v59 = vadd.s32 %v2668_v62, %v2666_v33  ;;  %v15175_v51 = vor.u32 %v4102_v2, %v4099_v42  ;;  %v18180_v28 = vrot.slane %v15034_v63, 2  ;;  %v2240_v56 = vadd.f32 1.0, %v13266_v27  ;;  %v2125_v60 = vpop.f32.mrf.mxu0  ;;  %v15195_v33 = vpop.f32.mrf.mxu1 }
 0x25b   : > { %18181 = vst [vmem:[#allocation30_spill] sm:$0xff] %v15184_v13  ;;  %vm2834_vm15 = vcmp.ne.s32.totalorder %v2646_v12, 0  ;;  %vm2852_vm7 = vcmp.lt.s32.totalorder %v2646_v12, 0  ;;  %v2888_v1 = vadd.s32 18, %v2646_v12  ;;  %v18182_v63 = vrot.slane %v15064_v0, 2 }
 0x25c   : > { %v4293_v61 = vsel %vm1362_vm3, %v18180_v28, %v18074_v48  ;;  %vm2870_vm13 = vmand %vm2852_vm7, %vm2834_vm15  ;;  %v2671_v54 = vadd.s32 %v2670_v59, %v2660_v47  ;;  %v4104_v42 = vsel %vm1122_vm2, %v15074_v24, %v15175_v51  ;;  %v3610_v45 = vadd.f32 %v3609_v16, %v15110_v18 }
 0x25d   : > { %4390 = vmatmul.bf16.gmra.mxu2 %v4293_v61  ;;  %v4524_v17 = vsel %vm1362_vm3, %v18182_v63, %v18073_v14  ;;  %v2906_v2 = vsel %vm2870_vm13, %v2888_v1, %v2646_v12  ;;  %13267 = vrcp.f32 %v2240_v56  ;;  %4222 = vmatmul.bf16.gmra.mxu1 %v4104_v42  ;;  %v2148_v47 = vadd.f32 %v2122_v44, %v14368_v38 }
 0x25e   : > { %4621 = vmatmul.bf16.gmra.mxu3 %v4524_v17  ;;  %v15199_v37 = vadd.s32 104, %v14359_v55  ;;  %vm2924_vm9 = vcmp.lt.s32.totalorder %v2906_v2, 16  ;;  %v2672_v24 = vadd.s32 %v2671_v54, %v2662_v49  ;;  %v15202_v0 = vadd.f32 %v15155_v5, %v3610_v45 }
 0x25f   : > { %v2978_v11 = vsel %vm2924_vm9, %v2275_v7, 0.0  ;;  %v15205_v18 = vadd.f32 %v15021_v23, %v2148_v47  ;;  %v3113_v62 = vrot.slane %v15164_v52, 4  ;;  %v2149_v1 = vadd.f32 %v2125_v60, %v14398_v3  ;;  %v12787_v3 = vld [vmem:[%s18041_s3 + $0x10] sm:$0xff] }
 0x260   : > { %18183 = vst [vmem:[#allocation31_spill] sm:$0xff] %v15199_v37  ;;  %v2681_v16 = vand.u32 65535, %v15199_v37  ;;  %v2682_v12 = vshrl.u32 %v15199_v37, 16  ;;  %v2996_v27 = vpack.c.bf16 %v2978_v11, %v2978_v11  ;;  %v2673_v38 = vshrl.u32 %v2672_v24, 4  ;;  %v12795_v24 = vld [vmem:[%s18041_s3 + $0x50] sm:$0xff]  ;;  %v15225_v60 = vpop.f32.mrf.mxu2  ;;  %6487 = vmatpush.bf16.msra.mxu3 %v12787_v3 }
 0x261   : > { %v2187_v44 = vsub.f32 0.0, %v15205_v18  ;;  %v12763_v11 = vld [vmem:[%s18039_s1 + $0x1d0] sm:$0xff]  ;;  %6376 = vmatpush.bf16.msra.mxu2 %v12795_v24 }
 0x262   : > { %v2684_v59 = vmul.u32 14564, %v2681_v16  ;;  %v2685_v28 = vmul.u32 58254, %v2681_v16  ;;  %v15211_v49 = vmul.u32 14564, %v2682_v12  ;;  %v3115_v5 = vshrl.u32 %v2996_v27, 16  ;;  %v15227_v16 = vpop.f32.mrf.mxu3  ;;  %4831 = vmatpush.bf16.msra.mxu0 %v12763_v11 }
 0x263   : > { %v3118_v61 = vshll.u32 %v2996_v27, 16  ;;  %v2674_v7 = vmul.u32 18, %v2673_v38  ;;  %v13268_v56 = vpop.eup %13267  ;;  %v2218_v54 = vmul.f32 1.442695, %v2187_v44  ;;  %v2687_v42 = vmul.u32 58254, %v2682_v12 }
 0x264   : > { %v2688_v63 = vshll.u32 %v2685_v28, 16  ;;  %v2690_v17 = vshll.u32 %v15211_v49, 16  ;;  %v3117_v52 = vrot.slane %v3115_v5, 6  ;;  %v2689_v47 = vshrl.u32 %v2685_v28, 16  ;;  %v15232_v28 = vpop.f32.mrf.mxu0  ;;  %v15234_v5 = vpop.f32.mrf.mxu1 }
 0x265   : > { %v3120_v45 = vrot.slane %v3118_v61, 7  ;;  %v2675_v2 = vsub.s32 %v15143_v30, %v2674_v7  ;;  %v2276_v12 = vmul.f32 %v13268_v56, %v15139_v46  ;;  %13269 = vpow2.f32 %v2218_v54  ;;  %18184 = vst [vmem:[#allocation32_spill] sm:$0xff] %v15234_v5 }
 0x266   : > { %vm2692_vm6 = vc.u32 %v2684_v59, %v2688_v63  ;;  %v2694_v27 = vadd.s32 %v2688_v63, %v2684_v59  ;;  %v15238_v46 = vadd.f32 %v15021_v23, %v2149_v1  ;;  %v15241_v59 = vadd.s32 112, %v14359_v55 }
 0x267   : > { %v15230_v38 = vor.u32 %v3120_v45, %v3117_v52  ;;  %vm2835_vm10 = vcmp.ne.s32.totalorder %v2675_v2, 0  ;;  %vm2853_vm12 = vcmp.lt.s32.totalorder %v2675_v2, 0  ;;  %v2889_v44 = vadd.s32 18, %v2675_v2  ;;  %v15248_v52 = vld [vmem:[%s13653_s11 + $0x88] sm:$0xff] }
 0x268   : > { %vm2871_vm15 = vmand %vm2853_vm12, %vm2835_vm10  ;;  %v2693_v61 = vsel %vm2692_vm6, 1, %v18128_v40  ;;  %vm2696_vm7 = vc.u32 %v2694_v27, %v2690_v17  ;;  %18185 = vst [vmem:[#allocation33_spill] sm:$0xff] %v15241_v59  ;;  %v2691_v54 = vshrl.u32 %v15211_v49, 16  ;;  %v2188_v1 = vsub.f32 0.0, %v15238_v46 }
 0x269   : > { %v3122_v7 = vsel %vm14781_vm14, %v3113_v62, %v15230_v38  ;;  %v2907_v56 = vsel %vm2871_vm15, %v2889_v44, %v2675_v2  ;;  %v2695_v63 = vadd.s32 %v2693_v61, %v2687_v42  ;;  %v2697_v17 = vsel %vm2696_vm7, 1, %v18128_v40 }
 0x26a   : > { %3216 = vst [vmem:[#allocation2 + $0x34] sm:$0xf] %v3122_v7  ;;  %vm2925_vm13 = vcmp.lt.s32.totalorder %v2907_v56, 16  ;;  %v2710_v45 = vand.u32 65535, %v15241_v59  ;;  %v2711_v3 = vshrl.u32 %v15241_v59, 16 }
 0x26b   : > { %v2979_v24 = vsel %vm2925_vm13, %v2276_v12, 0.0  ;;  %v2699_v11 = vadd.s32 %v2697_v17, %v2695_v63  ;;  %v13270_v2 = vpop.eup %13269  ;;  %v2220_v49 = vmul.f32 1.442695, %v2188_v1  ;;  %v3123_v63 = vrot.slane %v15230_v38, 4  ;;  %v15262_v1 = vpop.f32.mrf.mxu2 }
 0x26c   : > { %v2997_v27 = vpack.c.bf16 %v2979_v24, %v2979_v24  ;;  %v2713_v42 = vmul.u32 14564, %v2710_v45  ;;  %v2714_v44 = vmul.u32 58254, %v2710_v45  ;;  %v2241_v61 = vadd.f32 1.0, %v13270_v2  ;;  %v15260_v24 = vld [vmem:[%s13653_s11 + $0x90] sm:$0xff]  ;;  %18186 = vst [vmem:[#allocation34_spill] sm:$0xff] %v15262_v1  ;;  %v15264_v45 = vpop.f32.mrf.mxu3  ;;  %v2130_v32 = vpop.f32.mrf.mxu0 }
 0x26d   : > { %v2700_v7 = vadd.s32 %v2699_v11, %v2689_v47  ;;  %v15255_v56 = vmul.u32 14564, %v2711_v3  ;;  %v2716_v14 = vmul.u32 58254, %v2711_v3  ;;  %13271 = vpow2.f32 %v2220_v49  ;;  %18187 = vst [vmem:[#allocation35_spill] sm:$0xff] %v15264_v45  ;;  %v12771_v3 = vld [vmem:[%s18039_s1 + $0x210] sm:$0xff]  ;;  %v15275_v45 = vpop.f32.mrf.mxu1 }
 0x26e   : > { %v3125_v48 = vshrl.u32 %v2997_v27, 16  ;;  %v3128_v30 = vshll.u32 %v2997_v27, 16  ;;  %v2717_v12 = vshll.u32 %v2714_v44, 16  ;;  %13273 = vrcp.f32 %v2241_v61  ;;  %4999 = vmatpush.bf16.msra.mxu1 %v12771_v3 }
 0x26f   : > { %v2701_v17 = vadd.s32 %v2700_v7, %v2691_v54  ;;  %v2719_v62 = vshll.u32 %v15255_v56, 16  ;;  %v2718_v2 = vshrl.u32 %v2714_v44, 16  ;;  %v18188_v49 = vrot.slane %v15248_v52, 1 }
 0x270   : > { %v3127_v47 = vrot.slane %v3125_v48, 6  ;;  %v3130_v11 = vrot.slane %v3128_v30, 7  ;;  %vm2721_vm9 = vc.u32 %v2713_v42, %v2717_v12  ;;  %v2723_v54 = vadd.s32 %v2717_v12, %v2713_v42 }
 0x271   : > { %v2702_v27 = vshrl.u32 %v2701_v17, 4  ;;  %v2722_v38 = vsel %vm2721_vm9, 1, %v18128_v40  ;;  %v18189_v61 = vrot.slane %v15132_v20, 1  ;;  %v4106_v44 = vshrl.u32 %v15248_v52, 16 }
 0x272   : > { %v15277_v30 = vor.u32 %v3130_v11, %v3127_v47  ;;  %v2724_v48 = vadd.s32 %v2722_v38, %v2716_v14  ;;  %v4109_v17 = vshll.u32 %v15248_v52, 16  ;;  %vm2725_vm6 = vc.u32 %v2723_v54, %v2719_v62 }
 0x273   : > { %v3889_v7 = vsel %vm720_vm1, %v18189_v61, %v18188_v49  ;;  %v2703_v13 = vmul.u32 18, %v2702_v27  ;;  %v18078_v42 = vrot.slane %v15248_v52, 2  ;;  %v18077_v12 = vrot.slane %v15260_v24, 2  ;;  %v13272_v1 = vpop.eup %13271 }
 0x274   : > { %3989 = vmatmul.bf16.gmra.mxu0 %v3889_v7  ;;  %v3132_v49 = vsel %vm14781_vm14, %v3123_v63, %v15277_v30  ;;  %v2720_v47 = vshrl.u32 %v15255_v56, 16  ;;  %v2726_v14 = vsel %vm2725_vm6, 1, %v18128_v40  ;;  %v4108_v11 = vrot.slane %v4106_v44, 1  ;;  %v13274_v3 = vpop.eup %13273 }
 0x275   : > { %3217 = vst [vmem:[#allocation2 + $0x38] sm:$0xf] %v3132_v49  ;;  %v2704_v38 = vsub.s32 %v15199_v37, %v2703_v13  ;;  %v2242_v27 = vadd.f32 1.0, %v13272_v1  ;;  %v2728_v62 = vadd.s32 %v2726_v14, %v2724_v48  ;;  %v4111_v54 = vrot.slane %v4109_v17, 2  ;;  %v15315_v14 = vpop.f32.mrf.mxu3 }
 0x276   : > { %v2277_v61 = vmul.f32 %v13274_v3, %v15205_v18  ;;  %v18190_v7 = vrot.slane %v15132_v20, 2  ;;  %v18191_v56 = vrot.slane %v15161_v43, 2  ;;  %v3615_v13 = vadd.f32 %v15225_v60, %v15195_v33  ;;  %v15313_v60 = vpop.f32.mrf.mxu2 }
 0x277   : > { %vm2836_vm10 = vcmp.ne.s32.totalorder %v2704_v38, 0  ;;  %vm2854_vm12 = vcmp.lt.s32.totalorder %v2704_v38, 0  ;;  %v2890_v1 = vadd.s32 18, %v2704_v38  ;;  %13275 = vrcp.f32 %v2242_v27 }
 0x278   : > { %v4295_v63 = vsel %vm1362_vm3, %v18190_v7, %v18078_v42  ;;  %v4526_v44 = vsel %vm1362_vm3, %v18191_v56, %v18077_v12  ;;  %vm2872_vm15 = vmand %vm2854_vm12, %vm2836_vm10  ;;  %v2729_v18 = vadd.s32 %v2728_v62, %v2718_v2  ;;  %v15302_v20 = vor.u32 %v4111_v54, %v4108_v11 }
 0x279   : > { %4395 = vmatmul.bf16.gmra.mxu2 %v4295_v63  ;;  %4626 = vmatmul.bf16.gmra.mxu3 %v4526_v44  ;;  %v15305_v48 = vadd.f32 %v15227_v16, %v3615_v13  ;;  %v2150_v43 = vadd.f32 %v15232_v28, %v14443_v39  ;;  %v2908_v17 = vsel %vm2872_vm15, %v2890_v1, %v2704_v38  ;;  %v15310_v49 = vadd.s32 120, %v14359_v55 }
 0x27a   : > { %v2151_v33 = vadd.f32 %v2130_v32, %v14478_v29  ;;  %vm2926_vm7 = vcmp.lt.s32.totalorder %v2908_v17, 16  ;;  %v2730_v2 = vadd.s32 %v2729_v18, %v2720_v47  ;;  %v4113_v16 = vsel %vm1122_vm2, %v15175_v51, %v15302_v20  ;;  %v15325_v29 = vpop.f32.mrf.mxu0  ;;  %v15327_v32 = vpop.f32.mrf.mxu1 }
 0x27b   : > { %18192 = vst [vmem:[#allocation36_spill] sm:$0xff] %v15310_v49  ;;  %v15321_v11 = vadd.f32 %v15021_v23, %v2150_v43  ;;  %v2980_v39 = vsel %vm2926_vm7, %v2277_v61, 0.0  ;;  %4227 = vmatmul.bf16.gmra.mxu1 %v4113_v16  ;;  %v2739_v28 = vand.u32 65535, %v15310_v49  ;;  %v2740_v3 = vshrl.u32 %v15310_v49, 16 }
 0x27c   : > { %18193 = vst [vmem:[#allocation37_spill] sm:$0xff] %v15327_v32  ;;  %v3133_v38 = vrot.slane %v15277_v30, 4  ;;  %v2998_v47 = vpack.c.bf16 %v2980_v39, %v2980_v39  ;;  %v2731_v27 = vshrl.u32 %v2730_v2, 4  ;;  %v15334_v61 = vadd.f32 %v15021_v23, %v2151_v33  ;;  %v12794_v23 = vld [vmem:[%s18041_s3 + $0x48] sm:$0xff] }
 0x27d   : > { %v2189_v62 = vsub.f32 0.0, %v15321_v11  ;;  %v13276_v51 = vpop.eup %13275  ;;  %v2742_v54 = vmul.u32 14564, %v2739_v28  ;;  %v2743_v7 = vmul.u32 58254, %v2739_v28  ;;  %v15331_v63 = vmul.u32 14564, %v2740_v3  ;;  %6377 = vmatpush.bf16.msra.mxu2 %v12794_v23 }
 0x27e   : > { %v3135_v56 = vshrl.u32 %v2998_v47, 16  ;;  %v3138_v44 = vshll.u32 %v2998_v47, 16  ;;  %v2732_v13 = vmul.u32 18, %v2731_v27  ;;  %v2745_v1 = vmul.u32 58254, %v2740_v3  ;;  %v12762_v27 = vld [vmem:[%s18039_s1 + $0x1c8] sm:$0xff] }
 0x27f   : > { %v2278_v18 = vmul.f32 %v13276_v51, %v15238_v46  ;;  %v2222_v43 = vmul.f32 1.442695, %v2189_v62  ;;  %v2746_v30 = vshll.u32 %v2743_v7, 16  ;;  %v2748_v17 = vshll.u32 %v15331_v63, 16  ;;  %v12786_v62 = vld [vmem:[%s18041_s3 + $0x8] sm:$0xff]  ;;  %4832 = vmatpush.bf16.msra.mxu0 %v12762_v27 }
 0x280   : > { %v3137_v2 = vrot.slane %v3135_v56, 6  ;;  %v3140_v16 = vrot.slane %v3138_v44, 7  ;;  %v2733_v39 = vsub.s32 %v15241_v59, %v2732_v13  ;;  %v2747_v28 = vshrl.u32 %v2743_v7, 16  ;;  %v15355_v56 = vpop.f32.mrf.mxu2  ;;  %v15357_v44 = vpop.f32.mrf.mxu3  ;;  %6488 = vmatpush.bf16.msra.mxu3 %v12786_v62 }
 0x281   : > { %13277 = vpow2.f32 %v2222_v43  ;;  %vm2750_vm13 = vc.u32 %v2742_v54, %v2746_v30  ;;  %v2752_v33 = vadd.s32 %v2746_v30, %v2742_v54  ;;  %v2190_v3 = vsub.f32 0.0, %v15334_v61  ;;  %18195 = vst [vmem:[#allocation39_spill] sm:$0xff] %v15355_v56 }
 0x282   : > { %v15343_v47 = vor.u32 %v3140_v16, %v3137_v2  ;;  %vm2837_vm9 = vcmp.ne.s32.totalorder %v2733_v39, 0  ;;  %vm2855_vm6 = vcmp.lt.s32.totalorder %v2733_v39, 0  ;;  %v2891_v46 = vadd.s32 18, %v2733_v39  ;;  %18196 = vst [vmem:[#allocation40_spill] sm:$0xff] %v15357_v44  ;;  %v15364_v16 = vld [vmem:[%s13653_s11 + $0x90] sm:$0xff] }
 0x283   : > { %vm2873_vm10 = vmand %vm2855_vm6, %vm2837_vm9  ;;  %v2751_v51 = vsel %vm2750_vm13, 1, %v18128_v40  ;;  %vm2754_vm12 = vc.u32 %v2752_v33, %v2748_v17  ;;  %v2224_v54 = vmul.f32 1.442695, %v2190_v3  ;;  %v15353_v7 = vadd.s32 128, %v14359_v55  ;;  %v15368_v33 = vpop.f32.mrf.mxu0  ;;  %v15370_v3 = vpop.f32.mrf.mxu1 }
 0x284   : > { %v3142_v13 = vsel %vm14781_vm14, %v3133_v38, %v15343_v47  ;;  %v2909_v43 = vsel %vm2873_vm10, %v2891_v46, %v2733_v39  ;;  %v2749_v30 = vshrl.u32 %v15331_v63, 16  ;;  %v2753_v2 = vadd.s32 %v2751_v51, %v2745_v1 }
 0x285   : > { %18194 = vst [vmem:[#allocation38_spill] sm:$0xff] %v15353_v7  ;;  %vm2927_vm15 = vcmp.lt.s32.totalorder %v2909_v43, 16  ;;  %v2755_v17 = vsel %vm2754_vm12, 1, %v18128_v40  ;;  %13279 = vpow2.f32 %v2224_v54  ;;  %v2768_v23 = vand.u32 65535, %v15353_v7 }
 0x286   : > { %3218 = vst [vmem:[#allocation2 + $0x3c] sm:$0xf] %v3142_v13  ;;  %v3143_v38 = vrot.slane %v15343_v47, 4  ;;  %v2981_v39 = vsel %vm2927_vm15, %v2278_v18, 0.0  ;;  %v2757_v63 = vadd.s32 %v2755_v17, %v2753_v2  ;;  %v2769_v1 = vshrl.u32 %v15353_v7, 16 }
 0x287   : > { %v13278_v46 = vpop.eup %13277  ;;  %v2999_v27 = vpack.c.bf16 %v2981_v39, %v2981_v39  ;;  %v2771_v62 = vmul.u32 14564, %v2768_v23  ;;  %v2772_v51 = vmul.u32 58254, %v2768_v23  ;;  %v4115_v42 = vshrl.u32 %v15364_v16, 16  ;;  %v12770_v23 = vld [vmem:[%s18039_s1 + $0x208] sm:$0xff] }
 0x288   : > { %v2243_v43 = vadd.f32 1.0, %v13278_v46  ;;  %v2758_v54 = vadd.s32 %v2757_v63, %v2747_v28  ;;  %v2773_v12 = vmul.u32 14564, %v2769_v1  ;;  %v2774_v44 = vmul.u32 58254, %v2769_v1  ;;  %5000 = vmatpush.bf16.msra.mxu1 %v12770_v23  ;;  %v18231_v25 = vld [vmem:[#allocation39_spill] sm:$0xff] }
 0x289   : > { %v3145_v59 = vshrl.u32 %v2999_v27, 16  ;;  %v3148_v37 = vshll.u32 %v2999_v27, 16  ;;  %v2775_v47 = vshll.u32 %v2772_v51, 16  ;;  %v2776_v2 = vshrl.u32 %v2772_v51, 16  ;;  %v15386_v51 = vld [vmem:[%s13653_s11 + $0x98] sm:$0xff] }
 0x28a   : > { %13281 = vrcp.f32 %v2243_v43  ;;  %v2759_v18 = vadd.s32 %v2758_v54, %v2749_v30  ;;  %v2777_v17 = vshll.u32 %v2773_v12, 16  ;;  %v18197_v1 = vrot.slane %v15364_v16, 1 }
 0x28b   : > { %v13280_v39 = vpop.eup %13279  ;;  %v3147_v13 = vrot.slane %v3145_v59, 6  ;;  %v3150_v46 = vrot.slane %v3148_v37, 7  ;;  %vm2779_vm7 = vc.u32 %v2771_v62, %v2775_v47  ;;  %v2781_v28 = vadd.s32 %v2775_v47, %v2771_v62  ;;  %v15390_v37 = vpop.f32.mrf.mxu2 }
 0x28c   : > { %v2760_v63 = vshrl.u32 %v2759_v18, 4  ;;  %v2244_v56 = vadd.f32 1.0, %v13280_v39  ;;  %v2780_v27 = vsel %vm2779_vm7, 1, %v18128_v40  ;;  %v18198_v43 = vrot.slane %v15248_v52, 1  ;;  %v15392_v62 = vpop.f32.mrf.mxu3 }
 0x28d   : > { %v15388_v54 = vor.u32 %v3150_v46, %v3147_v13  ;;  %v2778_v32 = vshrl.u32 %v2773_v12, 16  ;;  %v2782_v59 = vadd.s32 %v2780_v27, %v2774_v44  ;;  %vm2783_vm13 = vc.u32 %v2781_v28, %v2777_v17  ;;  %v15400_v44 = vpop.f32.mrf.mxu0  ;;  %v15402_v17 = vpop.f32.mrf.mxu1 }
 0x28e   : > { %v3891_v30 = vsel %vm720_vm1, %v18198_v43, %v18197_v1  ;;  %v2761_v47 = vmul.u32 18, %v2760_v63  ;;  %v2784_v18 = vsel %vm2783_vm13, 1, %v18128_v40  ;;  %v4117_v39 = vrot.slane %v4115_v42, 1 }
 0x28f   : > { %3994 = vmatmul.bf16.gmra.mxu0 %v3891_v30  ;;  %v4118_v5 = vshll.u32 %v15364_v16, 16  ;;  %v3152_v23 = vsel %vm14781_vm14, %v3143_v38, %v15388_v54  ;;  %13283 = vrcp.f32 %v2244_v56  ;;  %v2786_v13 = vadd.s32 %v2784_v18, %v2782_v59  ;;  %v12793_v56 = vld [vmem:[%s18041_s3 + $0x40] sm:$0xff] }
 0x290   : > { %v18082_v12 = vrot.slane %v15364_v16, 2  ;;  %v13282_v46 = vpop.eup %13281  ;;  %3219 = vst [vmem:[#allocation2 + $0x40] sm:$0xf] %v3152_v23  ;;  %v2762_v28 = vsub.s32 %v15310_v49, %v2761_v47  ;;  %v18081_v42 = vrot.slane %v15386_v51, 2  ;;  %v3620_v27 = vadd.f32 %v15313_v60, %v15275_v45  ;;  %6378 = vmatpush.bf16.msra.mxu2 %v12793_v56  ;;  %v12761_v23 = vld [vmem:[%s18039_s1 + $0x1c0] sm:$0xff] }
 0x291   : > { %v4120_v63 = vrot.slane %v4118_v5, 2  ;;  %v2279_v38 = vmul.f32 %v13282_v46, %v15321_v11  ;;  %v2787_v1 = vadd.s32 %v2786_v13, %v2776_v2  ;;  %v18199_v43 = vrot.slane %v15248_v52, 2  ;;  %v12785_v13 = vld [vmem:[%s18041_s3] sm:$0xff]  ;;  %4833 = vmatpush.bf16.msra.mxu0 %v12761_v23 }
 0x292   : > { %v2152_v5 = vadd.f32 %v15325_v29, %v14518_v31  ;;  %vm2838_vm9 = vcmp.ne.s32.totalorder %v2762_v28, 0  ;;  %vm2856_vm6 = vcmp.lt.s32.totalorder %v2762_v28, 0  ;;  %v2892_v59 = vadd.s32 18, %v2762_v28  ;;  %v13506_v31 = vld [vmem:[%s18040_s2] ss:$0 sm:$0xff]  ;;  %6489 = vmatpush.bf16.msra.mxu3 %v12785_v13 }
 0x293   : > { %v4297_v30 = vsel %vm1362_vm3, %v18199_v43, %v18082_v12  ;;  %v15419_v45 = vor.u32 %v4120_v63, %v4117_v39  ;;  %vm2874_vm10 = vmand %vm2856_vm6, %vm2838_vm9  ;;  %v2788_v60 = vadd.s32 %v2787_v1, %v2778_v32  ;;  %v18200_v11 = vrot.slane %v15260_v24, 2  ;;  %v15450_v46 = vpop.f32.mrf.mxu2 }
 0x294   : > { %4400 = vmatmul.bf16.gmra.mxu2 %v4297_v30  ;;  %v15427_v52 = vadd.f32 %v15315_v14, %v3620_v27  ;;  %v15432_v29 = vadd.f32 %v13506_v31, %v2152_v5  ;;  %v2910_v47 = vsel %vm2874_vm10, %v2892_v59, %v2762_v28  ;;  %v15438_v24 = vadd.s32 136, %v14359_v55  ;;  %v15452_v28 = vpop.f32.mrf.mxu3 }
 0x295   : > { %v4528_v2 = vsel %vm1362_vm3, %v18200_v11, %v18081_v42  ;;  %v4122_v32 = vsel %vm1122_vm2, %v15302_v20, %v15419_v45  ;;  %v13284_v18 = vpop.eup %13283  ;;  %vm2928_vm12 = vcmp.lt.s32.totalorder %v2910_v47, 16  ;;  %v2789_v14 = vshrl.u32 %v2788_v60, 4  ;;  %v12769_v20 = vld [vmem:[%s18039_s1 + $0x200] sm:$0xff]  ;;  %18203 = vst [vmem:[#allocation43_spill] sm:$0xff] %v15452_v28  ;;  %v15459_v60 = vpop.f32.mrf.mxu0 }
 0x296   : > { %18201 = vst [vmem:[#allocation41_spill] sm:$0xff] %v15427_v52  ;;  %4631 = vmatmul.bf16.gmra.mxu3 %v4528_v2  ;;  %4232 = vmatmul.bf16.gmra.mxu1 %v4122_v32  ;;  %v2191_v39 = vsub.f32 0.0, %v15432_v29  ;;  %v3153_v63 = vrot.slane %v15388_v54, 4  ;;  %v2982_v27 = vsel %vm2928_vm12, %v2279_v38, 0.0  ;;  %v2797_v56 = vand.u32 65535, %v15438_v24  ;;  %v15461_v11 = vpop.f32.mrf.mxu1 }
 0x297   : > { %18202 = vst [vmem:[#allocation42_spill] sm:$0xff] %v15438_v24  ;;  %v2798_v1 = vshrl.u32 %v15438_v24, 16  ;;  %v3000_v43 = vpack.c.bf16 %v2982_v27, %v2982_v27  ;;  %v2790_v30 = vmul.u32 18, %v2789_v14  ;;  %v4005_v59 = vadd.f32 %v15368_v33, %v14567_v34  ;;  %5001 = vmatpush.bf16.msra.mxu1 %v12769_v20  ;;  %v4023_v34 = vld [vmem:[%s13653_s11 + $0x98] sm:$0x3] }
 0x298   : > { %v2226_v5 = vmul.f32 1.442695, %v2191_v39  ;;  %v2280_v54 = vmul.f32 %v13284_v18, %v15334_v61  ;;  %v2800_v38 = vmul.u32 14564, %v2797_v56  ;;  %v2801_v2 = vmul.u32 58254, %v2797_v56  ;;  %v3810_v27 = vld [vmem:[%s13653_s11 + $0x98] sm:$0x1] }
 0x299   : > { %v15464_v31 = vmul.u32 14564, %v2798_v1  ;;  %v3155_v47 = vshrl.u32 %v3000_v43, 16  ;;  %v3158_v32 = vshll.u32 %v3000_v43, 16  ;;  %v2791_v14 = vsub.s32 %v15353_v7, %v2790_v30  ;;  %v4447_v18 = vld [vmem:[%s13653_s11 + $0xa0] sm:$0x3] }
 0x29a   : > { %13285 = vpow2.f32 %v2226_v5  ;;  %v2803_v33 = vmul.u32 58254, %v2798_v1  ;;  %v2804_v39 = vshll.u32 %v2801_v2, 16  ;;  %v2805_v23 = vshrl.u32 %v2801_v2, 16  ;;  %v12832_v1 = vld [vmem:[%s18041_s3 + $0x138] sm:$0xff] }
 0x29b   : > { %v2806_v13 = vshll.u32 %v15464_v31, 16  ;;  %v3157_v42 = vrot.slane %v3155_v47, 6  ;;  %v3160_v61 = vrot.slane %v3158_v32, 7  ;;  %vm2839_vm15 = vcmp.ne.s32.totalorder %v2791_v14, 0  ;;  %v12808_v5 = vld [vmem:[%s18041_s3 + $0xb8] sm:$0xff]  ;;  %7106 = vmatpush.bf16.msrb.mxu2 %v12832_v1 }
 0x29c   : > { %vm2857_vm7 = vcmp.lt.s32.totalorder %v2791_v14, 0  ;;  %v2893_v20 = vadd.s32 18, %v2791_v14  ;;  %vm2808_vm9 = vc.u32 %v2800_v38, %v2804_v39  ;;  %v2810_v43 = vadd.s32 %v2804_v39, %v2800_v38  ;;  %v12840_v38 = vld [vmem:[%s18041_s3 + $0x178] sm:$0xff]  ;;  %v15488_v39 = vpop.f32.mrf.mxu2  ;;  %6634 = vmatpush.bf16.msrb.mxu0 %v12808_v5 }
 0x29d   : > { %vm15471_vm13 = vmand %vm2857_vm7, %vm2839_vm15  ;;  %v4243_v30 = vadd.f32 %v15370_v3, %v4005_v59  ;;  %v15482_v2 = vor.u32 %v3160_v61, %v3157_v42  ;;  %v2809_v47 = vsel %vm2808_vm9, 1, %v18128_v40  ;;  %v3864_v32 = vunpack.c.l.b16 %v3810_v27  ;;  %v15490_v3 = vpop.f32.mrf.mxu3  ;;  %v12824_v59 = vld [vmem:[%s18041_s3 + $0xf8] sm:$0xff]  ;;  %7276 = vmatpush.bf16.msrb.mxu3 %v12840_v38  ;;  %v15502_v52 = vpop.f32.mrf.mxu0 }
 0x29e   : > { %v4041_v12 = vunpack.c.l.b16 %v4023_v34  ;;  %v2911_v42 = vsel %vm15471_vm13, %v2893_v20, %v2791_v14  ;;  %v2811_v61 = vadd.s32 %v2809_v47, %v2803_v33  ;;  %vm2812_vm6 = vc.u32 %v2810_v43, %v2806_v13  ;;  %6866 = vmatpush.bf16.msrb.mxu1 %v12824_v59  ;;  %v15504_v14 = vpop.f32.mrf.mxu1 }
 0x29f   : > { %v4501_v7 = vunpack.c.l.b16 %v4447_v18  ;;  %v3162_v27 = vsel %vm14781_vm14, %v3153_v63, %v15482_v2  ;;  %vm2929_vm10 = vcmp.lt.s32.totalorder %v2911_v42, 16  ;;  %v2807_v49 = vshrl.u32 %v15464_v31, 16 }
 0x2a0   : > { %v13286_v34 = vpop.eup %13285  ;;  %v2813_v55 = vsel %vm2812_vm6, 1, %v18128_v40  ;;  %3220 = vst [vmem:[#allocation2 + $0x44] sm:$0xf] %v3162_v27  ;;  %v2983_v33 = vsel %vm2929_vm10, %v2280_v54, 0.0  ;;  %v3874_v56 = vpack.c.b16 %v3864_v32, %v3864_v32  ;;  %v4042_v43 = vpack.c.b16 %v4041_v12, %v4041_v12 }
 0x2a1   : > { %v2245_v13 = vadd.f32 1.0, %v13286_v34  ;;  %v2815_v18 = vadd.s32 %v2813_v55, %v2811_v61  ;;  %v3001_v20 = vpack.c.bf16 %v2983_v33, %v2983_v33  ;;  %v4511_v1 = vpack.c.b16 %v4501_v7, %v4501_v7 }
 0x2a2   : > { %v4411_v63 = vadd.f32 %v15390_v37, %v4243_v30  ;;  %v3892_v5 = vrot.slane %v3874_v56, 1  ;;  %v4124_v59 = vshrl.u32 %v4042_v43, 16  ;;  %v4127_v42 = vshll.u32 %v4042_v43, 16 }
 0x2a3   : > { %13287 = vrcp.f32 %v2245_v13  ;;  %v2816_v31 = vadd.s32 %v2815_v18, %v2805_v23  ;;  %v3165_v47 = vshrl.u32 %v3001_v20, 16  ;;  %v3168_v38 = vshll.u32 %v3001_v20, 16 }
 0x2a4   : > { %v18206_v28 = vrot.slane %v15364_v16, 1  ;;  %v4298_v34 = vrot.slane %v4042_v43, 2  ;;  %v4529_v55 = vrot.slane %v4511_v1, 2  ;;  %v4126_v7 = vrot.slane %v4124_v59, 1  ;;  %v15510_v37 = vpop.f32.mrf.mxu2 }
 0x2a5   : > { %v2817_v40 = vadd.s32 %v2816_v31, %v2807_v49  ;;  %v3167_v32 = vrot.slane %v3165_v47, 6  ;;  %v3170_v61 = vrot.slane %v3168_v38, 7  ;;  %v4129_v12 = vrot.slane %v4127_v42, 2  ;;  %v15512_v23 = vpop.f32.mrf.mxu3  ;;  %v15540_v42 = vld [vmem:[#allocation2 + $0x8] sm:$0xff] }
 0x2a6   : > { %v3893_v54 = vsel %vm720_vm1, %v18206_v28, %v3892_v5  ;;  %v18207_v27 = vrot.slane %v15364_v16, 2  ;;  %v18208_v33 = vrot.slane %v15386_v51, 2  ;;  %v15521_v13 = vadd.f32 %v15392_v62, %v4411_v63  ;;  %v3970_v16 = vpop.f32.mrf.mxu0  ;;  %v4208_v43 = vpop.f32.mrf.mxu1  ;;  %v15531_v62 = vld [vmem:[%s13653_s11 + $0x60] sm:$0xff]  ;;  %v4898_v63 = vld [vmem:[%s13653_s11 + $0x58] sm:$0x8] }
 0x2a7   : > { %3999 = vmatmul.bf16.gmra.mxu0 %v3893_v54  ;;  %v2818_v30 = vshrl.u32 %v2817_v40, 4  ;;  %v3163_v18 = vrot.slane %v15482_v2, 4  ;;  %v15524_v56 = vor.u32 %v3170_v61, %v3167_v32  ;;  %v4130_v20 = vor.u32 %v4129_v12, %v4126_v7  ;;  %v12978_v12 = vld [vmem:[#allocation2] sm:$0xff]  }
 0x2a8   : > { %v4299_v49 = vsel %vm1362_vm3, %v18207_v27, %v4298_v34  ;;  %v4530_v28 = vsel %vm1362_vm3, %v18208_v33, %v4529_v55  ;;  %v4681_v40 = vshrl.u32 %v14560_v26, 16  ;;  %v4007_v5 = vadd.f32 %v15459_v60, %v14674_v35  ;;  %v12831_v60 = vld [vmem:[%s18041_s3 + $0x130] sm:$0xff] }
 0x2a9   : > { %4405 = vmatmul.bf16.gmra.mxu2 %v4299_v49  ;;  %4636 = vmatmul.bf16.gmra.mxu3 %v4530_v28  ;;  %v13288_v1 = vpop.eup %13287  ;;  %v2819_v31 = vmul.u32 18, %v2818_v30  ;;  %v4684_v47 = vshll.u32 %v14560_v26, 16  ;;  %v4689_v2 = vshrl.u32 %v15531_v62, 16  ;;  %v3172_v38 = vsel %vm14781_vm14, %v3163_v18, %v15524_v56  ;;  %v12807_v34 = vld [vmem:[%s18041_s3 + $0xb0] sm:$0xff] }
 0x2aa   : > { %v4131_v59 = vsel %vm1122_vm2, %v15419_v45, %v4130_v20  ;;  %3221 = vst [vmem:[#allocation2 + $0x48] sm:$0xf] %v3172_v38  ;;  %v4245_v26 = vadd.f32 %v15461_v11, %v4007_v5  ;;  %v4683_v35 = vrot.slane %v4681_v40, 2  ;;  %v12839_v45 = vld [vmem:[%s18041_s3 + $0x170] sm:$0xff]  ;;  %v4692_v61 = vshll.u32 %v15531_v62, 16  ;;  %7107 = vmatpush.bf16.msrb.mxu2 %v12831_v60  ;;  %6635 = vmatpush.bf16.msrb.mxu0 %v12807_v34 }
 0x2ab   : > { %v2820_v54 = vsub.s32 %v15438_v24, %v2819_v31  ;;  %4237 = vmatmul.bf16.gmra.mxu1 %v4131_v59  ;;  %v4686_v55 = vrot.slane %v4684_v47, 3  ;;  %v4691_v32 = vrot.slane %v4689_v2, 2  ;;  %v4916_v7 = vunpack.c.l.b16 %v4898_v63  ;;  %v12823_v11 = vld [vmem:[%s18041_s3 + $0xf0] sm:$0xff]  ;;  %7277 = vmatpush.bf16.msrb.mxu3 %v12839_v45 }
 0x2ac   : > { %v2281_v30 = vmul.f32 %v13288_v1, %v15432_v29  ;;  %v4694_v33 = vrot.slane %v4692_v61, 3  ;;  %v4376_v28 = vpop.f32.mrf.mxu2  ;;  %6867 = vmatpush.bf16.msrb.mxu1 %v12823_v11  ;;  %v6239_v40 = vshrl.u32 %v12978_v12, 16  ;;  %v6241_v31 = vshll.u32 %v12978_v12, 16 }
 0x2ad   : > { %vm2840_vm12 = vcmp.ne.s32.totalorder %v2820_v54, 0  ;;  %vm2858_vm15 = vcmp.lt.s32.totalorder %v2820_v54, 0  ;;  %v2894_v27 = vadd.s32 18, %v2820_v54  ;;  %v4687_v49 = vor.u32 %v4686_v55, %v4683_v35  ;;  %v4607_v18 = vpop.f32.mrf.mxu3 }
 0x2ae   : > { %vm2876_vm7 = vmand %vm2858_vm15, %vm2840_vm12  ;;  %v6246_v5 = vshll.u32 %v15540_v42, 16  ;;  %v15559_v47 = vor.u32 %v4694_v33, %v4691_v32  ;;  %v18209_v29 = vunpack.c.l.b16 %v14502_v21  ;;  %v4413_v2 = vadd.f32 %v15488_v39, %v4245_v26  ;;  %v15564_v63 = vpop.f32.mrf.mxu0  ;;  %v15566_v38 = vpop.f32.mrf.mxu1 }
 0x2af   : > { %v2912_v20 = vsel %vm2876_vm7, %v2894_v27, %v2820_v54  ;;  %v6243_v35 = vrot.slane %v6241_v31, 1  ;;  %v4009_v21 = vadd.f32 %v3970_v16, %v14791_v22  ;;  %v4919_v61 = vrot.slane %v15531_v62, 3 }
 0x2b0   : > { %vm2930_vm13 = vcmp.lt.s32.totalorder %v2912_v20, 16  ;;  %v4917_v1 = vpack.c.b16 %v18209_v29, %v4916_v7  ;;  %v15569_v54 = vadd.f32 %v15490_v3, %v4413_v2  ;;  %v4696_v34 = vsel %vm1764_vm4, %v4687_v49, %v15559_v47  ;;  %v15581_v49 = vld [vmem:[%s13653_s11 + $0x68] sm:$0xff]  ;;  %v3223_v29 = vld [vmem:[#allocation2 + $0x50] sm:$0x3] }
 0x2b1   : > { %v2984_v59 = vsel %vm2930_vm13, %v2281_v30, 0.0  ;;  %v6244_v45 = vor.u32 %v6243_v35, %v6239_v40  ;;  %v6248_v55 = vrot.slane %v6246_v5, 1  ;;  %v4247_v7 = vadd.f32 %v4208_v43, %v4009_v21  ;;  %v12822_v21 = vld [vmem:[%s18041_s3 + $0xe8] sm:$0xff] }
 0x2b2   : > { %v3002_v60 = vpack.c.bf16 %v2984_v59, %v2984_v59  ;;  %v4918_v26 = vrot.slane %v4917_v1, 3  ;;  %v4698_v20 = vshrl.u32 %v15581_v49, 16  ;;  %v4701_v22 = vshll.u32 %v15581_v49, 16  ;;  %6868 = vmatpush.bf16.msrb.mxu1 %v12822_v21  ;;  %v12829_v21 = vld [vmem:[%s18041_s3 + $0x120] sm:$0xff] }
 0x2b3   : > { %v6249_v33 = vsel %vm400_vm0, %v6244_v45, %v6248_v55  ;;  %v4415_v16 = vadd.f32 %v4376_v28, %v4247_v7  ;;  %v3173_v40 = vrot.slane %v15524_v56, 4  ;;  %v12838_v45 = vld [vmem:[%s18041_s3 + $0x168] sm:$0xff] }
 0x2b4   : > { %v3175_v32 = vshrl.u32 %v3002_v60, 16  ;;  %v3178_v39 = vshll.u32 %v3002_v60, 16  ;;  %v15575_v27 = vpop.f32.mrf.mxu2  ;;  %v4920_v43 = vsel %vm2004_vm5, %v4918_v26, %v4919_v61  ;;  %v15592_v60 = vld [vmem:[#allocation2 + $0x10] sm:$0xff]  ;;  %v4700_v56 = vrot.slane %v4698_v20, 2  ;;  %7278 = vmatpush.bf16.msrb.mxu3 %v12838_v45 }
 0x2b5   : > { %v15577_v3 = vpop.f32.mrf.mxu3  ;;  %v15587_v1 = vadd.f32 %v4607_v18, %v4415_v16  ;;  %v4703_v28 = vrot.slane %v4701_v22, 3  ;;  %v12806_v18 = vld [vmem:[%s18041_s3 + $0xa8] sm:$0xff]  ;;  %v6254_v7 = vshll.u32 %v15592_v60, 16  ;;  %v6250_v16 = vshrl.u32 %v15540_v42, 16 }
 0x2b6   : > { %v3177_v11 = vrot.slane %v3175_v32, 6  ;;  %v3180_v30 = vrot.slane %v3178_v39, 7  ;;  %v3975_v31 = vpop.f32.mrf.mxu0  ;;  %v4213_v5 = vpop.f32.mrf.mxu1  ;;  %6636 = vmatpush.bf16.msrb.mxu0 %v12806_v18 }
 0x2b7   : > { %4834 = vmatmul.bf16.vlgmr.msra.gmra.mxu0 %v4696_v34  ;;  %v4011_v2 = vadd.f32 %v3975_v31, %v14893_v6  ;;  %v4704_v26 = vor.u32 %v4703_v28, %v4700_v56  ;;  %v18087_v28 = vrot.slane %v15540_v42, 1 }
 0x2b8   : > { %v3181_v62 = vor.u32 %v3180_v30, %v3177_v11 }
 0x2b9   : > { %6379 = vmatmul.bf16.vlgmr.msra.gmra.mxu2 %v6249_v33  ;;  %6490 = vmatmul.bf16.vlgmr.msra.gmra.mxu3 %v12978_v12  ;;  %v4249_v34 = vadd.f32 %v4213_v5, %v4011_v2  ;;  %v12830_v12 = vld [vmem:[%s18041_s3 + $0x128] sm:$0xff]  ;;  %v4705_v22 = vsel %vm1764_vm4, %v15559_v47, %v4704_v26 }
 0x2ba   : > { %v3182_v59 = vsel %vm14781_vm14, %v3173_v40, %v3181_v62  ;;  %v3183_v35 = vrot.slane %v3181_v62, 4  ;;  %7108 = vmatpush.bf16.msrb.mxu2 %v12830_v12  ;;  %v6256_v40 = vrot.slane %v6254_v7, 1  ;;  %v4921_v62 = vrot.slane %v15581_v49, 3 }
 0x2bb   : > { %3222 = vst [vmem:[#allocation2 + $0x4c] sm:$0xf] %v3182_v59  ;;  %5002 = vmatmul.bf16.vlgmr.msra.gmra.mxu1 %v4920_v43  ;;  %v6252_v43 = vor.u32 %v6250_v16, %v6248_v55  ;;  %v15626_v59 = vld [vmem:[%s13653_s11 + $0x70] sm:$0xff] }
 0x2bc   : > { %v3224_v6 = vsel %vm14371_vm8, %v3183_v35, %v3223_v29  ;;  %v4381_v32 = vpop.f32.mrf.mxu2  ;;  %v6561_v29 = vrot.slane %v15592_v60, 1  ;;  %v4707_v35 = vshrl.u32 %v15626_v59, 16  ;;  %v4710_v47 = vshll.u32 %v15626_v59, 16 }
 0x2bd   : > { %3225 = vst [vmem:[#allocation2 + $0x50] sm:$0x3] %v3224_v6  ;;  %v4612_v39 = vpop.f32.mrf.mxu3  ;;  %v4417_v11 = vadd.f32 %v4381_v32, %v4249_v34  ;;  %v6257_v2 = vsel %vm400_vm0, %v6252_v43, %v6256_v40  ;;  %v4922_v56 = vsel %vm2004_vm5, %v4919_v61, %v4921_v62  ;;  %v15633_v34 = vld [vmem:[#allocation2 + $0x18] sm:$0xff]  ;;  %v12805_v32 = vld [vmem:[%s18041_s3 + $0xa0] sm:$0xff] }
 0x2be   : > { %v15609_v30 = vpop.f32.mrf.mxu0  ;;  %v15611_v33 = vpop.f32.mrf.mxu1  ;;  %v15639_v18 = vsel %vm720_vm1, %v18087_v28, %v6561_v29  ;;  %v4709_v6 = vrot.slane %v4707_v35, 2  ;;  %v4712_v45 = vrot.slane %v4710_v47, 3  ;;  %7109 = vmatpush.bf16.msrb.mxu2 %v12829_v21  ;;  %6637 = vmatpush.bf16.msrb.mxu0 %v12805_v32  ;;  %v6563_v7 = vrot.slane %v15633_v34, 1 }
 0x2bf   : > { %v15613_v20 = vadd.f32 %v4612_v39, %v4417_v11  ;;  %18211 = vst [vmem:[#allocation45_spill] sm:$0xff] %v15639_v18  ;;  %v12821_v39 = vld [vmem:[%s18041_s3 + $0xe0] sm:$0xff]  ;;  %v6262_v43 = vshll.u32 %v15633_v34, 16  ;;  %v4923_v32 = vrot.slane %v15626_v59, 3 }
 0x2c0   : > { %6869 = vmatpush.bf16.msrb.mxu1 %v12821_v39  ;;  %v4713_v16 = vor.u32 %v4712_v45, %v4709_v6  ;;  %v15656_v35 = vsel %vm720_vm1, %v6561_v29, %v6563_v7  ;;  %v18230_v18 = vld [vmem:[#allocation37_spill] sm:$0xff] }
 0x2c1   : > { %18210 = vst [vmem:[#allocation44_spill] sm:$0xff] %v15613_v20  ;;  %v6264_v21 = vrot.slane %v6262_v43, 1 }
 0x2c2   : > { %18212 = vst [vmem:[#allocation46_spill] sm:$0xff] %v15656_v35 }
 0x2c4   : > { %v15619_v31 = vpop.f32.mrf.mxu2 }
 0x2c5   : > { %v15621_v5 = vpop.f32.mrf.mxu3 }
 0x2c6   : > { %v3980_v55 = vpop.f32.mrf.mxu0  ;;  %v4218_v49 = vpop.f32.mrf.mxu1 }
 0x2c7   : > { %4839 = vmatmul.bf16.gmra.mxu0 %v4705_v22  ;;  %v4013_v12 = vadd.f32 %v3980_v55, %v14985_v8  ;;  %v12837_v8 = vld [vmem:[%s18041_s3 + $0x160] sm:$0xff] }
 0x2c8   : > { %7279 = vmatpush.bf16.msrb.mxu3 %v12837_v8 }
 0x2c9   : > { %6384 = vmatmul.bf16.gmra.mxu2 %v6257_v2  ;;  %6495 = vmatmul.bf16.gmra.mxu3 %v15540_v42  ;;  %v4251_v61 = vadd.f32 %v4218_v49, %v4013_v12  ;;  %v4714_v49 = vsel %vm1764_vm4, %v4704_v26, %v4713_v16  ;;  %v6258_v12 = vshrl.u32 %v15592_v60, 16 }
 0x2cb   : > { %5007 = vmatmul.bf16.gmra.mxu1 %v4922_v56  ;;  %v6260_v6 = vor.u32 %v6258_v12, %v6256_v40  ;;  %v15679_v40 = vld [vmem:[#allocation2 + $0x20] sm:$0xff] }
 0x2cc   : > { %v4386_v11 = vpop.f32.mrf.mxu2 }
 0x2cd   : > { %v4617_v22 = vpop.f32.mrf.mxu3  ;;  %v4419_v2 = vadd.f32 %v4386_v11, %v4251_v61  ;;  %v6265_v29 = vsel %vm400_vm0, %v6260_v6, %v6264_v21  ;;  %v15671_v61 = vld [vmem:[%s13653_s11 + $0x78] sm:$0xff]  ;;  %v4924_v11 = vsel %vm2004_vm5, %v4921_v62, %v4923_v32 }
 0x2ce   : > { %v15658_v47 = vpop.f32.mrf.mxu0  ;;  %v15662_v55 = vpop.f32.mrf.mxu1  ;;  %v4716_v8 = vshrl.u32 %v15671_v61, 16  ;;  %v4719_v39 = vshll.u32 %v15671_v61, 16  ;;  %v12804_v62 = vld [vmem:[%s18041_s3 + $0x98] sm:$0xff] }
 0x2cf   : > { %v15660_v56 = vadd.f32 %v4617_v22, %v4419_v2  ;;  %6638 = vmatpush.bf16.msrb.mxu0 %v12804_v62 }
 0x2d0   : > { %v4718_v43 = vrot.slane %v4716_v8, 2  ;;  %v4721_v2 = vrot.slane %v4719_v39, 3  ;;  %v6270_v39 = vshll.u32 %v15679_v40, 16 }
 0x2d1   : > { %18213 = vst [vmem:[#allocation47_spill] sm:$0xff] %v15660_v56  ;;  %v15751_v56 = vld [vmem:[#allocation2 + $0x30] sm:$0xff] }
 0x2d2   : > { %v4722_v8 = vor.u32 %v4721_v2, %v4718_v43  ;;  %v18091_v20 = vrot.slane %v15751_v56, 1 }
 0x2d4   : > { %v15667_v45 = vpop.f32.mrf.mxu2  ;;  %v4723_v24 = vsel %vm1764_vm4, %v4713_v16, %v4722_v8 }
 0x2d5   : > { %v15677_v26 = vpop.f32.mrf.mxu3 }
 0x2d6   : > { %v3985_v59 = vpop.f32.mrf.mxu0 }
 0x2d7   : > { %4844 = vmatmul.bf16.gmra.mxu0 %v4714_v49  ;;  %v4015_v22 = vadd.f32 %v3985_v59, %v15095_v58  ;;  %v12828_v49 = vld [vmem:[%s18041_s3 + $0x118] sm:$0xff] }
 0x2d8   : > { %v12820_v58 = vld [vmem:[%s18041_s3 + $0xd8] sm:$0xff]  ;;  %7110 = vmatpush.bf16.msrb.mxu2 %v12828_v49  ;;  %v6272_v49 = vrot.slane %v6270_v39, 1 }
 0x2d9   : > { %6389 = vmatmul.bf16.gmra.mxu2 %v6265_v29  ;;  %6500 = vmatmul.bf16.gmra.mxu3 %v15592_v60  ;;  %v12836_v60 = vld [vmem:[%s18041_s3 + $0x158] sm:$0xff]  ;;  %v6565_v29 = vrot.slane %v15679_v40, 1 }
 0x2da   : > { %v4223_v12 = vpop.f32.mrf.mxu1  ;;  %7280 = vmatpush.bf16.msrb.mxu3 %v12836_v60  ;;  %6870 = vmatpush.bf16.msrb.mxu1 %v12820_v58  ;;  %v4925_v60 = vrot.slane %v15671_v61, 3  ;;  %v12803_v61 = vld [vmem:[%s18041_s3 + $0x90] sm:$0xff] }
 0x2db   : > { %5012 = vmatmul.bf16.gmra.mxu1 %v4924_v11  ;;  %v4253_v6 = vadd.f32 %v4223_v12, %v4015_v22  ;;  %v15697_v11 = vsel %vm720_vm1, %v6563_v7, %v6565_v29  ;;  %v6266_v22 = vshrl.u32 %v15633_v34, 16  ;;  %v15708_v7 = vld [vmem:[%s13653_s11 + $0x80] sm:$0xff]  ;;  %6639 = vmatpush.bf16.msrb.mxu0 %v12803_v61 }
 0x2dc   : > { %18214 = vst [vmem:[#allocation48_spill] sm:$0xff] %v15697_v11  ;;  %v4725_v58 = vshrl.u32 %v15708_v7, 16  ;;  %v4926_v16 = vsel %vm2004_vm5, %v4923_v32, %v4925_v60  ;;  %v12835_v32 = vld [vmem:[%s18041_s3 + $0x150] sm:$0xff] }
 0x2dd   : > { %v6268_v12 = vor.u32 %v6266_v22, %v6264_v21  ;;  %v12827_v21 = vld [vmem:[%s18041_s3 + $0x110] sm:$0xff] }
 0x2de   : > { %v15704_v43 = vpop.f32.mrf.mxu0  ;;  %7111 = vmatpush.bf16.msrb.mxu2 %v12827_v21  ;;  %7281 = vmatpush.bf16.msrb.mxu3 %v12835_v32  ;;  %v6274_v21 = vshrl.u32 %v15679_v40, 16 }
 0x2df   : > { %v6273_v2 = vsel %vm400_vm0, %v6268_v12, %v6272_v49 }
 0x2e0   : > { %v4391_v59 = vpop.f32.mrf.mxu2 }
 0x2e1   : > { %v4421_v28 = vadd.f32 %v4391_v59, %v4253_v6  ;;  %v4622_v53 = vpop.f32.mrf.mxu3  ;;  %v4728_v6 = vshll.u32 %v15708_v7, 16 }
 0x2e2   : > { %v15727_v22 = vpop.f32.mrf.mxu1 }
 0x2e3   : > { %v15701_v62 = vadd.f32 %v4622_v53, %v4421_v28  ;;  %v15714_v53 = vld [vmem:[#allocation2 + $0x28] sm:$0xff]  ;;  %v4727_v28 = vrot.slane %v4725_v58, 2 }
 0x2e4   : > { %v6278_v59 = vshll.u32 %v15714_v53, 16 }
 0x2e5   : > { %18215 = vst [vmem:[#allocation49_spill] sm:$0xff] %v15701_v62 }
 0x2e6   : > { %v6280_v61 = vrot.slane %v6278_v59, 1 }
 0x2e7   : > { %4849 = vmatmul.bf16.gmra.mxu0 %v4723_v24  ;;  %v4730_v24 = vrot.slane %v4728_v6, 3 }
 0x2e8   : > { %v15732_v58 = vpop.f32.mrf.mxu2 }
 0x2e9   : > { %6394 = vmatmul.bf16.gmra.mxu2 %v6273_v2  ;;  %6505 = vmatmul.bf16.gmra.mxu3 %v15633_v34  ;;  %v6567_v34 = vrot.slane %v15714_v53, 1  ;;  %v4731_v39 = vor.u32 %v4730_v24, %v4727_v28  ;;  %v15737_v32 = vpop.f32.mrf.mxu3  ;;  %v4927_v28 = vrot.slane %v15708_v7, 3  ;;  %v12819_v24 = vld [vmem:[%s18041_s3 + $0xd0] sm:$0xff] }
 0x2ea   : > { %6871 = vmatpush.bf16.msrb.mxu1 %v12819_v24 }
 0x2eb   : > { %5017 = vmatmul.bf16.gmra.mxu1 %v4926_v16  ;;  %v15730_v12 = vsel %vm720_vm1, %v6565_v29, %v6567_v34  ;;  %v4732_v16 = vsel %vm1764_vm4, %v4722_v8, %v4731_v39  ;;  %v6276_v29 = vor.u32 %v6274_v21, %v6272_v49  ;;  %v4928_v59 = vsel %vm2004_vm5, %v4925_v60, %v4927_v28 }
 0x2ec   : > { %18216 = vst [vmem:[#allocation50_spill] sm:$0xff] %v15730_v12  ;;  %v15745_v12 = vld [vmem:[%s13653_s11 + $0x88] sm:$0xff] }
 0x2ed   : > { %v6281_v62 = vsel %vm400_vm0, %v6276_v29, %v6280_v61  ;;  %v4737_v8 = vshll.u32 %v15745_v12, 16 }
 0x2f1   : > { %v3990_v2 = vpop.f32.mrf.mxu0 }
 0x2f2   : > { %v4017_v6 = vadd.f32 %v3990_v2, %v15202_v0  ;;  %v4734_v0 = vshrl.u32 %v15745_v12, 16 }
 0x2f4   : > { %v4736_v49 = vrot.slane %v4734_v0, 2  ;;  %v3582_v0 = vadd.f32 %v14592_v4, %v14564_v9  ;;  %v15784_v4 = vld [vmem:[%s13653_s11 + $0x90] sm:$0xff] }
 0x2f7   : > { %4854 = vmatmul.bf16.gmra.mxu0 %v4732_v16  ;;  %v4739_v16 = vrot.slane %v4737_v8, 3  ;;  %v3587_v8 = vadd.f32 %v14708_v19, %v14696_v41  ;;  %v4743_v41 = vshrl.u32 %v15784_v4, 16  ;;  %v4746_v19 = vshll.u32 %v15784_v4, 16 }
 0x2f8   : > { %v4228_v7 = vpop.f32.mrf.mxu1 }
 0x2f9   : > { %6399 = vmatmul.bf16.gmra.mxu2 %v6281_v62  ;;  %6510 = vmatmul.bf16.gmra.mxu3 %v15679_v40  ;;  %v4255_v2 = vadd.f32 %v4228_v7, %v4017_v6  ;;  %v15756_v35 = vor.u32 %v4739_v16, %v4736_v49  ;;  %v6286_v62 = vshll.u32 %v15751_v56, 16  ;;  %v15762_v40 = vsel %vm720_vm1, %v6567_v34, %v18091_v20  ;;  %v15764_v60 = vpop.f32.mrf.mxu0  ;;  %v12826_v6 = vld [vmem:[%s18041_s3 + $0x108] sm:$0xff] }
 0x2fa   : > { %18218 = vst [vmem:[#allocation52_spill] sm:$0xff] %v15762_v40  ;;  %v6282_v7 = vshrl.u32 %v15714_v53, 16  ;;  %7112 = vmatpush.bf16.msrb.mxu2 %v12826_v6  ;;  %v18090_v34 = vrot.slane %v15745_v12, 3  ;;  %v18219_v16 = vld [vmem:[#allocation10_spill] sm:$0xff] }
 0x2fb   : > { %5022 = vmatmul.bf16.gmra.mxu1 %v4928_v59  ;;  %v4741_v59 = vsel %vm1764_vm4, %v4731_v39, %v15756_v35  ;;  %v3592_v39 = vadd.f32 %v14828_v57, %v14834_v15  ;;  %v12834_v57 = vld [vmem:[%s18041_s3 + $0x148] sm:$0xff]  ;;  %v18222_v15 = vld [vmem:[#allocation21_spill] sm:$0xff] }
 0x2fc   : > { %v4396_v21 = vpop.f32.mrf.mxu2  ;;  %v4627_v29 = vpop.f32.mrf.mxu3  ;;  %v6284_v49 = vor.u32 %v6282_v7, %v6280_v61  ;;  %v4930_v6 = vsel %vm2004_vm5, %v4927_v28, %v18090_v34  ;;  %v15808_v7 = vld [vmem:[#allocation2 + $0x38] sm:$0xff]  ;;  %7282 = vmatpush.bf16.msrb.mxu3 %v12834_v57 }
 0x2fd   : > { %v4423_v24 = vadd.f32 %v4396_v21, %v4255_v2  ;;  %v15776_v2 = vrot.slane %v6286_v62, 1  ;;  %v3775_v21 = vadd.f32 %v18219_v16, %v3582_v0  ;;  %v18221_v62 = vld [vmem:[#allocation17_spill] sm:$0xff]  ;;  %v12802_v0 = vld [vmem:[%s18041_s3 + $0x88] sm:$0xff]  ;;  %v4745_v16 = vrot.slane %v4743_v41, 2 }
 0x2fe   : > { %6640 = vmatpush.bf16.msrb.mxu0 %v12802_v0  ;;  %v18227_v41 = vld [vmem:[#allocation29_spill] sm:$0xff]  ;;  %v18228_v0 = vld [vmem:[#allocation32_spill] sm:$0xff] }
 0x2ff   : > { %v15753_v11 = vadd.f32 %v4627_v29, %v4423_v24  ;;  %v3777_v24 = vadd.f32 %v14710_v50, %v3587_v8  ;;  %v6289_v9 = vsel %vm400_vm0, %v6284_v49, %v15776_v2  ;;  %v18220_v29 = vld [vmem:[#allocation16_spill] sm:$0xff]  ;;  %v3602_v8 = vadd.f32 %v18222_v15, %v15001_v10  ;;  %v18224_v10 = vld [vmem:[#allocation19_spill] sm:$0xff] }
 0x300   : > { %v3597_v61 = vadd.f32 %v18221_v62, %v18220_v29  ;;  %v15796_v50 = vpop.f32.mrf.mxu1  ;;  %v12818_v29 = vld [vmem:[%s18041_s3 + $0xc8] sm:$0xff] }
 0x301   : > { %18217 = vst [vmem:[#allocation51_spill] sm:$0xff] %v15753_v11  ;;  %v4008_v28 = vadd.f32 %v15502_v52, %v3777_v24  ;;  %v18223_v62 = vld [vmem:[#allocation14_spill] sm:$0xff]  ;;  %6872 = vmatpush.bf16.msrb.mxu1 %v12818_v29  ;;  %v13147_v29 = vld [vmem:[#allocation2] sm:$0xe] }
 0x302   : > { %v3779_v34 = vadd.f32 %v18223_v62, %v3592_v39  ;;  %v3781_v15 = vadd.f32 %v18224_v10, %v3597_v61  ;;  %v18229_v11 = vld [vmem:[#allocation34_spill] sm:$0xff]  ;;  %v3622_v39 = vadd.f32 %v18231_v25, %v18230_v18  ;;  %v6294_v25 = vshll.u32 %v15808_v7, 16 }
 0x303   : > { %v3617_v40 = vadd.f32 %v18229_v11, %v18228_v0  ;;  %v18232_v62 = vld [vmem:[#allocation22_spill] sm:$0xff] }
 0x304   : > { %v15819_v24 = vpop.f32.mrf.mxu2  ;;  %v15830_v10 = vadd.f32 %v18232_v62, %v3602_v8  ;;  %v15834_v57 = vpop.f32.mrf.mxu3  ;;  %v4010_v11 = vadd.f32 %v15564_v63, %v3779_v34  ;;  %v13146_v18 = vld [vmem:[#allocation2] sm:$0xf0] }
 0x305   : > { %v18236_v34 = vld [vmem:[#allocation30_spill] sm:$0xff] }
 0x307   : > { %4859 = vmatmul.bf16.gmra.mxu0 %v4741_v59  ;;  %v4006_v59 = vadd.f32 %v15400_v44, %v3775_v21  ;;  %v18225_v44 = vld [vmem:[#allocation24_spill] sm:$0xff]  ;;  %v18226_v21 = vld [vmem:[#allocation26_spill] sm:$0xff] }
 0x308   : > { %v3607_v52 = vadd.f32 %v18226_v21, %v18225_v44 }
 0x309   : > { %6404 = vmatmul.bf16.gmra.mxu2 %v6289_v9  ;;  %6515 = vmatmul.bf16.gmra.mxu3 %v15714_v53  ;;  %v15810_v53 = vld [vmem:[#allocation2 + $0xc] sm:$0xf]  ;;  %v4748_v9 = vrot.slane %v4746_v19, 3  ;;  %v3612_v19 = vadd.f32 %v15182_v36, %v18227_v41  ;;  %v4244_v44 = vadd.f32 %v15402_v17, %v4006_v59  ;;  %v18094_v36 = vrot.slane %v15808_v7, 1 }
 0x30a   : > { %v18095_v61 = vunpack.c.l.b16 %v15810_v53  ;;  %v18233_v41 = vld [vmem:[#allocation27_spill] sm:$0xff]  ;;  %v18234_v59 = vrot.slane %v15751_v56, 1 }
 0x30b   : > { %5027 = vmatmul.bf16.gmra.mxu1 %v4930_v6  ;;  %v6706_v6 = vld [vmem:[#allocation2 + $0x8] sm:$0xe]  ;;  %v15840_v21 = vor.u32 %v4748_v9, %v4745_v16  ;;  %v15844_v0 = vadd.f32 %v18233_v41, %v3607_v52  ;;  %v4412_v17 = vadd.f32 %v15450_v46, %v4244_v44  ;;  %v18237_v16 = vld [vmem:[#allocation35_spill] sm:$0xff]  ;;  %v13148_v52 = vor.u32 %v13147_v29, %v13146_v18 }
 0x30c   : > { %v3995_v49 = vpop.f32.mrf.mxu0  ;;  %v6761_v8 = vunpack.c.l.b16 %v6706_v6  ;;  %v15853_v63 = vsel %vm720_vm1, %v18234_v59, %v18094_v36  ;;  %v3789_v9 = vadd.f32 %v18237_v16, %v3617_v40  ;;  %v18238_v6 = vld [vmem:[#allocation40_spill] sm:$0xff]  ;;  %v4248_v41 = vadd.f32 %v15566_v38, %v4010_v11 }
 0x30d   : > { %v4019_v20 = vadd.f32 %v3995_v49, %v15305_v48  ;;  %v4246_v48 = vadd.f32 %v15504_v14, %v4008_v28  ;;  %v15836_v49 = vld [vmem:[#allocation2 + $0x10] sm:$0xff]  ;;  %18235 = vst [vmem:[#allocation10_spill] sm:$0xff] %v15853_v63  ;;  %v15856_v28 = vadd.f32 %v18236_v34, %v3612_v19  ;;  %v15860_v62 = vadd.f32 %v18238_v6, %v3622_v39 }
 0x30e   : > { %v6780_v46 = vpack.c.b16 %v18095_v61, %v6761_v8  ;;  %v6969_v44 = vshrl.u32 %v15836_v49, 16  ;;  %v4750_v40 = vsel %vm1764_vm4, %v15756_v35, %v15840_v21  ;;  %v6290_v19 = vshrl.u32 %v15751_v56, 16  ;;  %v18239_v34 = vld [vmem:[#allocation43_spill] sm:$0xff]  ;;  %v7178_v35 = vld [vmem:[#allocation2 + $0x8] sm:$0xc] }
 0x30f   : > { %v4414_v14 = vadd.f32 %v15510_v37, %v4246_v48  ;;  %v4012_v37 = vadd.f32 %v15609_v30, %v3781_v15  ;;  %v6972_v48 = vshll.u32 %v15836_v49, 16  ;;  %v15872_v39 = vrot.slane %v6294_v25, 1 }
 0x310   : > { %v15875_v8 = vadd.f32 %v18239_v34, %v4412_v17  ;;  %v18097_v18 = vrot.slane %v15784_v4, 3  ;;  %v4416_v38 = vadd.f32 %v15575_v27, %v4248_v41  ;;  %v6292_v11 = vor.u32 %v6290_v19, %v15776_v2  ;;  %v15888_v2 = vld [vmem:[#allocation2 + $0x14] sm:$0xf] }
 0x311   : > { %v15878_v30 = vadd.f32 %v15512_v23, %v4414_v14  ;;  %v6961_v29 = vshrl.u32 %v6780_v46, 16  ;;  %v6964_v16 = vshll.u32 %v6780_v46, 16  ;;  %v4250_v6 = vadd.f32 %v15611_v33, %v4012_v37 }
 0x312   : > { %v6558_v17 = vrot.slane %v13148_v52, 1  ;;  %v6971_v34 = vrot.slane %v6969_v44, 1  ;;  %v6974_v61 = vrot.slane %v6972_v48, 2  ;;  %v6297_v23 = vsel %vm400_vm0, %v6292_v11, %v15872_v39 }
 0x313   : > { %v4233_v59 = vpop.f32.mrf.mxu1  ;;  %v4752_v14 = vshrl.u32 %v15386_v51, 16  ;;  %v4755_v27 = vshll.u32 %v15386_v51, 16  ;;  %v4418_v41 = vadd.f32 %v15619_v31, %v4250_v6  ;;  %v18240_v33 = vrot.slane %v15745_v12, 3  ;;  %v7348_v31 = vld [vmem:[#allocation2 + $0x10] sm:$0xc]  ;;  %v15905_v12 = vld [vmem:[#allocation2 + $0x40] sm:$0xff] }
 0x314   : > { %v4257_v15 = vadd.f32 %v4233_v59, %v4019_v20  ;;  %v3997_v36 = vpop.f32.mrf.mxu0  ;;  %v6791_v44 = vrot.slane %v15836_v49, 1  ;;  %v7197_v48 = vunpack.c.l.b16 %v7178_v35  ;;  %v6966_v19 = vrot.slane %v6964_v16, 2 }
 0x315   : > { %v4932_v37 = vsel %vm2004_vm5, %v18240_v33, %v18097_v18  ;;  %v4020_v51 = vadd.f32 %v3997_v36, %v3789_v9  ;;  %v15903_v11 = vadd.f32 %v15577_v3, %v4416_v38  ;;  %v6790_v6 = vrot.slane %v6780_v46, 1  ;;  %v7820_v33 = vld [vmem:[#allocation2 + $0x10] sm:$0x8]  ;;  %v15970_v18 = vld [vmem:[%s13653_s11 + $0x98] sm:$0xff] }
 0x316   : > { %v4754_v35 = vrot.slane %v4752_v14, 2  ;;  %v18243_v36 = vrot.slane %v15540_v42, 1  ;;  %v15918_v3 = vadd.f32 %v15621_v5, %v4418_v41  ;;  %v7403_v16 = vunpack.c.l.b16 %v7348_v31  ;;  %v6171_v14 = vld [vmem:[#allocation2 + $0x48] sm:$0x1] }
 0x317   : > { %4864 = vmatmul.bf16.gmra.mxu0 %v4750_v40  ;;  %v4401_v25 = vpop.f32.mrf.mxu2  ;;  %v6963_v40 = vrot.slane %v6961_v29, 1  ;;  %v15915_v29 = vor.u32 %v6974_v61, %v6971_v34  ;;  %v15921_v46 = vsel %vm720_vm1, %v6790_v6, %v6791_v44  ;;  %v6573_v41 = vrot.slane %v15905_v12, 1 }
 0x318   : > { %v4425_v20 = vadd.f32 %v4401_v25, %v4257_v15  ;;  %v15900_v15 = vld [vmem:[#allocation2 + $0x18] sm:$0xff]  ;;  %v15913_v9 = vsel %vm720_vm1, %v6558_v17, %v18243_v36  ;;  %18244 = vst [vmem:[#allocation17_spill] sm:$0xff] %v15918_v3  ;;  %v6226_v31 = vunpack.c.l.b16 %v6171_v14  ;;  %v7839_v36 = vunpack.c.l.b16 %v7820_v33 }
 0x319   : > { %6409 = vmatmul.bf16.gmra.mxu2 %v6297_v23  ;;  %6520 = vmatmul.bf16.gmra.mxu3 %v15751_v56  ;;  %v4632_v52 = vpop.f32.mrf.mxu3  ;;  %v18242_v56 = vunpack.c.l.b16 %v15810_v53  ;;  %v7404_v23 = vunpack.c.l.b16 %v15888_v2  ;;  %v7201_v53 = vrot.slane %v15836_v49, 2  ;;  %v18096_v42 = vrot.slane %v15900_v15, 1 }
 0x31a   : > { %v15898_v59 = vadd.f32 %v4632_v52, %v4425_v20  ;;  %v4757_v20 = vrot.slane %v4755_v27, 3  ;;  %v6967_v27 = vor.u32 %v6966_v19, %v6963_v40  ;;  %v6978_v17 = vshrl.u32 %v15900_v15, 16 }
 0x31b   : > { %v7198_v25 = vpack.c.b16 %v18242_v56, %v7197_v48  ;;  %5032 = vmatmul.bf16.gmra.mxu1 %v4932_v37  ;;  %v4235_v38 = vpop.f32.mrf.mxu1  ;;  %v6981_v5 = vshll.u32 %v15900_v15, 16  ;;  %v15928_v37 = vld [vmem:[#allocation2 + $0x18] sm:$0xff]  ;;  %v15930_v52 = vpack.c.b16 %v7404_v23, %v7403_v16  ;;  %v18246_v56 = vrot.slane %v15808_v7, 1 }
 0x31c   : > { %18241 = vst [vmem:[#allocation16_spill] sm:$0xff] %v15898_v59  ;;  %v4258_v2 = vadd.f32 %v4235_v38, %v4020_v51  ;;  %v15932_v48 = vor.u32 %v4757_v20, %v4754_v35  ;;  %v6302_v51 = vshll.u32 %v15905_v12, 16  ;;  %v15937_v40 = vsel %vm1122_vm2, %v6967_v27, %v15915_v29 }
 0x31d   : > { %v7200_v34 = vrot.slane %v7198_v25, 2  ;;  %18245 = vst [vmem:[#allocation21_spill] sm:$0xff] %v15928_v37  ;;  %v15945_v25 = vsel %vm720_vm1, %v18246_v56, %v6573_v41  ;;  %v15952_v20 = vsel %vm720_vm1, %v6791_v44, %v18096_v42  ;;  %v6980_v38 = vrot.slane %v6978_v17, 1  ;;  %v18249_v56 = vld [vmem:[#allocation41_spill] sm:$0xff] }
 0x31e   : > { %18247 = vst [vmem:[#allocation14_spill] sm:$0xff] %v15945_v25  ;;  %v4014_v14 = vadd.f32 %v15658_v47, %v15830_v10  ;;  %v6983_v27 = vrot.slane %v6981_v5, 2  ;;  %v7611_v33 = vshrl.u32 %v15928_v37, 16  ;;  %v6298_v44 = vshrl.u32 %v15808_v7, 16 }
 0x31f   : > { %v4403_v61 = vpop.f32.mrf.mxu2  ;;  %v15940_v6 = vsel %vm1362_vm3, %v7200_v34, %v7201_v53  ;;  %v15965_v17 = vrot.slane %v6302_v51, 1  ;;  %v15973_v10 = vpack.c.b16 %v6226_v31, %v6226_v31  ;;  %v7603_v5 = vshrl.u32 %v15930_v52, 16 }
 0x320   : > { %v4426_v49 = vadd.f32 %v4403_v61, %v4258_v2  ;;  %v15955_v2 = vld [vmem:[#allocation2 + $0x20] sm:$0xff]  ;;  %v7432_v61 = vrot.slane %v15930_v52, 2  ;;  %v6300_v16 = vor.u32 %v6298_v44, %v15872_v39  ;;  %v7606_v51 = vshll.u32 %v15930_v52, 16 }
 0x321   : > { %v4634_v19 = vpop.f32.mrf.mxu3  ;;  %v4252_v59 = vadd.f32 %v15662_v55, %v4014_v14  ;;  %v7840_v31 = vpack.c.b16 %v7404_v23, %v7839_v36  ;;  %v4016_v25 = vadd.f32 %v15704_v43, %v15844_v0  ;;  %v7613_v44 = vrot.slane %v7611_v33, 2 }
 0x322   : > { %v15947_v35 = vadd.f32 %v4634_v19, %v4426_v49  ;;  %v4759_v49 = vsel %vm1764_vm4, %v15840_v21, %v15932_v48  ;;  %v7614_v19 = vshll.u32 %v15928_v37, 16  ;;  %v6987_v21 = vshrl.u32 %v15955_v2, 16 }
 0x323   : > { %v6305_v39 = vsel %vm400_vm0, %v6300_v16, %v15965_v17  ;;  %v18251_v52 = vrot.slane %v15970_v18, 3  ;;  %v18252_v55 = vrot.slane %v15784_v4, 3  ;;  %v6575_v23 = vrot.slane %v15973_v10, 1  ;;  %v16004_v4 = vld [vmem:[#allocation2 + $0x30] sm:$0xff] }
 0x324   : > { %18248 = vst [vmem:[#allocation19_spill] sm:$0xff] %v15947_v35  ;;  %v4000_v34 = vpop.f32.mrf.mxu0  ;;  %v6990_v35 = vshll.u32 %v15955_v2, 16  ;;  %v7616_v63 = vrot.slane %v7614_v19, 3  ;;  %v18099_v43 = vrot.slane %v15928_v37, 2  ;;  %v7605_v0 = vrot.slane %v7603_v5, 2 }
 0x325   : > { %v4021_v42 = vadd.f32 %v4000_v34, %v18249_v56  ;;  %v6984_v34 = vor.u32 %v6983_v27, %v6980_v38  ;;  %v18250_v56 = vrot.slane %v15900_v15, 2  ;;  %v4934_v38 = vsel %vm2004_vm5, %v18252_v55, %v18251_v52 }
 0x326   : > { %v6989_v16 = vrot.slane %v6987_v21, 1  ;;  %v6992_v14 = vrot.slane %v6990_v35, 2  ;;  %v7608_v27 = vrot.slane %v7606_v51, 3  ;;  %v18098_v19 = vrot.slane %v15928_v37, 3 }
 0x327   : > { %4869 = vmatmul.bf16.gmra.mxu0 %v4759_v49  ;;  %v15984_v47 = vsel %vm1362_vm3, %v7201_v53, %v18250_v56  ;;  %v15996_v53 = vld [vmem:[#allocation2 + $0x28] sm:$0xff]  ;;  %v16002_v33 = vsel %vm1122_vm2, %v15915_v29, %v6984_v34  ;;  %v16007_v49 = vsel %vm720_vm1, %v6573_v41, %v6575_v23  ;;  %v4420_v56 = vadd.f32 %v15667_v45, %v4252_v59 }
 0x328   : > { %v4238_v3 = vpop.f32.mrf.mxu1  ;;  %v4254_v5 = vadd.f32 %v15727_v22, %v4016_v25  ;;  %v6795_v35 = vrot.slane %v15955_v2, 1  ;;  %v16013_v21 = vor.u32 %v7616_v63, %v7613_v44  ;;  %v6996_v41 = vshrl.u32 %v15996_v53, 16 }
 0x329   : > { %6414 = vmatmul.bf16.gmra.mxu2 %v6305_v39  ;;  %6525 = vmatmul.bf16.gmra.mxu3 %v15808_v7  ;;  %v4259_v36 = vadd.f32 %v4238_v3, %v4021_v42  ;;  %v7842_v7 = vrot.slane %v7840_v31, 3  ;;  %v7205_v39 = vrot.slane %v15955_v2, 2  ;;  %v6999_v31 = vshll.u32 %v15996_v53, 16 }
 0x32a   : > { %18253 = vst [vmem:[#allocation24_spill] sm:$0xff] %v16013_v21  ;;  %v4422_v52 = vadd.f32 %v15732_v58, %v4254_v5  ;;  %v6993_v45 = vor.u32 %v6992_v14, %v6989_v16  ;;  %v16022_v22 = vsel %vm1362_vm3, %v7432_v61, %v18099_v43  ;;  %v7609_v59 = vor.u32 %v7608_v27, %v7605_v0  ;;  %v18259_v27 = vld [vmem:[#allocation3_spill] sm:$0xff] }
 0x32b   : > { %5037 = vmatmul.bf16.gmra.mxu1 %v4934_v38  ;;  %18254 = vst [vmem:[#allocation26_spill] sm:$0xff] %v16022_v22  ;;  %v7005_v44 = vshrl.u32 %v16004_v4, 16  ;;  %v7008_v2 = vshll.u32 %v16004_v4, 16  ;;  %v16030_v55 = vadd.f32 %v15677_v26, %v4420_v56  ;;  %v6310_v58 = vshll.u32 %v15973_v10, 16 }
 0x32c   : > { %v4406_v3 = vpop.f32.mrf.mxu2  ;;  %v4637_v42 = vpop.f32.mrf.mxu3  ;;  %v16035_v38 = vsel %vm1764_vm4, %v7609_v59, %v16013_v21  ;;  %v16040_v61 = vsel %vm2004_vm5, %v7842_v7, %v18098_v19  ;;  %v18258_v26 = vrot.slane %v15900_v15, 2  ;;  %v6998_v10 = vrot.slane %v6996_v41, 1 }
 0x32d   : > { %v4427_v29 = vadd.f32 %v4406_v3, %v4259_v36  ;;  %v4002_v51 = vpop.f32.mrf.mxu0  ;;  %18255 = vst [vmem:[#allocation29_spill] sm:$0xff] %v16035_v38  ;;  %v7001_v16 = vrot.slane %v6999_v31, 2  ;;  %v16053_v14 = vadd.f32 %v15737_v32, %v4422_v52  ;;  %v16056_v56 = vadd.s32 144, %v18259_v27 }
 0x32e   : > { %v4022_v63 = vadd.f32 %v4002_v51, %v15860_v62  ;;  %18256 = vst [vmem:[#allocation32_spill] sm:$0xff] %v16040_v61  ;;  %v18257_v62 = vrot.slane %v15900_v15, 1  ;;  %v16050_v36 = vsel %vm1362_vm3, %v18258_v26, %v7205_v39  ;;  %v16059_v7 = vsel %vm1122_vm2, %v6984_v34, %v6993_v45 }
 0x32f   : > { %v16024_v25 = vadd.f32 %v4637_v42, %v4427_v29  ;;  %v6797_v5 = vrot.slane %v15996_v53, 1  ;;  %v6306_v42 = vshrl.u32 %v15905_v12, 16  ;;  %v7007_v15 = vrot.slane %v7005_v44, 1 }
 0x330   : > { %v4240_v23 = vpop.f32.mrf.mxu1  ;;  %v16045_v0 = vsel %vm720_vm1, %v18257_v62, %v6795_v35  ;;  %v7010_v29 = vrot.slane %v7008_v2, 2  ;;  %v5216_v41 = vand.u32 65535, %v16056_v56  ;;  %v5217_v32 = vshrl.u32 %v16056_v56, 16 }
 0x331   : > { %v4260_v3 = vadd.f32 %v4240_v23, %v4022_v63  ;;  %v6312_v31 = vrot.slane %v6310_v58, 1  ;;  %v7207_v52 = vrot.slane %v15996_v53, 2  ;;  %v6308_v34 = vor.u32 %v6306_v42, %v15965_v17  ;;  %v16081_v17 = vld [vmem:[%s18040_s2] ss:$0 sm:$0xff] }
 0x332   : > { %v7002_v27 = vor.u32 %v7001_v16, %v6998_v10  ;;  %v18102_v63 = vrot.slane %v16004_v4, 1  ;;  %v5219_v44 = vmul.u32 14564, %v5216_v41  ;;  %v5220_v2 = vmul.u32 58254, %v5216_v41 }
 0x333   : > { %v16069_v19 = vmul.u32 14564, %v5217_v32  ;;  %v4018_v43 = vadd.f32 %v15764_v60, %v15856_v28  ;;  %v16075_v58 = vor.u32 %v7010_v29, %v7007_v15  ;;  %v18101_v53 = vrot.slane %v16004_v4, 2  ;;  %v16095_v29 = vld [vmem:[#allocation2 + $0x38] sm:$0xff] }
 0x334   : > { %v4408_v51 = vpop.f32.mrf.mxu2  ;;  %v4639_v59 = vpop.f32.mrf.mxu3  ;;  %v5222_v10 = vmul.u32 58254, %v5217_v32  ;;  %v16087_v60 = vsel %vm720_vm1, %v6795_v35, %v6797_v5  ;;  %v16090_v28 = vsel %vm1122_vm2, %v6993_v45, %v7002_v27  ;;  %v16093_v15 = vsel %vm1362_vm3, %v7205_v39, %v7207_v52 }
 0x335   : > { %v4428_v62 = vadd.f32 %v4408_v51, %v4260_v3  ;;  %v4835_v26 = vpop.f32.mrf.mxu0  ;;  %v5225_v16 = vshll.u32 %v16069_v19, 16  ;;  %v6313_v3 = vsel %vm400_vm0, %v6308_v34, %v6312_v31  ;;  %v16100_v41 = vsel %vm720_vm1, %v6797_v5, %v18102_v63 }
 0x336   : > { %v4880_v23 = vadd.f32 %v4835_v26, %v15521_v13  ;;  %v5223_v13 = vshll.u32 %v5220_v2, 16  ;;  %v18260_v35 = vmov 0   ;;  %v16106_v45 = vsel %vm1122_vm2, %v7002_v27, %v16075_v58 }
 0x337   : > { %v16073_v21 = vadd.f32 %v4639_v59, %v4428_v62  ;;  %v16111_v39 = vsel %vm1362_vm3, %v7207_v52, %v18101_v53  ;;  %v5224_v62 = vshrl.u32 %v5220_v2, 16  ;;  %v7014_v26 = vshrl.u32 %v16095_v29, 16  ;;  %v4660_v2 = vld [vmem:[%s13653_s11 + $0xa0] sm:$0x7] }
 0x338   : > { %v5003_v42 = vpop.f32.mrf.mxu1  ;;  %vm5227_vm9 = vc.u32 %v5219_v44, %v5223_v13  ;;  %v5229_v59 = vadd.s32 %v5223_v13, %v5219_v44  ;;  %v7017_v34 = vshll.u32 %v16095_v29, 16  ;;  %v12825_v44 = vld [vmem:[%s18041_s3 + $0x100] sm:$0xff]  ;;  %v18263_v22 = vrot.slane %v15970_v18, 3 }
 0x339   : > { %6419 = vmatmul.bf16.gmra.mxu2 %v6313_v3  ;;  %6530 = vmatmul.bf16.gmra.mxu3 %v15905_v12  ;;  %v5048_v51 = vadd.f32 %v5003_v42, %v4880_v23  ;;  %v4256_v12 = vadd.f32 %v15796_v50, %v4018_v43  ;;  %v5228_v32 = vsel %vm5227_vm9, 1, %v18260_v35  ;;  %v5226_v50 = vshrl.u32 %v16069_v19, 16  ;;  %v12801_v19 = vld [vmem:[%s18041_s3 + $0x80] sm:$0xff] }
 0x33a   : > { %v5230_v5 = vadd.s32 %v5228_v32, %v5222_v10  ;;  %vm5231_vm6 = vc.u32 %v5229_v59, %v5225_v16  ;;  %v18261_v16 = vld [vmem:[#allocation6_spill] sm:$0xff]  ;;  %v4678_v42 = vunpack.c.l.b16 %v4660_v2  ;;  %7113 = vmatpush.bf16.msrb.mxu2 %v12825_v44  ;;  %6641 = vmatpush.bf16.msrb.mxu0 %v12801_v19  ;;  %v7019_v38 = vrot.slane %v7017_v34, 2 }
 0x33b   : > { %v16114_v31 = vadd.f32 %v16081_v17, %v5048_v51  ;;  %v5232_v43 = vsel %vm5231_vm6, 1, %v18260_v35  ;;  %v16121_v27 = vadd.f32 %v15819_v24, %v4256_v12  ;;  %v16132_v3 = vadd.s32 144, %v18261_v16  ;;  %v12833_v24 = vld [vmem:[%s18041_s3 + $0x140] sm:$0xff] }
 0x33c   : > { %v5234_v23 = vadd.s32 %v5232_v43, %v5230_v5  ;;  %v6380_v10 = vpop.f32.mrf.mxu2  ;;  %v6491_v13 = vpop.f32.mrf.mxu3  ;;  %v12817_v51 = vld [vmem:[%s18041_s3 + $0xc0] sm:$0xff]  ;;  %v4679_v63 = vpack.c.b16 %v4678_v42, %v4678_v42  ;;  %7283 = vmatpush.bf16.msrb.mxu3 %v12833_v24 }
 0x33d   : > { %v5087_v52 = vsub.f32 0.0, %v16114_v31  ;;  %v16140_v59 = vadd.f32 %v6491_v13, %v6380_v10  ;;  %v4837_v12 = vpop.f32.mrf.mxu0  ;;  %v5245_v16 = vand.u32 65535, %v16132_v3  ;;  %6873 = vmatpush.bf16.msrb.mxu1 %v12817_v51  ;;  %v5246_v10 = vshrl.u32 %v16132_v3, 16 }
 0x33e   : > { %v5235_v53 = vadd.s32 %v5234_v23, %v5224_v62  ;;  %v4881_v2 = vadd.f32 %v4837_v12, %v15875_v8  ;;  %v7016_v13 = vrot.slane %v7014_v26, 1  ;;  %v4764_v62 = vshll.u32 %v4679_v63, 16 }
 0x33f   : > { %18262 = vst [vmem:[#allocation34_spill] sm:$0xff] %v16140_v59  ;;  %v5105_v43 = vmul.f32 1.442695, %v5087_v52  ;;  %v5248_v5 = vmul.u32 14564, %v5245_v16  ;;  %v4761_v52 = vshrl.u32 %v4679_v63, 16  ;;  %v4935_v23 = vrot.slane %v4679_v63, 3 }
 0x340   : > { %v5005_v37 = vpop.f32.mrf.mxu1  ;;  %v5236_v32 = vadd.s32 %v5235_v53, %v5226_v50  ;;  %v5249_v44 = vmul.u32 58254, %v5245_v16  ;;  %v5250_v42 = vmul.u32 14564, %v5246_v10  ;;  %v5251_v24 = vmul.u32 58254, %v5246_v10 }
 0x341   : > { %13289 = vpow2.f32 %v5105_v43  ;;  %v5049_v61 = vadd.f32 %v5005_v37, %v4881_v2  ;;  %v4763_v51 = vrot.slane %v4761_v52, 2  ;;  %v4766_v12 = vrot.slane %v4764_v62, 3 }
 0x342   : > { %v5237_v19 = vshrl.u32 %v5236_v32, 4  ;;  %v4936_v26 = vsel %vm2004_vm5, %v18263_v22, %v4935_v23  ;;  %v5252_v34 = vshll.u32 %v5249_v44, 16  ;;  %v5254_v50 = vshll.u32 %v5250_v42, 16 }
 0x343   : > { %v16148_v8 = vadd.f32 %v16081_v17, %v5049_v61  ;;  %5042 = vmatmul.bf16.gmra.mxu1 %v4936_v26  ;;  %v16154_v32 = vor.u32 %v7019_v38, %v7016_v13  ;;  %v4767_v61 = vor.u32 %v4766_v12, %v4763_v51  ;;  %v5253_v2 = vshrl.u32 %v5249_v44, 16  ;;  %v18266_v44 = vld [vmem:[#allocation7_spill] sm:$0xff] }
 0x344   : > { %v5238_v53 = vmul.u32 18, %v5237_v19  ;;  %v6382_v63 = vpop.f32.mrf.mxu2  ;;  %v6493_v43 = vpop.f32.mrf.mxu3  ;;  %vm5256_vm10 = vc.u32 %v5248_v5, %v5252_v34  ;;  %v5258_v16 = vadd.s32 %v5252_v34, %v5248_v5  ;;  %v18267_v34 = vrot.slane %v16095_v29, 1 }
 0x345   : > { %v5088_v37 = vsub.f32 0.0, %v16148_v8  ;;  %v5257_v22 = vsel %vm5256_vm10, 1, %v18260_v35  ;;  %v16158_v62 = vadd.f32 %v6493_v43, %v6382_v63  ;;  %v4840_v23 = vpop.f32.mrf.mxu0  ;;  %v4768_v26 = vsel %vm1764_vm4, %v15932_v48, %v4767_v61 }
 0x346   : > { %v5239_v52 = vsub.s32 %v16056_v56, %v5238_v53  ;;  %v5259_v59 = vadd.s32 %v5257_v22, %v5251_v24  ;;  %vm5260_vm12 = vc.u32 %v5258_v16, %v5254_v50  ;;  %4874 = vmatmul.bf16.gmra.mxu0 %v4768_v26  ;;  %v16164_v56 = vld [vmem:[#allocation2 + $0x40] sm:$0xff]  ;;  %v4882_v13 = vadd.f32 %v4840_v23, %v15569_v54 }
 0x347   : > { %v13290_v10 = vpop.eup %13289  ;;  %v5107_v18 = vmul.f32 1.442695, %v5088_v37  ;;  %v5261_v48 = vsel %vm5260_vm12, 1, %v18260_v35  ;;  %v5255_v24 = vshrl.u32 %v5250_v42, 16  ;;  %v18268_v53 = vrot.slane %v16004_v4, 1 }
 0x348   : > { %v5141_v19 = vadd.f32 1.0, %v13290_v10  ;;  %vm5735_vm15 = vcmp.ne.s32.totalorder %v5239_v52, 0  ;;  %vm5753_vm7 = vcmp.lt.s32.totalorder %v5239_v52, 0  ;;  %v5789_v38 = vadd.s32 18, %v5239_v52  ;;  %v5008_v12 = vpop.f32.mrf.mxu1 }
 0x349   : > { %7114 = vmatmul.bf16.vlgmr.msrb.gmra.mxu2 %v15937_v40  ;;  %7284 = vmatmul.bf16.vlgmr.msrb.gmra.mxu3 %v15940_v6  ;;  %13291 = vpow2.f32 %v5107_v18  ;;  %vm16166_vm13 = vmand %vm5753_vm7, %vm5735_vm15  ;;  %v16173_v40 = vadd.s32 144, %v18266_v44  ;;  %v16177_v6 = vadd.f32 %v15834_v57, %v16121_v27  ;;  %v5263_v51 = vadd.s32 %v5261_v48, %v5259_v59  ;;  %v12872_v44 = vld [vmem:[%s18041_s3 + $0x238] sm:$0xff] }
 0x34a   : > { %13293 = vrcp.f32 %v5141_v19  ;;  %v16184_v37 = vsel %vm720_vm1, %v18268_v53, %v18267_v34  ;;  %v5807_v54 = vsel %vm16166_vm13, %v5789_v38, %v5239_v52  ;;  %v5050_v50 = vadd.f32 %v5008_v12, %v4882_v13  ;;  %7918 = vmatpush.bf16.msra.mxu2 %v12872_v44 }
 0x34b   : > { %v5274_v63 = vand.u32 65535, %v16173_v40  ;;  %v5275_v43 = vshrl.u32 %v16173_v40, 16  ;;  %v5264_v57 = vadd.s32 %v5263_v51, %v5253_v2  ;;  %v16193_v27 = vsel %vm1122_vm2, %v16075_v58, %v16154_v32  ;;  %v12856_v51 = vld [vmem:[%s18041_s3 + $0x1b8] sm:$0xff] }
 0x34c   : > { %v18269_v59 = vrot.slane %v16095_v29, 2  ;;  %v18270_v42 = vrot.slane %v16004_v4, 2  ;;  %v16204_v10 = vadd.f32 %v16081_v17, %v5050_v50  ;;  %vm16208_vm9 = vcmp.lt.s32.totalorder %v5807_v54, 16  ;;  %v6385_v12 = vpop.f32.mrf.mxu2  ;;  %7508 = vmatpush.bf16.msra.mxu0 %v12856_v51 }
 0x34d   : > { %v5277_v52 = vmul.u32 14564, %v5274_v63  ;;  %v5278_v18 = vmul.u32 58254, %v5274_v63  ;;  %v16206_v2 = vmul.u32 14564, %v5275_v43  ;;  %v5265_v23 = vadd.s32 %v5264_v57, %v5255_v24  ;;  %v6496_v24 = vpop.f32.mrf.mxu3  ;;  %v12896_v63 = vld [vmem:[%s18041_s3 + $0x78] sm:$0xff] }
 0x34e   : > { %v16200_v61 = vsel %vm1362_vm3, %v18270_v42, %v18269_v59  ;;  %v7023_v4 = vshrl.u32 %v16164_v56, 16  ;;  %v7026_v19 = vshll.u32 %v16164_v56, 16  ;;  %v5089_v5 = vsub.f32 0.0, %v16204_v10  ;;  %v4842_v42 = vpop.f32.mrf.mxu0  ;;  %8519 = vmatpush.bf16.msra.mxu3 %v12896_v63 }
 0x34f   : > { %v13292_v22 = vpop.eup %13291  ;;  %v5280_v48 = vmul.u32 58254, %v5275_v43  ;;  %v5281_v13 = vshll.u32 %v5278_v18, 16  ;;  %v5266_v53 = vshrl.u32 %v5265_v23, 4  ;;  %v5282_v54 = vshrl.u32 %v5278_v18, 16  ;;  %v12864_v43 = vld [vmem:[%s18041_s3 + $0x1f8] sm:$0xff] }
 0x350   : > { %v13294_v26 = vpop.eup %13293  ;;  %v5142_v38 = vadd.f32 1.0, %v13292_v22  ;;  %v5283_v50 = vshll.u32 %v16206_v2, 16  ;;  %v5109_v57 = vmul.f32 1.442695, %v5089_v5  ;;  %v16232_v23 = vadd.f32 %v6496_v24, %v6385_v12  ;;  %7748 = vmatpush.bf16.msra.mxu1 %v12864_v43  ;;  %v18273_v5 = vld [vmem:[#allocation8_spill] sm:$0xff] }
 0x351   : > { %v5177_v34 = vmul.f32 %v13294_v26, %v16114_v31  ;;  %vm5285_vm6 = vc.u32 %v5277_v52, %v5281_v13  ;;  %v5287_v59 = vadd.s32 %v5281_v13, %v5277_v52  ;;  %v5267_v18 = vmul.u32 18, %v5266_v53 }
 0x352   : > { %13295 = vrcp.f32 %v5142_v38  ;;  %v5286_v22 = vsel %vm5285_vm6, 1, %v18260_v35  ;;  %v4883_v58 = vadd.f32 %v4842_v42, %v15878_v30  ;;  %v16239_v13 = vadd.s32 144, %v18273_v5 }
 0x353   : > { %v5879_v31 = vsel %vm16208_vm9, %v5177_v34, 0.0  ;;  %13297 = vpow2.f32 %v5109_v57  ;;  %v5288_v16 = vadd.s32 %v5286_v22, %v5280_v48  ;;  %vm5289_vm10 = vc.u32 %v5287_v59, %v5283_v50  ;;  %6874 = vmatmul.bf16.vlgmr.msrb.gmra.mxu1 %v15921_v46  ;;  %v5010_v34 = vpop.f32.mrf.mxu1 }
 0x354   : > { %v5897_v26 = vpack.c.bf16 %v5879_v31, %v5879_v31  ;;  %v5268_v38 = vsub.s32 %v16132_v3, %v5267_v18  ;;  %v5290_v52 = vsel %vm5289_vm10, 1, %v18260_v35  ;;  %v5284_v12 = vshrl.u32 %v16206_v2, 16  ;;  %v6113_v18 = vld [vmem:[#allocation2 + $0x50] sm:$0xe] }
 0x355   : > { %v5292_v24 = vadd.s32 %v5290_v52, %v5288_v16  ;;  %v5051_v53 = vadd.f32 %v5010_v34, %v4883_v58  ;;  %v5303_v30 = vand.u32 65535, %v16239_v13  ;;  %v5304_v57 = vshrl.u32 %v16239_v13, 16 }
 0x356   : > { %v5916_v44 = vshrl.u32 %v5897_v26, 16  ;;  %v5919_v51 = vshll.u32 %v5897_v26, 16  ;;  %vm5736_vm12 = vcmp.ne.s32.totalorder %v5268_v38, 0  ;;  %vm5754_vm15 = vcmp.lt.s32.totalorder %v5268_v38, 0  ;;  %6642 = vmatmul.bf16.vlgmr.msrb.gmra.mxu0 %v15913_v9 }
 0x357   : > { %v5790_v48 = vadd.s32 18, %v5268_v38  ;;  %vm5772_vm7 = vmand %vm5754_vm15, %vm5736_vm12  ;;  %v5293_v46 = vadd.s32 %v5292_v24, %v5282_v54  ;;  %v16248_v16 = vadd.f32 %v16081_v17, %v5051_v53  ;;  %v7213_v31 = vrot.slane %v16164_v56, 2 }
 0x358   : > { %v13296_v3 = vpop.eup %13295  ;;  %v5918_v50 = vrot.slane %v5916_v44, 6  ;;  %v5921_v63 = vrot.slane %v5919_v51, 7  ;;  %v5306_v58 = vmul.u32 14564, %v5303_v30  ;;  %v16255_v51 = vmul.u32 14564, %v5304_v57 }
 0x359   : > { %7119 = vmatmul.bf16.gmra.mxu2 %v16002_v33  ;;  %7289 = vmatmul.bf16.gmra.mxu3 %v15984_v47  ;;  %v5178_v43 = vmul.f32 %v13296_v3, %v16148_v8  ;;  %v5808_v2 = vsel %vm5772_vm7, %v5790_v48, %v5268_v38  ;;  %v13298_v59 = vpop.eup %13297  ;;  %v5294_v54 = vadd.s32 %v5293_v46, %v5284_v12  ;;  %v5090_v47 = vsub.f32 0.0, %v16248_v16 }
 0x35a   : > { %v5922_v42 = vor.u32 %v5921_v63, %v5918_v50  ;;  %vm5826_vm13 = vcmp.lt.s32.totalorder %v5808_v2, 16  ;;  %v5143_v22 = vadd.f32 1.0, %v13298_v59  ;;  %v5307_v8 = vmul.u32 58254, %v5303_v30  ;;  %v6387_v30 = vpop.f32.mrf.mxu2  ;;  %v6498_v2 = vpop.f32.mrf.mxu3 }
 0x35b   : > { %v5880_v33 = vsel %vm5826_vm13, %v5178_v43, 0.0  ;;  %v5295_v52 = vshrl.u32 %v5294_v54, 4  ;;  %v5111_v44 = vmul.f32 1.442695, %v5090_v47  ;;  %v5309_v53 = vmul.u32 58254, %v5304_v57 }
 0x35c   : > { %v6114_v9 = vsel %vm14379_vm11, %v5922_v42, %v6113_v18  ;;  %v5898_v38 = vpack.c.bf16 %v5880_v33, %v5880_v33  ;;  %v5923_v5 = vrot.slane %v5922_v42, 4  ;;  %13299 = vrcp.f32 %v5143_v22  ;;  %v4845_v18 = vpop.f32.mrf.mxu0  ;;  %v18275_v33 = vld [vmem:[#allocation9_spill] sm:$0xff] }
 0x35d   : > { %6115 = vst [vmem:[#allocation2 + $0x50] sm:$0xe] %v6114_v9  ;;  %v5296_v34 = vmul.u32 18, %v5295_v52  ;;  %v5310_v48 = vshll.u32 %v5307_v8, 16  ;;  %13301 = vpow2.f32 %v5111_v44  ;;  %v5311_v3 = vshrl.u32 %v5307_v8, 16 }
 0x35e   : > { %v5925_v12 = vshrl.u32 %v5898_v38, 16  ;;  %v5928_v24 = vshll.u32 %v5898_v38, 16  ;;  %v5312_v50 = vshll.u32 %v16255_v51, 16  ;;  %v16260_v54 = vadd.f32 %v6498_v2, %v6387_v30 }
 0x35f   : > { %v5297_v43 = vsub.s32 %v16173_v40, %v5296_v34  ;;  %vm5314_vm11 = vc.u32 %v5306_v58, %v5310_v48  ;;  %v5316_v42 = vadd.s32 %v5310_v48, %v5306_v58  ;;  %v16263_v22 = vadd.s32 144, %v18275_v33 }
 0x360   : > { %v5927_v63 = vrot.slane %v5925_v12, 6  ;;  %v5930_v46 = vrot.slane %v5928_v24, 7  ;;  %v5315_v59 = vsel %vm5314_vm11, 1, %v18260_v35  ;;  %v4884_v26 = vadd.f32 %v4845_v18, %v15587_v1  ;;  %v5013_v24 = vpop.f32.mrf.mxu1 }
 0x361   : > { %vm5737_vm9 = vcmp.ne.s32.totalorder %v5297_v43, 0  ;;  %vm5755_vm6 = vcmp.lt.s32.totalorder %v5297_v43, 0  ;;  %v5791_v47 = vadd.s32 18, %v5297_v43  ;;  %v5317_v40 = vadd.s32 %v5315_v59, %v5309_v53 }
 0x362   : > { %v16265_v57 = vor.u32 %v5930_v46, %v5927_v63  ;;  %v13300_v8 = vpop.eup %13299  ;;  %vm5773_vm10 = vmand %vm5755_vm6, %vm5737_vm9  ;;  %vm5318_vm12 = vc.u32 %v5316_v42, %v5312_v50  ;;  %v5332_v9 = vand.u32 65535, %v16263_v22  ;;  %v5313_v12 = vshrl.u32 %v16255_v51, 16 }
 0x363   : > { %v5179_v58 = vmul.f32 %v13300_v8, %v16204_v10  ;;  %v5809_v44 = vsel %vm5773_vm10, %v5791_v47, %v5297_v43  ;;  %v13302_v34 = vpop.eup %13301  ;;  %v5319_v48 = vsel %vm5318_vm12, 1, %v18260_v35  ;;  %v5052_v53 = vadd.f32 %v5013_v24, %v4884_v26  ;;  %6879 = vmatmul.bf16.gmra.mxu1 %v15952_v20  ;;  %v18277_v8 = vld [vmem:[#allocation45_spill] sm:$0xff] }
 0x364   : > { %v5932_v52 = vsel %vm14781_vm14, %v5923_v5, %v16265_v57  ;;  %vm5827_vm15 = vcmp.lt.s32.totalorder %v5809_v44, 16  ;;  %v5333_v1 = vshrl.u32 %v16263_v22, 16  ;;  %v5144_v63 = vadd.f32 1.0, %v13302_v34  ;;  %v4847_v24 = vpop.f32.mrf.mxu0 }
 0x365   : > { %6116 = vst [vmem:[#allocation2 + $0x54] sm:$0xf] %v5932_v52  ;;  %v5881_v50 = vsel %vm5827_vm15, %v5179_v58, 0.0  ;;  %v5321_v46 = vadd.s32 %v5319_v48, %v5317_v40  ;;  %v5335_v5 = vmul.u32 14564, %v5332_v9  ;;  %v16278_v10 = vadd.f32 %v16081_v17, %v5052_v53  ;;  %v12895_v52 = vld [vmem:[%s18041_s3 + $0x70] sm:$0xff] }
 0x366   : > { %v5899_v30 = vpack.c.bf16 %v5881_v50, %v5881_v50  ;;  %v5336_v51 = vmul.u32 58254, %v5332_v9  ;;  %v16280_v43 = vmul.u32 14564, %v5333_v1  ;;  %13303 = vrcp.f32 %v5144_v63  ;;  %6647 = vmatmul.bf16.gmra.mxu0 %v18277_v8  ;;  %v6501_v9 = vpop.f32.mrf.mxu3  ;;  %8520 = vmatpush.bf16.msra.mxu3 %v12895_v52 }
 0x367   : > { %v5322_v2 = vadd.s32 %v5321_v46, %v5311_v3  ;;  %v5338_v59 = vmul.u32 58254, %v5333_v1  ;;  %v7025_v20 = vrot.slane %v7023_v4, 1  ;;  %v5091_v33 = vsub.f32 0.0, %v16278_v10  ;;  %v12855_v4 = vld [vmem:[%s18041_s3 + $0x1b0] sm:$0xff] }
 0x368   : > { %v5935_v42 = vshrl.u32 %v5899_v30, 16  ;;  %v5938_v18 = vshll.u32 %v5899_v30, 16  ;;  %v5339_v47 = vshll.u32 %v5336_v51, 16  ;;  %v5933_v40 = vrot.slane %v16265_v57, 4  ;;  %7509 = vmatpush.bf16.msra.mxu0 %v12855_v4  ;;  %v5015_v8 = vpop.f32.mrf.mxu1 }
 0x369   : > { %7124 = vmatmul.bf16.gmra.mxu2 %v16059_v7  ;;  %7294 = vmatmul.bf16.gmra.mxu3 %v16050_v36  ;;  %v5323_v26 = vadd.s32 %v5322_v2, %v5313_v12  ;;  %v5341_v3 = vshll.u32 %v16280_v43, 16  ;;  %v12871_v7 = vld [vmem:[%s18041_s3 + $0x230] sm:$0xff]  ;;  %v6390_v36 = vpop.f32.mrf.mxu2  ;;  %v7028_v57 = vrot.slane %v7026_v19, 2  ;;  %v5113_v12 = vmul.f32 1.442695, %v5091_v33 }
 0x36a   : > { %v5937_v58 = vrot.slane %v5935_v42, 6  ;;  %v5940_v44 = vrot.slane %v5938_v18, 7  ;;  %vm5343_vm7 = vc.u32 %v5335_v5, %v5339_v47  ;;  %v5345_v53 = vadd.s32 %v5339_v47, %v5335_v5  ;;  %7919 = vmatpush.bf16.msra.mxu2 %v12871_v7  ;;  %v18278_v42 = vld [vmem:[#allocation11_spill] sm:$0xff] }
 0x36b   : > { %v5324_v34 = vshrl.u32 %v5323_v26, 4  ;;  %v5344_v48 = vsel %vm5343_vm7, 1, %v18260_v35  ;;  %v16302_v1 = vadd.f32 %v6501_v9, %v6390_v36  ;;  %13305 = vpow2.f32 %v5113_v12 }
 0x36c   : > { %v16304_v50 = vor.u32 %v5940_v44, %v5937_v58  ;;  %v5346_v63 = vadd.s32 %v5344_v48, %v5338_v59  ;;  %v4885_v19 = vadd.f32 %v4847_v24, %v15903_v11  ;;  %v13304_v46 = vpop.eup %13303  ;;  %v5340_v2 = vshrl.u32 %v5336_v51, 16 }
 0x36d   : > { %v5325_v30 = vmul.u32 18, %v5324_v34  ;;  %vm5347_vm13 = vc.u32 %v5345_v53, %v5341_v3  ;;  %v16308_v18 = vadd.s32 144, %v18278_v42  ;;  %v5342_v33 = vshrl.u32 %v16280_v43, 16  ;;  %v12863_v42 = vld [vmem:[%s18041_s3 + $0x1f0] sm:$0xff] }
 0x36e   : > { %v5942_v5 = vsel %vm14781_vm14, %v5933_v40, %v16304_v50  ;;  %v5348_v47 = vsel %vm5347_vm13, 1, %v18260_v35  ;;  %v18279_v59 = vrot.slane %v16164_v56, 1  ;;  %v18280_v11 = vrot.slane %v16095_v29, 1  ;;  %7749 = vmatpush.bf16.msra.mxu1 %v12863_v42 }
 0x36f   : > { %6117 = vst [vmem:[#allocation2 + $0x58] sm:$0xf] %v5942_v5  ;;  %v5326_v51 = vsub.s32 %v16239_v13, %v5325_v30  ;;  %v5350_v3 = vadd.s32 %v5348_v47, %v5346_v63  ;;  %v5053_v7 = vadd.f32 %v5015_v8, %v4885_v19  ;;  %v5361_v36 = vand.u32 65535, %v16308_v18  ;;  %v6503_v5 = vpop.f32.mrf.mxu3 }
 0x370   : > { %v16320_v26 = vsel %vm720_vm1, %v18280_v11, %v18279_v59  ;;  %v5180_v40 = vmul.f32 %v13304_v46, %v16248_v16  ;;  %v5362_v43 = vshrl.u32 %v16308_v18, 16  ;;  %v16326_v9 = vor.u32 %v7028_v57, %v7025_v20  ;;  %v4850_v59 = vpop.f32.mrf.mxu0 }
 0x371   : > { %v18281_v4 = vrot.slane %v16095_v29, 2  ;;  %vm5738_vm11 = vcmp.ne.s32.totalorder %v5326_v51, 0  ;;  %vm5756_vm9 = vcmp.lt.s32.totalorder %v5326_v51, 0  ;;  %v5792_v13 = vadd.s32 18, %v5326_v51  ;;  %v13306_v44 = vpop.eup %13305 }
 0x372   : > { %v5351_v58 = vadd.s32 %v5350_v3, %v5340_v2  ;;  %vm5774_vm6 = vmand %vm5756_vm9, %vm5738_vm11  ;;  %v16336_v12 = vadd.f32 %v16081_v17, %v5053_v7  ;;  %v5364_v16 = vmul.u32 14564, %v5361_v36  ;;  %v5365_v24 = vmul.u32 58254, %v5361_v36 }
 0x373   : > { %v16333_v52 = vsel %vm1362_vm3, %v18281_v4, %v7213_v31  ;;  %v16338_v20 = vmul.u32 14564, %v5362_v43  ;;  %v5943_v57 = vrot.slane %v16304_v50, 4  ;;  %v5810_v34 = vsel %vm5774_vm6, %v5792_v13, %v5326_v51  ;;  %6884 = vmatmul.bf16.gmra.mxu1 %v16045_v0  ;;  %v6392_v50 = vpop.f32.mrf.mxu2  ;;  %v18283_v13 = vld [vmem:[#allocation44_spill] sm:$0xff] }
 0x374   : > { %v5145_v29 = vadd.f32 1.0, %v13306_v44  ;;  %v5352_v48 = vadd.s32 %v5351_v58, %v5342_v33  ;;  %vm5828_vm10 = vcmp.lt.s32.totalorder %v5810_v34, 16  ;;  %v5092_v53 = vsub.f32 0.0, %v16336_v12  ;;  %v18284_v44 = vld [vmem:[#allocation12_spill] sm:$0xff] }
 0x375   : > { %v5367_v63 = vmul.u32 58254, %v5362_v43  ;;  %v5368_v19 = vshll.u32 %v5365_v24, 16  ;;  %v5882_v46 = vsel %vm5828_vm10, %v5180_v40, 0.0  ;;  %v5370_v2 = vshll.u32 %v16338_v20, 16  ;;  %v18282_v43 = vld [vmem:[#allocation46_spill] sm:$0xff] }
 0x376   : > { %13307 = vrcp.f32 %v5145_v29  ;;  %v5353_v30 = vshrl.u32 %v5352_v48, 4  ;;  %v5900_v47 = vpack.c.bf16 %v5882_v46, %v5882_v46  ;;  %v5115_v33 = vmul.f32 1.442695, %v5092_v53  ;;  %6652 = vmatmul.bf16.gmra.mxu0 %v18282_v43  ;;  %v16360_v48 = vld [vmem:[#allocation2 + $0x48] sm:$0xff] }
 0x377   : > { %v5369_v8 = vshrl.u32 %v5365_v24, 16  ;;  %vm5372_vm12 = vc.u32 %v5364_v16, %v5368_v19  ;;  %v5374_v0 = vadd.s32 %v5368_v19, %v5364_v16  ;;  %v16348_v3 = vadd.f32 %v6503_v5, %v6392_v50 }
 0x378   : > { %v5354_v11 = vmul.u32 18, %v5353_v30  ;;  %v5373_v51 = vsel %vm5372_vm12, 1, %v18260_v35  ;;  %v5945_v7 = vshrl.u32 %v5900_v47, 16  ;;  %v5948_v36 = vshll.u32 %v5900_v47, 16 }
 0x379   : > { %7129 = vmatmul.bf16.gmra.mxu2 %v16090_v28  ;;  %13309 = vpow2.f32 %v5115_v33  ;;  %v5375_v40 = vadd.s32 %v5373_v51, %v5367_v63  ;;  %7299 = vmatmul.bf16.gmra.mxu3 %v16093_v15  ;;  %vm5376_vm15 = vc.u32 %v5374_v0, %v5370_v2  ;;  %v4886_v58 = vadd.f32 %v4850_v59, %v18283_v13 }
 0x37a   : > { %v5355_v4 = vsub.s32 %v16263_v22, %v5354_v11  ;;  %v16356_v16 = vadd.s32 144, %v18284_v44  ;;  %v5947_v24 = vrot.slane %v5945_v7, 6  ;;  %v5950_v34 = vrot.slane %v5948_v36, 7  ;;  %v5018_v22 = vpop.f32.mrf.mxu1 }
 0x37b   : > { %v5371_v28 = vshrl.u32 %v16338_v20, 16  ;;  %v5377_v29 = vsel %vm5376_vm15, 1, %v18260_v35  ;;  %v5054_v30 = vadd.f32 %v5018_v22, %v4886_v58  ;;  %v16368_v5 = vsel %vm1122_vm2, %v16154_v32, %v16326_v9  ;;  %v12870_v22 = vld [vmem:[%s18041_s3 + $0x228] sm:$0xff] }
 0x37c   : > { %v13308_v53 = vpop.eup %13307  ;;  %vm5739_vm7 = vcmp.ne.s32.totalorder %v5355_v4, 0  ;;  %vm5757_vm13 = vcmp.lt.s32.totalorder %v5355_v4, 0  ;;  %v5793_v15 = vadd.s32 18, %v5355_v4  ;;  %v5379_v63 = vadd.s32 %v5377_v29, %v5375_v40  ;;  %7920 = vmatpush.bf16.msra.mxu2 %v12870_v22 }
 0x37d   : > { %v5951_v19 = vor.u32 %v5950_v34, %v5947_v24  ;;  %v5181_v46 = vmul.f32 %v13308_v53, %v16278_v10  ;;  %vm5775_vm11 = vmand %vm5757_vm13, %vm5739_vm7  ;;  %v5390_v2 = vand.u32 65535, %v16356_v16  ;;  %v5391_v20 = vshrl.u32 %v16356_v16, 16 }
 0x37e   : > { %v5811_v42 = vsel %vm5775_vm11, %v5793_v15, %v5355_v4  ;;  %v5380_v50 = vadd.s32 %v5379_v63, %v5369_v8  ;;  %v16373_v10 = vadd.f32 %v16081_v17, %v5054_v30  ;;  %v6805_v59 = vrot.slane %v16360_v48, 1  ;;  %v6395_v15 = vpop.f32.mrf.mxu2  ;;  %v6506_v63 = vpop.f32.mrf.mxu3 }
 0x37f   : > { %v13310_v47 = vpop.eup %13309  ;;  %v5952_v33 = vsel %vm14781_vm14, %v5943_v57, %v5951_v19  ;;  %vm5829_vm9 = vcmp.lt.s32.totalorder %v5811_v42, 16  ;;  %v5393_v0 = vmul.u32 14564, %v5390_v2  ;;  %v5394_v32 = vmul.u32 58254, %v5390_v2  ;;  %v4852_v2 = vpop.f32.mrf.mxu0 }
 0x380   : > { %6118 = vst [vmem:[#allocation2 + $0x5c] sm:$0xf] %v5952_v33  ;;  %v5883_v11 = vsel %vm5829_vm9, %v5181_v46, 0.0  ;;  %v5146_v8 = vadd.f32 1.0, %v13310_v47  ;;  %v5381_v51 = vadd.s32 %v5380_v50, %v5371_v28  ;;  %v5093_v36 = vsub.f32 0.0, %v16373_v10 }
 0x381   : > { %v5901_v7 = vpack.c.bf16 %v5883_v11, %v5883_v11  ;;  %v16377_v40 = vmul.u32 14564, %v5391_v20  ;;  %v5396_v57 = vmul.u32 58254, %v5391_v20  ;;  %v7032_v4 = vshrl.u32 %v16360_v48, 16  ;;  %v18285_v11 = vld [vmem:[#allocation17_spill] sm:$0xff] }
 0x382   : > { %13311 = vrcp.f32 %v5146_v8  ;;  %v5382_v43 = vshrl.u32 %v5381_v51, 4  ;;  %v5117_v44 = vmul.f32 1.442695, %v5093_v36  ;;  %v5397_v24 = vshll.u32 %v5394_v32, 16  ;;  %v18286_v51 = vld [vmem:[#allocation15_spill] sm:$0xff] }
 0x383   : > { %v5955_v13 = vshrl.u32 %v5901_v7, 16  ;;  %v5958_v58 = vshll.u32 %v5901_v7, 16  ;;  %v5953_v34 = vrot.slane %v5951_v19, 4  ;;  %v5398_v53 = vshrl.u32 %v5394_v32, 16  ;;  %6889 = vmatmul.bf16.gmra.mxu1 %v16087_v60 }
 0x384   : > { %v5383_v29 = vmul.u32 18, %v5382_v43  ;;  %v5399_v28 = vshll.u32 %v16377_v40, 16  ;;  %13313 = vpow2.f32 %v5117_v44  ;;  %vm5401_vm6 = vc.u32 %v5393_v0, %v5397_v24 }
 0x385   : > { %v5957_v46 = vrot.slane %v5955_v13, 6  ;;  %v5960_v30 = vrot.slane %v5958_v58, 7  ;;  %v5402_v19 = vsel %vm5401_vm6, 1, %v18260_v35  ;;  %v5403_v50 = vadd.s32 %v5397_v24, %v5393_v0  ;;  %v18287_v13 = vld [vmem:[#allocation48_spill] sm:$0xff] }
 0x386   : > { %v5384_v42 = vsub.s32 %v16308_v18, %v5383_v29  ;;  %v16387_v20 = vadd.f32 %v6506_v63, %v6395_v15  ;;  %v5404_v33 = vadd.s32 %v5402_v19, %v5396_v57  ;;  %v4887_v8 = vadd.f32 %v4852_v2, %v18285_v11  ;;  %v5020_v57 = vpop.f32.mrf.mxu1  ;;  %6657 = vmatmul.bf16.gmra.mxu0 %v18287_v13 }
 0x387   : > { %v16389_v47 = vor.u32 %v5960_v30, %v5957_v46  ;;  %v16393_v7 = vadd.s32 144, %v18286_v51  ;;  %vm5405_vm15 = vc.u32 %v5403_v50, %v5399_v28  ;;  %v5400_v32 = vshrl.u32 %v16377_v40, 16  ;;  %v4855_v13 = vpop.f32.mrf.mxu0 }
 0x388   : > { %v13312_v36 = vpop.eup %13311  ;;  %vm5740_vm10 = vcmp.ne.s32.totalorder %v5384_v42, 0  ;;  %vm5758_vm12 = vcmp.lt.s32.totalorder %v5384_v42, 0  ;;  %v5794_v60 = vadd.s32 18, %v5384_v42  ;;  %v5406_v43 = vsel %vm5405_vm15, 1, %v18260_v35 }
 0x389   : > { %7134 = vmatmul.bf16.gmra.mxu2 %v16106_v45  ;;  %v5962_v18 = vsel %vm14781_vm14, %v5953_v34, %v16389_v47  ;;  %v5182_v0 = vmul.f32 %v13312_v36, %v16336_v12  ;;  %vm5776_vm7 = vmand %vm5758_vm12, %vm5740_vm10  ;;  %7304 = vmatmul.bf16.gmra.mxu3 %v16111_v39  ;;  %v5408_v44 = vadd.s32 %v5406_v43, %v5404_v33  ;;  %v5419_v24 = vand.u32 65535, %v16393_v7  ;;  %v12894_v36 = vld [vmem:[%s18041_s3 + $0x68] sm:$0xff] }
 0x38a   : > { %6119 = vst [vmem:[#allocation2 + $0x60] sm:$0xf] %v5962_v18  ;;  %v5812_v58 = vsel %vm5776_vm7, %v5794_v60, %v5384_v42  ;;  %v5055_v45 = vadd.f32 %v5020_v57, %v4887_v8  ;;  %v13314_v29 = vpop.eup %13313  ;;  %v5420_v12 = vshrl.u32 %v16393_v7, 16  ;;  %v7035_v34 = vshll.u32 %v16360_v48, 16  ;;  %v6397_v60 = vpop.f32.mrf.mxu2  ;;  %v12862_v57 = vld [vmem:[%s18041_s3 + $0x1e8] sm:$0xff]  ;;  %8521 = vmatpush.bf16.msra.mxu3 %v12894_v36 }
 0x38b   : > { %vm5830_vm13 = vcmp.lt.s32.totalorder %v5812_v58, 16  ;;  %v7215_v40 = vrot.slane %v16360_v48, 2  ;;  %v5147_v15 = vadd.f32 1.0, %v13314_v29  ;;  %v5409_v63 = vadd.s32 %v5408_v44, %v5398_v53  ;;  %v12854_v53 = vld [vmem:[%s18041_s3 + $0x1a8] sm:$0xff]  ;;  %v6508_v18 = vpop.f32.mrf.mxu3  ;;  %7750 = vmatpush.bf16.msra.mxu1 %v12862_v57 }
 0x38c   : > { %v5884_v28 = vsel %vm5830_vm13, %v5182_v0, 0.0  ;;  %v16409_v22 = vadd.f32 %v16081_v17, %v5055_v45  ;;  %v5422_v46 = vmul.u32 14564, %v5419_v24  ;;  %v5423_v30 = vmul.u32 58254, %v5419_v24  ;;  %7510 = vmatpush.bf16.msra.mxu0 %v12854_v53  ;;  %v6724_v24 = vld [vmem:[#allocation2 + $0x50] sm:$0x1] }
 0x38d   : > { %v5902_v39 = vpack.c.bf16 %v5884_v28, %v5884_v28  ;;  %v16411_v2 = vmul.u32 14564, %v5420_v12  ;;  %v5963_v42 = vrot.slane %v16389_v47, 4  ;;  %13315 = vrcp.f32 %v5147_v15 }
 0x38e   : > { %v5410_v19 = vadd.s32 %v5409_v63, %v5400_v32  ;;  %v5094_v50 = vsub.f32 0.0, %v16409_v22  ;;  %v5425_v8 = vmul.u32 58254, %v5420_v12  ;;  %v5426_v51 = vshll.u32 %v5423_v30, 16 }
 0x38f   : > { %v5965_v33 = vshrl.u32 %v5902_v39, 16  ;;  %v5968_v11 = vshll.u32 %v5902_v39, 16  ;;  %v5427_v43 = vshrl.u32 %v5423_v30, 16  ;;  %v5428_v32 = vshll.u32 %v16411_v2, 16  ;;  %v18288_v39 = vld [vmem:[#allocation47_spill] sm:$0xff] }
 0x390   : > { %v5411_v0 = vshrl.u32 %v5410_v19, 4  ;;  %v5119_v47 = vmul.f32 1.442695, %v5094_v50  ;;  %vm5430_vm11 = vc.u32 %v5422_v46, %v5426_v51  ;;  %v5432_v45 = vadd.s32 %v5426_v51, %v5422_v46 }
 0x391   : > { %v5967_v58 = vrot.slane %v5965_v33, 6  ;;  %v5970_v44 = vrot.slane %v5968_v11, 7  ;;  %v5431_v12 = vsel %vm5430_vm11, 1, %v18260_v35  ;;  %v16426_v28 = vadd.f32 %v6508_v18, %v6397_v60  ;;  %v18289_v33 = vld [vmem:[#allocation18_spill] sm:$0xff]  ;;  %v5023_v18 = vpop.f32.mrf.mxu1 }
 0x392   : > { %v5412_v29 = vmul.u32 18, %v5411_v0  ;;  %13317 = vpow2.f32 %v5119_v47  ;;  %v5433_v63 = vadd.s32 %v5431_v12, %v5425_v8  ;;  %vm5434_vm9 = vc.u32 %v5432_v45, %v5428_v32 }
 0x393   : > { %v16428_v15 = vor.u32 %v5970_v44, %v5967_v58  ;;  %v4888_v30 = vadd.f32 %v4855_v13, %v18288_v39  ;;  %v13316_v19 = vpop.eup %13315  ;;  %v5435_v46 = vsel %vm5434_vm9, 1, %v18260_v35  ;;  %v16434_v11 = vadd.s32 144, %v18289_v33  ;;  %6894 = vmatmul.bf16.gmra.mxu1 %v16100_v41 }
 0x394   : > { %v5413_v50 = vsub.s32 %v16356_v16, %v5412_v29  ;;  %v6779_v51 = vunpack.c.l.b16 %v6724_v24  ;;  %v5183_v36 = vmul.f32 %v13316_v19, %v16373_v10  ;;  %v5429_v8 = vshrl.u32 %v16411_v2, 16  ;;  %v18290_v24 = vld [vmem:[#allocation50_spill] sm:$0xff] }
 0x395   : > { %v5972_v53 = vsel %vm14781_vm14, %v5963_v42, %v16428_v15  ;;  %v5437_v60 = vadd.s32 %v5435_v46, %v5433_v63  ;;  %v5056_v0 = vadd.f32 %v5023_v18, %v4888_v30  ;;  %v5448_v32 = vand.u32 65535, %v16434_v11  ;;  %v4857_v18 = vpop.f32.mrf.mxu0 }
 0x396   : > { %6120 = vst [vmem:[#allocation2 + $0x64] sm:$0xf] %v5972_v53  ;;  %vm5741_vm6 = vcmp.ne.s32.totalorder %v5413_v50, 0  ;;  %vm5759_vm10 = vcmp.lt.s32.totalorder %v5413_v50, 0  ;;  %v5795_v16 = vadd.s32 18, %v5413_v50  ;;  %v5449_v57 = vshrl.u32 %v16434_v11, 16  ;;  %6662 = vmatmul.bf16.gmra.mxu0 %v18290_v24 }
 0x397   : > { %vm5777_vm12 = vmand %vm5759_vm10, %vm5741_vm6  ;;  %v5438_v47 = vadd.s32 %v5437_v60, %v5427_v43  ;;  %v16446_v10 = vrot.slane %v7032_v4, 1  ;;  %v16449_v13 = vadd.f32 %v16081_v17, %v5056_v0  ;;  %v16454_v41 = vrot.slane %v7035_v34, 2 }
 0x398   : > { %v13318_v2 = vpop.eup %13317  ;;  %v5813_v42 = vsel %vm5777_vm12, %v5795_v16, %v5413_v50  ;;  %v16456_v43 = vpack.c.b16 %v6779_v51, %v6779_v51  ;;  %v5451_v45 = vmul.u32 14564, %v5448_v32  ;;  %v5452_v29 = vmul.u32 58254, %v5448_v32 }
 0x399   : > { %7139 = vmatmul.bf16.gmra.mxu2 %v16193_v27  ;;  %vm5831_vm15 = vcmp.lt.s32.totalorder %v5813_v42, 16  ;;  %v5148_v58 = vadd.f32 1.0, %v13318_v2  ;;  %v5439_v44 = vadd.s32 %v5438_v47, %v5429_v8  ;;  %7309 = vmatmul.bf16.gmra.mxu3 %v16200_v61  ;;  %v5095_v17 = vsub.f32 0.0, %v16449_v13  ;;  %v6400_v8 = vpop.f32.mrf.mxu2  ;;  %v6511_v61 = vpop.f32.mrf.mxu3  ;;  %v18291_v2 = vld [vmem:[#allocation20_spill] sm:$0xff] }
 0x39a   : > { %v5885_v4 = vsel %vm5831_vm15, %v5183_v36, 0.0  ;;  %v5453_v12 = vmul.u32 14564, %v5449_v57  ;;  %v5973_v27 = vrot.slane %v16428_v15, 4  ;;  %v5454_v30 = vmul.u32 58254, %v5449_v57  ;;  %v5025_v24 = vpop.f32.mrf.mxu1 }
 0x39b   : > { %v5903_v63 = vpack.c.bf16 %v5885_v4, %v5885_v4  ;;  %13319 = vrcp.f32 %v5148_v58  ;;  %v5440_v34 = vshrl.u32 %v5439_v44, 4  ;;  %v5121_v39 = vmul.f32 1.442695, %v5095_v17 }
 0x39c   : > { %v5455_v19 = vshll.u32 %v5452_v29, 16  ;;  %v5457_v50 = vshll.u32 %v5453_v12, 16  ;;  %v5456_v53 = vshrl.u32 %v5452_v29, 16  ;;  %v16462_v60 = vadd.f32 %v6511_v61, %v6400_v8 }
 0x39d   : > { %v5975_v46 = vshrl.u32 %v5903_v63, 16  ;;  %v5978_v33 = vshll.u32 %v5903_v63, 16  ;;  %v5441_v51 = vmul.u32 18, %v5440_v34  ;;  %13321 = vpow2.f32 %v5121_v39 }
 0x39e   : > { %vm5459_vm7 = vc.u32 %v5451_v45, %v5455_v19  ;;  %v5461_v36 = vadd.s32 %v5455_v19, %v5451_v45  ;;  %v4889_v57 = vadd.f32 %v4857_v18, %v16030_v55  ;;  %v16468_v42 = vadd.s32 144, %v18291_v2 }
 0x39f   : > { %v5977_v15 = vrot.slane %v5975_v46, 6  ;;  %v5980_v16 = vrot.slane %v5978_v33, 7  ;;  %v5442_v0 = vsub.s32 %v16393_v7, %v5441_v51  ;;  %v5460_v47 = vsel %vm5459_vm7, 1, %v18260_v35 }
 0x3a0   : > { %v5462_v32 = vadd.s32 %v5460_v47, %v5454_v30  ;;  %vm5463_vm13 = vc.u32 %v5461_v36, %v5457_v50  ;;  %v5057_v17 = vadd.f32 %v5025_v24, %v4889_v57  ;;  %v5477_v29 = vand.u32 65535, %v16468_v42  ;;  %v12869_v47 = vld [vmem:[%s18041_s3 + $0x220] sm:$0xff] }
 0x3a1   : > { %v13320_v58 = vpop.eup %13319  ;;  %v16470_v44 = vor.u32 %v5980_v16, %v5977_v15  ;;  %vm5742_vm11 = vcmp.ne.s32.totalorder %v5442_v0, 0  ;;  %vm5760_vm9 = vcmp.lt.s32.totalorder %v5442_v0, 0  ;;  %v5796_v45 = vadd.s32 18, %v5442_v0  ;;  %v6513_v24 = vpop.f32.mrf.mxu3  ;;  %7921 = vmatpush.bf16.msra.mxu2 %v12869_v47 }
 0x3a2   : > { %v5184_v4 = vmul.f32 %v13320_v58, %v16409_v22  ;;  %vm5778_vm6 = vmand %vm5760_vm9, %vm5742_vm11  ;;  %v5464_v7 = vsel %vm5463_vm13, 1, %v18260_v35  ;;  %v5458_v34 = vshrl.u32 %v5453_v12, 16  ;;  %v16481_v22 = vld [vmem:[%s18040_s2] ss:$0 sm:$0xff]  ;;  %v5478_v50 = vshrl.u32 %v16468_v42, 16  ;;  %v5028_v47 = vpop.f32.mrf.mxu1 }
 0x3a3   : > { %v5982_v55 = vsel %vm14781_vm14, %v5973_v27, %v16470_v44  ;;  %v5814_v63 = vsel %vm5778_vm6, %v5796_v45, %v5442_v0  ;;  %v5466_v39 = vadd.s32 %v5464_v7, %v5462_v32  ;;  %v13322_v30 = vpop.eup %13321  ;;  %v16484_v19 = vadd.f32 %v16481_v22, %v5057_v17  ;;  %6899 = vmatmul.bf16.gmra.mxu1 %v16184_v37  ;;  %v12893_v37 = vld [vmem:[%s18041_s3 + $0x60] sm:$0xff]  ;;  %v6402_v45 = vpop.f32.mrf.mxu2 }
 0x3a4   : > { %6121 = vst [vmem:[#allocation2 + $0x68] sm:$0xf] %v5982_v55  ;;  %vm5832_vm10 = vcmp.lt.s32.totalorder %v5814_v63, 16  ;;  %v5480_v46 = vmul.u32 14564, %v5477_v29  ;;  %v5149_v51 = vadd.f32 1.0, %v13322_v30  ;;  %v5481_v8 = vmul.u32 58254, %v5477_v29  ;;  %v4860_v29 = vpop.f32.mrf.mxu0  ;;  %8522 = vmatpush.bf16.msra.mxu3 %v12893_v37 }
 0x3a5   : > { %v5886_v33 = vsel %vm5832_vm10, %v5184_v4, 0.0  ;;  %v5467_v27 = vadd.s32 %v5466_v39, %v5456_v53  ;;  %v5983_v12 = vrot.slane %v16470_v44, 4  ;;  %v5096_v36 = vsub.f32 0.0, %v16484_v19  ;;  %v12853_v53 = vld [vmem:[%s18041_s3 + $0x1a0] sm:$0xff] }
 0x3a6   : > { %v5904_v61 = vpack.c.bf16 %v5886_v33, %v5886_v33  ;;  %v16490_v18 = vmul.u32 14564, %v5478_v50  ;;  %13323 = vrcp.f32 %v5149_v51  ;;  %v5483_v16 = vmul.u32 58254, %v5478_v50  ;;  %v12861_v44 = vld [vmem:[%s18041_s3 + $0x1e0] sm:$0xff]  ;;  %7511 = vmatpush.bf16.msra.mxu0 %v12853_v53 }
 0x3a7   : > { %v5468_v15 = vadd.s32 %v5467_v27, %v5458_v34  ;;  %v5484_v0 = vshll.u32 %v5481_v8, 16  ;;  %v5123_v2 = vmul.f32 1.442695, %v5096_v36  ;;  %v5485_v7 = vshrl.u32 %v5481_v8, 16  ;;  %7751 = vmatpush.bf16.msra.mxu1 %v12861_v44  ;;  %v18293_v51 = vld [vmem:[#allocation49_spill] sm:$0xff]  ;;  %v18294_v8 = vld [vmem:[#allocation23_spill] sm:$0xff] }
 0x3a8   : > { %v5985_v32 = vshrl.u32 %v5904_v61, 16  ;;  %v5988_v57 = vshll.u32 %v5904_v61, 16  ;;  %v5486_v58 = vshll.u32 %v16490_v18, 16  ;;  %v16507_v50 = vadd.f32 %v6513_v24, %v6402_v45 }
 0x3a9   : > { %7144 = vmatmul.bf16.gmra.mxu2 %v16368_v5  ;;  %v5469_v4 = vshrl.u32 %v5468_v15, 4  ;;  %vm5488_vm12 = vc.u32 %v5480_v46, %v5484_v0  ;;  %v5490_v17 = vadd.s32 %v5484_v0, %v5480_v46  ;;  %13325 = vpow2.f32 %v5123_v2  ;;  %v18292_v5 = vld [vmem:[#allocation52_spill] sm:$0xff]  ;;  %7314 = vmatmul.bf16.gmra.mxu3 %v16333_v52 }
 0x3aa   : > { %v5987_v55 = vrot.slane %v5985_v32, 6  ;;  %v5990_v63 = vrot.slane %v5988_v57, 7  ;;  %v5489_v34 = vsel %vm5488_vm12, 1, %v18260_v35  ;;  %6667 = vmatmul.bf16.gmra.mxu0 %v18292_v5  ;;  %v4890_v27 = vadd.f32 %v4860_v29, %v18293_v51 }
 0x3ab   : > { %v5470_v39 = vmul.u32 18, %v5469_v4  ;;  %v5491_v30 = vadd.s32 %v5489_v34, %v5483_v16  ;;  %vm5492_vm15 = vc.u32 %v5490_v17, %v5486_v58  ;;  %v16516_v61 = vadd.s32 144, %v18294_v8  ;;  %v6405_v8 = vpop.f32.mrf.mxu2 }
 0x3ac   : > { %v16511_v46 = vor.u32 %v5990_v63, %v5987_v55  ;;  %v5493_v33 = vsel %vm5492_vm15, 1, %v18260_v35  ;;  %v13324_v36 = vpop.eup %13323  ;;  %v5487_v16 = vshrl.u32 %v16490_v18, 16  ;;  %v16522_v53 = vor.u32 %v16454_v41, %v16446_v10 }
 0x3ad   : > { %v5471_v15 = vsub.s32 %v16434_v11, %v5470_v39  ;;  %v5495_v0 = vadd.s32 %v5493_v33, %v5491_v30  ;;  %v5185_v37 = vmul.f32 %v13324_v36, %v16449_v13  ;;  %v5058_v32 = vadd.f32 %v5028_v47, %v4890_v27 }
 0x3ae   : > { %v5992_v52 = vsel %vm14781_vm14, %v5983_v12, %v16511_v46  ;;  %v16533_v11 = vsel %vm1362_vm3, %v7213_v31, %v7215_v40  ;;  %v5506_v13 = vand.u32 65535, %v16516_v61  ;;  %v5507_v12 = vshrl.u32 %v16516_v61, 16 }
 0x3af   : > { %6122 = vst [vmem:[#allocation2 + $0x6c] sm:$0xf] %v5992_v52  ;;  %vm5743_vm7 = vcmp.ne.s32.totalorder %v5471_v15, 0  ;;  %vm5761_vm13 = vcmp.lt.s32.totalorder %v5471_v15, 0  ;;  %v5797_v18 = vadd.s32 18, %v5471_v15  ;;  %v5496_v10 = vadd.s32 %v5495_v0, %v5485_v7  ;;  %v13326_v41 = vpop.eup %13325 }
 0x3b0   : > { %vm5779_vm11 = vmand %vm5761_vm13, %vm5743_vm7  ;;  %v16536_v57 = vadd.f32 %v16481_v22, %v5058_v32  ;;  %v6807_v2 = vrot.slane %v16456_v43, 1  ;;  %v5150_v44 = vadd.f32 1.0, %v13326_v41  ;;  %v7039_v45 = vsel %vm1122_vm2, %v16326_v9, %v16522_v53  ;;  %v6516_v9 = vpop.f32.mrf.mxu3  ;;  %v12868_v43 = vld [vmem:[%s18041_s3 + $0x218] sm:$0xff] }
 0x3b1   : > { %v5815_v58 = vsel %vm5779_vm11, %v5797_v18, %v5471_v15  ;;  %v5497_v31 = vadd.s32 %v5496_v10, %v5487_v16  ;;  %v5509_v4 = vmul.u32 14564, %v5506_v13  ;;  %v5510_v7 = vmul.u32 58254, %v5506_v13  ;;  %v4862_v16 = vpop.f32.mrf.mxu0  ;;  %v5030_v13 = vpop.f32.mrf.mxu1  ;;  %7922 = vmatpush.bf16.msra.mxu2 %v12868_v43 }
 0x3b2   : > { %vm5833_vm9 = vcmp.lt.s32.totalorder %v5815_v58, 16  ;;  %v5097_v24 = vsub.f32 0.0, %v16536_v57  ;;  %13327 = vrcp.f32 %v5150_v44  ;;  %v5511_v55 = vmul.u32 14564, %v5507_v12 }
 0x3b3   : > { %v5887_v17 = vsel %vm5833_vm9, %v5185_v37, 0.0  ;;  %v5498_v29 = vshrl.u32 %v5497_v31, 4  ;;  %v5512_v39 = vmul.u32 58254, %v5507_v12  ;;  %v5513_v30 = vshll.u32 %v5510_v7, 16  ;;  %6904 = vmatmul.bf16.gmra.mxu1 %v16320_v26 }
 0x3b4   : > { %v5905_v63 = vpack.c.bf16 %v5887_v17, %v5887_v17  ;;  %v5125_v34 = vmul.f32 1.442695, %v5097_v24  ;;  %v5993_v5 = vrot.slane %v16511_v46, 4  ;;  %v5514_v51 = vshrl.u32 %v5510_v7, 16  ;;  %v18295_v7 = vld [vmem:[#allocation25_spill] sm:$0xff] }
 0x3b5   : > { %v5499_v33 = vmul.u32 18, %v5498_v29  ;;  %v5515_v27 = vshll.u32 %v5511_v55, 16  ;;  %vm5517_vm6 = vc.u32 %v5509_v4, %v5513_v30  ;;  %v5519_v52 = vadd.s32 %v5513_v30, %v5509_v4 }
 0x3b6   : > { %v5995_v36 = vshrl.u32 %v5905_v63, 16  ;;  %v5998_v15 = vshll.u32 %v5905_v63, 16  ;;  %13329 = vpow2.f32 %v5125_v34  ;;  %v5518_v47 = vsel %vm5517_vm6, 1, %v18260_v35 }
 0x3b7   : > { %v5500_v0 = vsub.s32 %v16468_v42, %v5499_v33  ;;  %v16549_v37 = vadd.f32 %v6516_v9, %v6405_v8  ;;  %v5520_v18 = vadd.s32 %v5518_v47, %v5512_v39  ;;  %v4891_v10 = vadd.f32 %v4862_v16, %v16053_v14 }
 0x3b8   : > { %v5997_v46 = vrot.slane %v5995_v36, 6  ;;  %v6000_v32 = vrot.slane %v5998_v15, 7  ;;  %v13328_v41 = vpop.eup %13327  ;;  %vm5521_vm15 = vc.u32 %v5519_v52, %v5515_v27  ;;  %v5516_v24 = vshrl.u32 %v5511_v55, 16 }
 0x3b9   : > { %7149 = vmatmul.bf16.gmra.mxu2 %v7039_v45  ;;  %vm5744_vm10 = vcmp.ne.s32.totalorder %v5500_v0, 0  ;;  %vm5762_vm12 = vcmp.lt.s32.totalorder %v5500_v0, 0  ;;  %v5798_v26 = vadd.s32 18, %v5500_v0  ;;  %v5186_v42 = vmul.f32 %v13328_v41, %v16484_v19  ;;  %v18296_v45 = vld [vmem:[#allocation10_spill] sm:$0xff]  ;;  %7319 = vmatmul.bf16.gmra.mxu3 %v16533_v11 }
 0x3ba   : > { %v16552_v12 = vor.u32 %v6000_v32, %v5997_v46  ;;  %vm5780_vm7 = vmand %vm5762_vm12, %vm5744_vm10  ;;  %v5522_v58 = vsel %vm5521_vm15, 1, %v18260_v35  ;;  %v5059_v44 = vadd.f32 %v5030_v13, %v4891_v10  ;;  %v16557_v14 = vadd.s32 144, %v18295_v7  ;;  %6672 = vmatmul.bf16.gmra.mxu0 %v18296_v45  ;;  %v12892_v13 = vld [vmem:[%s18041_s3 + $0x58] sm:$0xff]  ;;  %v18298_v45 = vld [vmem:[#allocation51_spill] sm:$0xff] }
 0x3bb   : > { %v5816_v31 = vsel %vm5780_vm7, %v5798_v26, %v5500_v0  ;;  %v5524_v4 = vadd.s32 %v5522_v58, %v5520_v18  ;;  %v18297_v55 = vrot.slane %v16164_v56, 1  ;;  %v16580_v8 = vsel %vm720_vm1, %v6805_v59, %v6807_v2  ;;  %v6407_v2 = vpop.f32.mrf.mxu2  ;;  %v6518_v18 = vpop.f32.mrf.mxu3  ;;  %8523 = vmatpush.bf16.msra.mxu3 %v12892_v13 }
 0x3bc   : > { %v13330_v17 = vpop.eup %13329  ;;  %v6002_v29 = vsel %vm14781_vm14, %v5993_v5, %v16552_v12  ;;  %vm5834_vm13 = vcmp.lt.s32.totalorder %v5816_v31, 16  ;;  %v16565_v19 = vadd.f32 %v16481_v22, %v5059_v44  ;;  %v5535_v11 = vand.u32 65535, %v16557_v14 }
 0x3bd   : > { %v6806_v63 = vsel %vm720_vm1, %v18297_v55, %v6805_v59  ;;  %6123 = vst [vmem:[#allocation2 + $0x70] sm:$0xf] %v6002_v29  ;;  %v5888_v34 = vsel %vm5834_vm13, %v5186_v42, 0.0  ;;  %v5151_v39 = vadd.f32 1.0, %v13330_v17  ;;  %v5525_v30 = vadd.s32 %v5524_v4, %v5514_v51  ;;  %v12852_v59 = vld [vmem:[%s18041_s3 + $0x198] sm:$0xff]  ;;  %v4865_v42 = vpop.f32.mrf.mxu0 }
 0x3be   : > { %v5906_v33 = vpack.c.bf16 %v5888_v34, %v5888_v34  ;;  %v5098_v27 = vsub.f32 0.0, %v16565_v19  ;;  %v5536_v5 = vshrl.u32 %v16557_v14, 16  ;;  %v5538_v9 = vmul.u32 14564, %v5535_v11  ;;  %7512 = vmatpush.bf16.msra.mxu0 %v12852_v59 }
 0x3bf   : > { %13331 = vrcp.f32 %v5151_v39  ;;  %v5526_v56 = vadd.s32 %v5525_v30, %v5516_v24  ;;  %v5539_v36 = vmul.u32 58254, %v5535_v11  ;;  %v6003_v47 = vrot.slane %v16552_v12, 4  ;;  %v12860_v12 = vld [vmem:[%s18041_s3 + $0x1d8] sm:$0xff]  ;;  %v16608_v11 = vld [vmem:[#allocation2 + $0x48] sm:$0xff]  }
 0x3c0   : > { %v6005_v15 = vshrl.u32 %v5906_v33, 16  ;;  %v6008_v51 = vshll.u32 %v5906_v33, 16  ;;  %v5127_v16 = vmul.f32 1.442695, %v5098_v27  ;;  %v16582_v0 = vmul.u32 14564, %v5536_v5  ;;  %7752 = vmatpush.bf16.msra.mxu1 %v12860_v12  ;;  %v18299_v39 = vld [vmem:[#allocation28_spill] sm:$0xff] }
 0x3c1   : > { %v5527_v52 = vshrl.u32 %v5526_v56, 4  ;;  %v5541_v46 = vmul.u32 58254, %v5536_v5  ;;  %v5542_v32 = vshll.u32 %v5539_v36, 16  ;;  %v5543_v44 = vshrl.u32 %v5539_v36, 16  ;;  %v5033_v36 = vpop.f32.mrf.mxu1 }
 0x3c2   : > { %v6007_v10 = vrot.slane %v6005_v15, 6  ;;  %v6010_v41 = vrot.slane %v6008_v51, 7  ;;  %13333 = vpow2.f32 %v5127_v16  ;;  %v5544_v26 = vshll.u32 %v16582_v0, 16 }
 0x3c3   : > { %v5528_v58 = vmul.u32 18, %v5527_v52  ;;  %vm5546_vm11 = vc.u32 %v5538_v9, %v5542_v32  ;;  %v5548_v31 = vadd.s32 %v5542_v32, %v5538_v9  ;;  %v16601_v7 = vadd.f32 %v6518_v18, %v6407_v2  ;;  %6909 = vmatmul.bf16.gmra.mxu1 %v6806_v63  ;;  %v6938_v2 = vld [vmem:[#allocation2 + $0x50] sm:$0x3] }
 0x3c4   : > { %v16598_v24 = vor.u32 %v6010_v41, %v6007_v10  ;;  %v5547_v4 = vsel %vm5546_vm11, 1, %v18260_v35  ;;  %v4892_v17 = vadd.f32 %v4865_v42, %v18298_v45  ;;  %v16606_v30 = vadd.s32 144, %v18299_v39  ;;  %v6521_v45 = vpop.f32.mrf.mxu3 }
 0x3c5   : > { %v13332_v29 = vpop.eup %13331  ;;  %v5529_v55 = vsub.s32 %v16516_v61, %v5528_v58  ;;  %v5549_v34 = vadd.s32 %v5547_v4, %v5541_v46  ;;  %vm5550_vm9 = vc.u32 %v5548_v31, %v5544_v26  ;;  %v5545_v5 = vshrl.u32 %v16582_v0, 16  ;;  %v18300_v26 = vld [vmem:[#allocation14_spill] sm:$0xff]  ;;  %v6410_v4 = vpop.f32.mrf.mxu2 }
 0x3c6   : > { %v6012_v33 = vsel %vm14781_vm14, %v6003_v47, %v16598_v24  ;;  %v5187_v27 = vmul.f32 %v13332_v29, %v16536_v57  ;;  %v5551_v56 = vsel %vm5550_vm9, 1, %v18260_v35  ;;  %v5060_v63 = vadd.f32 %v5033_v36, %v4892_v17  ;;  %v4867_v39 = vpop.f32.mrf.mxu0 }
 0x3c7   : > { %6124 = vst [vmem:[#allocation2 + $0x74] sm:$0xf] %v6012_v33  ;;  %vm5745_vm6 = vcmp.ne.s32.totalorder %v5529_v55, 0  ;;  %vm5763_vm10 = vcmp.lt.s32.totalorder %v5529_v55, 0  ;;  %v5799_v61 = vadd.s32 18, %v5529_v55  ;;  %v5553_v9 = vadd.s32 %v5551_v56, %v5549_v34 }
 0x3c8   : > { %v13334_v15 = vpop.eup %13333  ;;  %vm5781_vm12 = vmand %vm5763_vm10, %vm5745_vm6  ;;  %v5564_v51 = vand.u32 65535, %v16606_v30  ;;  %v5565_v16 = vshrl.u32 %v16606_v30, 16  ;;  %v8389_v47 = vshll.u32 %v16608_v11, 16  ;;  %v6013_v57 = vrot.slane %v16598_v24, 4 }
 0x3c9   : > { %v5817_v0 = vsel %vm5781_vm12, %v5799_v61, %v5529_v55  ;;  %v5152_v52 = vadd.f32 1.0, %v13334_v15  ;;  %v5554_v46 = vadd.s32 %v5553_v9, %v5543_v44  ;;  %v16621_v32 = vadd.f32 %v16481_v22, %v5060_v63 }
 0x3ca   : > { %vm5835_vm15 = vcmp.lt.s32.totalorder %v5817_v0, 16  ;;  %v5567_v43 = vmul.u32 14564, %v5564_v51  ;;  %v5568_v59 = vmul.u32 58254, %v5564_v51  ;;  %v5569_v41 = vmul.u32 14564, %v5565_v16  ;;  %6677 = vmatmul.bf16.gmra.mxu0 %v18300_v26 }
 0x3cb   : > { %v5889_v18 = vsel %vm5835_vm15, %v5187_v27, 0.0  ;;  %13335 = vrcp.f32 %v5152_v52  ;;  %v5555_v10 = vadd.s32 %v5554_v46, %v5545_v5  ;;  %v5099_v12 = vsub.f32 0.0, %v16621_v32 }
 0x3cc   : > { %v5907_v13 = vpack.c.bf16 %v5889_v18, %v5889_v18  ;;  %v5570_v42 = vmul.u32 58254, %v5565_v16  ;;  %v5571_v58 = vshll.u32 %v5568_v59, 16  ;;  %v5572_v44 = vshrl.u32 %v5568_v59, 16  ;;  %v18301_v16 = vld [vmem:[#allocation31_spill] sm:$0xff] }
 0x3cd   : > { %v5556_v31 = vshrl.u32 %v5555_v10, 4  ;;  %v5573_v24 = vshll.u32 %v5569_v41, 16  ;;  %v6957_v17 = vunpack.c.l.b16 %v6938_v2  ;;  %v5129_v34 = vmul.f32 1.442695, %v5099_v12  ;;  %v5035_v10 = vpop.f32.mrf.mxu1 }
 0x3ce   : > { %v6015_v29 = vshrl.u32 %v5907_v13, 16  ;;  %v6018_v55 = vshll.u32 %v5907_v13, 16  ;;  %vm5575_vm7 = vc.u32 %v5567_v43, %v5571_v58  ;;  %v5577_v5 = vadd.s32 %v5571_v58, %v5567_v43 }
 0x3cf   : > { %v5557_v33 = vmul.u32 18, %v5556_v31  ;;  %v5576_v27 = vsel %vm5575_vm7, 1, %v18260_v35  ;;  %v16626_v56 = vadd.f32 %v6521_v45, %v6410_v4  ;;  %13337 = vpow2.f32 %v5129_v34 }
 0x3d0   : > { %v6017_v61 = vrot.slane %v6015_v29, 6  ;;  %v6020_v9 = vrot.slane %v6018_v55, 7  ;;  %v5578_v36 = vadd.s32 %v5576_v27, %v5570_v42  ;;  %vm5579_vm13 = vc.u32 %v5577_v5, %v5573_v24  ;;  %v12867_v5 = vld [vmem:[%s18041_s3 + $0x210] sm:$0xff] }
 0x3d1   : > { %v13336_v15 = vpop.eup %13335  ;;  %v5558_v63 = vsub.s32 %v16557_v14, %v5557_v33  ;;  %v4893_v51 = vadd.f32 %v4867_v39, %v16177_v6  ;;  %v16631_v0 = vadd.s32 144, %v18301_v16  ;;  %v5574_v43 = vshrl.u32 %v5569_v41, 16  ;;  %7923 = vmatpush.bf16.msra.mxu2 %v12867_v5 }
 0x3d2   : > { %v16633_v52 = vor.u32 %v6020_v9, %v6017_v61  ;;  %v5188_v46 = vmul.f32 %v13336_v15, %v16565_v19  ;;  %v5580_v59 = vsel %vm5579_vm13, 1, %v18260_v35  ;;  %v16641_v13 = vpack.c.b16 %v6957_v17, %v6957_v17  ;;  %v6412_v61 = vpop.f32.mrf.mxu2  ;;  %v6523_v9 = vpop.f32.mrf.mxu3  ;;  %v12891_v15 = vld [vmem:[%s18041_s3 + $0x50] sm:$0xff] }
 0x3d3   : > { %vm5746_vm11 = vcmp.ne.s32.totalorder %v5558_v63, 0  ;;  %vm5764_vm9 = vcmp.lt.s32.totalorder %v5558_v63, 0  ;;  %v5800_v2 = vadd.s32 18, %v5558_v63  ;;  %v5582_v18 = vadd.s32 %v5580_v59, %v5578_v36  ;;  %6914 = vmatmul.bf16.gmra.mxu1 %v16580_v8  ;;  %v12851_v36 = vld [vmem:[%s18041_s3 + $0x190] sm:$0xff]  ;;  %8524 = vmatpush.bf16.msra.mxu3 %v12891_v15 }
 0x3d4   : > { %v6022_v14 = vsel %vm14781_vm14, %v6013_v57, %v16633_v52  ;;  %vm5782_vm6 = vmand %vm5764_vm9, %vm5746_vm11  ;;  %v5061_v6 = vadd.f32 %v5035_v10, %v4893_v51  ;;  %v5593_v26 = vand.u32 65535, %v16631_v0  ;;  %v6023_v19 = vrot.slane %v16633_v52, 4  ;;  %7513 = vmatpush.bf16.msra.mxu0 %v12851_v36 }
 0x3d5   : > { %6125 = vst [vmem:[#allocation2 + $0x78] sm:$0xf] %v6022_v14  ;;  %v5818_v41 = vsel %vm5782_vm6, %v5800_v2, %v5558_v63  ;;  %v5583_v12 = vadd.s32 %v5582_v18, %v5572_v44  ;;  %v5594_v42 = vshrl.u32 %v16631_v0, 16  ;;  %v13338_v58 = vpop.eup %13337  ;;  %v7041_v39 = vshrl.u32 %v16641_v13, 16 }
 0x3d6   : > { %vm5836_vm10 = vcmp.lt.s32.totalorder %v5818_v41, 16  ;;  %v16647_v31 = vadd.f32 %v16481_v22, %v5061_v6  ;;  %v5596_v57 = vmul.u32 14564, %v5593_v26  ;;  %v5597_v24 = vmul.u32 58254, %v5593_v26  ;;  %v18302_v41 = vld [vmem:[#allocation16_spill] sm:$0xff] }
 0x3d7   : > { %v5890_v4 = vsel %vm5836_vm10, %v5188_v46, 0.0  ;;  %v5153_v45 = vadd.f32 1.0, %v13338_v58  ;;  %v5584_v17 = vadd.s32 %v5583_v12, %v5574_v43  ;;  %v16649_v29 = vmul.u32 14564, %v5594_v42  ;;  %v4870_v46 = vpop.f32.mrf.mxu0 }
 0x3d8   : > { %v5908_v55 = vpack.c.bf16 %v5890_v4, %v5890_v4  ;;  %v5100_v34 = vsub.f32 0.0, %v16647_v31  ;;  %v5600_v44 = vshll.u32 %v5597_v24, 16  ;;  %v5599_v33 = vmul.u32 58254, %v5594_v42 }
 0x3d9   : > { %13339 = vrcp.f32 %v5153_v45  ;;  %v5585_v8 = vshrl.u32 %v5584_v17, 4  ;;  %v5602_v27 = vshll.u32 %v16649_v29, 16  ;;  %v5601_v52 = vshrl.u32 %v5597_v24, 16  ;;  %v18303_v24 = vld [vmem:[#allocation33_spill] sm:$0xff] }
 0x3da   : > { %v6025_v63 = vshrl.u32 %v5908_v55, 16  ;;  %v6028_v51 = vshll.u32 %v5908_v55, 16  ;;  %v5131_v16 = vmul.f32 1.442695, %v5100_v34  ;;  %vm5604_vm12 = vc.u32 %v5596_v57, %v5600_v44  ;;  %6682 = vmatmul.bf16.gmra.mxu0 %v16007_v49  ;;  %v5038_v55 = vpop.f32.mrf.mxu1 }
 0x3db   : > { %v5586_v43 = vmul.u32 18, %v5585_v8  ;;  %v5606_v59 = vadd.s32 %v5600_v44, %v5596_v57  ;;  %v16663_v2 = vadd.f32 %v6523_v9, %v6412_v61  ;;  %v5605_v14 = vsel %vm5604_vm12, 1, %v18260_v35 }
 0x3dc   : > { %v6027_v18 = vrot.slane %v6025_v63, 6  ;;  %v6030_v10 = vrot.slane %v6028_v51, 7  ;;  %13341 = vpow2.f32 %v5131_v16  ;;  %v5607_v26 = vadd.s32 %v5605_v14, %v5599_v33 }
 0x3dd   : > { %v5587_v6 = vsub.s32 %v16606_v30, %v5586_v43  ;;  %vm5608_vm15 = vc.u32 %v5606_v59, %v5602_v27  ;;  %v4894_v12 = vadd.f32 %v4870_v46, %v18302_v41  ;;  %v5603_v58 = vshrl.u32 %v16649_v29, 16 }
 0x3de   : > { %v16669_v42 = vor.u32 %v6030_v10, %v6027_v18  ;;  %v5609_v57 = vsel %vm5608_vm15, 1, %v18260_v35  ;;  %v16674_v4 = vadd.s32 144, %v18303_v24  ;;  %v16680_v29 = vrot.slane %v7041_v39, 1  ;;  %v6526_v24 = vpop.f32.mrf.mxu3 }
 0x3df   : > { %v13340_v45 = vpop.eup %13339  ;;  %vm5747_vm7 = vcmp.ne.s32.totalorder %v5587_v6, 0  ;;  %vm5765_vm13 = vcmp.lt.s32.totalorder %v5587_v6, 0  ;;  %v5801_v17 = vadd.s32 18, %v5587_v6  ;;  %v5611_v49 = vadd.s32 %v5609_v57, %v5607_v26  ;;  %v6415_v57 = vpop.f32.mrf.mxu2 }
 0x3e0   : > { %v6032_v30 = vsel %vm14781_vm14, %v6023_v19, %v16669_v42  ;;  %v5189_v34 = vmul.f32 %v13340_v45, %v16621_v32  ;;  %vm5783_vm11 = vmand %vm5765_vm13, %vm5747_vm7  ;;  %v5062_v44 = vadd.f32 %v5038_v55, %v4894_v12  ;;  %v5622_v27 = vand.u32 65535, %v16674_v4 }
 0x3e1   : > { %6126 = vst [vmem:[#allocation2 + $0x7c] sm:$0xf] %v6032_v30  ;;  %v5819_v8 = vsel %vm5783_vm11, %v5801_v17, %v5587_v6  ;;  %v5612_v33 = vadd.s32 %v5611_v49, %v5601_v52  ;;  %v5623_v5 = vshrl.u32 %v16674_v4, 16  ;;  %v6033_v9 = vrot.slane %v16669_v42, 4 }
 0x3e2   : > { %v13342_v61 = vpop.eup %13341  ;;  %vm5837_vm9 = vcmp.lt.s32.totalorder %v5819_v8, 16  ;;  %v16686_v36 = vadd.f32 %v16481_v22, %v5062_v44  ;;  %v7044_v32 = vshll.u32 %v16641_v13, 16  ;;  %v5625_v63 = vmul.u32 14564, %v5622_v27 }
 0x3e3   : > { %v5891_v19 = vsel %vm5837_vm9, %v5189_v34, 0.0  ;;  %v5154_v15 = vadd.f32 1.0, %v13342_v61  ;;  %v5613_v39 = vadd.s32 %v5612_v33, %v5603_v58  ;;  %v5626_v52 = vmul.u32 58254, %v5622_v27  ;;  %v12859_v58 = vld [vmem:[%s18041_s3 + $0x1d0] sm:$0xff] }
 0x3e4   : > { %v5909_v51 = vpack.c.bf16 %v5891_v19, %v5891_v19  ;;  %v5101_v16 = vsub.f32 0.0, %v16686_v36  ;;  %v5627_v46 = vmul.u32 14564, %v5623_v5  ;;  %v5628_v59 = vmul.u32 58254, %v5623_v5  ;;  %7753 = vmatpush.bf16.msra.mxu1 %v12859_v58  ;;  %v18304_v27 = vld [vmem:[#allocation19_spill] sm:$0xff]  ;;  %v18305_v61 = vld [vmem:[#allocation36_spill] sm:$0xff] }
 0x3e5   : > { %13343 = vrcp.f32 %v5154_v15  ;;  %v5614_v43 = vshrl.u32 %v5613_v39, 4  ;;  %v7217_v18 = vrot.slane %v16641_v13, 2  ;;  %v5629_v26 = vshll.u32 %v5626_v52, 16  ;;  %v4872_v13 = vpop.f32.mrf.mxu0 }
 0x3e6   : > { %v6035_v10 = vshrl.u32 %v5909_v51, 16  ;;  %v6038_v14 = vshll.u32 %v5909_v51, 16  ;;  %v5133_v6 = vmul.f32 1.442695, %v5101_v16  ;;  %v5630_v12 = vshrl.u32 %v5626_v52, 16  ;;  %v5040_v16 = vpop.f32.mrf.mxu1 }
 0x3e7   : > { %v5615_v41 = vmul.u32 18, %v5614_v43  ;;  %v5631_v42 = vshll.u32 %v5627_v46, 16  ;;  %v16694_v45 = vrot.slane %v7044_v32, 2  ;;  %vm5633_vm6 = vc.u32 %v5625_v63, %v5629_v26 }
 0x3e8   : > { %v6037_v17 = vrot.slane %v6035_v10, 6  ;;  %v6040_v49 = vrot.slane %v6038_v14, 7  ;;  %13345 = vpow2.f32 %v5133_v6  ;;  %v5634_v30 = vsel %vm5633_vm6, 1, %v18260_v35 }
 0x3e9   : > { %v5616_v55 = vsub.s32 %v16631_v0, %v5615_v41  ;;  %v5635_v34 = vadd.s32 %v5629_v26, %v5625_v63  ;;  %v16698_v44 = vadd.f32 %v6526_v24, %v6415_v57  ;;  %v5636_v33 = vadd.s32 %v5634_v30, %v5628_v59 }
 0x3ea   : > { %v16700_v8 = vor.u32 %v6040_v49, %v6037_v17  ;;  %v4895_v5 = vadd.f32 %v4872_v13, %v18304_v27  ;;  %v16704_v32 = vadd.s32 144, %v18305_v61  ;;  %v5632_v63 = vshrl.u32 %v5627_v46, 16 }
 0x3eb   : > { %v13344_v19 = vpop.eup %13343  ;;  %vm5748_vm10 = vcmp.ne.s32.totalorder %v5616_v55, 0  ;;  %vm5766_vm12 = vcmp.lt.s32.totalorder %v5616_v55, 0  ;;  %v5802_v15 = vadd.s32 18, %v5616_v55  ;;  %vm5637_vm15 = vc.u32 %v5635_v34, %v5631_v42  ;;  %v6528_v34 = vpop.f32.mrf.mxu3 }
 0x3ec   : > { %v6042_v0 = vsel %vm14781_vm14, %v6033_v9, %v16700_v8  ;;  %v5190_v39 = vmul.f32 %v13344_v19, %v16647_v31  ;;  %vm5784_vm7 = vmand %vm5766_vm12, %vm5748_vm10  ;;  %v5638_v51 = vsel %vm5637_vm15, 1, %v18260_v35  ;;  %v5063_v59 = vadd.f32 %v5040_v16, %v4895_v5 }
 0x3ed   : > { %6127 = vst [vmem:[#allocation2 + $0x80] sm:$0xf] %v6042_v0  ;;  %v5820_v52 = vsel %vm5784_vm7, %v5802_v15, %v5616_v55  ;;  %v5640_v43 = vadd.s32 %v5638_v51, %v5636_v33  ;;  %v5651_v10 = vand.u32 65535, %v16704_v32  ;;  %v6043_v6 = vrot.slane %v16700_v8, 4  ;;  %v12866_v8 = vld [vmem:[%s18041_s3 + $0x208] sm:$0xff]  ;;  %v4875_v19 = vpop.f32.mrf.mxu0 }
 0x3ee   : > { %v13346_v14 = vpop.eup %13345  ;;  %vm5838_vm13 = vcmp.lt.s32.totalorder %v5820_v52, 16  ;;  %v5652_v26 = vshrl.u32 %v16704_v32, 16  ;;  %v7218_v31 = vsel %vm1362_vm3, %v7215_v40, %v7217_v18  ;;  %v16718_v42 = vadd.f32 %v16481_v22, %v5063_v59  ;;  %7924 = vmatpush.bf16.msra.mxu2 %v12866_v8 }
 0x3ef   : > { %v5892_v9 = vsel %vm5838_vm13, %v5190_v39, 0.0  ;;  %v5155_v46 = vadd.f32 1.0, %v13346_v14  ;;  %v5641_v41 = vadd.s32 %v5640_v43, %v5630_v12  ;;  %7324 = vmatmul.bf16.gmra.mxu3 %v7218_v31  ;;  %v5654_v57 = vmul.u32 14564, %v5651_v10  ;;  %v6417_v12 = vpop.f32.mrf.mxu2  ;;  %v18306_v14 = vld [vmem:[#allocation38_spill] sm:$0xff] }
 0x3f0   : > { %v5910_v58 = vpack.c.bf16 %v5892_v9, %v5892_v9  ;;  %v5655_v24 = vmul.u32 58254, %v5651_v10  ;;  %v5656_v17 = vmul.u32 14564, %v5652_v26  ;;  %v5102_v13 = vsub.f32 0.0, %v16718_v42 }
 0x3f1   : > { %13347 = vrcp.f32 %v5155_v46  ;;  %v5642_v49 = vadd.s32 %v5641_v41, %v5632_v63  ;;  %v7047_v48 = vor.u32 %v16694_v45, %v16680_v29  ;;  %v5657_v18 = vmul.u32 58254, %v5652_v26 }
 0x3f2   : > { %v6045_v55 = vshrl.u32 %v5910_v58, 16  ;;  %v6048_v40 = vshll.u32 %v5910_v58, 16  ;;  %v5658_v30 = vshll.u32 %v5655_v24, 16  ;;  %v5135_v27 = vmul.f32 1.442695, %v5102_v13  ;;  %v16745_v13 = vld [vmem:[#allocation2 + $0x50] sm:$0xff] }
 0x3f3   : > { %v5643_v33 = vshrl.u32 %v5642_v49, 4  ;;  %v5659_v5 = vshrl.u32 %v5655_v24, 16  ;;  %v5660_v61 = vshll.u32 %v5656_v17, 16  ;;  %v16727_v63 = vadd.f32 %v6528_v34, %v6417_v12 }
 0x3f4   : > { %v6047_v15 = vrot.slane %v6045_v55, 6  ;;  %v6050_v0 = vrot.slane %v6048_v40, 7  ;;  %vm5662_vm11 = vc.u32 %v5654_v57, %v5658_v30  ;;  %v5664_v39 = vadd.s32 %v5658_v30, %v5654_v57 }
 0x3f5   : > { %v5644_v29 = vmul.u32 18, %v5643_v33  ;;  %13349 = vpow2.f32 %v5135_v27  ;;  %v5663_v45 = vsel %vm5662_vm11, 1, %v18260_v35  ;;  %v4896_v52 = vadd.f32 %v4875_v19, %v16024_v25  ;;  %v5043_v25 = vpop.f32.mrf.mxu1 }
 0x3f6   : > { %v16729_v51 = vor.u32 %v6050_v0, %v6047_v15  ;;  %v5665_v16 = vadd.s32 %v5663_v45, %v5657_v18  ;;  %vm5666_vm9 = vc.u32 %v5664_v39, %v5660_v61  ;;  %v16735_v26 = vadd.s32 144, %v18306_v14 }
 0x3f7   : > { %v13348_v43 = vpop.eup %13347  ;;  %v5645_v59 = vsub.s32 %v16674_v4, %v5644_v29  ;;  %v5667_v10 = vsel %vm5666_vm9, 1, %v18260_v35  ;;  %v7048_v31 = vsel %vm1122_vm2, %v16522_v53, %v7047_v48  ;;  %v5661_v41 = vshrl.u32 %v5656_v17, 16 }
 0x3f8   : > { %v6052_v9 = vsel %vm14781_vm14, %v6043_v6, %v16729_v51  ;;  %v5191_v46 = vmul.f32 %v13348_v43, %v16686_v36  ;;  %v5669_v58 = vadd.s32 %v5667_v10, %v5665_v16  ;;  %7154 = vmatmul.bf16.gmra.mxu2 %v7048_v31  ;;  %v5064_v57 = vadd.f32 %v5043_v25, %v4896_v52  ;;  %v12850_v52 = vld [vmem:[%s18041_s3 + $0x188] sm:$0xff]  ;;  %v6531_v10 = vpop.f32.mrf.mxu3 }
 0x3f9   : > { %6128 = vst [vmem:[#allocation2 + $0x84] sm:$0xf] %v6052_v9  ;;  %vm5749_vm6 = vcmp.ne.s32.totalorder %v5645_v59, 0  ;;  %vm5767_vm10 = vcmp.lt.s32.totalorder %v5645_v59, 0  ;;  %v5803_v4 = vadd.s32 18, %v5645_v59  ;;  %v5680_v49 = vand.u32 65535, %v16735_v26  ;;  %7514 = vmatpush.bf16.msra.mxu0 %v12850_v52 }
 0x3fa   : > { %vm5785_vm12 = vmand %vm5767_vm10, %vm5749_vm6  ;;  %v5670_v24 = vadd.s32 %v5669_v58, %v5659_v5  ;;  %v5681_v53 = vshrl.u32 %v16735_v26, 16  ;;  %v8387_v6 = vshrl.u32 %v16608_v11, 16  ;;  %v6053_v17 = vrot.slane %v16729_v51, 4  ;;  %v12890_v43 = vld [vmem:[%s18041_s3 + $0x48] sm:$0xff] }
 0x3fb   : > { %v13350_v36 = vpop.eup %13349  ;;  %v5821_v48 = vsel %vm5785_vm12, %v5803_v4, %v5645_v59  ;;  %v16750_v55 = vadd.f32 %v16481_v22, %v5064_v57  ;;  %v16754_v40 = vrot.slane %v8389_v47, 1  ;;  %v5683_v12 = vmul.u32 14564, %v5680_v49  ;;  %v6420_v59 = vpop.f32.mrf.mxu2  ;;  %v12858_v31 = vld [vmem:[%s18041_s3 + $0x1c8] sm:$0xff]  ;;  %8525 = vmatpush.bf16.msra.mxu3 %v12890_v43 }
 0x3fc   : > { %vm5839_vm15 = vcmp.lt.s32.totalorder %v5821_v48, 16  ;;  %v5156_v18 = vadd.f32 1.0, %v13350_v36  ;;  %v5671_v30 = vadd.s32 %v5670_v24, %v5661_v41  ;;  %v5684_v33 = vmul.u32 58254, %v5680_v49  ;;  %7754 = vmatpush.bf16.msra.mxu1 %v12858_v31 }
 0x3fd   : > { %v5893_v34 = vsel %vm5839_vm15, %v5191_v46, 0.0  ;;  %v5103_v8 = vsub.f32 0.0, %v16750_v55  ;;  %v16757_v27 = vmul.u32 14564, %v5681_v53  ;;  %v8394_v19 = vshll.u32 %v16745_v13, 16  ;;  %v4877_v46 = vpop.f32.mrf.mxu0  ;;  %v5045_v49 = vpop.f32.mrf.mxu1 }
 0x3fe   : > { %v5911_v5 = vpack.c.bf16 %v5893_v34, %v5893_v34  ;;  %13351 = vrcp.f32 %v5156_v18  ;;  %v5672_v61 = vshrl.u32 %v5671_v30, 4  ;;  %v5686_v0 = vmul.u32 58254, %v5681_v53  ;;  %v18307_v53 = vld [vmem:[#allocation42_spill] sm:$0xff] }
 0x3ff   : > { %v5137_v15 = vmul.f32 1.442695, %v5103_v8  ;;  %v5687_v39 = vshll.u32 %v5684_v33, 16  ;;  %v5689_v47 = vshll.u32 %v16757_v27, 16  ;;  %v5688_v16 = vshrl.u32 %v5684_v33, 16 }
 0x400   : > { %v6055_v29 = vshrl.u32 %v5911_v5, 16  ;;  %v6058_v45 = vshll.u32 %v5911_v5, 16  ;;  %v5673_v51 = vmul.u32 18, %v5672_v61  ;;  %v16770_v9 = vadd.f32 %v6531_v10, %v6420_v59 }
 0x401   : > { %13353 = vpow2.f32 %v5137_v15  ;;  %vm5691_vm7 = vc.u32 %v5683_v12, %v5687_v39  ;;  %v5693_v14 = vadd.s32 %v5687_v39, %v5683_v12  ;;  %v4897_v24 = vadd.f32 %v4877_v46, %v16073_v21 }
 0x402   : > { %v6057_v41 = vrot.slane %v6055_v29, 6  ;;  %v6060_v58 = vrot.slane %v6058_v45, 7  ;;  %v5674_v25 = vsub.s32 %v16704_v32, %v5673_v51  ;;  %v5692_v4 = vsel %vm5691_vm7, 1, %v18260_v35 }
 0x403   : > { %v5694_v57 = vadd.s32 %v5692_v4, %v5686_v0  ;;  %vm5695_vm13 = vc.u32 %v5693_v14, %v5689_v47  ;;  %v16776_v36 = vadd.s32 144, %v18307_v53  ;;  %v5065_v34 = vadd.f32 %v5045_v49, %v4897_v24  ;;  %v6422_v4 = vpop.f32.mrf.mxu2  ;;  %v12865_v24 = vld [vmem:[%s18041_s3 + $0x200] sm:$0xff] }
 0x404   : > { %v13352_v48 = vpop.eup %13351  ;;  %v16778_v18 = vor.u32 %v6060_v58, %v6057_v41  ;;  %vm5750_vm11 = vcmp.ne.s32.totalorder %v5674_v25, 0  ;;  %vm5768_vm9 = vcmp.lt.s32.totalorder %v5674_v25, 0  ;;  %v5804_v30 = vadd.s32 18, %v5674_v25  ;;  %v12849_v49 = vld [vmem:[%s18041_s3 + $0x180] sm:$0xff]  ;;  %7925 = vmatpush.bf16.msra.mxu2 %v12865_v24 }
 0x405   : > { %v5192_v32 = vmul.f32 %v13352_v48, %v16718_v42  ;;  %vm5786_vm6 = vmand %vm5768_vm9, %vm5750_vm11  ;;  %v5696_v12 = vsel %vm5695_vm13, 1, %v18260_v35  ;;  %v5709_v8 = vand.u32 65535, %v16776_v36  ;;  %v5690_v5 = vshrl.u32 %v16757_v27, 16  ;;  %v12889_v53 = vld [vmem:[%s18041_s3 + $0x40] sm:$0xff]  ;;  %7515 = vmatpush.bf16.msra.mxu0 %v12849_v49 }
 0x406   : > { %v6062_v21 = vsel %vm14781_vm14, %v6053_v17, %v16778_v18  ;;  %v5822_v33 = vsel %vm5786_vm6, %v5804_v30, %v5674_v25  ;;  %v5698_v61 = vadd.s32 %v5696_v12, %v5694_v57  ;;  %v16788_v0 = vadd.f32 %v16481_v22, %v5065_v34  ;;  %v6533_v57 = vpop.f32.mrf.mxu3  ;;  %v6875_v12 = vpop.f32.mrf.mxu1  ;;  %v12857_v34 = vld [vmem:[%s18041_s3 + $0x1c0] sm:$0xff]  ;;  %8526 = vmatpush.bf16.msra.mxu3 %v12889_v53 }
 0x407   : > { %v13354_v15 = vpop.eup %13353  ;;  %6129 = vst [vmem:[#allocation2 + $0x88] sm:$0xf] %v6062_v21  ;;  %vm5840_vm10 = vcmp.lt.s32.totalorder %v5822_v33, 16  ;;  %v5710_v42 = vshrl.u32 %v16776_v36, 16  ;;  %v5712_v39 = vmul.u32 14564, %v5709_v8  ;;  %v16791_v51 = vmul.u32 58254, %v5709_v8  ;;  %7755 = vmatpush.bf16.msra.mxu1 %v12857_v34 }
 0x408   : > { %v5894_v47 = vsel %vm5840_vm10, %v5192_v32, 0.0  ;;  %v5157_v29 = vadd.f32 1.0, %v13354_v15  ;;  %v5699_v45 = vadd.s32 %v5698_v61, %v5688_v16  ;;  %v6063_v17 = vrot.slane %v16778_v18, 4  ;;  %v6643_v32 = vpop.f32.mrf.mxu0  ;;  %v12920_v8 = vld [vmem:[%s18041_s3 + $0xf8] sm:$0xff] }
 0x409   : > { %v5912_v52 = vpack.c.bf16 %v5894_v47, %v5894_v47  ;;  %v5104_v27 = vsub.f32 0.0, %v16788_v0  ;;  %v16795_v43 = vmul.u32 14564, %v5710_v42  ;;  %v5715_v10 = vmul.u32 58254, %v5710_v42  ;;  %v12888_v21 = vld [vmem:[%s18041_s3 + $0x38] sm:$0xff]  ;;  %v18308_v47 = vld [vmem:[#allocation34_spill] sm:$0xff]  ;;  %9011 = vmatpush.bf16.msrb.mxu2 %v12920_v8 }
 0x40a   : > { %13355 = vrcp.f32 %v5157_v29  ;;  %v5700_v59 = vadd.s32 %v5699_v45, %v5690_v5  ;;  %v5716_v22 = vshll.u32 %v16791_v51, 16  ;;  %v5717_v58 = vshrl.u32 %v16791_v51, 16  ;;  %v12928_v15 = vld [vmem:[%s18041_s3 + $0x138] sm:$0xff]  ;;  %8630 = vmatpush.bf16.msrb.mxu0 %v12888_v21  ;;  %v12887_v21 = vld [vmem:[%s18041_s3 + $0x30] sm:$0xff] }
 0x40b   : > { %v6065_v14 = vshrl.u32 %v5912_v52, 16  ;;  %v6068_v31 = vshll.u32 %v5912_v52, 16  ;;  %v5139_v46 = vmul.f32 1.442695, %v5104_v27  ;;  %v5718_v41 = vshll.u32 %v16795_v43, 16  ;;  %v12904_v51 = vld [vmem:[%s18041_s3 + $0xb8] sm:$0xff]  ;;  %9249 = vmatpush.bf16.msrb.mxu3 %v12928_v15 }
 0x40c   : > { %v5701_v16 = vshrl.u32 %v5700_v59, 4  ;;  %vm5720_vm12 = vc.u32 %v5712_v39, %v5716_v22  ;;  %v5722_v25 = vadd.s32 %v5716_v22, %v5712_v39  ;;  %v16819_v61 = vadd.f32 %v6533_v57, %v6422_v4  ;;  %v16835_v52 = vld [vmem:[#allocation2 + $0x20] sm:$0xff]  ;;  %8780 = vmatpush.bf16.msrb.mxu1 %v12904_v51  ;;  %v7115_v57 = vpop.f32.mrf.mxu2  ;;  %v16859_v8 = vld [vmem:[#allocation2 + $0x58] sm:$0xff] }
 0x40d   : > { %v6067_v48 = vrot.slane %v6065_v14, 6  ;;  %v6070_v18 = vrot.slane %v6068_v31, 7  ;;  %13357 = vpow2.f32 %v5139_v46  ;;  %v5721_v30 = vsel %vm5720_vm12, 1, %v18260_v35  ;;  %v18309_v46 = vld [vmem:[#allocation26_spill] sm:$0xff] }
 0x40e   : > { %v5702_v33 = vmul.u32 18, %v5701_v16  ;;  %v5723_v5 = vadd.s32 %v5721_v30, %v5715_v10  ;;  %vm5724_vm15 = vc.u32 %v5722_v25, %v5718_v41  ;;  %v6688_v29 = vadd.f32 %v6643_v32, %v18308_v47  ;;  %7516 = vmatmul.bf16.vlgmr.msra.gmra.mxu0 %v18309_v46  ;;  %v7285_v24 = vpop.f32.mrf.mxu3 }
 0x40f   : > { %v16824_v42 = vor.u32 %v6070_v18, %v6067_v48  ;;  %v5725_v39 = vsel %vm5724_vm15, 1, %v18260_v35  ;;  %v16830_v45 = vrot.slane %v8394_v19, 1  ;;  %v5719_v10 = vshrl.u32 %v16795_v43, 16  ;;  %v12919_v19 = vld [vmem:[%s18041_s3 + $0xf0] sm:$0xff]  ;;  %v6877_v48 = vpop.f32.mrf.mxu1  ;;  %8631 = vmatpush.bf16.msrb.mxu0 %v12887_v21 }
 0x410   : > { %v13356_v27 = vpop.eup %13355  ;;  %v5703_v59 = vsub.s32 %v16735_v26, %v5702_v33  ;;  %v5727_v35 = vadd.s32 %v5725_v39, %v5723_v5  ;;  %v8392_v22 = vor.u32 %v16754_v40, %v8387_v6  ;;  %v6920_v26 = vadd.f32 %v6875_v12, %v6688_v29  ;;  %v18310_v43 = vld [vmem:[#allocation32_spill] sm:$0xff]  ;;  %v18311_v40 = vld [vmem:[#allocation29_spill] sm:$0xff]  ;;  %9012 = vmatpush.bf16.msrb.mxu2 %v12919_v19  ;;  %v6645_v53 = vpop.f32.mrf.mxu0 }
 0x411   : > { %v6072_v14 = vsel %vm14781_vm14, %v6063_v17, %v16824_v42  ;;  %v5193_v31 = vmul.f32 %v13356_v27, %v16750_v55  ;;  %7926 = vmatmul.bf16.vlgmr.msra.gmra.mxu2 %v18310_v43  ;;  %7756 = vmatmul.bf16.vlgmr.msra.gmra.mxu1 %v18311_v40  ;;  %v7620_v55 = vshrl.u32 %v16835_v52, 16  ;;  %v7623_v49 = vshll.u32 %v16835_v52, 16  ;;  %v12927_v33 = vld [vmem:[%s18041_s3 + $0x130] sm:$0xff] }
 0x412   : > { %6130 = vst [vmem:[#allocation2 + $0x8c] sm:$0xf] %v6072_v14  ;;  %vm5751_vm7 = vcmp.ne.s32.totalorder %v5703_v59, 0  ;;  %vm5769_vm13 = vcmp.lt.s32.totalorder %v5703_v59, 0  ;;  %v5805_v11 = vadd.s32 18, %v5703_v59  ;;  %v5728_v6 = vadd.s32 %v5727_v35, %v5717_v58  ;;  %9250 = vmatpush.bf16.msrb.mxu3 %v12927_v33 }
 0x413   : > { %v13358_v41 = vpop.eup %13357  ;;  %vm5787_vm11 = vmand %vm5769_vm13, %vm5751_vm7  ;;  %v8397_v17 = vsel %vm400_vm0, %v8392_v22, %v16830_v45  ;;  %v7160_v58 = vadd.f32 %v7115_v57, %v6920_v26  ;;  %v6689_v32 = vadd.f32 %v6645_v53, %v16158_v62  ;;  %v7622_v39 = vrot.slane %v7620_v55, 2  ;;  %v12903_v62 = vld [vmem:[%s18041_s3 + $0xb0] sm:$0xff] }
 0x414   : > { %v5823_v16 = vsel %vm5787_vm11, %v5805_v11, %v5703_v59  ;;  %v5158_v25 = vadd.f32 1.0, %v13358_v41  ;;  %v5729_v4 = vadd.s32 %v5728_v6, %v5719_v10  ;;  %8527 = vmatmul.bf16.vlgmr.msra.gmra.mxu3 %v8397_v17  ;;  %v7625_v47 = vrot.slane %v7623_v49, 3  ;;  %8781 = vmatpush.bf16.msrb.mxu1 %v12903_v62  ;;  %v7117_v26 = vpop.f32.mrf.mxu2  ;;  %v18312_v49 = vld [vmem:[#allocation21_spill] sm:$0xff] }
 0x415   : > { %vm5841_vm9 = vcmp.lt.s32.totalorder %v5823_v16, 16  ;;  %v16857_v34 = vadd.f32 %v7285_v24, %v7160_v58  ;;  %v6921_v15 = vadd.f32 %v6877_v48, %v6689_v32  ;;  %v7435_v59 = vrot.slane %v16835_v52, 2  ;;  %v16896_v48 = vld [vmem:[#allocation2 + $0x28] sm:$0xff] }
 0x416   : > { %v5895_v18 = vsel %vm5841_vm9, %v5193_v31, 0.0  ;;  %13359 = vrcp.f32 %v5158_v25  ;;  %v5730_v30 = vshrl.u32 %v5729_v4, 4  ;;  %v7845_v22 = vrot.slane %v16835_v52, 3  ;;  %v7287_v46 = vpop.f32.mrf.mxu3 }
 0x417   : > { %v5913_v12 = vpack.c.bf16 %v5895_v18, %v5895_v18  ;;  %v8402_v19 = vshll.u32 %v16859_v8, 16  ;;  %v16874_v43 = vor.u32 %v7625_v47, %v7622_v39  ;;  %v6073_v11 = vrot.slane %v16824_v42, 4  ;;  %v6880_v17 = vpop.f32.mrf.mxu1 }
 0x418   : > { %v5731_v5 = vmul.u32 18, %v5730_v30  ;;  %v7161_v40 = vadd.f32 %v7117_v26, %v6921_v15  ;;  %v6648_v41 = vpop.f32.mrf.mxu0  ;;  %v8398_v25 = vshrl.u32 %v16745_v13, 16  ;;  %v18313_v58 = vrot.slane %v18312_v49, 2  ;;  %v18315_v30 = vld [vmem:[#allocation24_spill] sm:$0xff] }
 0x419   : > { %v6075_v29 = vshrl.u32 %v5913_v12, 16  ;;  %v6078_v51 = vshll.u32 %v5913_v12, 16  ;;  %v6690_v16 = vadd.f32 %v6648_v41, %v16232_v23  ;;  %v16884_v24 = vrot.slane %v8402_v19, 1 }
 0x41a   : > { %v5732_v27 = vsub.s32 %v16776_v36, %v5731_v5  ;;  %v16882_v57 = vadd.f32 %v7287_v46, %v7161_v40  ;;  %v7436_v53 = vsel %vm1362_vm3, %v18313_v58, %v7435_v59  ;;  %v18314_v23 = vrot.slane %v18312_v49, 3  ;;  %v16909_v46 = vld [vmem:[#allocation2 + $0x60] sm:$0xff]  ;;  %v12886_v40 = vld [vmem:[%s18041_s3 + $0x28] sm:$0xff] }
 0x41b   : > { %v6077_v10 = vrot.slane %v6075_v29, 6  ;;  %v6080_v35 = vrot.slane %v6078_v51, 7  ;;  %v7627_v32 = vsel %vm1764_vm4, %v18315_v30, %v16874_v43  ;;  %v8400_v12 = vor.u32 %v8398_v25, %v16830_v45  ;;  %8632 = vmatpush.bf16.msrb.mxu0 %v12886_v40  ;;  %v16925_v25 = vld [vmem:[#allocation2 + $0x54] sm:$0xf] }
 0x41c   : > { %v13360_v14 = vpop.eup %13359  ;;  %vm5752_vm6 = vcmp.ne.s32.totalorder %v5732_v27, 0  ;;  %vm5770_vm10 = vcmp.lt.s32.totalorder %v5732_v27, 0  ;;  %v5806_v31 = vadd.s32 18, %v5732_v27  ;;  %v7846_v13 = vsel %vm2004_vm5, %v18314_v23, %v7845_v22  ;;  %v7120_v15 = vpop.f32.mrf.mxu2  ;;  %v9321_v23 = vld [vmem:[#allocation2 + $0x50] sm:$0xc] }
 0x41d   : > { %v6081_v36 = vor.u32 %v6080_v35, %v6077_v10  ;;  %v5194_v6 = vmul.f32 %v13360_v14, %v16788_v0  ;;  %vm5788_vm12 = vmand %vm5770_vm10, %vm5752_vm6  ;;  %v6922_v0 = vadd.f32 %v6880_v17, %v6690_v16  ;;  %v8405_v5 = vsel %vm400_vm0, %v8400_v12, %v16884_v24  ;;  %v16934_v12 = vld [vmem:[#allocation2 + $0x58] sm:$0xff] }
 0x41e   : > { %v5824_v55 = vsel %vm5788_vm12, %v5806_v31, %v5732_v27  ;;  %7521 = vmatmul.bf16.gmra.mxu0 %v7436_v53  ;;  %v7290_v39 = vpop.f32.mrf.mxu3  ;;  %v7629_v47 = vshrl.u32 %v16896_v48, 16  ;;  %v7632_v35 = vshll.u32 %v16896_v48, 16  ;;  %v6133_v31 = vld [vmem:[#allocation2 + $0x98] sm:$0x3]  ;;  %v7437_v38 = vrot.slane %v16896_v48, 2 }
 0x41f   : > { %v6082_v4 = vsel %vm14781_vm14, %v6073_v11, %v6081_v36  ;;  %vm5842_vm15 = vcmp.lt.s32.totalorder %v5824_v55, 16  ;;  %v7162_v51 = vadd.f32 %v7120_v15, %v6922_v0  ;;  %v6882_v10 = vpop.f32.mrf.mxu1  ;;  %v6083_v19 = vrot.slane %v6081_v36, 4  ;;  %v12918_v11 = vld [vmem:[%s18041_s3 + $0xe8] sm:$0xff] }
 0x420   : > { %6131 = vst [vmem:[#allocation2 + $0x90] sm:$0xf] %v6082_v4  ;;  %v5896_v42 = vsel %vm5842_vm15, %v5194_v6, 0.0  ;;  %v6650_v27 = vpop.f32.mrf.mxu0  ;;  %v12902_v36 = vld [vmem:[%s18041_s3 + $0xa8] sm:$0xff]  ;;  %v7631_v55 = vrot.slane %v7629_v47, 2  ;;  %v7634_v16 = vrot.slane %v7632_v35, 3  ;;  %9013 = vmatpush.bf16.msrb.mxu2 %v12918_v11  ;;  %v9339_v47 = vunpack.c.l.b16 %v9321_v23 }
 0x421   : > { %v5914_v18 = vpack.c.bf16 %v5896_v42, %v5896_v42  ;;  %7931 = vmatmul.bf16.gmra.mxu2 %v7846_v13  ;;  %7761 = vmatmul.bf16.gmra.mxu1 %v7627_v32  ;;  %v6691_v45 = vadd.f32 %v6650_v27, %v16260_v54  ;;  %v16907_v26 = vadd.f32 %v7290_v39, %v7162_v51  ;;  %v12926_v54 = vld [vmem:[%s18041_s3 + $0x128] sm:$0xff]  ;;  %v8410_v0 = vshll.u32 %v16909_v46, 16  ;;  %v12925_v4 = vld [vmem:[%s18041_s3 + $0x120] sm:$0xff] }
 0x422   : > { %9251 = vmatpush.bf16.msrb.mxu3 %v12926_v54  ;;  %8782 = vmatpush.bf16.msrb.mxu1 %v12902_v36  ;;  %v7847_v53 = vrot.slane %v16896_v48, 3  ;;  %v16932_v32 = vor.u32 %v7634_v16, %v7631_v55  ;;  %v8406_v15 = vshrl.u32 %v16859_v8, 16  ;;  %v12917_v55 = vld [vmem:[%s18041_s3 + $0xe0] sm:$0xff] }
 0x423   : > { %v6085_v21 = vshrl.u32 %v5914_v18, 16  ;;  %v6088_v33 = vshll.u32 %v5914_v18, 16  ;;  %v6923_v6 = vadd.f32 %v6882_v10, %v6691_v45  ;;  %v8412_v39 = vrot.slane %v8410_v0, 1  ;;  %v16955_v10 = vld [vmem:[#allocation2 + $0x30] sm:$0xff]  ;;  %v12885_v16 = vld [vmem:[%s18041_s3 + $0x20] sm:$0xff] }
 0x424   : > { %8532 = vmatmul.bf16.gmra.mxu3 %v8405_v5  ;;  %v7122_v49 = vpop.f32.mrf.mxu2  ;;  %v7848_v51 = vsel %vm2004_vm5, %v7845_v22, %v7847_v53  ;;  %v8408_v27 = vor.u32 %v8406_v15, %v16884_v24  ;;  %v7638_v11 = vshrl.u32 %v16955_v10, 16  ;;  %v7641_v24 = vshll.u32 %v16955_v10, 16  ;;  %9014 = vmatpush.bf16.msrb.mxu2 %v12917_v55 }
 0x425   : > { %v6087_v62 = vrot.slane %v6085_v21, 6  ;;  %v6090_v29 = vrot.slane %v6088_v33, 7  ;;  %v7163_v13 = vadd.f32 %v7122_v49, %v6923_v6  ;;  %v18105_v21 = vunpack.c.l.b16 %v16925_v25  ;;  %v16963_v6 = vld [vmem:[#allocation2 + $0x60] sm:$0xff]  ;;  %8633 = vmatpush.bf16.msrb.mxu0 %v12885_v16 }
 0x426   : > { %v7292_v58 = vpop.f32.mrf.mxu3  ;;  %v8413_v52 = vsel %vm400_vm0, %v8408_v27, %v8412_v39  ;;  %v7643_v0 = vrot.slane %v7641_v24, 3  ;;  %v9344_v49 = vrot.slane %v16963_v6, 2  ;;  %9252 = vmatpush.bf16.msrb.mxu3 %v12925_v4  ;;  %v8414_v27 = vshrl.u32 %v16909_v46, 16  ;;  %v12916_v4 = vld [vmem:[%s18041_s3 + $0xd8] sm:$0xff] }
 0x427   : > { %v6091_v14 = vor.u32 %v6090_v29, %v6087_v62  ;;  %v6885_v30 = vpop.f32.mrf.mxu1  ;;  %v16938_v5 = vadd.f32 %v7292_v58, %v7163_v13  ;;  %v7438_v29 = vsel %vm1362_vm3, %v7435_v59, %v7437_v38  ;;  %v9340_v35 = vpack.c.b16 %v18105_v21, %v9339_v47 }
 0x428   : > { %v6653_v18 = vpop.f32.mrf.mxu0  ;;  %v9342_v59 = vrot.slane %v16934_v12, 2  ;;  %9015 = vmatpush.bf16.msrb.mxu2 %v12916_v4 }
 0x429   : > { %v6092_v41 = vsel %vm14781_vm14, %v6083_v19, %v6091_v14  ;;  %v6093_v17 = vrot.slane %v6091_v14, 4  ;;  %v6692_v33 = vadd.f32 %v6653_v18, %v16302_v1  ;;  %v7636_v1 = vsel %vm1764_vm4, %v16874_v43, %v16932_v32 }
 0x42a   : > { %6132 = vst [vmem:[#allocation2 + $0x94] sm:$0xf] %v6092_v41  ;;  %v9341_v45 = vrot.slane %v9340_v35, 2  ;;  %v16971_v41 = vld [vmem:[#allocation2 + $0x68] sm:$0xff]  ;;  %v16988_v23 = vsel %vm1362_vm3, %v9342_v59, %v9344_v49 }
 0x42b   : > { %v6134_v42 = vsel %vm14371_vm8, %v6093_v17, %v6133_v31  ;;  %v6924_v62 = vadd.f32 %v6885_v30, %v6692_v33  ;;  %v8418_v58 = vshll.u32 %v16971_v41, 16  ;;  %v7439_v30 = vrot.slane %v16955_v10, 2 }
 0x42c   : > { %6135 = vst [vmem:[#allocation2 + $0x98] sm:$0x3] %v6134_v42  ;;  %v7125_v22 = vpop.f32.mrf.mxu2  ;;  %v16966_v40 = vsel %vm1362_vm3, %v9341_v45, %v9342_v59  ;;  %v7640_v42 = vrot.slane %v7638_v11, 2  ;;  %v7849_v33 = vrot.slane %v16955_v10, 3 }
 0x42d   : > { %v7164_v14 = vadd.f32 %v7125_v22, %v6924_v62  ;;  %v8420_v35 = vrot.slane %v8418_v58, 1  ;;  %v7440_v59 = vsel %vm1362_vm3, %v7437_v38, %v7439_v30  ;;  %v17004_v22 = vld [vmem:[#allocation2 + $0x38] sm:$0xff] }
 0x42e   : > { %7526 = vmatmul.bf16.gmra.mxu0 %v7438_v29  ;;  %v7295_v19 = vpop.f32.mrf.mxu3  ;;  %v7644_v29 = vor.u32 %v7643_v0, %v7640_v42  ;;  %v7850_v10 = vsel %vm2004_vm5, %v7847_v53, %v7849_v33  ;;  %v7647_v53 = vshrl.u32 %v17004_v22, 16  ;;  %v7650_v24 = vshll.u32 %v17004_v22, 16  ;;  %v12884_v42 = vld [vmem:[%s18041_s3 + $0x18] sm:$0xff] }
 0x42f   : > { %v6887_v43 = vpop.f32.mrf.mxu1  ;;  %v16969_v36 = vadd.f32 %v7295_v19, %v7164_v14  ;;  %v17006_v19 = vld [vmem:[#allocation2 + $0x68] sm:$0xff]  ;;  %8634 = vmatpush.bf16.msrb.mxu0 %v12884_v42 }
 0x430   : > { %v6655_v31 = vpop.f32.mrf.mxu0  ;;  %v7645_v45 = vsel %vm1764_vm4, %v16932_v32, %v7644_v29  ;;  %v9346_v32 = vrot.slane %v17006_v19, 2  ;;  %v7649_v0 = vrot.slane %v7647_v53, 2 }
 0x431   : > { %7936 = vmatmul.bf16.gmra.mxu2 %v7848_v51  ;;  %7766 = vmatmul.bf16.gmra.mxu1 %v7636_v1  ;;  %v6693_v54 = vadd.f32 %v6655_v31, %v16348_v3  ;;  %v12901_v3 = vld [vmem:[%s18041_s3 + $0xa0] sm:$0xff] }
 0x432   : > { %8783 = vmatpush.bf16.msrb.mxu1 %v12901_v3  ;;  %v17018_v55 = vsel %vm1362_vm3, %v9344_v49, %v9346_v32  ;;  %v7652_v3 = vrot.slane %v7650_v24, 3 }
 0x433   : > { %v6925_v17 = vadd.f32 %v6887_v43, %v6693_v54 }
 0x434   : > { %8537 = vmatmul.bf16.gmra.mxu3 %v8413_v52  ;;  %v7127_v13 = vpop.f32.mrf.mxu2 }
 0x435   : > { %v7165_v15 = vadd.f32 %v7127_v13, %v6925_v17  ;;  %v17015_v17 = vld [vmem:[#allocation2 + $0x70] sm:$0xff] }
 0x436   : > { %v7297_v18 = vpop.f32.mrf.mxu3  ;;  %v8426_v49 = vshll.u32 %v17015_v17, 16 }
 0x437   : > { %v6890_v62 = vpop.f32.mrf.mxu1  ;;  %v16993_v1 = vadd.f32 %v7297_v18, %v7165_v15  ;;  %v7441_v18 = vrot.slane %v17004_v22, 2  ;;  %v7851_v15 = vrot.slane %v17004_v22, 3 }
 0x438   : > { %v6658_v47 = vpop.f32.mrf.mxu0 }
 0x439   : > { %v6694_v51 = vadd.f32 %v6658_v47, %v16387_v20  ;;  %v8416_v20 = vor.u32 %v8414_v27, %v8412_v39  ;;  %v7653_v27 = vor.u32 %v7652_v3, %v7649_v0  ;;  %v7852_v22 = vsel %vm2004_vm5, %v7849_v33, %v7851_v15 }
 0x43b   : > { %v6926_v52 = vadd.f32 %v6890_v62, %v6694_v51  ;;  %v8421_v14 = vsel %vm400_vm0, %v8416_v20, %v8420_v35  ;;  %v12900_v20 = vld [vmem:[%s18041_s3 + $0x98] sm:$0xff] }
 0x43c   : > { %v7130_v31 = vpop.f32.mrf.mxu2  ;;  %8784 = vmatpush.bf16.msrb.mxu1 %v12900_v20 }
 0x43d   : > { %v7166_v38 = vadd.f32 %v7130_v31, %v6926_v52  ;;  %v7442_v31 = vsel %vm1362_vm3, %v7439_v30, %v7441_v18 }
 0x43e   : > { %7531 = vmatmul.bf16.gmra.mxu0 %v7440_v59  ;;  %v7300_v43 = vpop.f32.mrf.mxu3 }
 0x43f   : > { %v6892_v11 = vpop.f32.mrf.mxu1  ;;  %v17013_v54 = vadd.f32 %v7300_v43, %v7166_v38  ;;  %v7654_v43 = vsel %vm1764_vm4, %v7644_v29, %v7653_v27 }
 0x440   : > { %v6660_v48 = vpop.f32.mrf.mxu0 }
 0x441   : > { %7941 = vmatmul.bf16.gmra.mxu2 %v7850_v10  ;;  %7771 = vmatmul.bf16.gmra.mxu1 %v7645_v45  ;;  %v6695_v39 = vadd.f32 %v6660_v48, %v16426_v28  ;;  %v12924_v28 = vld [vmem:[%s18041_s3 + $0x118] sm:$0xff]  ;;  %v8422_v10 = vshrl.u32 %v16971_v41, 16  ;;  %v8428_v45 = vrot.slane %v8426_v49, 1  ;;  %v17044_v48 = vld [vmem:[#allocation2 + $0x70] sm:$0xff] }
 0x442   : > { %9253 = vmatpush.bf16.msrb.mxu3 %v12924_v28  ;;  %v17053_v28 = vld [vmem:[#allocation2 + $0x78] sm:$0xff]  ;;  %v12915_v49 = vld [vmem:[%s18041_s3 + $0xd0] sm:$0xff] }
 0x443   : > { %v6927_v16 = vadd.f32 %v6892_v11, %v6695_v39  ;;  %v8424_v38 = vor.u32 %v8422_v10, %v8420_v35  ;;  %v9348_v35 = vrot.slane %v17044_v48, 2  ;;  %9016 = vmatpush.bf16.msrb.mxu2 %v12915_v49 }
 0x444   : > { %8542 = vmatmul.bf16.gmra.mxu3 %v8421_v14  ;;  %v7132_v58 = vpop.f32.mrf.mxu2 }
 0x445   : > { %v7167_v47 = vadd.f32 %v7132_v58, %v6927_v16  ;;  %v8429_v11 = vsel %vm400_vm0, %v8424_v38, %v8428_v45  ;;  %v17056_v0 = vsel %vm1362_vm3, %v9346_v32, %v9348_v35 }
 0x446   : > { %v7302_v13 = vpop.f32.mrf.mxu3 }
 0x447   : > { %v6895_v51 = vpop.f32.mrf.mxu1  ;;  %v17033_v59 = vadd.f32 %v7302_v13, %v7167_v47  ;;  %v8434_v47 = vshll.u32 %v17053_v28, 16 }
 0x448   : > { %v6663_v62 = vpop.f32.mrf.mxu0 }
 0x449   : > { %v6696_v52 = vadd.f32 %v6663_v62, %v16462_v60  ;;  %v17042_v60 = vld [vmem:[#allocation2 + $0x40] sm:$0xff]  ;;  %v8436_v38 = vrot.slane %v8434_v47, 1 }
 0x44a   : > { %v7656_v33 = vshrl.u32 %v17042_v60, 16  ;;  %v7659_v29 = vshll.u32 %v17042_v60, 16 }
 0x44b   : > { %v6928_v14 = vadd.f32 %v6895_v51, %v6696_v52  ;;  %v7853_v52 = vrot.slane %v17042_v60, 3 }
 0x44c   : > { %v7135_v53 = vpop.f32.mrf.mxu2  ;;  %v7658_v58 = vrot.slane %v7656_v33, 2  ;;  %v7661_v13 = vrot.slane %v7659_v29, 3  ;;  %v17080_v33 = vld [vmem:[#allocation2 + $0x48] sm:$0xff]  ;;  %v17082_v29 = vld [vmem:[#allocation2 + $0x78] sm:$0xff] }
 0x44d   : > { %v7168_v39 = vadd.f32 %v7135_v53, %v6928_v14  ;;  %v12923_v53 = vld [vmem:[%s18041_s3 + $0x110] sm:$0xff] }
 0x44e   : > { %7536 = vmatmul.bf16.gmra.mxu0 %v7442_v31  ;;  %v7305_v24 = vpop.f32.mrf.mxu3  ;;  %v7662_v14 = vor.u32 %v7661_v13, %v7658_v58  ;;  %9254 = vmatpush.bf16.msrb.mxu3 %v12923_v53  ;;  %v9350_v13 = vrot.slane %v17082_v29, 2 }
 0x44f   : > { %v6897_v16 = vpop.f32.mrf.mxu1  ;;  %v17051_v42 = vadd.f32 %v7305_v24, %v7168_v39  ;;  %v7854_v39 = vsel %vm2004_vm5, %v7851_v15, %v7853_v52 }
 0x450   : > { %v6665_v30 = vpop.f32.mrf.mxu0 }
 0x451   : > { %7946 = vmatmul.bf16.gmra.mxu2 %v7852_v22  ;;  %7776 = vmatmul.bf16.gmra.mxu1 %v7654_v43  ;;  %v6697_v4 = vadd.f32 %v6665_v30, %v16507_v50  ;;  %v7443_v50 = vrot.slane %v17042_v60, 2  ;;  %v8430_v43 = vshrl.u32 %v17015_v17, 16  ;;  %v7663_v30 = vsel %vm1764_vm4, %v7653_v27, %v7662_v14 }
 0x452   : > { %v7665_v27 = vshrl.u32 %v17080_v33, 16 }
 0x453   : > { %v6929_v3 = vadd.f32 %v6897_v16, %v6697_v4  ;;  %v7444_v24 = vsel %vm1362_vm3, %v7441_v18, %v7443_v50  ;;  %v8432_v16 = vor.u32 %v8430_v43, %v8428_v45  ;;  %v7668_v45 = vshll.u32 %v17080_v33, 16 }
 0x454   : > { %8547 = vmatmul.bf16.gmra.mxu3 %v8429_v11  ;;  %v7137_v62 = vpop.f32.mrf.mxu2  ;;  %v12883_v11 = vld [vmem:[%s18041_s3 + $0x10] sm:$0xff] }
 0x455   : > { %v7169_v10 = vadd.f32 %v7137_v62, %v6929_v3  ;;  %8635 = vmatpush.bf16.msrb.mxu0 %v12883_v11  ;;  %v8437_v4 = vsel %vm400_vm0, %v8432_v16, %v8436_v38 }
 0x456   : > { %v7307_v51 = vpop.f32.mrf.mxu3 }
 0x457   : > { %v6900_v32 = vpop.f32.mrf.mxu1  ;;  %v17065_v22 = vadd.f32 %v7307_v51, %v7169_v10  ;;  %v17091_v51 = vld [vmem:[#allocation2 + $0x80] sm:$0xff]  ;;  %v17094_v10 = vsel %vm1362_vm3, %v9348_v35, %v9350_v13 }
 0x458   : > { %v6668_v20 = vpop.f32.mrf.mxu0  ;;  %18317 = vst [vmem:[#allocation37_spill] sm:$0xff] %v17094_v10  ;;  %v8442_v43 = vshll.u32 %v17091_v51, 16 }
 0x459   : > { %v6698_v31 = vadd.f32 %v6668_v20, %v16549_v37  ;;  %v12899_v37 = vld [vmem:[%s18041_s3 + $0x90] sm:$0xff] }
 0x45a   : > { %8785 = vmatpush.bf16.msrb.mxu1 %v12899_v37 }
 0x45b   : > { %v6930_v60 = vadd.f32 %v6900_v32, %v6698_v31  ;;  %v7667_v32 = vrot.slane %v7665_v27, 2  ;;  %v7670_v31 = vrot.slane %v7668_v45, 3  ;;  %v12922_v27 = vld [vmem:[%s18041_s3 + $0x108] sm:$0xff] }
 0x45c   : > { %v7140_v18 = vpop.f32.mrf.mxu2  ;;  %9255 = vmatpush.bf16.msrb.mxu3 %v12922_v27 }
 0x45d   : > { %v7170_v3 = vadd.f32 %v7140_v18, %v6930_v60  ;;  %v7445_v60 = vrot.slane %v17080_v33, 2  ;;  %v8444_v18 = vrot.slane %v8442_v43, 1 }
 0x45e   : > { %7541 = vmatmul.bf16.gmra.mxu0 %v7444_v24  ;;  %v7310_v15 = vpop.f32.mrf.mxu3  ;;  %v7855_v24 = vrot.slane %v17080_v33, 3  ;;  %v12921_v33 = vld [vmem:[%s18041_s3 + $0x100] sm:$0xff] }
 0x45f   : > { %v6902_v58 = vpop.f32.mrf.mxu1  ;;  %v17089_v62 = vadd.f32 %v7310_v15, %v7170_v3  ;;  %v12914_v15 = vld [vmem:[%s18041_s3 + $0xc8] sm:$0xff] }
 0x460   : > { %v6670_v49 = vpop.f32.mrf.mxu0  ;;  %9017 = vmatpush.bf16.msrb.mxu2 %v12914_v15  ;;  %9256 = vmatpush.bf16.msrb.mxu3 %v12921_v33 }
 0x461   : > { %7951 = vmatmul.bf16.gmra.mxu2 %v7854_v39  ;;  %7781 = vmatmul.bf16.gmra.mxu1 %v7663_v30  ;;  %v6699_v47 = vadd.f32 %v6670_v49, %v16601_v7  ;;  %v17099_v30 = vor.u32 %v7670_v31, %v7667_v32  ;;  %v7446_v49 = vsel %vm1362_vm3, %v7443_v50, %v7445_v60  ;;  %v12898_v50 = vld [vmem:[%s18041_s3 + $0x88] sm:$0xff] }
 0x462   : > { %8786 = vmatpush.bf16.msrb.mxu1 %v12898_v50 }
 0x463   : > { %v6931_v20 = vadd.f32 %v6902_v58, %v6699_v47  ;;  %v7856_v58 = vsel %vm2004_vm5, %v7853_v52, %v7855_v24  ;;  %v7672_v45 = vsel %vm1764_vm4, %v7662_v14, %v17099_v30  ;;  %v17127_v52 = vld [vmem:[#allocation2 + $0x80] sm:$0xff] }
 0x464   : > { %8552 = vmatmul.bf16.gmra.mxu3 %v8437_v4  ;;  %v7142_v11 = vpop.f32.mrf.mxu2  ;;  %v8438_v4 = vshrl.u32 %v17053_v28, 16 }
 0x465   : > { %v7171_v39 = vadd.f32 %v7142_v11, %v6931_v20  ;;  %v17122_v20 = vld [vmem:[#allocation2 + $0x50] sm:$0xff] }
 0x466   : > { %v7312_v53 = vpop.f32.mrf.mxu3  ;;  %v8440_v47 = vor.u32 %v8438_v4, %v8436_v38  ;;  %v17136_v4 = vld [vmem:[#allocation2 + $0x88] sm:$0xff]  ;;  %v18107_v50 = vrot.slane %v17122_v20, 2 }
 0x467   : > { %v6905_v37 = vpop.f32.mrf.mxu1  ;;  %v17102_v35 = vadd.f32 %v7312_v53, %v7171_v39  ;;  %v7674_v53 = vshrl.u32 %v17122_v20, 16  ;;  %v7677_v39 = vshll.u32 %v17122_v20, 16  ;;  %v8450_v27 = vshll.u32 %v17136_v4, 16 }
 0x468   : > { %v6673_v7 = vpop.f32.mrf.mxu0  ;;  %v8445_v32 = vsel %vm400_vm0, %v8440_v47, %v8444_v18 }
 0x469   : > { %v6700_v16 = vadd.f32 %v6673_v7, %v16626_v56  ;;  %v12882_v56 = vld [vmem:[%s18041_s3 + $0x8] sm:$0xff]  ;;  %v9352_v7 = vrot.slane %v17127_v52, 2 }
 0x46a   : > { %8636 = vmatpush.bf16.msrb.mxu0 %v12882_v56  ;;  %v7580_v56 = vld [vmem:[#allocation2 + $0x58] sm:$0x7] }
 0x46b   : > { %v6932_v3 = vadd.f32 %v6905_v37, %v6700_v16  ;;  %v17139_v15 = vsel %vm1362_vm3, %v9350_v13, %v9352_v7 }
 0x46c   : > { %v7145_v31 = vpop.f32.mrf.mxu2  ;;  %18318 = vst [vmem:[#allocation39_spill] sm:$0xff] %v17139_v15 }
 0x46d   : > { %v7172_v14 = vadd.f32 %v7145_v31, %v6932_v3  ;;  %v7679_v3 = vrot.slane %v7677_v39, 3  ;;  %v8452_v39 = vrot.slane %v8450_v27, 1 }
 0x46e   : > { %7546 = vmatmul.bf16.gmra.mxu0 %v7446_v49  ;;  %v7315_v43 = vpop.f32.mrf.mxu3 }
 0x46f   : > { %v6907_v11 = vpop.f32.mrf.mxu1  ;;  %v17134_v16 = vadd.f32 %v7315_v43, %v7172_v14 }
 0x470   : > { %v6675_v38 = vpop.f32.mrf.mxu0 }
 0x471   : > { %7956 = vmatmul.bf16.gmra.mxu2 %v7856_v58  ;;  %7786 = vmatmul.bf16.gmra.mxu1 %v7672_v45  ;;  %v6701_v37 = vadd.f32 %v6675_v38, %v16663_v2  ;;  %v7676_v58 = vrot.slane %v7674_v53, 2  ;;  %v7599_v38 = vunpack.c.l.b16 %v7580_v56  ;;  %v8446_v53 = vshrl.u32 %v17091_v51, 16  ;;  %v8321_v51 = vld [vmem:[#allocation2 + $0x90] sm:$0x1] }
 0x473   : > { %v6933_v49 = vadd.f32 %v6907_v11, %v6701_v37  ;;  %v17144_v14 = vor.u32 %v7679_v3, %v7676_v58  ;;  %v7366_v37 = vld [vmem:[#allocation2 + $0x58] sm:$0x3]  ;;  %v12881_v3 = vld [vmem:[%s18041_s3] sm:$0xff]  ;;  %v8448_v56 = vor.u32 %v8446_v53, %v8444_v18  ;;  %v7600_v27 = vpack.c.b16 %v7599_v38, %v7599_v38 }
 0x474   : > { %8557 = vmatmul.bf16.gmra.mxu3 %v8445_v32  ;;  %v7147_v45 = vpop.f32.mrf.mxu2  ;;  %v18106_v32 = vrot.slane %v17122_v20, 3  ;;  %8637 = vmatpush.bf16.msrb.mxu0 %v12881_v3 }
 0x475   : > { %v7173_v2 = vadd.f32 %v7147_v45, %v6933_v49  ;;  %v7448_v49 = vsel %vm1362_vm3, %v7445_v60, %v18107_v50  ;;  %v7681_v60 = vsel %vm1764_vm4, %v17099_v30, %v17144_v14  ;;  %v17175_v45 = vld [vmem:[#allocation2 + $0x88] sm:$0xff]  ;;  %v7683_v53 = vshrl.u32 %v7600_v27, 16 }
 0x476   : > { %v7317_v47 = vpop.f32.mrf.mxu3  ;;  %v7858_v58 = vsel %vm2004_vm5, %v7855_v24, %v18106_v32  ;;  %v12897_v24 = vld [vmem:[%s18041_s3 + $0x80] sm:$0xff]  ;;  %v7859_v50 = vrot.slane %v7600_v27, 3 }
 0x477   : > { %v6910_v43 = vpop.f32.mrf.mxu1  ;;  %v17147_v11 = vadd.f32 %v7317_v47, %v7173_v2  ;;  %v8453_v47 = vsel %vm400_vm0, %v8448_v56, %v8452_v39  ;;  %v8375_v2 = vunpack.c.l.b16 %v8321_v51  ;;  %8787 = vmatpush.bf16.msrb.mxu1 %v12897_v24 }
 0x478   : > { %v6678_v31 = vpop.f32.mrf.mxu0 }
 0x479   : > { %v6702_v13 = vadd.f32 %v6678_v31, %v16698_v44  ;;  %v12913_v44 = vld [vmem:[%s18041_s3 + $0xc0] sm:$0xff]  ;;  %v7421_v31 = vunpack.c.l.b16 %v7366_v37  ;;  %v17182_v56 = vpack.c.b16 %v8375_v2, %v8375_v2  ;;  %v7685_v37 = vrot.slane %v7683_v53, 2 }
 0x47a   : > { %9018 = vmatpush.bf16.msrb.mxu2 %v12913_v44  ;;  %v18319_v53 = vrot.slane %v17122_v20, 2 }
 0x47b   : > { %v6934_v21 = vadd.f32 %v6910_v43, %v6702_v13  ;;  %v7431_v3 = vpack.c.b16 %v7421_v31, %v7421_v31 }
 0x47c   : > { %v7150_v30 = vpop.f32.mrf.mxu2 }
 0x47d   : > { %v7174_v43 = vadd.f32 %v7150_v30, %v6934_v21  ;;  %v8458_v21 = vshll.u32 %v17182_v56, 16  ;;  %v7449_v32 = vrot.slane %v7431_v3, 2 }
 0x47e   : > { %7551 = vmatmul.bf16.gmra.mxu0 %v7448_v49  ;;  %v7320_v18 = vpop.f32.mrf.mxu3  ;;  %v7686_v49 = vshll.u32 %v7600_v27, 16 }
 0x47f   : > { %v6912_v13 = vpop.f32.mrf.mxu1  ;;  %v17180_v44 = vadd.f32 %v7320_v18, %v7174_v43  ;;  %v9083_v43 = vld [vmem:[#allocation2 + $0x98] sm:$0x3]  ;;  %v8460_v31 = vrot.slane %v8458_v21, 1 }
 0x480   : > { %v6680_v38 = vpop.f32.mrf.mxu0  ;;  %v7688_v24 = vrot.slane %v7686_v49, 3  ;;  %v7450_v49 = vsel %vm1362_vm3, %v18319_v53, %v7449_v32 }
 0x481   : > { %7961 = vmatmul.bf16.gmra.mxu2 %v7858_v58  ;;  %7791 = vmatmul.bf16.gmra.mxu1 %v7681_v60  ;;  %v9354_v58 = vrot.slane %v17175_v45, 2  ;;  %v6703_v60 = vadd.f32 %v6680_v38, %v16727_v63 }
 0x482   : > { %v7689_v18 = vor.u32 %v7688_v24, %v7685_v37 }
 0x483   : > { %v6935_v51 = vadd.f32 %v6912_v13, %v6703_v60  ;;  %v17185_v33 = vsel %vm1362_vm3, %v9352_v7, %v9354_v58  ;;  %v8454_v7 = vshrl.u32 %v17136_v4, 16  ;;  %v18320_v60 = vrot.slane %v17122_v20, 3 }
 0x484   : > { %8562 = vmatmul.bf16.gmra.mxu3 %v8453_v47  ;;  %v7152_v47 = vpop.f32.mrf.mxu2  ;;  %v9101_v4 = vunpack.c.l.b16 %v9083_v43  ;;  %v9115_v43 = vshll.u32 %v16934_v12, 16 }
 0x485   : > { %v7175_v15 = vadd.f32 %v7152_v47, %v6935_v51  ;;  %v7860_v27 = vsel %vm2004_vm5, %v18320_v60, %v7859_v50  ;;  %v8852_v51 = vld [vmem:[#allocation2 + $0x50] sm:$0xe]  ;;  %v18321_v47 = vunpack.c.l.b16 %v16925_v25  ;;  %v13167_v60 = vld [vmem:[#allocation2 + $0x48] sm:$0xe] }
 0x486   : > { %v7322_v30 = vpop.f32.mrf.mxu3  ;;  %v8906_v37 = vunpack.c.l.b16 %v8852_v51 }
 0x487   : > { %v6915_v63 = vpop.f32.mrf.mxu1  ;;  %v17189_v38 = vadd.f32 %v7322_v30, %v7175_v15  ;;  %v17200_v15 = vld [vmem:[#allocation2 + $0x90] sm:$0xff] }
 0x488   : > { %v6683_v10 = vpop.f32.mrf.mxu0  ;;  %v8925_v30 = vpack.c.b16 %v18321_v47, %v8906_v37 }
 0x489   : > { %v6704_v2 = vadd.f32 %v6683_v10, %v16770_v9  ;;  %v7690_v9 = vsel %vm1764_vm4, %v17144_v14, %v7689_v18  ;;  %v8456_v10 = vor.u32 %v8454_v7, %v8452_v39  ;;  %v9356_v14 = vrot.slane %v17200_v15, 2 }
 0x48a   : > { %v9104_v53 = vshrl.u32 %v8925_v30, 16  ;;  %v9107_v25 = vshll.u32 %v8925_v30, 16  ;;  %v8935_v47 = vrot.slane %v8925_v30, 1  ;;  %v17229_v30 = vld [vmem:[%s18042_s4] ss:$0 sm:$0xff] }
 0x48b   : > { %v6936_v13 = vadd.f32 %v6915_v63, %v6704_v2  ;;  %v8461_v3 = vsel %vm400_vm0, %v8456_v10, %v8460_v31  ;;  %v17205_v63 = vpack.c.b16 %v9101_v4, %v9101_v4  ;;  %v9112_v2 = vshrl.u32 %v16934_v12, 16 }
 0x48c   : > { %v7155_v24 = vpop.f32.mrf.mxu2  ;;  %v17214_v7 = vsel %vm1362_vm3, %v9354_v58, %v9356_v14 }
 0x48d   : > { %v7176_v20 = vadd.f32 %v7155_v24, %v6936_v13  ;;  %18322 = vst [vmem:[#allocation22_spill] sm:$0xff] %v17214_v7  ;;  %v13166_v13 = vld [vmem:[#allocation2 + $0x48] sm:$0xf0]  ;;  %v9114_v51 = vrot.slane %v9112_v2, 1 }
 0x48e   : > { %7556 = vmatmul.bf16.gmra.mxu0 %v7450_v49  ;;  %v7325_v32 = vpop.f32.mrf.mxu3  ;;  %v9358_v49 = vrot.slane %v17205_v63, 2 }
 0x48f   : > { %v6917_v50 = vpop.f32.mrf.mxu1  ;;  %v17209_v18 = vadd.f32 %v7325_v32, %v7176_v20  ;;  %v13516_v32 = vld [vmem:[#allocation2 + $0x50] sm:$0xff] }
 0x490   : > { %v6685_v21 = vpop.f32.mrf.mxu0  ;;  %v8705_v20 = vrot.slane %v13516_v32, 1 }
 0x491   : > { %7966 = vmatmul.bf16.gmra.mxu2 %v7860_v27  ;;  %7796 = vmatmul.bf16.gmra.mxu1 %v7690_v9  ;;  %v6705_v39 = vadd.f32 %v6685_v21, %v16819_v61  ;;  %v13168_v27 = vor.u32 %v13167_v60, %v13166_v13  ;;  %v9117_v9 = vrot.slane %v9115_v43, 2  ;;  %v17218_v61 = vsel %vm1362_vm3, %v9356_v14, %v9358_v49  ;;  %v13517_v49 = vld [vmem:[#allocation2 + $0x48] sm:$0xff]  }
 0x492   : > { %18323 = vst [vmem:[#allocation27_spill] sm:$0xff] %v17218_v61  ;;  %v9106_v21 = vrot.slane %v9104_v53, 1 }
 0x493   : > { %v6937_v31 = vadd.f32 %v6917_v50, %v6705_v39  ;;  %v9109_v50 = vrot.slane %v9107_v25, 2  ;;  %v8704_v43 = vrot.slane %v13168_v27, 1  ;;  %v9118_v13 = vor.u32 %v9117_v9, %v9114_v51 }
 0x494   : > { %8567 = vmatmul.bf16.gmra.mxu3 %v8461_v3  ;;  %v7157_v10 = vpop.f32.mrf.mxu2  ;;  %v8936_v3 = vrot.slane %v16934_v12, 1 }
 0x495   : > { %v7177_v37 = vadd.f32 %v7157_v10, %v6937_v31  ;;  %v8706_v12 = vsel %vm720_vm1, %v8704_v43, %v8705_v20  ;;  %v9110_v31 = vor.u32 %v9109_v50, %v9106_v21  ;;  %v9121_v10 = vshrl.u32 %v16963_v6, 16  ;;  %v12936_v43 = vld [vmem:[%s18041_s3 + $0x178] sm:$0xff] }
 0x496   : > { %v7327_v4 = vpop.f32.mrf.mxu3  ;;  %v8937_v14 = vsel %vm720_vm1, %v8935_v47, %v8936_v3  ;;  %9417 = vmatpush.bf16.msra.mxu0 %v12936_v43 }
 0x497   : > { %v7757_v24 = vpop.f32.mrf.mxu1  ;;  %v17221_v39 = vadd.f32 %v7327_v4, %v7177_v37  ;;  %v9119_v53 = vsel %vm1122_vm2, %v9110_v31, %v9118_v13  ;;  %v9123_v21 = vrot.slane %v9121_v10, 1  ;;  %v12952_v10 = vld [vmem:[%s18041_s3 + $0x1b8] sm:$0xff] }
 0x498   : > { %v7517_v58 = vpop.f32.mrf.mxu0  ;;  %9648 = vmatpush.bf16.msra.mxu1 %v12952_v10  ;;  %v17283_v10 = vld [vmem:[%s13653_s11 + $0x10] sm:$0xff]  }
 0x499   : > { %v7562_v2 = vadd.f32 %v7517_v58, %v16857_v34  ;;  %v9124_v58 = vshll.u32 %v16963_v6, 16 }
 0x49b   : > { %v7802_v60 = vadd.f32 %v7757_v24, %v7562_v2  ;;  %v12960_v2 = vld [vmem:[%s18041_s3 + $0x1f8] sm:$0xff] }
 0x49c   : > { %v7927_v34 = vpop.f32.mrf.mxu2  ;;  %9886 = vmatpush.bf16.msra.mxu2 %v12960_v2 }
 0x49d   : > { %v7972_v27 = vadd.f32 %v7927_v34, %v7802_v60  ;;  %v18109_v34 = vrot.slane %v16859_v8, 1 }
 0x49e   : > { %8638 = vmatmul.bf16.vlgmr.msrb.gmra.mxu0 %v13517_v49  ;;  %v17232_v25 = vpop.f32.mrf.mxu3 }
 0x49f   : > { %v7759_v9 = vpop.f32.mrf.mxu1  ;;  %v17236_v4 = vadd.f32 %v17229_v30, %v7972_v27  ;;  %v18108_v27 = vrot.slane %v16963_v6, 1 }
 0x4a0   : > { %v7519_v51 = vpop.f32.mrf.mxu0 }
 0x4a1   : > { %9019 = vmatmul.bf16.vlgmr.msrb.gmra.mxu2 %v8937_v14  ;;  %8788 = vmatmul.bf16.vlgmr.msrb.gmra.mxu1 %v8706_v12  ;;  %v7563_v37 = vadd.f32 %v7519_v51, %v16882_v57  ;;  %v8011_v24 = vsub.f32 0.0, %v17236_v4  ;;  %v12968_v14 = vld [vmem:[%s18041_s3 + $0x238] sm:$0xff]  ;;  %v9126_v57 = vrot.slane %v9124_v58, 2 }
 0x4a2   : > { %10054 = vmatpush.bf16.msra.mxu3 %v12968_v14 }
 0x4a3   : > { %v8029_v50 = vmul.f32 1.442695, %v8011_v24  ;;  %v7803_v47 = vadd.f32 %v7759_v9, %v7563_v37  ;;  %v17261_v37 = vor.u32 %v9126_v57, %v9123_v21  ;;  %v8708_v24 = vsel %vm720_vm1, %v8705_v20, %v18109_v34 }
 0x4a4   : > { %9257 = vmatmul.bf16.vlgmr.msrb.gmra.mxu3 %v9119_v53  ;;  %v7929_v49 = vpop.f32.mrf.mxu2 }
 0x4a5   : > { %13361 = vpow2.f32 %v8029_v50  ;;  %v7973_v31 = vadd.f32 %v7929_v49, %v7803_v47  ;;  %v8939_v50 = vsel %vm720_vm1, %v8936_v3, %v18108_v27  ;;  %v9128_v2 = vsel %vm1122_vm2, %v9118_v13, %v17261_v37  ;;  %v8120_v13 = vld [vmem:[%s13653_s11 + $0xc] sm:$0xf] }
 0x4a6   : > { %v17250_v12 = vpop.f32.mrf.mxu3 }
 0x4a7   : > { %v7762_v53 = vpop.f32.mrf.mxu1  ;;  %v17255_v51 = vadd.f32 %v17229_v30, %v7973_v31 }
 0x4a8   : > { %v7522_v60 = vpop.f32.mrf.mxu0 }
 0x4a9   : > { %v7564_v9 = vadd.f32 %v7522_v60, %v16907_v26  ;;  %v8012_v58 = vsub.f32 0.0, %v17255_v51  ;;  %v9130_v60 = vshrl.u32 %v17006_v19, 16 }
 0x4ab   : > { %v13362_v26 = vpop.eup %13361  ;;  %v8031_v47 = vmul.f32 1.442695, %v8012_v58  ;;  %v7804_v21 = vadd.f32 %v7762_v53, %v7564_v9  ;;  %v9133_v53 = vshll.u32 %v17006_v19, 16  ;;  %v8119_v9 = vld [vmem:[%s13653_s11 + $0x8] sm:$0xe] }
 0x4ac   : > { %v8065_v3 = vadd.f32 1.0, %v13362_v26  ;;  %v12959_v26 = vld [vmem:[%s18041_s3 + $0x1f0] sm:$0xff] }
 0x4ad   : > { %13363 = vpow2.f32 %v8031_v47  ;;  %9887 = vmatpush.bf16.msra.mxu2 %v12959_v26  ;;  %v13518_v26 = vld [vmem:[#allocation2 + $0x58] sm:$0xff] }
 0x4ae   : > { %8643 = vmatmul.bf16.gmra.mxu0 %v13516_v32  ;;  %v7932_v32 = vpop.f32.mrf.mxu2  ;;  %v17272_v43 = vpop.f32.mrf.mxu3  ;;  %13365 = vrcp.f32 %v8065_v3 }
 0x4af   : > { %v7974_v20 = vadd.f32 %v7932_v32, %v7804_v21  ;;  %v7764_v57 = vpop.f32.mrf.mxu1  ;;  %v9132_v21 = vrot.slane %v9130_v60, 1  ;;  %v8139_v32 = vunpack.c.l.bf16 %v8120_v13  ;;  %v12951_v13 = vld [vmem:[%s18041_s3 + $0x1b0] sm:$0xff] }
 0x4b0   : > { %v7524_v14 = vpop.f32.mrf.mxu0  ;;  %9649 = vmatpush.bf16.msra.mxu1 %v12951_v13 }
 0x4b1   : > { %8793 = vmatmul.bf16.gmra.mxu1 %v8708_v24  ;;  %9024 = vmatmul.bf16.gmra.mxu2 %v8939_v50  ;;  %v17275_v49 = vadd.f32 %v17229_v30, %v7974_v20  ;;  %v7565_v31 = vadd.f32 %v7524_v14, %v16938_v5  ;;  %v9135_v5 = vrot.slane %v9133_v53, 2  ;;  %v12983_v14 = vunpack.c.l.bf16 %v17283_v10 }
 0x4b3   : > { %v8013_v58 = vsub.f32 0.0, %v17275_v49  ;;  %v13364_v24 = vpop.eup %13363  ;;  %v7805_v47 = vadd.f32 %v7764_v57, %v7565_v31  ;;  %v8709_v57 = vrot.slane %v16909_v46, 1  ;;  %v8940_v31 = vrot.slane %v17006_v19, 1 }
 0x4b4   : > { %9262 = vmatmul.bf16.gmra.mxu3 %v9128_v2  ;;  %v8138_v2 = vunpack.c.l.bf16 %v8119_v9  ;;  %v8066_v20 = vadd.f32 1.0, %v13364_v24  ;;  %v12935_v9 = vld [vmem:[%s18041_s3 + $0x170] sm:$0xff]  ;;  %v13366_v24 = vpop.eup %13365 }
 0x4b5   : > { %v8033_v50 = vmul.f32 1.442695, %v8013_v58  ;;  %v17307_v58 = vor.u32 %v9135_v5, %v9132_v21  ;;  %9418 = vmatpush.bf16.msra.mxu0 %v12935_v9  ;;  %v18325_v5 = vrot.slane %v16963_v6, 1 }
 0x4b6   : > { %v7934_v27 = vpop.f32.mrf.mxu2  ;;  %v17290_v34 = vpop.f32.mrf.mxu3 }
 0x4b7   : > { %13367 = vpow2.f32 %v8033_v50  ;;  %v7975_v61 = vadd.f32 %v7934_v27, %v7805_v47  ;;  %v7767_v7 = vpop.f32.mrf.mxu1  ;;  %v12967_v27 = vld [vmem:[%s18041_s3 + $0x230] sm:$0xff]  ;;  %v8177_v50 = vrot.slane %v8138_v2, 3  ;;  %v17309_v47 = vrot.slane %v12983_v14, 3 }
 0x4b8   : > { %v7527_v3 = vpop.f32.mrf.mxu0  ;;  %13369 = vrcp.f32 %v8066_v20  ;;  %10055 = vmatpush.bf16.msra.mxu3 %v12967_v27  ;;  %v18324_v20 = vrot.slane %v16859_v8, 1  ;;  %v8941_v2 = vsel %vm720_vm1, %v18325_v5, %v8940_v31  ;;  %v8101_v14 = vmul.f32 %v13366_v24, %v17236_v4 }
 0x4b9   : > { %v17295_v60 = vadd.f32 %v17229_v30, %v7975_v61  ;;  %v7566_v53 = vadd.f32 %v7527_v3, %v16969_v36  ;;  %v8178_v61 = vrot.slane %v8139_v32, 3  ;;  %v9137_v27 = vsel %vm1122_vm2, %v17261_v37, %v17307_v58 }
 0x4ba   : > { %v8710_v21 = vsel %vm720_vm1, %v18324_v20, %v8709_v57  ;;  %v9139_v37 = vshrl.u32 %v17044_v48, 16 }
 0x4bb   : > { %v8014_v36 = vsub.f32 0.0, %v17295_v60  ;;  %v7806_v9 = vadd.f32 %v7767_v7, %v7566_v53  ;;  %v8179_v13 = vsel %vm2004_vm5, %v8177_v50, %v8178_v61  ;;  %v8181_v6 = vsel %vm2004_vm5, %v8178_v61, %v17309_v47 }
 0x4bc   : > { %v9142_v50 = vshll.u32 %v17044_v48, 16 }
 0x4bd   : > { %v13368_v32 = vpop.eup %13367  ;;  %v8035_v3 = vmul.f32 1.442695, %v8014_v36 }
 0x4be   : > { %8648 = vmatmul.bf16.gmra.mxu0 %v13518_v26  ;;  %v13370_v8 = vpop.eup %13369  ;;  %v7937_v26 = vpop.f32.mrf.mxu2  ;;  %v8067_v36 = vadd.f32 1.0, %v13368_v32 }
 0x4bf   : > { %v17330_v20 = vpop.f32.mrf.mxu3  ;;  %v8102_v7 = vmul.f32 %v13370_v8, %v17255_v51  ;;  %13371 = vpow2.f32 %v8035_v3  ;;  %v7976_v4 = vadd.f32 %v7937_v26, %v7806_v9  ;;  %v7769_v24 = vpop.f32.mrf.mxu1  ;;  %v17345_v3 = vld [vmem:[%s13653_s11 + $0x18] sm:$0xff]   ;;  %v9141_v8 = vrot.slane %v9139_v37, 1  ;;  %v12958_v37 = vld [vmem:[%s18041_s3 + $0x1e8] sm:$0xff] }
 0x4c0   : > { %v7529_v53 = vpop.f32.mrf.mxu0  ;;  %13373 = vrcp.f32 %v8067_v36  ;;  %v12987_v26 = vunpack.c.l.bf16 %v17345_v3  ;;  %v8711_v36 = vrot.slane %v16971_v41, 1  ;;  %9888 = vmatpush.bf16.msra.mxu2 %v12958_v37 }
 0x4c1   : > { %8798 = vmatmul.bf16.gmra.mxu1 %v8710_v21  ;;  %9029 = vmatmul.bf16.gmra.mxu2 %v8941_v2  ;;  %v8232_v21 = vadd.f32 %v8179_v13, %v8101_v14  ;;  %v8233_v5 = vadd.f32 %v8181_v6, %v8102_v7  ;;  %v17336_v61 = vadd.f32 %v17229_v30, %v7976_v4  ;;  %v9144_v13 = vrot.slane %v9142_v50, 2  ;;  %v12934_v50 = vld [vmem:[%s18041_s3 + $0x168] sm:$0xff] }
 0x4c2   : > { %v7567_v2 = vadd.f32 %v7529_v53, %v16993_v1  ;;  %v12984_v1 = vunpack.c.h.bf16 %v17283_v10  ;;  %9419 = vmatpush.bf16.msra.mxu0 %v12934_v50 }
 0x4c3   : > { %v13016_v51 = vpack.c.bf16 %v8233_v5, %v8232_v21  ;;  %v8015_v32 = vsub.f32 0.0, %v17336_v61 }
 0x4c4   : > { %9267 = vmatmul.bf16.gmra.mxu3 %v9137_v27  ;;  %v7807_v27 = vadd.f32 %v7769_v24, %v7567_v2  ;;  %v12966_v2 = vld [vmem:[%s18041_s3 + $0x228] sm:$0xff] }
 0x4c5   : > { %v13372_v9 = vpop.eup %13371  ;;  %13017 = vst [vmem:[%s17342_s26] sm:$0xff] %v13016_v51   ;;  %v8037_v14 = vmul.f32 1.442695, %v8015_v32  ;;  %v8942_v51 = vrot.slane %v17044_v48, 1  ;;  %v17368_v32 = vor.u32 %v9144_v13, %v9141_v8  ;;  %10056 = vmatpush.bf16.msra.mxu3 %v12966_v2  ;;  %v8712_v8 = vsel %vm720_vm1, %v8709_v57, %v8711_v36 }
 0x4c6   : > { %v8068_v6 = vadd.f32 1.0, %v13372_v9  ;;  %v7939_v7 = vpop.f32.mrf.mxu2  ;;  %v13374_v9 = vpop.eup %13373 }
 0x4c7   : > { %v17351_v4 = vpop.f32.mrf.mxu3  ;;  %13375 = vpow2.f32 %v8037_v14  ;;  %v7977_v53 = vadd.f32 %v7939_v7, %v7807_v27  ;;  %v7772_v5 = vpop.f32.mrf.mxu1  ;;  %v8182_v14 = vrot.slane %v12984_v1, 3  ;;  %v17370_v27 = vrot.slane %v12987_v26, 3 }
 0x4c8   : > { %v7532_v21 = vpop.f32.mrf.mxu0  ;;  %13377 = vrcp.f32 %v8068_v6  ;;  %v8943_v13 = vsel %vm720_vm1, %v8940_v31, %v8942_v51  ;;  %v8103_v26 = vmul.f32 %v13374_v9, %v17275_v49  ;;  %v9146_v46 = vsel %vm1122_vm2, %v17307_v58, %v17368_v32 }
 0x4c9   : > { %v17356_v24 = vadd.f32 %v17229_v30, %v7977_v53  ;;  %v7568_v10 = vadd.f32 %v7532_v21, %v17013_v54  ;;  %v12950_v54 = vld [vmem:[%s18041_s3 + $0x1a8] sm:$0xff]  ;;  %v13519_v21 = vld [vmem:[#allocation2 + $0x60] sm:$0xff]  ;;  %v8183_v57 = vsel %vm2004_vm5, %v17309_v47, %v8182_v14  ;;  %v8185_v19 = vsel %vm2004_vm5, %v8182_v14, %v17370_v27 }
 0x4ca   : > { %9650 = vmatpush.bf16.msra.mxu1 %v12950_v54  ;;  %v9148_v9 = vshrl.u32 %v17082_v29, 16  ;;  %v9151_v47 = vshll.u32 %v17082_v29, 16  ;;  %v8234_v54 = vadd.f32 %v8183_v57, %v8103_v26  ;;  %v12988_v26 = vunpack.c.h.bf16 %v17345_v3 }
 0x4cb   : > { %v8016_v6 = vsub.f32 0.0, %v17356_v24  ;;  %v7808_v53 = vadd.f32 %v7772_v5, %v7568_v10 }
 0x4cd   : > { %v13376_v1 = vpop.eup %13375  ;;  %v8039_v7 = vmul.f32 1.442695, %v8016_v6 }
 0x4ce   : > { %8653 = vmatmul.bf16.gmra.mxu0 %v13519_v21  ;;  %v13378_v37 = vpop.eup %13377  ;;  %v7942_v31 = vpop.f32.mrf.mxu2  ;;  %v8069_v2 = vadd.f32 1.0, %v13376_v1  ;;  %v17404_v21 = vld [vmem:[%s13653_s11 + $0x20] sm:$0xff]  }
 0x4cf   : > { %v17394_v50 = vpop.f32.mrf.mxu3  ;;  %v8104_v49 = vmul.f32 %v13378_v37, %v17295_v60  ;;  %13379 = vpow2.f32 %v8039_v7  ;;  %v7978_v5 = vadd.f32 %v7942_v31, %v7808_v53  ;;  %v7774_v58 = vpop.f32.mrf.mxu1  ;;  %v9153_v37 = vrot.slane %v9151_v47, 2  ;;  %v12933_v47 = vld [vmem:[%s18041_s3 + $0x160] sm:$0xff] }
 0x4d0   : > { %v7534_v10 = vpop.f32.mrf.mxu0  ;;  %13381 = vrcp.f32 %v8069_v2  ;;  %v8713_v2 = vrot.slane %v17015_v17, 1  ;;  %9420 = vmatpush.bf16.msra.mxu0 %v12933_v47  ;;  %v9157_v47 = vshrl.u32 %v17127_v52, 16 }
 0x4d1   : > { %8803 = vmatmul.bf16.gmra.mxu1 %v8712_v8  ;;  %9034 = vmatmul.bf16.gmra.mxu2 %v8943_v13  ;;  %v8235_v14 = vadd.f32 %v8185_v19, %v8104_v49  ;;  %v17400_v6 = vadd.f32 %v17229_v30, %v7978_v5  ;;  %v7569_v8 = vadd.f32 %v7534_v10, %v17033_v59  ;;  %v12991_v19 = vunpack.c.l.bf16 %v17404_v21 }
 0x4d3   : > { %v13021_v13 = vpack.c.bf16 %v8235_v14, %v8234_v54  ;;  %v8017_v60 = vsub.f32 0.0, %v17400_v6  ;;  %v7809_v53 = vadd.f32 %v7774_v58, %v7569_v8  ;;  %v8944_v54 = vrot.slane %v17082_v29, 1  ;;  %v12965_v14 = vld [vmem:[%s18041_s3 + $0x220] sm:$0xff] }
 0x4d4   : > { %9272 = vmatmul.bf16.gmra.mxu3 %v9146_v46  ;;  %v9150_v46 = vrot.slane %v9148_v9, 1  ;;  %v12957_v9 = vld [vmem:[%s18041_s3 + $0x1e0] sm:$0xff] }
 0x4d5   : > { %v13380_v7 = vpop.eup %13379  ;;  %13157 = vst [vmem:[%s17342_s26 + $0x8] sm:$0xff] %v13021_v13   ;;  %v8041_v1 = vmul.f32 1.442695, %v8017_v60  ;;  %v8186_v60 = vrot.slane %v12988_v26, 3  ;;  %9889 = vmatpush.bf16.msra.mxu2 %v12957_v9  ;;  %10057 = vmatpush.bf16.msra.mxu3 %v12965_v14 }
 0x4d6   : > { %v8070_v57 = vadd.f32 1.0, %v13380_v7  ;;  %v7944_v31 = vpop.f32.mrf.mxu2  ;;  %v17427_v8 = vor.u32 %v9153_v37, %v9150_v46  ;;  %v13382_v13 = vpop.eup %13381  ;;  %v17429_v7 = vrot.slane %v12991_v19, 3  ;;  %v8945_v46 = vsel %vm720_vm1, %v8942_v51, %v8944_v54 }
 0x4d7   : > { %v17410_v49 = vpop.f32.mrf.mxu3  ;;  %13383 = vpow2.f32 %v8041_v1  ;;  %v7979_v59 = vadd.f32 %v7944_v31, %v7809_v53  ;;  %v7777_v10 = vpop.f32.mrf.mxu1  ;;  %v8714_v53 = vsel %vm720_vm1, %v8711_v36, %v8713_v2  ;;  %v8105_v26 = vmul.f32 %v13382_v13, %v17336_v61  ;;  %v13520_v31 = vld [vmem:[#allocation2 + $0x68] sm:$0xff] }
 0x4d8   : > { %v7537_v5 = vpop.f32.mrf.mxu0  ;;  %13385 = vrcp.f32 %v8070_v57  ;;  %v9155_v41 = vsel %vm1122_vm2, %v17368_v32, %v17427_v8  ;;  %v8187_v36 = vsel %vm2004_vm5, %v17370_v27, %v8186_v60  ;;  %v8189_v48 = vsel %vm2004_vm5, %v8186_v60, %v17429_v7 }
 0x4d9   : > { %v17415_v58 = vadd.f32 %v17229_v30, %v7979_v59  ;;  %v7570_v3 = vadd.f32 %v7537_v5, %v17051_v42  ;;  %v12949_v42 = vld [vmem:[%s18041_s3 + $0x1a0] sm:$0xff]  ;;  %v9160_v27 = vshll.u32 %v17127_v52, 16  ;;  %v8236_v14 = vadd.f32 %v8187_v36, %v8105_v26 }
 0x4da   : > { %9651 = vmatpush.bf16.msra.mxu1 %v12949_v42  ;;  %v12992_v26 = vunpack.c.h.bf16 %v17404_v21 }
 0x4db   : > { %v8018_v1 = vsub.f32 0.0, %v17415_v58  ;;  %v7810_v19 = vadd.f32 %v7777_v10, %v7570_v3 }
 0x4dd   : > { %v13384_v37 = vpop.eup %13383  ;;  %v8043_v57 = vmul.f32 1.442695, %v8018_v1 }
 0x4de   : > { %8658 = vmatmul.bf16.gmra.mxu0 %v13520_v31  ;;  %v13386_v59 = vpop.eup %13385  ;;  %v7947_v51 = vpop.f32.mrf.mxu2  ;;  %v8071_v9 = vadd.f32 1.0, %v13384_v37  ;;  %v9162_v31 = vrot.slane %v9160_v27, 2  ;;  %v12964_v27 = vld [vmem:[%s18041_s3 + $0x218] sm:$0xff] }
 0x4df   : > { %v17453_v5 = vpop.f32.mrf.mxu3  ;;  %v8106_v61 = vmul.f32 %v13386_v59, %v17356_v24  ;;  %13387 = vpow2.f32 %v8043_v57  ;;  %v7980_v10 = vadd.f32 %v7947_v51, %v7810_v19  ;;  %v7779_v32 = vpop.f32.mrf.mxu1  ;;  %v9159_v19 = vrot.slane %v9157_v47, 1  ;;  %v12932_v47 = vld [vmem:[%s18041_s3 + $0x158] sm:$0xff]  ;;  %10058 = vmatpush.bf16.msra.mxu3 %v12964_v27 }
 0x4e0   : > { %v7539_v3 = vpop.f32.mrf.mxu0  ;;  %13389 = vrcp.f32 %v8071_v9  ;;  %v12956_v9 = vld [vmem:[%s18041_s3 + $0x1d8] sm:$0xff]  ;;  %9421 = vmatpush.bf16.msra.mxu0 %v12932_v47 }
 0x4e1   : > { %8808 = vmatmul.bf16.gmra.mxu1 %v8714_v53  ;;  %9039 = vmatmul.bf16.gmra.mxu2 %v8945_v46  ;;  %v8237_v13 = vadd.f32 %v8189_v48, %v8106_v61  ;;  %v17459_v60 = vadd.f32 %v17229_v30, %v7980_v10  ;;  %v7571_v42 = vadd.f32 %v7539_v3, %v17065_v22  ;;  %v17463_v53 = vld [vmem:[%s13653_s11 + $0x28] sm:$0xff]   ;;  %v8715_v10 = vrot.slane %v17053_v28, 1 }
 0x4e2   : > { %v12995_v59 = vunpack.c.l.bf16 %v17463_v53  ;;  %v8946_v3 = vrot.slane %v17127_v52, 1  ;;  %9890 = vmatpush.bf16.msra.mxu2 %v12956_v9 }
 0x4e3   : > { %v13026_v1 = vpack.c.bf16 %v8237_v13, %v8236_v14  ;;  %v8019_v24 = vsub.f32 0.0, %v17459_v60  ;;  %v7811_v57 = vadd.f32 %v7779_v32, %v7571_v42  ;;  %v17486_v14 = vor.u32 %v9162_v31, %v9159_v19 }
 0x4e4   : > { %9277 = vmatmul.bf16.gmra.mxu3 %v9155_v41  ;;  %v8190_v42 = vrot.slane %v12992_v26, 3  ;;  %v13521_v26 = vld [vmem:[#allocation2 + $0x70] sm:$0xff] }
 0x4e5   : > { %v13388_v46 = vpop.eup %13387  ;;  %13158 = vst [vmem:[%s17342_s26 + $0x10] sm:$0xff] %v13026_v1   ;;  %v8045_v37 = vmul.f32 1.442695, %v8019_v24  ;;  %v17488_v1 = vrot.slane %v12995_v59, 3  ;;  %v8716_v24 = vsel %vm720_vm1, %v8713_v2, %v8715_v10  ;;  %v9164_v17 = vsel %vm1122_vm2, %v17427_v8, %v17486_v14 }
 0x4e6   : > { %v8072_v41 = vadd.f32 1.0, %v13388_v46  ;;  %v7949_v36 = vpop.f32.mrf.mxu2  ;;  %v13390_v13 = vpop.eup %13389  ;;  %v8947_v46 = vsel %vm720_vm1, %v8944_v54, %v8946_v3  ;;  %v8191_v2 = vsel %vm2004_vm5, %v17429_v7, %v8190_v42  ;;  %v9169_v7 = vshll.u32 %v17175_v45, 16 }
 0x4e7   : > { %v17469_v48 = vpop.f32.mrf.mxu3  ;;  %13391 = vpow2.f32 %v8045_v37  ;;  %v7981_v22 = vadd.f32 %v7949_v36, %v7811_v57  ;;  %v7782_v61 = vpop.f32.mrf.mxu1  ;;  %v8107_v57 = vmul.f32 %v13390_v13, %v17400_v6  ;;  %v8193_v29 = vsel %vm2004_vm5, %v8190_v42, %v17488_v1  ;;  %v17519_v42 = vld [vmem:[%s13653_s11 + $0x30] sm:$0xff]  }
 0x4e8   : > { %v7542_v51 = vpop.f32.mrf.mxu0  ;;  %13393 = vrcp.f32 %v8072_v41 }
 0x4e9   : > { %v17474_v32 = vadd.f32 %v17229_v30, %v7981_v22  ;;  %v7572_v21 = vadd.f32 %v7542_v51, %v17089_v62 }
 0x4eb   : > { %v8020_v62 = vsub.f32 0.0, %v17474_v32  ;;  %v7812_v31 = vadd.f32 %v7782_v61, %v7572_v21  ;;  %v9166_v61 = vshrl.u32 %v17175_v45, 16  ;;  %v8238_v21 = vadd.f32 %v8191_v2, %v8107_v57 }
 0x4ed   : > { %v13392_v37 = vpop.eup %13391  ;;  %v8047_v19 = vmul.f32 1.442695, %v8020_v62  ;;  %v9168_v57 = vrot.slane %v9166_v61, 1 }
 0x4ee   : > { %8663 = vmatmul.bf16.gmra.mxu0 %v13521_v26  ;;  %v13394_v41 = vpop.eup %13393  ;;  %v7952_v54 = vpop.f32.mrf.mxu2  ;;  %v8073_v51 = vadd.f32 1.0, %v13392_v37  ;;  %v12948_v37 = vld [vmem:[%s18041_s3 + $0x198] sm:$0xff] }
 0x4ef   : > { %v17509_v59 = vpop.f32.mrf.mxu3  ;;  %v8108_v6 = vmul.f32 %v13394_v41, %v17415_v58  ;;  %13395 = vpow2.f32 %v8047_v19  ;;  %v7982_v36 = vadd.f32 %v7952_v54, %v7812_v31  ;;  %v7784_v8 = vpop.f32.mrf.mxu1  ;;  %v9171_v19 = vrot.slane %v9169_v7, 2  ;;  %9652 = vmatpush.bf16.msra.mxu1 %v12948_v37  ;;  %v13523_v37 = vld [vmem:[#allocation2 + $0x78] sm:$0xff] }
 0x4f0   : > { %v7544_v22 = vpop.f32.mrf.mxu0  ;;  %13397 = vrcp.f32 %v8073_v51  ;;  %v12996_v31 = vunpack.c.h.bf16 %v17463_v53  ;;  %v12955_v51 = vld [vmem:[%s18041_s3 + $0x1d0] sm:$0xff] }
 0x4f1   : > { %8813 = vmatmul.bf16.gmra.mxu1 %v8716_v24  ;;  %9044 = vmatmul.bf16.gmra.mxu2 %v8947_v46  ;;  %v8239_v9 = vadd.f32 %v8193_v29, %v8108_v6  ;;  %v17515_v47 = vadd.f32 %v17229_v30, %v7982_v36  ;;  %v7573_v27 = vadd.f32 %v7544_v22, %v17102_v35  ;;  %v12999_v35 = vunpack.c.l.bf16 %v17519_v42  ;;  %v17530_v6 = vld [vmem:[#allocation2 + $0x80] sm:$0xff] }
 0x4f2   : > { %v8717_v36 = vrot.slane %v17530_v6, 1  ;;  %v8948_v22 = vrot.slane %v17175_v45, 1  ;;  %v17541_v61 = vor.u32 %v9171_v19, %v9168_v57  ;;  %9891 = vmatpush.bf16.msra.mxu2 %v12955_v51 }
 0x4f3   : > { %v13031_v13 = vpack.c.bf16 %v8239_v9, %v8238_v21  ;;  %v8021_v58 = vsub.f32 0.0, %v17515_v47  ;;  %v7813_v46 = vadd.f32 %v7784_v8, %v7573_v27  ;;  %v8194_v21 = vrot.slane %v12996_v31, 3 }
 0x4f4   : > { %9282 = vmatmul.bf16.gmra.mxu3 %v9164_v17  ;;  %v17543_v9 = vrot.slane %v12999_v35, 3  ;;  %v9173_v28 = vsel %vm1122_vm2, %v17486_v14, %v17541_v61 }
 0x4f5   : > { %v13396_v62 = vpop.eup %13395  ;;  %13159 = vst [vmem:[%s17342_s26 + $0x18] sm:$0xff] %v13031_v13   ;;  %v8049_v24 = vmul.f32 1.442695, %v8021_v58  ;;  %v8718_v13 = vsel %vm720_vm1, %v8715_v10, %v8717_v36  ;;  %v8195_v10 = vsel %vm2004_vm5, %v17488_v1, %v8194_v21  ;;  %v9178_v1 = vshll.u32 %v17200_v15, 16 }
 0x4f6   : > { %v8074_v26 = vadd.f32 1.0, %v13396_v62  ;;  %v7954_v17 = vpop.f32.mrf.mxu2  ;;  %v13398_v7 = vpop.eup %13397  ;;  %v8197_v52 = vsel %vm2004_vm5, %v8194_v21, %v17543_v9 }
 0x4f7   : > { %v17528_v41 = vpop.f32.mrf.mxu3  ;;  %13399 = vpow2.f32 %v8049_v24  ;;  %v7983_v2 = vadd.f32 %v7954_v17, %v7813_v46  ;;  %v7787_v54 = vpop.f32.mrf.mxu1  ;;  %v8109_v62 = vmul.f32 %v13398_v7, %v17459_v60  ;;  %v9175_v17 = vshrl.u32 %v17200_v15, 16  ;;  %v17574_v7 = vld [vmem:[%s13653_s11 + $0x38] sm:$0xff]  }
 0x4f8   : > { %v7547_v29 = vpop.f32.mrf.mxu0  ;;  %13401 = vrcp.f32 %v8074_v26 }
 0x4f9   : > { %v17535_v53 = vadd.f32 %v17229_v30, %v7983_v2  ;;  %v7574_v8 = vadd.f32 %v7547_v29, %v17134_v16  ;;  %v8949_v16 = vsel %vm720_vm1, %v8946_v3, %v8948_v22  ;;  %v8240_v2 = vadd.f32 %v8195_v10, %v8109_v62  ;;  %v12931_v62 = vld [vmem:[%s18041_s3 + $0x150] sm:$0xff] }
 0x4fa   : > { %v9177_v21 = vrot.slane %v9175_v17, 1  ;;  %9422 = vmatpush.bf16.msra.mxu0 %v12931_v62 }
 0x4fb   : > { %v8022_v27 = vsub.f32 0.0, %v17535_v53  ;;  %v7814_v46 = vadd.f32 %v7787_v54, %v7574_v8 }
 0x4fd   : > { %v13400_v58 = vpop.eup %13399  ;;  %v8051_v24 = vmul.f32 1.442695, %v8022_v27  ;;  %v9180_v27 = vrot.slane %v9178_v1, 2 }
 0x4fe   : > { %8668 = vmatmul.bf16.gmra.mxu0 %v13523_v37  ;;  %v13402_v57 = vpop.eup %13401  ;;  %v7957_v3 = vpop.f32.mrf.mxu2  ;;  %v8075_v35 = vadd.f32 1.0, %v13400_v58 }
 0x4ff   : > { %v17564_v19 = vpop.f32.mrf.mxu3  ;;  %v8110_v60 = vmul.f32 %v13402_v57, %v17474_v32  ;;  %13403 = vpow2.f32 %v8051_v24  ;;  %v7984_v31 = vadd.f32 %v7957_v3, %v7814_v46  ;;  %v7789_v14 = vpop.f32.mrf.mxu1  ;;  %v12947_v24 = vld [vmem:[%s18041_s3 + $0x190] sm:$0xff]  ;;  %v13000_v46 = vunpack.c.h.bf16 %v17519_v42 }
 0x500   : > { %v7549_v26 = vpop.f32.mrf.mxu0  ;;  %13405 = vrcp.f32 %v8075_v35  ;;  %9653 = vmatpush.bf16.msra.mxu1 %v12947_v24  ;;  %v8950_v42 = vrot.slane %v17200_v15, 1  ;;  %v17599_v17 = vor.u32 %v9180_v27, %v9177_v21 }
 0x501   : > { %8818 = vmatmul.bf16.gmra.mxu1 %v8718_v13  ;;  %9049 = vmatmul.bf16.gmra.mxu2 %v8949_v16  ;;  %v8241_v29 = vadd.f32 %v8197_v52, %v8110_v60  ;;  %v17570_v54 = vadd.f32 %v17229_v30, %v7984_v31  ;;  %v7575_v8 = vadd.f32 %v7549_v26, %v17147_v11  ;;  %v12963_v11 = vld [vmem:[%s18041_s3 + $0x210] sm:$0xff]  ;;  %v17591_v31 = vld [vmem:[#allocation2 + $0x88] sm:$0xff] }
 0x502   : > { %10059 = vmatpush.bf16.msra.mxu3 %v12963_v11  ;;  %v8719_v26 = vrot.slane %v17591_v31, 1 }
 0x503   : > { %v13036_v51 = vpack.c.bf16 %v8241_v29, %v8240_v2  ;;  %v8023_v32 = vsub.f32 0.0, %v17570_v54  ;;  %v7815_v58 = vadd.f32 %v7789_v14, %v7575_v8  ;;  %v8198_v2 = vrot.slane %v13000_v46, 3 }
 0x504   : > { %9287 = vmatmul.bf16.gmra.mxu3 %v9173_v28  ;;  %v13003_v28 = vunpack.c.l.bf16 %v17574_v7 }
 0x505   : > { %v13404_v13 = vpop.eup %13403  ;;  %13160 = vst [vmem:[%s17342_s26 + $0x20] sm:$0xff] %v13036_v51   ;;  %v8053_v16 = vmul.f32 1.442695, %v8023_v32  ;;  %v8720_v51 = vsel %vm720_vm1, %v8717_v36, %v8719_v26  ;;  %v8199_v62 = vsel %vm2004_vm5, %v17543_v9, %v8198_v2  ;;  %v9184_v9 = vshrl.u32 %v17205_v63, 16 }
 0x506   : > { %v8076_v37 = vadd.f32 1.0, %v13404_v13  ;;  %v7959_v57 = vpop.f32.mrf.mxu2  ;;  %v13406_v1 = vpop.eup %13405  ;;  %v17601_v29 = vrot.slane %v13003_v28, 3  ;;  %v9187_v28 = vshll.u32 %v17205_v63, 16 }
 0x507   : > { %v17589_v10 = vpop.f32.mrf.mxu3  ;;  %13407 = vpow2.f32 %v8053_v16  ;;  %v7985_v52 = vadd.f32 %v7959_v57, %v7815_v58  ;;  %v7792_v60 = vpop.f32.mrf.mxu1  ;;  %v8111_v21 = vmul.f32 %v13406_v1, %v17515_v47  ;;  %v9182_v16 = vsel %vm1122_vm2, %v17541_v61, %v17599_v17  ;;  %v8870_v58 = vld [vmem:[#allocation2 + $0x98] sm:$0x1] }
 0x508   : > { %v7552_v3 = vpop.f32.mrf.mxu0  ;;  %13409 = vrcp.f32 %v8076_v37  ;;  %v8201_v45 = vsel %vm2004_vm5, %v8198_v2, %v17601_v29  ;;  %v8924_v37 = vunpack.c.l.b16 %v8870_v58 }
 0x509   : > { %v17596_v14 = vadd.f32 %v17229_v30, %v7985_v52  ;;  %v7576_v35 = vadd.f32 %v7552_v3, %v17180_v44  ;;  %v8951_v44 = vsel %vm720_vm1, %v8948_v22, %v8950_v42  ;;  %v8242_v57 = vadd.f32 %v8199_v62, %v8111_v21  ;;  %v12954_v21 = vld [vmem:[%s18041_s3 + $0x1c8] sm:$0xff] }
 0x50a   : > { %v8934_v2 = vpack.c.b16 %v8924_v37, %v8924_v37  ;;  %9892 = vmatpush.bf16.msra.mxu2 %v12954_v21 }
 0x50b   : > { %v8024_v8 = vsub.f32 0.0, %v17596_v14  ;;  %v7816_v13 = vadd.f32 %v7792_v60, %v7576_v35 }
 0x50d   : > { %v13408_v32 = vpop.eup %13407  ;;  %v8055_v27 = vmul.f32 1.442695, %v8024_v8  ;;  %v9186_v8 = vrot.slane %v9184_v9, 1 }
 0x50e   : > { %8673 = vmatmul.bf16.gmra.mxu0 %v17530_v6  ;;  %v13410_v36 = vpop.eup %13409  ;;  %v7962_v22 = vpop.f32.mrf.mxu2  ;;  %v8077_v46 = vadd.f32 1.0, %v13408_v32 }
 0x50f   : > { %v17623_v11 = vpop.f32.mrf.mxu3  ;;  %v8112_v47 = vmul.f32 %v13410_v36, %v17535_v53  ;;  %13411 = vpow2.f32 %v8055_v27  ;;  %v7986_v6 = vadd.f32 %v7962_v22, %v7816_v13  ;;  %v7794_v61 = vpop.f32.mrf.mxu1  ;;  %v17633_v53 = vld [vmem:[%s13653_s11 + $0x40] sm:$0xff]   ;;  %v12962_v27 = vld [vmem:[%s18041_s3 + $0x208] sm:$0xff]  ;;  %v13004_v13 = vunpack.c.h.bf16 %v17574_v7 }
 0x510   : > { %v7554_v24 = vpop.f32.mrf.mxu0  ;;  %13413 = vrcp.f32 %v8077_v46  ;;  %v13007_v58 = vunpack.c.l.bf16 %v17633_v53  ;;  %10060 = vmatpush.bf16.msra.mxu3 %v12962_v27  ;;  %v8721_v7 = vrot.slane %v17182_v56, 1 }
 0x511   : > { %8823 = vmatmul.bf16.gmra.mxu1 %v8720_v51  ;;  %9054 = vmatmul.bf16.gmra.mxu2 %v8951_v44  ;;  %v8243_v52 = vadd.f32 %v8201_v45, %v8112_v47  ;;  %v17629_v3 = vadd.f32 %v17229_v30, %v7986_v6  ;;  %v7577_v60 = vadd.f32 %v7554_v24, %v17189_v38  ;;  %v9189_v51 = vrot.slane %v9187_v28, 2  ;;  %v12930_v38 = vld [vmem:[%s18041_s3 + $0x148] sm:$0xff]  ;;  %v9489_v28 = vld [vmem:[#allocation2 + $0x58] sm:$0xc] }
 0x512   : > { %v12946_v45 = vld [vmem:[%s18041_s3 + $0x188] sm:$0xff]  ;;  %9423 = vmatpush.bf16.msra.mxu0 %v12930_v38  ;;  %v8952_v24 = vrot.slane %v8934_v2, 1  ;;  %v8722_v56 = vsel %vm720_vm1, %v8719_v26, %v8721_v7  ;;  %v17670_v2 = vld [vmem:[#allocation2 + $0x60] sm:$0xff] }
 0x513   : > { %v13041_v35 = vpack.c.bf16 %v8243_v52, %v8242_v57  ;;  %v8025_v1 = vsub.f32 0.0, %v17629_v3  ;;  %v7817_v63 = vadd.f32 %v7794_v61, %v7577_v60  ;;  %9654 = vmatpush.bf16.msra.mxu1 %v12946_v45  ;;  %v17654_v61 = vld [vmem:[#allocation2 + $0x5c] sm:$0xf]  ;;  %v9190_v9 = vor.u32 %v9189_v51, %v9186_v8 }
 0x514   : > { %9292 = vmatmul.bf16.gmra.mxu3 %v9182_v16  ;;  %v8202_v52 = vrot.slane %v13004_v13, 3  ;;  %v17660_v60 = vrot.slane %v13007_v58, 3  ;;  %v9749_v58 = vshrl.u32 %v17670_v2, 16 }
 0x515   : > { %v13412_v44 = vpop.eup %13411  ;;  %13161 = vst [vmem:[%s17342_s26 + $0x28] sm:$0xff] %v13041_v35   ;;  %v8057_v32 = vmul.f32 1.442695, %v8025_v1  ;;  %v9544_v1 = vunpack.c.l.b16 %v17654_v61 }
 0x516   : > { %v8078_v16 = vadd.f32 1.0, %v13412_v44  ;;  %v7964_v36 = vpop.f32.mrf.mxu2  ;;  %v13414_v57 = vpop.eup %13413  ;;  %v8203_v15 = vsel %vm2004_vm5, %v17601_v29, %v8202_v52  ;;  %v8205_v26 = vsel %vm2004_vm5, %v8202_v52, %v17660_v60  ;;  %v9752_v29 = vshll.u32 %v17670_v2, 16 }
 0x517   : > { %v17648_v62 = vpop.f32.mrf.mxu3  ;;  %13415 = vpow2.f32 %v8057_v32  ;;  %v7987_v22 = vadd.f32 %v7964_v36, %v7817_v63  ;;  %v7797_v6 = vpop.f32.mrf.mxu1  ;;  %v8113_v51 = vmul.f32 %v13414_v57, %v17570_v54  ;;  %v9191_v63 = vsel %vm1122_vm2, %v17599_v17, %v9190_v9 }
 0x518   : > { %v7557_v47 = vpop.f32.mrf.mxu0  ;;  %13417 = vrcp.f32 %v8078_v16  ;;  %v9754_v57 = vrot.slane %v9752_v29, 3 }
 0x519   : > { %v17657_v46 = vadd.f32 %v17229_v30, %v7987_v22  ;;  %v7578_v37 = vadd.f32 %v7557_v47, %v17209_v18  ;;  %v8953_v30 = vsel %vm720_vm1, %v8950_v42, %v8952_v24  ;;  %v9543_v18 = vunpack.c.l.b16 %v9489_v28  ;;  %v13525_v22 = vld [vmem:[%s18042_s4] ss:$0 sm:$0xff]  ;;  %v17692_v24 = vld [vmem:[%s13653_s11 + $0x48] sm:$0xff]  }
 0x51a   : > { %v8244_v36 = vadd.f32 %v8203_v15, %v8113_v51  ;;  %v9751_v28 = vrot.slane %v9749_v58, 2  ;;  %v13008_v51 = vunpack.c.h.bf16 %v17633_v53  ;;  %v12945_v15 = vld [vmem:[%s18041_s3 + $0x180] sm:$0xff] }
 0x51b   : > { %v8026_v35 = vsub.f32 0.0, %v17657_v46  ;;  %v7818_v32 = vadd.f32 %v7797_v6, %v7578_v37  ;;  %v9562_v17 = vpack.c.b16 %v9544_v1, %v9543_v18  ;;  %v9958_v6 = vld [vmem:[#allocation2 + $0x58] sm:$0x8]  ;;  %v12929_v18 = vld [vmem:[%s18041_s3 + $0x140] sm:$0xff]  ;;  %9655 = vmatpush.bf16.msra.mxu1 %v12945_v15 }
 0x51c   : > { %v9976_v52 = vunpack.c.l.b16 %v9958_v6  ;;  %9424 = vmatpush.bf16.msra.mxu0 %v12929_v18  ;;  %v17716_v29 = vor.u32 %v9754_v57, %v9751_v28 }
 0x51d   : > { %v13416_v8 = vpop.eup %13415  ;;  %v8059_v44 = vmul.f32 1.442695, %v8026_v35  ;;  %v9741_v37 = vshrl.u32 %v9562_v17, 16  ;;  %v9744_v9 = vshll.u32 %v9562_v17, 16 }
 0x51e   : > { %8678 = vmatmul.bf16.gmra.mxu0 %v17591_v31  ;;  %v13418_v21 = vpop.eup %13417  ;;  %v7967_v42 = vpop.f32.mrf.mxu2  ;;  %v8079_v16 = vadd.f32 1.0, %v13416_v8  ;;  %v12961_v8 = vld [vmem:[%s18041_s3 + $0x200] sm:$0xff] }
 0x51f   : > { %v17680_v38 = vpop.f32.mrf.mxu3  ;;  %v8114_v54 = vmul.f32 %v13418_v21, %v17596_v14  ;;  %13419 = vpow2.f32 %v8059_v44  ;;  %v7988_v31 = vadd.f32 %v7967_v42, %v7818_v32  ;;  %v7799_v13 = vpop.f32.mrf.mxu1  ;;  %v13011_v32 = vunpack.c.l.bf16 %v17692_v24  ;;  %10061 = vmatpush.bf16.msra.mxu3 %v12961_v8 }
 0x520   : > { %v7559_v27 = vpop.f32.mrf.mxu0  ;;  %13421 = vrcp.f32 %v8079_v16  ;;  %v9573_v16 = vrot.slane %v17670_v2, 2 }
 0x521   : > { %8828 = vmatmul.bf16.gmra.mxu1 %v8722_v56  ;;  %9059 = vmatmul.bf16.gmra.mxu2 %v8953_v30  ;;  %v8245_v45 = vadd.f32 %v8205_v26, %v8114_v54  ;;  %v17688_v47 = vadd.f32 %v13525_v22, %v7988_v31  ;;  %v7579_v14 = vadd.f32 %v7559_v27, %v17221_v39  ;;  %v12953_v39 = vld [vmem:[%s18041_s3 + $0x1c0] sm:$0xff]  ;;  %v9743_v27 = vrot.slane %v9741_v37, 2 }
 0x522   : > { %v9977_v26 = vpack.c.b16 %v9544_v1, %v9976_v52  ;;  %9893 = vmatpush.bf16.msra.mxu2 %v12953_v39  ;;  %v9979_v1 = vrot.slane %v17670_v2, 3 }
 0x523   : > { %v13046_v7 = vpack.c.bf16 %v8245_v45, %v8244_v36  ;;  %v8027_v61 = vsub.f32 0.0, %v17688_v47  ;;  %v7819_v30 = vadd.f32 %v7799_v13, %v7579_v14  ;;  %v9746_v13 = vrot.slane %v9744_v9, 3 }
 0x524   : > { %9297 = vmatmul.bf16.gmra.mxu3 %v9191_v63  ;;  %v8206_v45 = vrot.slane %v13008_v51, 3  ;;  %v17719_v14 = vrot.slane %v13011_v32, 3 }
 0x525   : > { %v13420_v35 = vpop.eup %13419  ;;  %13162 = vst [vmem:[%s17342_s26 + $0x30] sm:$0xff] %v13046_v7   ;;  %v8061_v56 = vmul.f32 1.442695, %v8027_v61  ;;  %v9572_v7 = vrot.slane %v9562_v17, 2  ;;  %v9747_v37 = vor.u32 %v9746_v13, %v9743_v27  ;;  %v8137_v13 = vld [vmem:[%s13653_s11 + $0x50] sm:$0x3] }
 0x526   : > { %v8080_v44 = vadd.f32 1.0, %v13420_v35  ;;  %v7969_v63 = vpop.f32.mrf.mxu2  ;;  %v13422_v36 = vpop.eup %13421  ;;  %v8209_v39 = vsel %vm2004_vm5, %v8206_v45, %v17719_v14 }
 0x527   : > { %v17707_v21 = vpop.f32.mrf.mxu3  ;;  %13423 = vpow2.f32 %v8061_v56  ;;  %v7989_v42 = vadd.f32 %v7969_v63, %v7819_v30  ;;  %v8789_v31 = vpop.f32.mrf.mxu1  ;;  %v9574_v9 = vsel %vm1362_vm3, %v9572_v7, %v9573_v16  ;;  %v8115_v57 = vmul.f32 %v13422_v36, %v17629_v3 }
 0x528   : > { %v8639_v54 = vpop.f32.mrf.mxu0  ;;  %13425 = vrcp.f32 %v8080_v44  ;;  %v9756_v17 = vsel %vm1764_vm4, %v9747_v37, %v17716_v29  ;;  %v8207_v30 = vsel %vm2004_vm5, %v17660_v60, %v8206_v45  ;;  %v13012_v45 = vunpack.c.h.bf16 %v17692_v24 }
 0x529   : > { %v8640_v53 = vadd.f32 %v8639_v54, %v17232_v25  ;;  %v17714_v58 = vadd.f32 %v13525_v22, %v7989_v42  ;;  %v9978_v25 = vrot.slane %v9977_v26, 3  ;;  %v17725_v22 = vld [vmem:[#allocation2 + $0x68] sm:$0xff]  ;;  %v8246_v15 = vadd.f32 %v8207_v30, %v8115_v57 }
 0x52a   : > { %v9758_v60 = vshrl.u32 %v17725_v22, 16  ;;  %v9761_v54 = vshll.u32 %v17725_v22, 16  ;;  %v9575_v57 = vrot.slane %v17725_v22, 2  ;;  %v8210_v30 = vrot.slane %v13012_v45, 3 }
 0x52b   : > { %v8834_v6 = vadd.f32 %v8789_v31, %v8640_v53  ;;  %v8028_v61 = vsub.f32 0.0, %v17714_v58  ;;  %v9980_v35 = vsel %vm2004_vm5, %v9978_v25, %v9979_v1 }
 0x52c   : > { %v9760_v53 = vrot.slane %v9758_v60, 2  ;;  %v9763_v36 = vrot.slane %v9761_v54, 3 }
 0x52d   : > { %v13424_v28 = vpop.eup %13423  ;;  %v8063_v52 = vmul.f32 1.442695, %v8028_v61 }
 0x52e   : > { %9425 = vmatmul.bf16.vlgmr.msra.gmra.mxu0 %v16966_v40  ;;  %v13426_v56 = vpop.eup %13425  ;;  %v9020_v18 = vpop.f32.mrf.mxu2  ;;  %v8081_v32 = vadd.f32 1.0, %v13424_v28 }
 0x52f   : > { %v9258_v3 = vpop.f32.mrf.mxu3  ;;  %v8116_v40 = vmul.f32 %v13426_v56, %v17657_v46  ;;  %13427 = vpow2.f32 %v8063_v52  ;;  %v9065_v8 = vadd.f32 %v9020_v18, %v8834_v6  ;;  %v8791_v44 = vpop.f32.mrf.mxu1  ;;  %v9576_v18 = vsel %vm1362_vm3, %v9573_v16, %v9575_v57 }
 0x530   : > { %v8641_v51 = vpop.f32.mrf.mxu0  ;;  %13429 = vrcp.f32 %v8081_v32 }
 0x531   : > { %9656 = vmatmul.bf16.vlgmr.msra.gmra.mxu1 %v9574_v9  ;;  %9894 = vmatmul.bf16.vlgmr.msra.gmra.mxu2 %v9756_v17  ;;  %v8642_v63 = vadd.f32 %v8641_v51, %v17250_v12  ;;  %v8247_v26 = vadd.f32 %v8209_v39, %v8116_v40  ;;  %v17741_v42 = vadd.f32 %v9258_v3, %v9065_v8  ;;  %v8156_v12 = vunpack.c.l.bf16 %v8137_v13  ;;  %v17755_v3 = vld [vmem:[#allocation2 + $0x70] sm:$0xff] }
 0x532   : > { %v9764_v17 = vor.u32 %v9763_v36, %v9760_v53  ;;  %v8211_v51 = vsel %vm2004_vm5, %v17719_v14, %v8210_v30  ;;  %v9770_v14 = vshll.u32 %v17755_v3, 16 }
 0x533   : > { %v8835_v31 = vadd.f32 %v8791_v44, %v8642_v63  ;;  %v13051_v27 = vpack.c.bf16 %v8247_v26, %v8246_v15  ;;  %v8212_v24 = vrot.slane %v8156_v12, 3 }
 0x534   : > { %10062 = vmatmul.bf16.vlgmr.msra.gmra.mxu3 %v9980_v35  ;;  %v9981_v35 = vrot.slane %v17725_v22, 3  ;;  %v9772_v13 = vrot.slane %v9770_v14, 3 }
 0x535   : > { %v13428_v46 = vpop.eup %13427  ;;  %13163 = vst [vmem:[%s17342_s26 + $0x38] sm:$0xff] %v13051_v27   ;;  %v8213_v16 = vsel %vm2004_vm5, %v8210_v30, %v8212_v24 }
 0x536   : > { %v8082_v6 = vadd.f32 1.0, %v13428_v46  ;;  %v9022_v7 = vpop.f32.mrf.mxu2  ;;  %v13430_v56 = vpop.eup %13429  ;;  %v9982_v22 = vsel %vm2004_vm5, %v9979_v1, %v9981_v35  ;;  %v9767_v1 = vshrl.u32 %v17755_v3, 16 }
 0x537   : > { %v9260_v61 = vpop.f32.mrf.mxu3  ;;  %v9066_v37 = vadd.f32 %v9022_v7, %v8835_v31  ;;  %v8794_v9 = vpop.f32.mrf.mxu1  ;;  %v8117_v40 = vmul.f32 %v13430_v56, %v17688_v47  ;;  %v17783_v56 = vld [vmem:[#allocation2 + $0x78] sm:$0xff] }
 0x538   : > { %v8644_v25 = vpop.f32.mrf.mxu0  ;;  %13431 = vrcp.f32 %v8082_v6  ;;  %v9769_v27 = vrot.slane %v9767_v1, 2  ;;  %v9577_v6 = vrot.slane %v17755_v3, 2 }
 0x539   : > { %v8645_v28 = vadd.f32 %v8644_v25, %v17272_v43  ;;  %v17749_v52 = vadd.f32 %v9260_v61, %v9066_v37  ;;  %v9765_v43 = vsel %vm1764_vm4, %v17716_v29, %v9764_v17  ;;  %v8248_v60 = vadd.f32 %v8211_v51, %v8117_v40 }
 0x53a   : > { %v9773_v7 = vor.u32 %v9772_v13, %v9769_v27  ;;  %v9983_v61 = vrot.slane %v17755_v3, 3  ;;  %v9578_v25 = vsel %vm1362_vm3, %v9575_v57, %v9577_v6  ;;  %v9779_v57 = vshll.u32 %v17783_v56, 16 }
 0x53b   : > { %v8836_v39 = vadd.f32 %v8794_v9, %v8645_v28 }
 0x53c   : > { %v9774_v9 = vsel %vm1764_vm4, %v9764_v17, %v9773_v7  ;;  %v9984_v28 = vsel %vm2004_vm5, %v9981_v35, %v9983_v61  ;;  %v9781_v35 = vrot.slane %v9779_v57, 3 }
 0x53e   : > { %9430 = vmatmul.bf16.gmra.mxu0 %v16988_v23  ;;  %v13432_v8 = vpop.eup %13431  ;;  %v9025_v44 = vpop.f32.mrf.mxu2 }
 0x53f   : > { %v9263_v32 = vpop.f32.mrf.mxu3  ;;  %v8118_v23 = vmul.f32 %v13432_v8, %v17714_v58  ;;  %v9067_v47 = vadd.f32 %v9025_v44, %v8836_v39  ;;  %v8796_v29 = vpop.f32.mrf.mxu1 }
 0x540   : > { %v8646_v63 = vpop.f32.mrf.mxu0 }
 0x541   : > { %9661 = vmatmul.bf16.gmra.mxu1 %v9576_v18  ;;  %9899 = vmatmul.bf16.gmra.mxu2 %v9765_v43  ;;  %v8647_v2 = vadd.f32 %v8646_v63, %v17290_v34  ;;  %v8249_v15 = vadd.f32 %v8213_v16, %v8118_v23  ;;  %v17770_v26 = vadd.f32 %v9263_v32, %v9067_v47  ;;  %v9579_v23 = vrot.slane %v17783_v56, 2 }
 0x542   : > { %v9985_v63 = vrot.slane %v17783_v56, 3 }
 0x543   : > { %v8837_v54 = vadd.f32 %v8796_v29, %v8647_v2  ;;  %v13056_v31 = vpack.c.bf16 %v8249_v15, %v8248_v60  ;;  %v9580_v2 = vsel %vm1362_vm3, %v9577_v6, %v9579_v23  ;;  %v17799_v15 = vld [vmem:[#allocation2 + $0x80] sm:$0xff] }
 0x544   : > { %10067 = vmatmul.bf16.gmra.mxu3 %v9982_v22  ;;  %v9986_v60 = vsel %vm2004_vm5, %v9983_v61, %v9985_v63 }
 0x545   : > { %13164 = vst [vmem:[%s17342_s26 + $0x40] sm:$0xff] %v13056_v31  }
 0x546   : > { %v9027_v46 = vpop.f32.mrf.mxu2 }
 0x547   : > { %v9265_v58 = vpop.f32.mrf.mxu3  ;;  %v9068_v53 = vadd.f32 %v9027_v46, %v8837_v54  ;;  %v8799_v45 = vpop.f32.mrf.mxu1 }
 0x548   : > { %v8649_v36 = vpop.f32.mrf.mxu0 }
 0x549   : > { %v8650_v34 = vadd.f32 %v8649_v36, %v17330_v20  ;;  %v17776_v12 = vadd.f32 %v9265_v58, %v9068_v53  ;;  %v9788_v58 = vshll.u32 %v17799_v15, 16 }
 0x54b   : > { %v8838_v37 = vadd.f32 %v8799_v45, %v8650_v34  ;;  %v9790_v45 = vrot.slane %v9788_v58, 3 }
 0x54e   : > { %9435 = vmatmul.bf16.gmra.mxu0 %v17018_v55  ;;  %v9030_v20 = vpop.f32.mrf.mxu2  ;;  %v9776_v55 = vshrl.u32 %v17783_v56, 16  ;;  %v9987_v56 = vrot.slane %v17799_v15, 3 }
 0x54f   : > { %v9268_v30 = vpop.f32.mrf.mxu3  ;;  %v9069_v24 = vadd.f32 %v9030_v20, %v8838_v37  ;;  %v8801_v18 = vpop.f32.mrf.mxu1 }
 0x550   : > { %v8651_v39 = vpop.f32.mrf.mxu0  ;;  %v9778_v43 = vrot.slane %v9776_v55, 2 }
 0x551   : > { %9666 = vmatmul.bf16.gmra.mxu1 %v9578_v25  ;;  %9904 = vmatmul.bf16.gmra.mxu2 %v9774_v9  ;;  %v8652_v3 = vadd.f32 %v8651_v39, %v17351_v4  ;;  %v17786_v40 = vadd.f32 %v9268_v30, %v9069_v24  ;;  %v9581_v9 = vrot.slane %v17799_v15, 2  ;;  %v18326_v24 = vld [vmem:[#allocation37_spill] sm:$0xff] }
 0x552   : > { %v9782_v4 = vor.u32 %v9781_v35, %v9778_v43 }
 0x553   : > { %v8839_v17 = vadd.f32 %v8801_v18, %v8652_v3  ;;  %v9582_v30 = vsel %vm1362_vm3, %v9579_v23, %v9581_v9  ;;  %v9988_v18 = vsel %vm2004_vm5, %v9985_v63, %v9987_v56  ;;  %v17815_v3 = vld [vmem:[#allocation2 + $0x88] sm:$0xff] }
 0x554   : > { %10072 = vmatmul.bf16.gmra.mxu3 %v9984_v28  ;;  %v9783_v1 = vsel %vm1764_vm4, %v9773_v7, %v9782_v4 }
 0x556   : > { %v9032_v22 = vpop.f32.mrf.mxu2 }
 0x557   : > { %v9270_v8 = vpop.f32.mrf.mxu3  ;;  %v9070_v51 = vadd.f32 %v9032_v22, %v8839_v17  ;;  %v8804_v44 = vpop.f32.mrf.mxu1 }
 0x558   : > { %v8654_v16 = vpop.f32.mrf.mxu0 }
 0x559   : > { %v8655_v32 = vadd.f32 %v8654_v16, %v17394_v50  ;;  %v17792_v47 = vadd.f32 %v9270_v8, %v9070_v51  ;;  %v9794_v8 = vshrl.u32 %v17815_v3, 16  ;;  %v9797_v51 = vshll.u32 %v17815_v3, 16 }
 0x55b   : > { %v8840_v29 = vadd.f32 %v8804_v44, %v8655_v32  ;;  %v9796_v44 = vrot.slane %v9794_v8, 2  ;;  %v9799_v32 = vrot.slane %v9797_v51, 3 }
 0x55e   : > { %9440 = vmatmul.bf16.gmra.mxu0 %v17056_v0  ;;  %v9035_v50 = vpop.f32.mrf.mxu2  ;;  %v9785_v0 = vshrl.u32 %v17799_v15, 16 }
 0x55f   : > { %v9273_v14 = vpop.f32.mrf.mxu3  ;;  %v9071_v54 = vadd.f32 %v9035_v50, %v8840_v29  ;;  %v8806_v27 = vpop.f32.mrf.mxu1  ;;  %v9989_v50 = vrot.slane %v17815_v3, 3 }
 0x560   : > { %v8656_v31 = vpop.f32.mrf.mxu0  ;;  %v9787_v36 = vrot.slane %v9785_v0, 2  ;;  %v17831_v0 = vld [vmem:[#allocation2 + $0x90] sm:$0xff] }
 0x561   : > { %9671 = vmatmul.bf16.gmra.mxu1 %v9580_v2  ;;  %9909 = vmatmul.bf16.gmra.mxu2 %v9783_v1  ;;  %v8657_v13 = vadd.f32 %v8656_v31, %v17410_v49  ;;  %v17802_v46 = vadd.f32 %v9273_v14, %v9071_v54  ;;  %v18327_v31 = vld [vmem:[#allocation39_spill] sm:$0xff] }
 0x562   : > { %v9791_v49 = vor.u32 %v9790_v45, %v9787_v36 }
 0x563   : > { %v8841_v53 = vadd.f32 %v8806_v27, %v8657_v13  ;;  %v9990_v13 = vsel %vm2004_vm5, %v9987_v56, %v9989_v50 }
 0x564   : > { %10077 = vmatmul.bf16.gmra.mxu3 %v9986_v60  ;;  %v9792_v39 = vsel %vm1764_vm4, %v9782_v4, %v9791_v49  ;;  %v9583_v60 = vrot.slane %v17815_v3, 2 }
 0x566   : > { %v9037_v34 = vpop.f32.mrf.mxu2  ;;  %v9584_v54 = vsel %vm1362_vm3, %v9581_v9, %v9583_v60 }
 0x567   : > { %v9275_v6 = vpop.f32.mrf.mxu3  ;;  %v9072_v7 = vadd.f32 %v9037_v34, %v8841_v53  ;;  %v8809_v37 = vpop.f32.mrf.mxu1 }
 0x568   : > { %v8659_v61 = vpop.f32.mrf.mxu0 }
 0x569   : > { %v8660_v25 = vadd.f32 %v8659_v61, %v17453_v5  ;;  %v17808_v28 = vadd.f32 %v9275_v6, %v9072_v7  ;;  %v9803_v7 = vshrl.u32 %v17831_v0, 16  ;;  %v9806_v61 = vshll.u32 %v17831_v0, 16 }
 0x56b   : > { %v8842_v20 = vadd.f32 %v8809_v37, %v8660_v25  ;;  %v9805_v25 = vrot.slane %v9803_v7, 2  ;;  %v9808_v9 = vrot.slane %v9806_v61, 3  ;;  %v9507_v7 = vld [vmem:[#allocation2 + $0xa0] sm:$0x3] }
 0x56e   : > { %9445 = vmatmul.bf16.gmra.mxu0 %v18326_v24  ;;  %v9040_v5 = vpop.f32.mrf.mxu2 }
 0x56f   : > { %v9278_v55 = vpop.f32.mrf.mxu3  ;;  %v9073_v57 = vadd.f32 %v9040_v5, %v8842_v20  ;;  %v8811_v43 = vpop.f32.mrf.mxu1  ;;  %v9991_v5 = vrot.slane %v17831_v0, 3 }
 0x570   : > { %v8661_v17 = vpop.f32.mrf.mxu0 }
 0x571   : > { %9676 = vmatmul.bf16.gmra.mxu1 %v9582_v30  ;;  %9914 = vmatmul.bf16.gmra.mxu2 %v9792_v39  ;;  %v8662_v35 = vadd.f32 %v8661_v17, %v17469_v48  ;;  %v17818_v22 = vadd.f32 %v9278_v55, %v9073_v57  ;;  %v9800_v48 = vor.u32 %v9799_v32, %v9796_v44 }
 0x573   : > { %v8843_v16 = vadd.f32 %v8811_v43, %v8662_v35  ;;  %v9801_v27 = vsel %vm1764_vm4, %v9791_v49, %v9800_v48  ;;  %v9992_v43 = vsel %vm2004_vm5, %v9989_v50, %v9991_v5  ;;  %v17847_v35 = vld [vmem:[#allocation2 + $0x98] sm:$0xff] }
 0x574   : > { %10082 = vmatmul.bf16.gmra.mxu3 %v9988_v18  ;;  %v9585_v18 = vrot.slane %v17831_v0, 2  ;;  %v9993_v0 = vrot.slane %v17847_v35, 3 }
 0x576   : > { %v9042_v23 = vpop.f32.mrf.mxu2  ;;  %v9586_v57 = vsel %vm1362_vm3, %v9583_v60, %v9585_v18 }
 0x577   : > { %v9280_v4 = vpop.f32.mrf.mxu3  ;;  %v9074_v63 = vadd.f32 %v9042_v23, %v8843_v16  ;;  %v8814_v2 = vpop.f32.mrf.mxu1 }
 0x578   : > { %v8664_v29 = vpop.f32.mrf.mxu0 }
 0x579   : > { %v8665_v1 = vadd.f32 %v8664_v29, %v17509_v59  ;;  %v17824_v15 = vadd.f32 %v9280_v4, %v9074_v63  ;;  %v9815_v4 = vshll.u32 %v17847_v35, 16 }
 0x57b   : > { %v8844_v14 = vadd.f32 %v8814_v2, %v8665_v1  ;;  %v9817_v2 = vrot.slane %v9815_v4, 3  ;;  %v18329_v4 = vld [vmem:[#allocation27_spill] sm:$0xff] }
 0x57e   : > { %9450 = vmatmul.bf16.gmra.mxu0 %v18327_v31  ;;  %v9045_v59 = vpop.f32.mrf.mxu2 }
 0x57f   : > { %v9283_v58 = vpop.f32.mrf.mxu3  ;;  %v9075_v53 = vadd.f32 %v9045_v59, %v8844_v14  ;;  %v8816_v45 = vpop.f32.mrf.mxu1 }
 0x580   : > { %v8666_v36 = vpop.f32.mrf.mxu0 }
 0x581   : > { %9681 = vmatmul.bf16.gmra.mxu1 %v9584_v54  ;;  %9919 = vmatmul.bf16.gmra.mxu2 %v9801_v27  ;;  %v8667_v34 = vadd.f32 %v8666_v36, %v17528_v41  ;;  %v17834_v6 = vadd.f32 %v9283_v58, %v9075_v53  ;;  %v9809_v41 = vor.u32 %v9808_v9, %v9805_v25  ;;  %v9587_v27 = vrot.slane %v17847_v35, 2  ;;  %v18328_v36 = vld [vmem:[#allocation22_spill] sm:$0xff] }
 0x583   : > { %v8845_v37 = vadd.f32 %v8816_v45, %v8667_v34  ;;  %v9810_v17 = vsel %vm1764_vm4, %v9800_v48, %v9809_v41  ;;  %v9720_v48 = vld [vmem:[#allocation2 + $0xa0] sm:$0x7]  ;;  %v9588_v53 = vsel %vm1362_vm3, %v9585_v18, %v9587_v27  ;;  %v9994_v34 = vsel %vm2004_vm5, %v9991_v5, %v9993_v0 }
 0x584   : > { %10087 = vmatmul.bf16.gmra.mxu3 %v9990_v13  ;;  %v9738_v59 = vunpack.c.l.b16 %v9720_v48 }
 0x586   : > { %v9047_v49 = vpop.f32.mrf.mxu2 }
 0x587   : > { %v9285_v56 = vpop.f32.mrf.mxu3  ;;  %v9076_v20 = vadd.f32 %v9047_v49, %v8845_v37  ;;  %v8819_v24 = vpop.f32.mrf.mxu1 }
 0x588   : > { %v8669_v30 = vpop.f32.mrf.mxu0 }
 0x589   : > { %v8670_v39 = vadd.f32 %v8669_v30, %v17564_v19  ;;  %v17840_v3 = vadd.f32 %v9285_v56, %v9076_v20  ;;  %v9561_v20 = vunpack.c.l.b16 %v9507_v7 }
 0x58b   : > { %v8846_v55 = vadd.f32 %v8819_v24, %v8670_v39 }
 0x58e   : > { %9455 = vmatmul.bf16.gmra.mxu0 %v17185_v33  ;;  %v9050_v19 = vpop.f32.mrf.mxu2  ;;  %v9812_v33 = vshrl.u32 %v17847_v35, 16 }
 0x58f   : > { %v9288_v8 = vpop.f32.mrf.mxu3  ;;  %v9077_v51 = vadd.f32 %v9050_v19, %v8846_v55  ;;  %v8821_v44 = vpop.f32.mrf.mxu1 }
 0x590   : > { %v8671_v16 = vpop.f32.mrf.mxu0  ;;  %v9814_v29 = vrot.slane %v9812_v33, 2 }
 0x591   : > { %9686 = vmatmul.bf16.gmra.mxu1 %v9586_v57  ;;  %9924 = vmatmul.bf16.gmra.mxu2 %v9810_v17  ;;  %v8672_v32 = vadd.f32 %v8671_v16, %v17589_v10  ;;  %v17850_v23 = vadd.f32 %v9288_v8, %v9077_v51 }
 0x592   : > { %v9818_v13 = vor.u32 %v9817_v2, %v9814_v29 }
 0x593   : > { %v8847_v63 = vadd.f32 %v8821_v44, %v8672_v32 }
 0x594   : > { %10092 = vmatmul.bf16.gmra.mxu3 %v9992_v43  ;;  %v9819_v45 = vsel %vm1764_vm4, %v9809_v41, %v9818_v13  ;;  %v9571_v41 = vpack.c.b16 %v9561_v20, %v9561_v20 }
 0x596   : > { %v9052_v1 = vpop.f32.mrf.mxu2  ;;  %v9589_v51 = vrot.slane %v9571_v41, 2 }
 0x597   : > { %v9290_v60 = vpop.f32.mrf.mxu3  ;;  %v9078_v50 = vadd.f32 %v9052_v1, %v8847_v63  ;;  %v8824_v54 = vpop.f32.mrf.mxu1 }
 0x598   : > { %v8674_v14 = vpop.f32.mrf.mxu0  ;;  %v9590_v33 = vsel %vm1362_vm3, %v9587_v27, %v9589_v51 }
 0x599   : > { %v8675_v31 = vadd.f32 %v8674_v14, %v17623_v11  ;;  %v17856_v10 = vadd.f32 %v9290_v60, %v9078_v50  ;;  %v9739_v11 = vpack.c.b16 %v9738_v59, %v9738_v59 }
 0x59b   : > { %v8848_v58 = vadd.f32 %v8824_v54, %v8675_v31  ;;  %v9821_v24 = vshrl.u32 %v9739_v11, 16  ;;  %v9824_v39 = vshll.u32 %v9739_v11, 16  ;;  %v9995_v44 = vrot.slane %v9739_v11, 3 }
 0x59d   : > { %v9823_v55 = vrot.slane %v9821_v24, 2  ;;  %v9826_v5 = vrot.slane %v9824_v39, 3  ;;  %v9996_v29 = vsel %vm2004_vm5, %v9993_v0, %v9995_v44 }
 0x59e   : > { %9460 = vmatmul.bf16.gmra.mxu0 %v18328_v36  ;;  %v9055_v61 = vpop.f32.mrf.mxu2 }
 0x59f   : > { %v9293_v37 = vpop.f32.mrf.mxu3  ;;  %v9079_v25 = vadd.f32 %v9055_v61, %v8848_v58  ;;  %v8826_v49 = vpop.f32.mrf.mxu1 }
 0x5a0   : > { %v8676_v9 = vpop.f32.mrf.mxu0 }
 0x5a1   : > { %9691 = vmatmul.bf16.gmra.mxu1 %v9588_v53  ;;  %9929 = vmatmul.bf16.gmra.mxu2 %v9819_v45  ;;  %v8677_v56 = vadd.f32 %v8676_v9, %v17648_v62  ;;  %v17864_v30 = vadd.f32 %v9293_v37, %v9079_v25  ;;  %v9827_v62 = vor.u32 %v9826_v5, %v9823_v55 }
 0x5a3   : > { %v8849_v18 = vadd.f32 %v8826_v49, %v8677_v56  ;;  %v9828_v63 = vsel %vm1764_vm4, %v9818_v13, %v9827_v62 }
 0x5a4   : > { %10097 = vmatmul.bf16.gmra.mxu3 %v9994_v34 }
 0x5a6   : > { %v9057_v57 = vpop.f32.mrf.mxu2 }
 0x5a7   : > { %v9295_v17 = vpop.f32.mrf.mxu3  ;;  %v9080_v43 = vadd.f32 %v9057_v57, %v8849_v18  ;;  %v8829_v19 = vpop.f32.mrf.mxu1 }
 0x5a8   : > { %v8679_v35 = vpop.f32.mrf.mxu0 }
 0x5a9   : > { %v8680_v8 = vadd.f32 %v8679_v35, %v17680_v38  ;;  %v17867_v16 = vadd.f32 %v9295_v17, %v9080_v43 }
 0x5ab   : > { %v8850_v32 = vadd.f32 %v8829_v19, %v8680_v8 }
 0x5ae   : > { %9465 = vmatmul.bf16.gmra.mxu0 %v18329_v4  ;;  %v9060_v2 = vpop.f32.mrf.mxu2 }
 0x5af   : > { %v9298_v1 = vpop.f32.mrf.mxu3  ;;  %v9081_v38 = vadd.f32 %v9060_v2, %v8850_v32  ;;  %v8831_v48 = vpop.f32.mrf.mxu1  ;;  %v17895_v2 = vld [vmem:[%s13653_s11 + $0x58] sm:$0xff]  }
 0x5b0   : > { %v8681_v60 = vpop.f32.mrf.mxu0 }
 0x5b1   : > { %9696 = vmatmul.bf16.gmra.mxu1 %v9590_v33  ;;  %9934 = vmatmul.bf16.gmra.mxu2 %v9828_v63  ;;  %v8682_v50 = vadd.f32 %v8681_v60, %v17707_v21  ;;  %v17874_v14 = vadd.f32 %v9298_v1, %v9081_v38  ;;  %v17882_v21 = vld [vmem:[%s18042_s4] ss:$0 sm:$0xff]  ;;  %v10255_v63 = vld [vmem:[%s13653_s11 + $0x50] sm:$0xe] }
 0x5b3   : > { %v8851_v54 = vadd.f32 %v8831_v48, %v8682_v50 }
 0x5b4   : > { %10102 = vmatmul.bf16.gmra.mxu3 %v9996_v29  ;;  %v10256_v29 = vld [vmem:[%s13653_s11 + $0x54] sm:$0xf] }
 0x5b6   : > { %v9062_v31 = vpop.f32.mrf.mxu2 }
 0x5b7   : > { %v9300_v27 = vpop.f32.mrf.mxu3  ;;  %v9082_v59 = vadd.f32 %v9062_v31, %v8851_v54  ;;  %v9657_v53 = vpop.f32.mrf.mxu1 }
 0x5b8   : > { %v9426_v58 = vpop.f32.mrf.mxu0 }
 0x5b9   : > { %v17876_v13 = vadd.f32 %v9300_v27, %v9082_v59  ;;  %v9471_v0 = vadd.f32 %v9426_v58, %v17741_v42  ;;  %v10275_v58 = vunpack.c.l.bf16 %v10256_v29 }
 0x5bb   : > { %v9702_v36 = vadd.f32 %v9657_v53, %v9471_v0  ;;  %v13064_v0 = vunpack.c.l.bf16 %v17895_v2 }
 0x5be   : > { %v9895_v45 = vpop.f32.mrf.mxu2 }
 0x5bf   : > { %v10063_v34 = vpop.f32.mrf.mxu3  ;;  %v9940_v7 = vadd.f32 %v9895_v45, %v9702_v36  ;;  %v9659_v61 = vpop.f32.mrf.mxu1 }
 0x5c0   : > { %v9428_v11 = vpop.f32.mrf.mxu0 }
 0x5c1   : > { %v10108_v37 = vadd.f32 %v10063_v34, %v9940_v7  ;;  %v9472_v25 = vadd.f32 %v9428_v11, %v17749_v52 }
 0x5c3   : > { %v10129_v9 = vadd.f32 %v17882_v21, %v10108_v37  ;;  %v9703_v56 = vadd.f32 %v9659_v61, %v9472_v25  ;;  %v10313_v61 = vrot.slane %v10275_v58, 3  ;;  %v10315_v37 = vrot.slane %v13064_v0, 3 }
 0x5c5   : > { %v10147_v49 = vsub.f32 0.0, %v10129_v9 }
 0x5c6   : > { %v9897_v20 = vpop.f32.mrf.mxu2 }
 0x5c7   : > { %v10065_v42 = vpop.f32.mrf.mxu3  ;;  %v10165_v24 = vmul.f32 1.442695, %v10147_v49  ;;  %v9941_v39 = vadd.f32 %v9897_v20, %v9703_v56  ;;  %v9662_v41 = vpop.f32.mrf.mxu1 }
 0x5c8   : > { %v9431_v18 = vpop.f32.mrf.mxu0 }
 0x5c9   : > { %13433 = vpow2.f32 %v10165_v24  ;;  %v10109_v55 = vadd.f32 %v10065_v42, %v9941_v39  ;;  %v9473_v5 = vadd.f32 %v9431_v18, %v17770_v26 }
 0x5cb   : > { %v10130_v57 = vadd.f32 %v17882_v21, %v10109_v55  ;;  %v9704_v52 = vadd.f32 %v9662_v41, %v9473_v5 }
 0x5cd   : > { %v10148_v17 = vsub.f32 0.0, %v10130_v57 }
 0x5ce   : > { %v9900_v43 = vpop.f32.mrf.mxu2 }
 0x5cf   : > { %v10068_v35 = vpop.f32.mrf.mxu3  ;;  %v13434_v19 = vpop.eup %13433  ;;  %v10167_v8 = vmul.f32 1.442695, %v10148_v17  ;;  %v9942_v51 = vadd.f32 %v9900_v43, %v9704_v52  ;;  %v10316_v17 = vsel %vm2004_vm5, %v10313_v61, %v10315_v37 }
 0x5d0   : > { %v9433_v62 = vpop.f32.mrf.mxu0  ;;  %v9664_v44 = vpop.f32.mrf.mxu1  ;;  %v10201_v4 = vadd.f32 1.0, %v13434_v19 }
 0x5d1   : > { %13435 = vpow2.f32 %v10167_v8  ;;  %v10110_v32 = vadd.f32 %v10068_v35, %v9942_v51  ;;  %v9474_v33 = vadd.f32 %v9433_v62, %v17776_v12  ;;  %v10274_v12 = vunpack.c.l.bf16 %v10255_v63 }
 0x5d2   : > { %13437 = vrcp.f32 %v10201_v4 }
 0x5d3   : > { %v17890_v26 = vadd.f32 %v17882_v21, %v10110_v32  ;;  %v9705_v38 = vadd.f32 %v9664_v44, %v9474_v33  ;;  %v10312_v11 = vrot.slane %v10274_v12, 3  ;;  %v17911_v44 = vld [vmem:[%s13653_s11 + $0x60] sm:$0xff]  }
 0x5d5   : > { %v10149_v1 = vsub.f32 0.0, %v17890_v26  ;;  %v10314_v5 = vsel %vm2004_vm5, %v10312_v11, %v10313_v61 }
 0x5d6   : > { %v9902_v60 = vpop.f32.mrf.mxu2 }
 0x5d7   : > { %v10070_v48 = vpop.f32.mrf.mxu3  ;;  %v13436_v50 = vpop.eup %13435  ;;  %v10169_v54 = vmul.f32 1.442695, %v10149_v1  ;;  %v9943_v31 = vadd.f32 %v9902_v60, %v9705_v38  ;;  %v13065_v60 = vunpack.c.h.bf16 %v17895_v2 }
 0x5d8   : > { %v9436_v27 = vpop.f32.mrf.mxu0  ;;  %v9667_v59 = vpop.f32.mrf.mxu1  ;;  %v10202_v53 = vadd.f32 1.0, %v13436_v50  ;;  %v13068_v50 = vunpack.c.l.bf16 %v17911_v44 }
 0x5d9   : > { %13439 = vpow2.f32 %v10169_v54  ;;  %v10111_v36 = vadd.f32 %v10070_v48, %v9943_v31  ;;  %v9475_v45 = vadd.f32 %v9436_v27, %v17786_v40  ;;  %v13438_v7 = vpop.eup %13437  ;;  %v10317_v12 = vrot.slane %v13065_v60, 3 }
 0x5da   : > { %13441 = vrcp.f32 %v10202_v53  ;;  %v10237_v24 = vmul.f32 %v13438_v7, %v10129_v9  ;;  %v10319_v58 = vrot.slane %v13068_v50, 3 }
 0x5db   : > { %v17901_v34 = vadd.f32 %v17882_v21, %v10111_v36  ;;  %v9706_v49 = vadd.f32 %v9667_v59, %v9475_v45 }
 0x5dc   : > { %v10367_v8 = vadd.f32 %v10314_v5, %v10237_v24  ;;  %v17931_v5 = vld [vmem:[%s13653_s11 + $0x68] sm:$0xff]  }
 0x5dd   : > { %v10150_v25 = vsub.f32 0.0, %v17901_v34 }
 0x5de   : > { %v9905_v56 = vpop.f32.mrf.mxu2 }
 0x5df   : > { %v10073_v20 = vpop.f32.mrf.mxu3  ;;  %v13440_v42 = vpop.eup %13439  ;;  %v10171_v39 = vmul.f32 1.442695, %v10150_v25  ;;  %v9944_v18 = vadd.f32 %v9905_v56, %v9706_v49  ;;  %v10318_v56 = vsel %vm2004_vm5, %v10315_v37, %v10317_v12 }
 0x5e0   : > { %v9438_v41 = vpop.f32.mrf.mxu0  ;;  %v9669_v40 = vpop.f32.mrf.mxu1  ;;  %v10203_v19 = vadd.f32 1.0, %v13440_v42 }
 0x5e1   : > { %v13442_v55 = vpop.eup %13441  ;;  %13443 = vpow2.f32 %v10171_v39  ;;  %v10112_v43 = vadd.f32 %v10073_v20, %v9944_v18  ;;  %v9476_v35 = vadd.f32 %v9438_v41, %v17792_v47  ;;  %v10320_v20 = vsel %vm2004_vm5, %v10317_v12, %v10319_v58 }
 0x5e2   : > { %v10238_v52 = vmul.f32 %v13442_v55, %v10130_v57  ;;  %13445 = vrcp.f32 %v10203_v19 }
 0x5e3   : > { %v17908_v9 = vadd.f32 %v17882_v21, %v10112_v43  ;;  %v9707_v33 = vadd.f32 %v9669_v40, %v9476_v35 }
 0x5e4   : > { %v10368_v51 = vadd.f32 %v10316_v17, %v10238_v52 }
 0x5e5   : > { %v10151_v32 = vsub.f32 0.0, %v17908_v9 }
 0x5e6   : > { %v13097_v62 = vpack.c.bf16 %v10368_v51, %v10367_v8  ;;  %v9907_v4 = vpop.f32.mrf.mxu2  ;;  %v13069_v51 = vunpack.c.h.bf16 %v17911_v44 }
 0x5e7   : > { %v10075_v57 = vpop.f32.mrf.mxu3  ;;  %v13444_v63 = vpop.eup %13443  ;;  %v10173_v29 = vmul.f32 1.442695, %v10151_v32  ;;  %v9945_v1 = vadd.f32 %v9907_v4, %v9707_v33  ;;  %v13072_v32 = vunpack.c.l.bf16 %v17931_v5 }
 0x5e8   : > { %13177 = vst [vmem:[%s17342_s26 + $0x48] sm:$0xff] %v13097_v62   ;;  %v9441_v47 = vpop.f32.mrf.mxu0  ;;  %v9672_v38 = vpop.f32.mrf.mxu1  ;;  %v10204_v48 = vadd.f32 1.0, %v13444_v63 }
 0x5e9   : > { %13447 = vpow2.f32 %v10173_v29  ;;  %v10113_v54 = vadd.f32 %v10075_v57, %v9945_v1  ;;  %v9477_v31 = vadd.f32 %v9441_v47, %v17802_v46  ;;  %v13446_v59 = vpop.eup %13445  ;;  %v10321_v29 = vrot.slane %v13069_v51, 3 }
 0x5ea   : > { %13449 = vrcp.f32 %v10204_v48  ;;  %v10239_v7 = vmul.f32 %v13446_v59, %v17890_v26  ;;  %v10323_v1 = vrot.slane %v13072_v32, 3 }
 0x5eb   : > { %v17919_v27 = vadd.f32 %v17882_v21, %v10113_v54  ;;  %v9708_v0 = vadd.f32 %v9672_v38, %v9477_v31 }
 0x5ec   : > { %v10369_v41 = vadd.f32 %v10318_v56, %v10239_v7 }
 0x5ed   : > { %v10152_v53 = vsub.f32 0.0, %v17919_v27 }
 0x5ee   : > { %v9910_v36 = vpop.f32.mrf.mxu2 }
 0x5ef   : > { %v10078_v45 = vpop.f32.mrf.mxu3  ;;  %v13448_v2 = vpop.eup %13447  ;;  %v10175_v11 = vmul.f32 1.442695, %v10152_v53  ;;  %v9946_v61 = vadd.f32 %v9910_v36, %v9708_v0  ;;  %v10322_v53 = vsel %vm2004_vm5, %v10319_v58, %v10321_v29  ;;  %v10324_v0 = vsel %vm2004_vm5, %v10321_v29, %v10323_v1 }
 0x5f0   : > { %v9443_v25 = vpop.f32.mrf.mxu0  ;;  %v9674_v46 = vpop.f32.mrf.mxu1  ;;  %v10205_v18 = vadd.f32 1.0, %v13448_v2 }
 0x5f1   : > { %v13450_v49 = vpop.eup %13449  ;;  %13451 = vpow2.f32 %v10175_v11  ;;  %v10114_v24 = vadd.f32 %v10078_v45, %v9946_v61  ;;  %v9478_v39 = vadd.f32 %v9443_v25, %v17808_v28 }
 0x5f2   : > { %v10240_v42 = vmul.f32 %v13450_v49, %v17901_v34  ;;  %13453 = vrcp.f32 %v10205_v18  ;;  %v13073_v18 = vunpack.c.h.bf16 %v17931_v5 }
 0x5f3   : > { %v17928_v40 = vadd.f32 %v17882_v21, %v10114_v24  ;;  %v9709_v17 = vadd.f32 %v9674_v46, %v9478_v39  ;;  %v17951_v46 = vld [vmem:[%s13653_s11 + $0x70] sm:$0xff]  }
 0x5f4   : > { %v10370_v26 = vadd.f32 %v10320_v20, %v10240_v42 }
 0x5f5   : > { %v10153_v37 = vsub.f32 0.0, %v17928_v40 }
 0x5f6   : > { %v13102_v55 = vpack.c.bf16 %v10370_v26, %v10369_v41  ;;  %v9912_v52 = vpop.f32.mrf.mxu2  ;;  %v13076_v26 = vunpack.c.l.bf16 %v17951_v46 }
 0x5f7   : > { %v10080_v34 = vpop.f32.mrf.mxu3  ;;  %v13452_v43 = vpop.eup %13451  ;;  %v10177_v35 = vmul.f32 1.442695, %v10153_v37  ;;  %v9947_v19 = vadd.f32 %v9912_v52, %v9709_v17 }
 0x5f8   : > { %13178 = vst [vmem:[%s17342_s26 + $0x50] sm:$0xff] %v13102_v55   ;;  %v9446_v28 = vpop.f32.mrf.mxu0  ;;  %v9677_v8 = vpop.f32.mrf.mxu1  ;;  %v10206_v62 = vadd.f32 1.0, %v13452_v43  ;;  %v10327_v43 = vrot.slane %v13076_v26, 3 }
 0x5f9   : > { %13455 = vpow2.f32 %v10177_v35  ;;  %v10115_v33 = vadd.f32 %v10080_v34, %v9947_v19  ;;  %v9479_v4 = vadd.f32 %v9446_v28, %v17818_v22  ;;  %v13454_v63 = vpop.eup %13453  ;;  %v10325_v34 = vrot.slane %v13073_v18, 3 }
 0x5fa   : > { %13457 = vrcp.f32 %v10206_v62  ;;  %v10241_v50 = vmul.f32 %v13454_v63, %v17908_v9 }
 0x5fb   : > { %v17939_v57 = vadd.f32 %v17882_v21, %v10115_v33  ;;  %v9710_v38 = vadd.f32 %v9677_v8, %v9479_v4  ;;  %v10326_v63 = vsel %vm2004_vm5, %v10323_v1, %v10325_v34  ;;  %v10328_v29 = vsel %vm2004_vm5, %v10325_v34, %v10327_v43 }
 0x5fc   : > { %v10371_v11 = vadd.f32 %v10322_v53, %v10241_v50 }
 0x5fd   : > { %v10154_v47 = vsub.f32 0.0, %v17939_v57 }
 0x5fe   : > { %v9915_v60 = vpop.f32.mrf.mxu2 }
 0x5ff   : > { %v10083_v48 = vpop.f32.mrf.mxu3  ;;  %v13456_v44 = vpop.eup %13455  ;;  %v10179_v54 = vmul.f32 1.442695, %v10154_v47  ;;  %v9948_v31 = vadd.f32 %v9915_v60, %v9710_v38 }
 0x600   : > { %v9448_v59 = vpop.f32.mrf.mxu0  ;;  %v9679_v22 = vpop.f32.mrf.mxu1  ;;  %v10207_v7 = vadd.f32 1.0, %v13456_v44 }
 0x601   : > { %v13458_v12 = vpop.eup %13457  ;;  %13459 = vpow2.f32 %v10179_v54  ;;  %v10116_v45 = vadd.f32 %v10083_v48, %v9948_v31  ;;  %v9480_v2 = vadd.f32 %v9448_v59, %v17824_v15  ;;  %v17971_v31 = vld [vmem:[%s13653_s11 + $0x78] sm:$0xff]  }
 0x602   : > { %v10242_v36 = vmul.f32 %v13458_v12, %v17919_v27  ;;  %13461 = vrcp.f32 %v10207_v7  ;;  %v13080_v7 = vunpack.c.l.bf16 %v17971_v31 }
 0x603   : > { %v17948_v61 = vadd.f32 %v17882_v21, %v10116_v45  ;;  %v9711_v49 = vadd.f32 %v9679_v22, %v9480_v2  ;;  %v13077_v45 = vunpack.c.h.bf16 %v17951_v46 }
 0x604   : > { %v10372_v9 = vadd.f32 %v10324_v0, %v10242_v36 }
 0x605   : > { %v10155_v58 = vsub.f32 0.0, %v17948_v61 }
 0x606   : > { %v13107_v25 = vpack.c.bf16 %v10372_v9, %v10371_v11  ;;  %v9917_v56 = vpop.f32.mrf.mxu2 }
 0x607   : > { %v10085_v27 = vpop.f32.mrf.mxu3  ;;  %v13460_v20 = vpop.eup %13459  ;;  %v10181_v42 = vmul.f32 1.442695, %v10155_v58  ;;  %v9949_v24 = vadd.f32 %v9917_v56, %v9711_v49  ;;  %v10329_v49 = vrot.slane %v13077_v45, 3  ;;  %v10331_v56 = vrot.slane %v13080_v7, 3 }
 0x608   : > { %13179 = vst [vmem:[%s17342_s26 + $0x58] sm:$0xff] %v13107_v25   ;;  %v9451_v15 = vpop.f32.mrf.mxu0  ;;  %v9682_v39 = vpop.f32.mrf.mxu1  ;;  %v10208_v41 = vadd.f32 1.0, %v13460_v20 }
 0x609   : > { %13463 = vpow2.f32 %v10181_v42  ;;  %v10117_v55 = vadd.f32 %v10085_v27, %v9949_v24  ;;  %v9481_v37 = vadd.f32 %v9451_v15, %v17834_v6  ;;  %v13462_v52 = vpop.eup %13461 }
 0x60a   : > { %13465 = vrcp.f32 %v10208_v41  ;;  %v10243_v51 = vmul.f32 %v13462_v52, %v17928_v40 }
 0x60b   : > { %v17959_v17 = vadd.f32 %v17882_v21, %v10117_v55  ;;  %v9712_v19 = vadd.f32 %v9682_v39, %v9481_v37  ;;  %v10332_v37 = vsel %vm2004_vm5, %v10329_v49, %v10331_v56 }
 0x60c   : > { %v10373_v44 = vadd.f32 %v10326_v63, %v10243_v51  ;;  %v17988_v51 = vld [vmem:[%s13653_s11 + $0x80] sm:$0xff]  }
 0x60d   : > { %v10156_v35 = vsub.f32 0.0, %v17959_v17 }
 0x60e   : > { %v9920_v28 = vpop.f32.mrf.mxu2 }
 0x60f   : > { %v10088_v8 = vpop.f32.mrf.mxu3  ;;  %v13464_v5 = vpop.eup %13463  ;;  %v10183_v62 = vmul.f32 1.442695, %v10156_v35  ;;  %v9950_v32 = vadd.f32 %v9920_v28, %v9712_v19 }
 0x610   : > { %v9453_v33 = vpop.f32.mrf.mxu0  ;;  %v9684_v6 = vpop.f32.mrf.mxu1  ;;  %v10209_v48 = vadd.f32 1.0, %v13464_v5 }
 0x611   : > { %v13466_v4 = vpop.eup %13465  ;;  %13467 = vpow2.f32 %v10183_v62  ;;  %v10118_v38 = vadd.f32 %v10088_v8, %v9950_v32  ;;  %v9482_v60 = vadd.f32 %v9453_v33, %v17840_v3 }
 0x612   : > { %v10244_v47 = vmul.f32 %v13466_v4, %v17939_v57  ;;  %13469 = vrcp.f32 %v10209_v48 }
 0x613   : > { %v17968_v50 = vadd.f32 %v17882_v21, %v10118_v38  ;;  %v9713_v59 = vadd.f32 %v9684_v6, %v9482_v60  ;;  %v13084_v38 = vunpack.c.l.bf16 %v17988_v51 }
 0x614   : > { %v10374_v40 = vadd.f32 %v10328_v29, %v10244_v47  ;;  %v13081_v29 = vunpack.c.h.bf16 %v17971_v31 }
 0x615   : > { %v10157_v1 = vsub.f32 0.0, %v17968_v50 }
 0x616   : > { %v13112_v54 = vpack.c.bf16 %v10374_v40, %v10373_v44  ;;  %v9922_v22 = vpop.f32.mrf.mxu2 }
 0x617   : > { %v10090_v57 = vpop.f32.mrf.mxu3  ;;  %v13468_v12 = vpop.eup %13467  ;;  %v10185_v53 = vmul.f32 1.442695, %v10157_v1  ;;  %v9951_v0 = vadd.f32 %v9922_v22, %v9713_v59  ;;  %v10335_v1 = vrot.slane %v13084_v38, 3 }
 0x618   : > { %13180 = vst [vmem:[%s17342_s26 + $0x60] sm:$0xff] %v13112_v54   ;;  %v9456_v3 = vpop.f32.mrf.mxu0  ;;  %v9687_v36 = vpop.f32.mrf.mxu1  ;;  %v10210_v2 = vadd.f32 1.0, %v13468_v12  ;;  %v10333_v54 = vrot.slane %v13081_v29, 3 }
 0x619   : > { %13471 = vpow2.f32 %v10185_v53  ;;  %v10119_v11 = vadd.f32 %v10090_v57, %v9951_v0  ;;  %v9483_v9 = vadd.f32 %v9456_v3, %v17850_v23  ;;  %v13470_v58 = vpop.eup %13469  ;;  %v10330_v23 = vsel %vm2004_vm5, %v10327_v43, %v10329_v49 }
 0x61a   : > { %13473 = vrcp.f32 %v10210_v2  ;;  %v10245_v46 = vmul.f32 %v13470_v58, %v17948_v61  ;;  %v10336_v2 = vsel %vm2004_vm5, %v10333_v54, %v10335_v1 }
 0x61b   : > { %v10140_v25 = vadd.f32 %v17882_v21, %v10119_v11  ;;  %v9714_v20 = vadd.f32 %v9687_v36, %v9483_v9 }
 0x61c   : > { %v10375_v28 = vadd.f32 %v10330_v23, %v10245_v46 }
 0x61d   : > { %v10158_v27 = vsub.f32 0.0, %v10140_v25 }
 0x61e   : > { %v9925_v42 = vpop.f32.mrf.mxu2 }
 0x61f   : > { %v10093_v24 = vpop.f32.mrf.mxu3  ;;  %v13472_v15 = vpop.eup %13471  ;;  %v10187_v39 = vmul.f32 1.442695, %v10158_v27  ;;  %v9952_v18 = vadd.f32 %v9925_v42, %v9714_v20 }
 0x620   : > { %v9458_v41 = vpop.f32.mrf.mxu0  ;;  %v9689_v26 = vpop.f32.mrf.mxu1  ;;  %v10211_v19 = vadd.f32 1.0, %v13472_v15 }
 0x621   : > { %v13474_v55 = vpop.eup %13473  ;;  %13475 = vpow2.f32 %v10187_v39  ;;  %v10120_v34 = vadd.f32 %v10093_v24, %v9952_v18  ;;  %v9484_v35 = vadd.f32 %v9458_v41, %v17856_v10  ;;  %v18004_v24 = vld [vmem:[%s13653_s11 + $0x88] sm:$0xff]  }
 0x622   : > { %v10246_v52 = vmul.f32 %v13474_v55, %v17959_v17  ;;  %13477 = vrcp.f32 %v10211_v19  ;;  %v13088_v23 = vunpack.c.l.bf16 %v18004_v24 }
 0x623   : > { %v17985_v8 = vadd.f32 %v17882_v21, %v10120_v34  ;;  %v9715_v62 = vadd.f32 %v9689_v26, %v9484_v35  ;;  %v13085_v26 = vunpack.c.h.bf16 %v17988_v51 }
 0x624   : > { %v10376_v61 = vadd.f32 %v10332_v37, %v10246_v52 }
 0x625   : > { %v10159_v43 = vsub.f32 0.0, %v17985_v8 }
 0x626   : > { %v13117_v5 = vpack.c.bf16 %v10376_v61, %v10375_v28  ;;  %v9927_v32 = vpop.f32.mrf.mxu2  ;;  %v10337_v28 = vrot.slane %v13085_v26, 3  ;;  %v10339_v61 = vrot.slane %v13088_v23, 3 }
 0x627   : > { %v10095_v17 = vpop.f32.mrf.mxu3  ;;  %v13476_v33 = vpop.eup %13475  ;;  %v10189_v6 = vmul.f32 1.442695, %v10159_v43  ;;  %v9953_v4 = vadd.f32 %v9927_v32, %v9715_v62 }
 0x628   : > { %13181 = vst [vmem:[%s17342_s26 + $0x68] sm:$0xff] %v13117_v5   ;;  %v9461_v10 = vpop.f32.mrf.mxu0  ;;  %v9692_v63 = vpop.f32.mrf.mxu1  ;;  %v10212_v47 = vadd.f32 1.0, %v13476_v33 }
 0x629   : > { %13479 = vpow2.f32 %v10189_v6  ;;  %v10121_v60 = vadd.f32 %v10095_v17, %v9953_v4  ;;  %v9485_v48 = vadd.f32 %v9461_v10, %v17864_v30  ;;  %v13478_v40 = vpop.eup %13477  ;;  %v10334_v30 = vsel %vm2004_vm5, %v10331_v56, %v10333_v54 }
 0x62a   : > { %13481 = vrcp.f32 %v10212_v47  ;;  %v10247_v31 = vmul.f32 %v13478_v40, %v17968_v50 }
 0x62b   : > { %v10142_v44 = vadd.f32 %v17882_v21, %v10121_v60  ;;  %v9716_v22 = vadd.f32 %v9692_v63, %v9485_v48  ;;  %v10340_v63 = vsel %vm2004_vm5, %v10337_v28, %v10339_v61 }
 0x62c   : > { %v10377_v27 = vadd.f32 %v10334_v30, %v10247_v31 }
 0x62d   : > { %v10160_v59 = vsub.f32 0.0, %v10142_v44 }
 0x62e   : > { %v9930_v57 = vpop.f32.mrf.mxu2 }
 0x62f   : > { %v10098_v12 = vpop.f32.mrf.mxu3  ;;  %v13480_v53 = vpop.eup %13479  ;;  %v10191_v0 = vmul.f32 1.442695, %v10160_v59  ;;  %v9954_v3 = vadd.f32 %v9930_v57, %v9716_v22  ;;  %v13176_v22 = vld [vmem:[%s13653_s11 + $0x90] sm:$0xff]  }
 0x630   : > { %v9463_v36 = vpop.f32.mrf.mxu0  ;;  %v13482_v45 = vpop.eup %13481  ;;  %v10213_v49 = vadd.f32 1.0, %v13480_v53 }
 0x631   : > { %v9694_v7 = vpop.f32.mrf.mxu1  ;;  %v10248_v11 = vmul.f32 %v13482_v45, %v10140_v25  ;;  %13483 = vpow2.f32 %v10191_v0  ;;  %v10122_v9 = vadd.f32 %v10098_v12, %v9954_v3  ;;  %v9486_v58 = vadd.f32 %v9463_v36, %v17867_v16 }
 0x632   : > { %13485 = vrcp.f32 %v10213_v49  ;;  %v13089_v0 = vunpack.c.h.bf16 %v18004_v24 }
 0x633   : > { %v10378_v20 = vadd.f32 %v10336_v2, %v10248_v11  ;;  %v18001_v50 = vadd.f32 %v17882_v21, %v10122_v9  ;;  %v9717_v15 = vadd.f32 %v9694_v7, %v9486_v58 }
 0x634   : > { %v10341_v7 = vrot.slane %v13089_v0, 3 }
 0x635   : > { %v13122_v42 = vpack.c.bf16 %v10378_v20, %v10377_v27  ;;  %v10161_v56 = vsub.f32 0.0, %v18001_v50 }
 0x636   : > { %v9932_v46 = vpop.f32.mrf.mxu2 }
 0x637   : > { %v10100_v25 = vpop.f32.mrf.mxu3  ;;  %v13484_v39 = vpop.eup %13483  ;;  %13182 = vst [vmem:[%s17342_s26 + $0x70] sm:$0xff] %v13122_v42   ;;  %v10193_v18 = vmul.f32 1.442695, %v10161_v56  ;;  %v9955_v41 = vadd.f32 %v9932_v46, %v9717_v15  ;;  %v10342_v42 = vsel %vm2004_vm5, %v10339_v61, %v10341_v7 }
 0x638   : > { %v9466_v16 = vpop.f32.mrf.mxu0  ;;  %v10214_v55 = vadd.f32 1.0, %v13484_v39  ;;  %v13486_v19 = vpop.eup %13485  ;;  %v10273_v39 = vld [vmem:[%s13653_s11 + $0x98] sm:$0x3] }
 0x639   : > { %13487 = vpow2.f32 %v10193_v18  ;;  %v10123_v37 = vadd.f32 %v10100_v25, %v9955_v41  ;;  %v9487_v52 = vadd.f32 %v9466_v16, %v17874_v14  ;;  %v9697_v34 = vpop.f32.mrf.mxu1  ;;  %v10249_v51 = vmul.f32 %v13486_v19, %v17985_v8 }
 0x63a   : > { %13489 = vrcp.f32 %v10214_v55  ;;  %v10338_v14 = vsel %vm2004_vm5, %v10335_v1, %v10337_v28  ;;  %v13093_v41 = vunpack.c.h.bf16 %v13176_v22 }
 0x63b   : > { %v10144_v35 = vadd.f32 %v17882_v21, %v10123_v37  ;;  %v9718_v43 = vadd.f32 %v9697_v34, %v9487_v52  ;;  %v10379_v48 = vadd.f32 %v10338_v14, %v10249_v51 }
 0x63c   : > { %v10345_v55 = vrot.slane %v13093_v41, 3 }
 0x63d   : > { %v10162_v5 = vsub.f32 0.0, %v10144_v35 }
 0x63e   : > { %v9935_v62 = vpop.f32.mrf.mxu2 }
 0x63f   : > { %v10103_v32 = vpop.f32.mrf.mxu3  ;;  %v13488_v17 = vpop.eup %13487  ;;  %v10195_v33 = vmul.f32 1.442695, %v10162_v5  ;;  %v9956_v6 = vadd.f32 %v9935_v62, %v9718_v43 }
 0x640   : > { %v9468_v4 = vpop.f32.mrf.mxu0  ;;  %v13490_v10 = vpop.eup %13489  ;;  %v10215_v60 = vadd.f32 1.0, %v13488_v17 }
 0x641   : > { %v10250_v29 = vmul.f32 %v13490_v10, %v10142_v44  ;;  %13491 = vpow2.f32 %v10195_v33  ;;  %v10124_v47 = vadd.f32 %v10103_v32, %v9956_v6  ;;  %v9488_v38 = vadd.f32 %v9468_v4, %v17876_v13  ;;  %v9699_v54 = vpop.f32.mrf.mxu1 }
 0x642   : > { %13493 = vrcp.f32 %v10215_v60  ;;  %v13092_v13 = vunpack.c.l.bf16 %v13176_v22 }
 0x643   : > { %v10380_v40 = vadd.f32 %v10340_v63, %v10250_v29  ;;  %v10145_v8 = vadd.f32 %v17882_v21, %v10124_v47  ;;  %v9719_v12 = vadd.f32 %v9699_v54, %v9488_v38 }
 0x644   : > { %v10343_v11 = vrot.slane %v13092_v13, 3 }
 0x645   : > { %v13127_v59 = vpack.c.bf16 %v10380_v40, %v10379_v48  ;;  %v10163_v57 = vsub.f32 0.0, %v10145_v8 }
 0x646   : > { %v9937_v1 = vpop.f32.mrf.mxu2  ;;  %v10344_v24 = vsel %vm2004_vm5, %v10341_v7, %v10343_v11  ;;  %v10346_v34 = vsel %vm2004_vm5, %v10343_v11, %v10345_v55 }
 0x647   : > { %v13492_v53 = vpop.eup %13491  ;;  %13183 = vst [vmem:[%s17342_s26 + $0x78] sm:$0xff] %v13127_v59   ;;  %v10197_v44 = vmul.f32 1.442695, %v10163_v57  ;;  %v9957_v31 = vadd.f32 %v9937_v1, %v9719_v12  ;;  %v10105_v36 = vpop.f32.mrf.mxu3 }
 0x648   : > { %v10216_v3 = vadd.f32 1.0, %v13492_v53  ;;  %v13494_v2 = vpop.eup %13493 }
 0x649   : > { %13495 = vpow2.f32 %v10197_v44  ;;  %v10125_v45 = vadd.f32 %v10105_v36, %v9957_v31  ;;  %v10251_v49 = vmul.f32 %v13494_v2, %v18001_v50  ;;  %v10292_v50 = vunpack.c.l.bf16 %v10273_v39 }
 0x64a   : > { %13497 = vrcp.f32 %v10216_v3 }
 0x64b   : > { %v10146_v30 = vadd.f32 %v17882_v21, %v10125_v45  ;;  %v10381_v46 = vadd.f32 %v10342_v42, %v10251_v49  ;;  %v10347_v23 = vrot.slane %v10292_v50, 3 }
 0x64d   : > { %v10164_v9 = vsub.f32 0.0, %v10146_v30 }
 0x64f   : > { %v13496_v58 = vpop.eup %13495  ;;  %v10199_v27 = vmul.f32 1.442695, %v10164_v9 }
 0x650   : > { %v13498_v20 = vpop.eup %13497  ;;  %v10217_v15 = vadd.f32 1.0, %v13496_v58 }
 0x651   : > { %v10252_v56 = vmul.f32 %v13498_v20, %v10144_v35  ;;  %13499 = vpow2.f32 %v10199_v27  ;;  %v10348_v35 = vsel %vm2004_vm5, %v10345_v55, %v10347_v23 }
 0x652   : > { %13501 = vrcp.f32 %v10217_v15 }
 0x653   : > { %v10382_v21 = vadd.f32 %v10344_v24, %v10252_v56 }
 0x655   : > { %v13132_v25 = vpack.c.bf16 %v10382_v21, %v10381_v46 }
 0x657   : > { %v13500_v18 = vpop.eup %13499  ;;  %13184 = vst [vmem:[%s17342_s26 + $0x80] sm:$0xff] %v13132_v25  }
 0x658   : > { %v10218_v16 = vadd.f32 1.0, %v13500_v18  ;;  %v13502_v26 = vpop.eup %13501 }
 0x659   : > { %v10253_v37 = vmul.f32 %v13502_v26, %v10145_v8 }
 0x65a   : > { %13503 = vrcp.f32 %v10218_v16 }
 0x65b   : > { %v10383_v28 = vadd.f32 %v10346_v34, %v10253_v37 }
 0x660   : > { %v13504_v52 = vpop.eup %13503 }
 0x661   : > { %v10254_v19 = vmul.f32 %v13504_v52, %v10146_v30 }
 0x663   : > { %v10384_v61 = vadd.f32 %v10348_v35, %v10254_v19 }
 0x665   : > { %v13137_v5 = vpack.c.bf16 %v10384_v61, %v10383_v28 }
 0x667   : > { %13185 = vst [vmem:[%s17342_s26 + $0x88] sm:$0xff] %v13137_v5  }
 0x668 PF: > { %s15_s20 = sadd.s32 1, %s13548_s20   ;;  %s18330_s18 = smov %s13544_s19 }
 0x669   : > { %p12_p5 = scmp.ge.s32.totalorder %s15_s20, 4   ;;  %s18331_s19 = smov %s18333_s21 }
 0x66b   :  { %14 = sbr.rel (!%p12_p5) target bundleno = 2 (0x2), region = 96 }

</bundles_post_ra>
